<compile_context>
chip_gen: v5e
topology: v5e:2x2
jax: 0.10.0
libtpu: 0.0.40
codegen_flags: <defaults>
</compile_context>

<pallas_src>
import numpy as np
import jax
import jax.numpy as jnp
from jax.experimental import pallas as pl
from jax.experimental.pallas import tpu as pltpu


def get_out_size(in_size, padding, kernel_size, stride):
    return int((in_size + 2 * padding - kernel_size) / stride + 1)


def conv2d_forward(x, K, kernel_size, stride, padding, *, use_bf16=False,
                   target_block_bytes=2 << 20, max_block_bytes=12 << 20):
    """Reproduces Conv2d.forward from the PyTorch reference (including its quirks)."""
    assert padding > 0, "reference code only pads correctly for padding > 0"
    B, Cin, H, W = x.shape
    assert H == W, "reference code assumes square spatial input"
    k = int(kernel_size)
    s = int(stride)
    assert s >= 1
    Cout = int(K.shape[-1])
    out_size = get_out_size(H, padding, k, s)
    xp = H + 2 * padding

    # Output positions actually visited by the reference loop: range(0, xp - k, s).
    L = len(range(0, xp - k, s))
    if L <= 0:
        return jnp.zeros((B, Cout, out_size, out_size), jnp.float32)

    compute_dtype = jnp.bfloat16 if use_bf16 else jnp.float32
    itemsize = jnp.dtype(compute_dtype).itemsize

    # --- pad once (semantically required), then phase-decompose for the stride --------
    # x_ph[b, (rh*s+rw)*Cin + c, q, r] == x_padded[b, c, q*s + rh, r*s + rw], so every
    # in-kernel window access is a unit-stride static slice.  Total bytes == x_padded:
    # no k^2 amplification and no padded full-array rebuilds.
    x_padded = jnp.pad(x.astype(jnp.float32),
                       ((0, 0), (0, 0), (padding, padding), (padding, padding)))
    q_extra = (k - 1) // s
    Hq = L + q_extra
    target = s * Hq
    if target > xp:
        x_padded = jnp.pad(x_padded,
                           ((0, 0), (0, 0), (0, target - xp), (0, target - xp)))
    x_ph = x_padded[:, :, :target, :target]
    x_ph = x_ph.reshape(B, Cin, Hq, s, Hq, s)
    x_ph = jnp.transpose(x_ph, (0, 3, 5, 1, 2, 4))            # (B, s, s, Cin, Hq, Hq)
    x_ph = x_ph.reshape(B, s * s * Cin, Hq, Hq).astype(compute_dtype)

    # K.view(-1, Cout): the quirky flat weight, indexed by the patch's (cin, kh, kw)
    # flat index.  Tiny -> lives in SMEM and is read as f32 scalars.
    Kflat = K.reshape(k * k * Cin, Cout).astype(jnp.float32)

    # --- choose the batch-block size NB ------------------------------------------------
    in_img = s * s * Cin * Hq * Hq * itemsize
    out_img = Cout * out_size * out_size * 4
    per_img = in_img + out_img
    cap = max(1, B // 2)                 # keep >= 2 grid steps (v7x megacore sharding)
    NB = 1
    for nb in range(1, cap + 1):
        if B % nb:
            continue
        if nb * per_img <= max_block_bytes:
            NB = nb
            if nb * per_img >= target_block_bytes:
                break
        else:
            break
    grid = (B // NB,)

    def kernel(w_ref, x_ref, o_ref):
        # Reference quirk: the untouched last output row/col stay zero.
        if L < out_size:
            o_ref[...] = jnp.zeros_like(o_ref)
        for nb in range(NB):
            accs = [jnp.zeros((L, L), jnp.float32) for _ in range(Cout)]
            p = 0
            for c in range(Cin):
                for kh in range(k):
                    qh, rh = kh // s, kh % s
                    for kw in range(k):
                        qw, rw = kw // s, kw % s
                        ch = (rh * s + rw) * Cin + c
                        win = x_ref[nb, ch, qh:qh + L, qw:qw + L].astype(jnp.float32)
                        for d in range(Cout):
                            accs[d] = accs[d] + w_ref[p, d] * win
                        p += 1
            for d in range(Cout):
                o_ref[nb, d, :L, :L] = accs[d]

    # Generation-safe VMEM budget: ~2x headroom over the double-buffered blocks, capped
    # at 48 MiB (fits v7x's 64 MiB/TC; trivially fine on v5e/v6e's 128 MiB).
    vmem_limit = int(min(48 << 20, max(16 << 20, 4 * NB * per_img + (2 << 20))))

    out = pl.pallas_call(
        kernel,
        out_shape=jax.ShapeDtypeStruct((B, Cout, out_size, out_size), jnp.float32),
        grid=grid,
        in_specs=[
            pl.BlockSpec(memory_space=pltpu.MemorySpace.SMEM),          # Kflat (scalars)
            pl.BlockSpec((NB, s * s * Cin, Hq, Hq), lambda i: (i, 0, 0, 0)),
        ],
        out_specs=pl.BlockSpec((NB, Cout, out_size, out_size), lambda i: (i, 0, 0, 0)),
        compiler_params=pltpu.CompilerParams(
            dimension_semantics=("parallel",),
            vmem_limit_bytes=vmem_limit),
        cost_estimate=pl.CostEstimate(
            flops=2 * B * Cout * L * L * (Cin * k * k),
            transcendentals=0,
            bytes_accessed=int(x_ph.size) * itemsize + int(Kflat.size) * 4
                           + B * Cout * out_size * out_size * 4),
    )(Kflat, x_ph)
    return out


def _reference_numpy(x, K, kernel_size, stride, padding):
    """Direct numpy transcription of the PyTorch forward, for validation."""
    x = np.asarray(x, np.float32)
    K = np.asarray(K, np.float32)
    B, Cin, H, _ = x.shape
    Cout = K.shape[-1]
    out_size = get_out_size(H, padding, kernel_size, stride)
    out = np.zeros((B, Cout, out_size, out_size), np.float32)
    xp = H + 2 * padding
    x_padded = np.zeros((B, Cin, xp, xp), np.float32)
    x_padded[:, :, padding:-padding, padding:-padding] = x
    Kf = K.reshape(-1, Cout)
    i_out = 0
    for i in range(0, xp - kernel_size, stride):
        j_out = 0
        for j in range(0, xp - kernel_size, stride):
            x_part = x_padded[:, :, i:i + kernel_size, j:j + kernel_size].reshape(B, -1)
            out[:, :, i_out, j_out] = x_part @ Kf
            j_out += 1
        i_out += 1
    return out


if __name__ == "__main__":
    B, Cin, Cout = 2, 4, 8
    H = 16
    kernel_size, padding = 3, 1

    key = jax.random.PRNGKey(0)
    kx, kk = jax.random.split(key)
    x = jax.random.normal(kx, (B, Cin, H, H), jnp.float32)

    # Deterministic xavier-uniform-style init for K of shape (k, k, Cin, Cout)
    fan = kernel_size * Cin * Cout
    bound = float(np.sqrt(6.0 / (fan + fan)))
    K = jax.random.uniform(kk, (kernel_size, kernel_size, Cin, Cout),
                           jnp.float32, minval=-bound, maxval=bound)

    # stride=1 exercises the "zero last row/col" quirk; stride=2 exercises the phase path.
    for stride in (1, 2):
        out = conv2d_forward(x, K, kernel_size, stride, padding, use_bf16=False)
        out = jax.block_until_ready(out)
        ref = _reference_numpy(x, K, kernel_size, stride, padding)
        np.testing.assert_allclose(np.asarray(out), ref, rtol=1e-4, atol=1e-4)

    print("KERNEL_OK")
</pallas_src>

<mosaic_0001>
module attributes {stable_mosaic.version = 11 : i64} {
  func.func @kernel(%arg0: i32, %arg1: memref<36x8xf32, #tpu.memory_space<smem>>, %arg2: memref<1x4x17x17xf32, #tpu.memory_space<vmem>>, %arg3: memref<1x8x16x16xf32, #tpu.memory_space<vmem>>) attributes {dimension_semantics = [#tpu.dimension_semantics<parallel>], iteration_bounds = array<i64: 2>, scalar_prefetch = 0 : i64, scratch_operands = 0 : i64, tpu.core_type = #tpu.core_type<tc>, window_params = [{transform_indices = @transform_0, window_bounds = array<i64: 36, 8>}, {transform_indices = @transform_1, window_bounds = array<i64: 1, 4, 17, 17>}, {transform_indices = @transform_2, window_bounds = array<i64: 1, 8, 16, 16>}]} {
    %cst = arith.constant 0.000000e+00 : f32
    %0 = vector.broadcast %cst : f32 to vector<1x8x16x16xf32>
    %c0 = arith.constant 0 : index
    %c0_0 = arith.constant 0 : index
    %c0_1 = arith.constant 0 : index
    %c0_2 = arith.constant 0 : index
    %1 = vector.load %arg3[%c0, %c0_0, %c0_1, %c0_2] : memref<1x8x16x16xf32, #tpu.memory_space<vmem>>, vector<1x8x16x16xf32>
    tpu.vector_store %arg3[%c0, %c0_0, %c0_1, %c0_2], %0 {strides = array<i32>} : memref<1x8x16x16xf32, #tpu.memory_space<vmem>>, vector<1x8x16x16xf32>,
    %cst_3 = arith.constant 0.000000e+00 : f32
    %2 = vector.broadcast %cst_3 : f32 to vector<15x15xf32>
    %cst_4 = arith.constant 0.000000e+00 : f32
    %3 = vector.broadcast %cst_4 : f32 to vector<15x15xf32>
    %cst_5 = arith.constant 0.000000e+00 : f32
    %4 = vector.broadcast %cst_5 : f32 to vector<15x15xf32>
    %cst_6 = arith.constant 0.000000e+00 : f32
    %5 = vector.broadcast %cst_6 : f32 to vector<15x15xf32>
    %cst_7 = arith.constant 0.000000e+00 : f32
    %6 = vector.broadcast %cst_7 : f32 to vector<15x15xf32>
    %cst_8 = arith.constant 0.000000e+00 : f32
    %7 = vector.broadcast %cst_8 : f32 to vector<15x15xf32>
    %cst_9 = arith.constant 0.000000e+00 : f32
    %8 = vector.broadcast %cst_9 : f32 to vector<15x15xf32>
    %cst_10 = arith.constant 0.000000e+00 : f32
    %9 = vector.broadcast %cst_10 : f32 to vector<15x15xf32>
    %c0_11 = arith.constant 0 : index
    %c0_12 = arith.constant 0 : index
    %c0_13 = arith.constant 0 : index
    %c0_14 = arith.constant 0 : index
    %10 = vector.load %arg2[%c0_11, %c0_12, %c0_13, %c0_14] : memref<1x4x17x17xf32, #tpu.memory_space<vmem>>, vector<1x1x15x15xf32>
    %11 = vector.shape_cast %10 : vector<1x1x15x15xf32> to vector<15x15xf32>
    %c0_15 = arith.constant 0 : index
    %c0_16 = arith.constant 0 : index
    %12 = memref.load %arg1[%c0_15, %c0_16] : memref<36x8xf32, #tpu.memory_space<smem>>
    %13 = vector.broadcast %12 : f32 to vector<15x15xf32>
    %14 = arith.mulf %13, %11 : vector<15x15xf32>
    %15 = arith.addf %2, %14 : vector<15x15xf32>
    %c0_17 = arith.constant 0 : index
    %c1 = arith.constant 1 : index
    %16 = memref.load %arg1[%c0_17, %c1] : memref<36x8xf32, #tpu.memory_space<smem>>
    %17 = vector.broadcast %16 : f32 to vector<15x15xf32>
    %18 = arith.mulf %17, %11 : vector<15x15xf32>
    %19 = arith.addf %3, %18 : vector<15x15xf32>
    %c0_18 = arith.constant 0 : index
    %c2 = arith.constant 2 : index
    %20 = memref.load %arg1[%c0_18, %c2] : memref<36x8xf32, #tpu.memory_space<smem>>
    %21 = vector.broadcast %20 : f32 to vector<15x15xf32>
    %22 = arith.mulf %21, %11 : vector<15x15xf32>
    %23 = arith.addf %4, %22 : vector<15x15xf32>
    %c0_19 = arith.constant 0 : index
    %c3 = arith.constant 3 : index
    %24 = memref.load %arg1[%c0_19, %c3] : memref<36x8xf32, #tpu.memory_space<smem>>
    %25 = vector.broadcast %24 : f32 to vector<15x15xf32>
    %26 = arith.mulf %25, %11 : vector<15x15xf32>
    %27 = arith.addf %5, %26 : vector<15x15xf32>
    %c0_20 = arith.constant 0 : index
    %c4 = arith.constant 4 : index
    %28 = memref.load %arg1[%c0_20, %c4] : memref<36x8xf32, #tpu.memory_space<smem>>
    %29 = vector.broadcast %28 : f32 to vector<15x15xf32>
    %30 = arith.mulf %29, %11 : vector<15x15xf32>
    %31 = arith.addf %6, %30 : vector<15x15xf32>
    %c0_21 = arith.constant 0 : index
    %c5 = arith.constant 5 : index
    %32 = memref.load %arg1[%c0_21, %c5] : memref<36x8xf32, #tpu.memory_space<smem>>
    %33 = vector.broadcast %32 : f32 to vector<15x15xf32>
    %34 = arith.mulf %33, %11 : vector<15x15xf32>
    %35 = arith.addf %7, %34 : vector<15x15xf32>
    %c0_22 = arith.constant 0 : index
    %c6 = arith.constant 6 : index
    %36 = memref.load %arg1[%c0_22, %c6] : memref<36x8xf32, #tpu.memory_space<smem>>
    %37 = vector.broadcast %36 : f32 to vector<15x15xf32>
    %38 = arith.mulf %37, %11 : vector<15x15xf32>
    %39 = arith.addf %8, %38 : vector<15x15xf32>
    %c0_23 = arith.constant 0 : index
    %c7 = arith.constant 7 : index
    %40 = memref.load %arg1[%c0_23, %c7] : memref<36x8xf32, #tpu.memory_space<smem>>
    %41 = vector.broadcast %40 : f32 to vector<15x15xf32>
    %42 = arith.mulf %41, %11 : vector<15x15xf32>
    %43 = arith.addf %9, %42 : vector<15x15xf32>
    %c0_24 = arith.constant 0 : index
    %c0_25 = arith.constant 0 : index
    %c0_26 = arith.constant 0 : index
    %c1_27 = arith.constant 1 : index
    %44 = vector.load %arg2[%c0_24, %c0_25, %c0_26, %c1_27] : memref<1x4x17x17xf32, #tpu.memory_space<vmem>>, vector<1x1x15x15xf32>
    %45 = vector.shape_cast %44 : vector<1x1x15x15xf32> to vector<15x15xf32>
    %c1_28 = arith.constant 1 : index
    %c0_29 = arith.constant 0 : index
    %46 = memref.load %arg1[%c1_28, %c0_29] : memref<36x8xf32, #tpu.memory_space<smem>>
    %47 = vector.broadcast %46 : f32 to vector<15x15xf32>
    %48 = arith.mulf %47, %45 : vector<15x15xf32>
    %49 = arith.addf %15, %48 : vector<15x15xf32>
    %c1_30 = arith.constant 1 : index
    %c1_31 = arith.constant 1 : index
    %50 = memref.load %arg1[%c1_30, %c1_31] : memref<36x8xf32, #tpu.memory_space<smem>>
    %51 = vector.broadcast %50 : f32 to vector<15x15xf32>
    %52 = arith.mulf %51, %45 : vector<15x15xf32>
    %53 = arith.addf %19, %52 : vector<15x15xf32>
    %c1_32 = arith.constant 1 : index
    %c2_33 = arith.constant 2 : index
    %54 = memref.load %arg1[%c1_32, %c2_33] : memref<36x8xf32, #tpu.memory_space<smem>>
    %55 = vector.broadcast %54 : f32 to vector<15x15xf32>
    %56 = arith.mulf %55, %45 : vector<15x15xf32>
    %57 = arith.addf %23, %56 : vector<15x15xf32>
    %c1_34 = arith.constant 1 : index
    %c3_35 = arith.constant 3 : index
    %58 = memref.load %arg1[%c1_34, %c3_35] : memref<36x8xf32, #tpu.memory_space<smem>>
    %59 = vector.broadcast %58 : f32 to vector<15x15xf32>
    %60 = arith.mulf %59, %45 : vector<15x15xf32>
    %61 = arith.addf %27, %60 : vector<15x15xf32>
    %c1_36 = arith.constant 1 : index
    %c4_37 = arith.constant 4 : index
    %62 = memref.load %arg1[%c1_36, %c4_37] : memref<36x8xf32, #tpu.memory_space<smem>>
    %63 = vector.broadcast %62 : f32 to vector<15x15xf32>
    %64 = arith.mulf %63, %45 : vector<15x15xf32>
    %65 = arith.addf %31, %64 : vector<15x15xf32>
    %c1_38 = arith.constant 1 : index
    %c5_39 = arith.constant 5 : index
    %66 = memref.load %arg1[%c1_38, %c5_39] : memref<36x8xf32, #tpu.memory_space<smem>>
    %67 = vector.broadcast %66 : f32 to vector<15x15xf32>
    %68 = arith.mulf %67, %45 : vector<15x15xf32>
    %69 = arith.addf %35, %68 : vector<15x15xf32>
    %c1_40 = arith.constant 1 : index
    %c6_41 = arith.constant 6 : index
    %70 = memref.load %arg1[%c1_40, %c6_41] : memref<36x8xf32, #tpu.memory_space<smem>>
    %71 = vector.broadcast %70 : f32 to vector<15x15xf32>
    %72 = arith.mulf %71, %45 : vector<15x15xf32>
    %73 = arith.addf %39, %72 : vector<15x15xf32>
    %c1_42 = arith.constant 1 : index
    %c7_43 = arith.constant 7 : index
    %74 = memref.load %arg1[%c1_42, %c7_43] : memref<36x8xf32, #tpu.memory_space<smem>>
    %75 = vector.broadcast %74 : f32 to vector<15x15xf32>
    %76 = arith.mulf %75, %45 : vector<15x15xf32>
    %77 = arith.addf %43, %76 : vector<15x15xf32>
    %c0_44 = arith.constant 0 : index
    %c0_45 = arith.constant 0 : index
    %c0_46 = arith.constant 0 : index
    %c2_47 = arith.constant 2 : index
    %78 = vector.load %arg2[%c0_44, %c0_45, %c0_46, %c2_47] : memref<1x4x17x17xf32, #tpu.memory_space<vmem>>, vector<1x1x15x15xf32>
    %79 = vector.shape_cast %78 : vector<1x1x15x15xf32> to vector<15x15xf32>
    %c2_48 = arith.constant 2 : index
    %c0_49 = arith.constant 0 : index
    %80 = memref.load %arg1[%c2_48, %c0_49] : memref<36x8xf32, #tpu.memory_space<smem>>
    %81 = vector.broadcast %80 : f32 to vector<15x15xf32>
    %82 = arith.mulf %81, %79 : vector<15x15xf32>
    %83 = arith.addf %49, %82 : vector<15x15xf32>
    %c2_50 = arith.constant 2 : index
    %c1_51 = arith.constant 1 : index
    %84 = memref.load %arg1[%c2_50, %c1_51] : memref<36x8xf32, #tpu.memory_space<smem>>
    %85 = vector.broadcast %84 : f32 to vector<15x15xf32>
    %86 = arith.mulf %85, %79 : vector<15x15xf32>
    %87 = arith.addf %53, %86 : vector<15x15xf32>
    %c2_52 = arith.constant 2 : index
    %c2_53 = arith.constant 2 : index
    %88 = memref.load %arg1[%c2_52, %c2_53] : memref<36x8xf32, #tpu.memory_space<smem>>
    %89 = vector.broadcast %88 : f32 to vector<15x15xf32>
    %90 = arith.mulf %89, %79 : vector<15x15xf32>
    %91 = arith.addf %57, %90 : vector<15x15xf32>
    %c2_54 = arith.constant 2 : index
    %c3_55 = arith.constant 3 : index
    %92 = memref.load %arg1[%c2_54, %c3_55] : memref<36x8xf32, #tpu.memory_space<smem>>
    %93 = vector.broadcast %92 : f32 to vector<15x15xf32>
    %94 = arith.mulf %93, %79 : vector<15x15xf32>
    %95 = arith.addf %61, %94 : vector<15x15xf32>
    %c2_56 = arith.constant 2 : index
    %c4_57 = arith.constant 4 : index
    %96 = memref.load %arg1[%c2_56, %c4_57] : memref<36x8xf32, #tpu.memory_space<smem>>
    %97 = vector.broadcast %96 : f32 to vector<15x15xf32>
    %98 = arith.mulf %97, %79 : vector<15x15xf32>
    %99 = arith.addf %65, %98 : vector<15x15xf32>
    %c2_58 = arith.constant 2 : index
    %c5_59 = arith.constant 5 : index
    %100 = memref.load %arg1[%c2_58, %c5_59] : memref<36x8xf32, #tpu.memory_space<smem>>
    %101 = vector.broadcast %100 : f32 to vector<15x15xf32>
    %102 = arith.mulf %101, %79 : vector<15x15xf32>
    %103 = arith.addf %69, %102 : vector<15x15xf32>
    %c2_60 = arith.constant 2 : index
    %c6_61 = arith.constant 6 : index
    %104 = memref.load %arg1[%c2_60, %c6_61] : memref<36x8xf32, #tpu.memory_space<smem>>
    %105 = vector.broadcast %104 : f32 to vector<15x15xf32>
    %106 = arith.mulf %105, %79 : vector<15x15xf32>
    %107 = arith.addf %73, %106 : vector<15x15xf32>
    %c2_62 = arith.constant 2 : index
    %c7_63 = arith.constant 7 : index
    %108 = memref.load %arg1[%c2_62, %c7_63] : memref<36x8xf32, #tpu.memory_space<smem>>
    %109 = vector.broadcast %108 : f32 to vector<15x15xf32>
    %110 = arith.mulf %109, %79 : vector<15x15xf32>
    %111 = arith.addf %77, %110 : vector<15x15xf32>
    %c0_64 = arith.constant 0 : index
    %c0_65 = arith.constant 0 : index
    %c1_66 = arith.constant 1 : index
    %c0_67 = arith.constant 0 : index
    %112 = vector.load %arg2[%c0_64, %c0_65, %c1_66, %c0_67] : memref<1x4x17x17xf32, #tpu.memory_space<vmem>>, vector<1x1x15x15xf32>
    %113 = vector.shape_cast %112 : vector<1x1x15x15xf32> to vector<15x15xf32>
    %c3_68 = arith.constant 3 : index
    %c0_69 = arith.constant 0 : index
    %114 = memref.load %arg1[%c3_68, %c0_69] : memref<36x8xf32, #tpu.memory_space<smem>>
    %115 = vector.broadcast %114 : f32 to vector<15x15xf32>
    %116 = arith.mulf %115, %113 : vector<15x15xf32>
    %117 = arith.addf %83, %116 : vector<15x15xf32>
    %c3_70 = arith.constant 3 : index
    %c1_71 = arith.constant 1 : index
    %118 = memref.load %arg1[%c3_70, %c1_71] : memref<36x8xf32, #tpu.memory_space<smem>>
    %119 = vector.broadcast %118 : f32 to vector<15x15xf32>
    %120 = arith.mulf %119, %113 : vector<15x15xf32>
    %121 = arith.addf %87, %120 : vector<15x15xf32>
    %c3_72 = arith.constant 3 : index
    %c2_73 = arith.constant 2 : index
    %122 = memref.load %arg1[%c3_72, %c2_73] : memref<36x8xf32, #tpu.memory_space<smem>>
    %123 = vector.broadcast %122 : f32 to vector<15x15xf32>
    %124 = arith.mulf %123, %113 : vector<15x15xf32>
    %125 = arith.addf %91, %124 : vector<15x15xf32>
    %c3_74 = arith.constant 3 : index
    %c3_75 = arith.constant 3 : index
    %126 = memref.load %arg1[%c3_74, %c3_75] : memref<36x8xf32, #tpu.memory_space<smem>>
    %127 = vector.broadcast %126 : f32 to vector<15x15xf32>
    %128 = arith.mulf %127, %113 : vector<15x15xf32>
    %129 = arith.addf %95, %128 : vector<15x15xf32>
    %c3_76 = arith.constant 3 : index
    %c4_77 = arith.constant 4 : index
    %130 = memref.load %arg1[%c3_76, %c4_77] : memref<36x8xf32, #tpu.memory_space<smem>>
    %131 = vector.broadcast %130 : f32 to vector<15x15xf32>
    %132 = arith.mulf %131, %113 : vector<15x15xf32>
    %133 = arith.addf %99, %132 : vector<15x15xf32>
    %c3_78 = arith.constant 3 : index
    %c5_79 = arith.constant 5 : index
    %134 = memref.load %arg1[%c3_78, %c5_79] : memref<36x8xf32, #tpu.memory_space<smem>>
    %135 = vector.broadcast %134 : f32 to vector<15x15xf32>
    %136 = arith.mulf %135, %113 : vector<15x15xf32>
    %137 = arith.addf %103, %136 : vector<15x15xf32>
    %c3_80 = arith.constant 3 : index
    %c6_81 = arith.constant 6 : index
    %138 = memref.load %arg1[%c3_80, %c6_81] : memref<36x8xf32, #tpu.memory_space<smem>>
    %139 = vector.broadcast %138 : f32 to vector<15x15xf32>
    %140 = arith.mulf %139, %113 : vector<15x15xf32>
    %141 = arith.addf %107, %140 : vector<15x15xf32>
    %c3_82 = arith.constant 3 : index
    %c7_83 = arith.constant 7 : index
    %142 = memref.load %arg1[%c3_82, %c7_83] : memref<36x8xf32, #tpu.memory_space<smem>>
    %143 = vector.broadcast %142 : f32 to vector<15x15xf32>
    %144 = arith.mulf %143, %113 : vector<15x15xf32>
    %145 = arith.addf %111, %144 : vector<15x15xf32>
    %c0_84 = arith.constant 0 : index
    %c0_85 = arith.constant 0 : index
    %c1_86 = arith.constant 1 : index
    %c1_87 = arith.constant 1 : index
    %146 = vector.load %arg2[%c0_84, %c0_85, %c1_86, %c1_87] : memref<1x4x17x17xf32, #tpu.memory_space<vmem>>, vector<1x1x15x15xf32>
    %147 = vector.shape_cast %146 : vector<1x1x15x15xf32> to vector<15x15xf32>
    %c4_88 = arith.constant 4 : index
    %c0_89 = arith.constant 0 : index
    %148 = memref.load %arg1[%c4_88, %c0_89] : memref<36x8xf32, #tpu.memory_space<smem>>
    %149 = vector.broadcast %148 : f32 to vector<15x15xf32>
    %150 = arith.mulf %149, %147 : vector<15x15xf32>
    %151 = arith.addf %117, %150 : vector<15x15xf32>
    %c4_90 = arith.constant 4 : index
    %c1_91 = arith.constant 1 : index
    %152 = memref.load %arg1[%c4_90, %c1_91] : memref<36x8xf32, #tpu.memory_space<smem>>
    %153 = vector.broadcast %152 : f32 to vector<15x15xf32>
    %154 = arith.mulf %153, %147 : vector<15x15xf32>
    %155 = arith.addf %121, %154 : vector<15x15xf32>
    %c4_92 = arith.constant 4 : index
    %c2_93 = arith.constant 2 : index
    %156 = memref.load %arg1[%c4_92, %c2_93] : memref<36x8xf32, #tpu.memory_space<smem>>
    %157 = vector.broadcast %156 : f32 to vector<15x15xf32>
    %158 = arith.mulf %157, %147 : vector<15x15xf32>
    %159 = arith.addf %125, %158 : vector<15x15xf32>
    %c4_94 = arith.constant 4 : index
    %c3_95 = arith.constant 3 : index
    %160 = memref.load %arg1[%c4_94, %c3_95] : memref<36x8xf32, #tpu.memory_space<smem>>
    %161 = vector.broadcast %160 : f32 to vector<15x15xf32>
    %162 = arith.mulf %161, %147 : vector<15x15xf32>
    %163 = arith.addf %129, %162 : vector<15x15xf32>
    %c4_96 = arith.constant 4 : index
    %c4_97 = arith.constant 4 : index
    %164 = memref.load %arg1[%c4_96, %c4_97] : memref<36x8xf32, #tpu.memory_space<smem>>
    %165 = vector.broadcast %164 : f32 to vector<15x15xf32>
    %166 = arith.mulf %165, %147 : vector<15x15xf32>
    %167 = arith.addf %133, %166 : vector<15x15xf32>
    %c4_98 = arith.constant 4 : index
    %c5_99 = arith.constant 5 : index
    %168 = memref.load %arg1[%c4_98, %c5_99] : memref<36x8xf32, #tpu.memory_space<smem>>
    %169 = vector.broadcast %168 : f32 to vector<15x15xf32>
    %170 = arith.mulf %169, %147 : vector<15x15xf32>
    %171 = arith.addf %137, %170 : vector<15x15xf32>
    %c4_100 = arith.constant 4 : index
    %c6_101 = arith.constant 6 : index
    %172 = memref.load %arg1[%c4_100, %c6_101] : memref<36x8xf32, #tpu.memory_space<smem>>
    %173 = vector.broadcast %172 : f32 to vector<15x15xf32>
    %174 = arith.mulf %173, %147 : vector<15x15xf32>
    %175 = arith.addf %141, %174 : vector<15x15xf32>
    %c4_102 = arith.constant 4 : index
    %c7_103 = arith.constant 7 : index
    %176 = memref.load %arg1[%c4_102, %c7_103] : memref<36x8xf32, #tpu.memory_space<smem>>
    %177 = vector.broadcast %176 : f32 to vector<15x15xf32>
    %178 = arith.mulf %177, %147 : vector<15x15xf32>
    %179 = arith.addf %145, %178 : vector<15x15xf32>
    %c0_104 = arith.constant 0 : index
    %c0_105 = arith.constant 0 : index
    %c1_106 = arith.constant 1 : index
    %c2_107 = arith.constant 2 : index
    %180 = vector.load %arg2[%c0_104, %c0_105, %c1_106, %c2_107] : memref<1x4x17x17xf32, #tpu.memory_space<vmem>>, vector<1x1x15x15xf32>
    %181 = vector.shape_cast %180 : vector<1x1x15x15xf32> to vector<15x15xf32>
    %c5_108 = arith.constant 5 : index
    %c0_109 = arith.constant 0 : index
    %182 = memref.load %arg1[%c5_108, %c0_109] : memref<36x8xf32, #tpu.memory_space<smem>>
    %183 = vector.broadcast %182 : f32 to vector<15x15xf32>
    %184 = arith.mulf %183, %181 : vector<15x15xf32>
    %185 = arith.addf %151, %184 : vector<15x15xf32>
    %c5_110 = arith.constant 5 : index
    %c1_111 = arith.constant 1 : index
    %186 = memref.load %arg1[%c5_110, %c1_111] : memref<36x8xf32, #tpu.memory_space<smem>>
    %187 = vector.broadcast %186 : f32 to vector<15x15xf32>
    %188 = arith.mulf %187, %181 : vector<15x15xf32>
    %189 = arith.addf %155, %188 : vector<15x15xf32>
    %c5_112 = arith.constant 5 : index
    %c2_113 = arith.constant 2 : index
    %190 = memref.load %arg1[%c5_112, %c2_113] : memref<36x8xf32, #tpu.memory_space<smem>>
    %191 = vector.broadcast %190 : f32 to vector<15x15xf32>
    %192 = arith.mulf %191, %181 : vector<15x15xf32>
    %193 = arith.addf %159, %192 : vector<15x15xf32>
    %c5_114 = arith.constant 5 : index
    %c3_115 = arith.constant 3 : index
    %194 = memref.load %arg1[%c5_114, %c3_115] : memref<36x8xf32, #tpu.memory_space<smem>>
    %195 = vector.broadcast %194 : f32 to vector<15x15xf32>
    %196 = arith.mulf %195, %181 : vector<15x15xf32>
    %197 = arith.addf %163, %196 : vector<15x15xf32>
    %c5_116 = arith.constant 5 : index
    %c4_117 = arith.constant 4 : index
    %198 = memref.load %arg1[%c5_116, %c4_117] : memref<36x8xf32, #tpu.memory_space<smem>>
    %199 = vector.broadcast %198 : f32 to vector<15x15xf32>
    %200 = arith.mulf %199, %181 : vector<15x15xf32>
    %201 = arith.addf %167, %200 : vector<15x15xf32>
    %c5_118 = arith.constant 5 : index
    %c5_119 = arith.constant 5 : index
    %202 = memref.load %arg1[%c5_118, %c5_119] : memref<36x8xf32, #tpu.memory_space<smem>>
    %203 = vector.broadcast %202 : f32 to vector<15x15xf32>
    %204 = arith.mulf %203, %181 : vector<15x15xf32>
    %205 = arith.addf %171, %204 : vector<15x15xf32>
    %c5_120 = arith.constant 5 : index
    %c6_121 = arith.constant 6 : index
    %206 = memref.load %arg1[%c5_120, %c6_121] : memref<36x8xf32, #tpu.memory_space<smem>>
    %207 = vector.broadcast %206 : f32 to vector<15x15xf32>
    %208 = arith.mulf %207, %181 : vector<15x15xf32>
    %209 = arith.addf %175, %208 : vector<15x15xf32>
    %c5_122 = arith.constant 5 : index
    %c7_123 = arith.constant 7 : index
    %210 = memref.load %arg1[%c5_122, %c7_123] : memref<36x8xf32, #tpu.memory_space<smem>>
    %211 = vector.broadcast %210 : f32 to vector<15x15xf32>
    %212 = arith.mulf %211, %181 : vector<15x15xf32>
    %213 = arith.addf %179, %212 : vector<15x15xf32>
    %c0_124 = arith.constant 0 : index
    %c0_125 = arith.constant 0 : index
    %c2_126 = arith.constant 2 : index
    %c0_127 = arith.constant 0 : index
    %214 = vector.load %arg2[%c0_124, %c0_125, %c2_126, %c0_127] : memref<1x4x17x17xf32, #tpu.memory_space<vmem>>, vector<1x1x15x15xf32>
    %215 = vector.shape_cast %214 : vector<1x1x15x15xf32> to vector<15x15xf32>
    %c6_128 = arith.constant 6 : index
    %c0_129 = arith.constant 0 : index
    %216 = memref.load %arg1[%c6_128, %c0_129] : memref<36x8xf32, #tpu.memory_space<smem>>
    %217 = vector.broadcast %216 : f32 to vector<15x15xf32>
    %218 = arith.mulf %217, %215 : vector<15x15xf32>
    %219 = arith.addf %185, %218 : vector<15x15xf32>
    %c6_130 = arith.constant 6 : index
    %c1_131 = arith.constant 1 : index
    %220 = memref.load %arg1[%c6_130, %c1_131] : memref<36x8xf32, #tpu.memory_space<smem>>
    %221 = vector.broadcast %220 : f32 to vector<15x15xf32>
    %222 = arith.mulf %221, %215 : vector<15x15xf32>
    %223 = arith.addf %189, %222 : vector<15x15xf32>
    %c6_132 = arith.constant 6 : index
    %c2_133 = arith.constant 2 : index
    %224 = memref.load %arg1[%c6_132, %c2_133] : memref<36x8xf32, #tpu.memory_space<smem>>
    %225 = vector.broadcast %224 : f32 to vector<15x15xf32>
    %226 = arith.mulf %225, %215 : vector<15x15xf32>
    %227 = arith.addf %193, %226 : vector<15x15xf32>
    %c6_134 = arith.constant 6 : index
    %c3_135 = arith.constant 3 : index
    %228 = memref.load %arg1[%c6_134, %c3_135] : memref<36x8xf32, #tpu.memory_space<smem>>
    %229 = vector.broadcast %228 : f32 to vector<15x15xf32>
    %230 = arith.mulf %229, %215 : vector<15x15xf32>
    %231 = arith.addf %197, %230 : vector<15x15xf32>
    %c6_136 = arith.constant 6 : index
    %c4_137 = arith.constant 4 : index
    %232 = memref.load %arg1[%c6_136, %c4_137] : memref<36x8xf32, #tpu.memory_space<smem>>
    %233 = vector.broadcast %232 : f32 to vector<15x15xf32>
    %234 = arith.mulf %233, %215 : vector<15x15xf32>
    %235 = arith.addf %201, %234 : vector<15x15xf32>
    %c6_138 = arith.constant 6 : index
    %c5_139 = arith.constant 5 : index
    %236 = memref.load %arg1[%c6_138, %c5_139] : memref<36x8xf32, #tpu.memory_space<smem>>
    %237 = vector.broadcast %236 : f32 to vector<15x15xf32>
    %238 = arith.mulf %237, %215 : vector<15x15xf32>
    %239 = arith.addf %205, %238 : vector<15x15xf32>
    %c6_140 = arith.constant 6 : index
    %c6_141 = arith.constant 6 : index
    %240 = memref.load %arg1[%c6_140, %c6_141] : memref<36x8xf32, #tpu.memory_space<smem>>
    %241 = vector.broadcast %240 : f32 to vector<15x15xf32>
    %242 = arith.mulf %241, %215 : vector<15x15xf32>
    %243 = arith.addf %209, %242 : vector<15x15xf32>
    %c6_142 = arith.constant 6 : index
    %c7_143 = arith.constant 7 : index
    %244 = memref.load %arg1[%c6_142, %c7_143] : memref<36x8xf32, #tpu.memory_space<smem>>
    %245 = vector.broadcast %244 : f32 to vector<15x15xf32>
    %246 = arith.mulf %245, %215 : vector<15x15xf32>
    %247 = arith.addf %213, %246 : vector<15x15xf32>
    %c0_144 = arith.constant 0 : index
    %c0_145 = arith.constant 0 : index
    %c2_146 = arith.constant 2 : index
    %c1_147 = arith.constant 1 : index
    %248 = vector.load %arg2[%c0_144, %c0_145, %c2_146, %c1_147] : memref<1x4x17x17xf32, #tpu.memory_space<vmem>>, vector<1x1x15x15xf32>
    %249 = vector.shape_cast %248 : vector<1x1x15x15xf32> to vector<15x15xf32>
    %c7_148 = arith.constant 7 : index
    %c0_149 = arith.constant 0 : index
    %250 = memref.load %arg1[%c7_148, %c0_149] : memref<36x8xf32, #tpu.memory_space<smem>>
    %251 = vector.broadcast %250 : f32 to vector<15x15xf32>
    %252 = arith.mulf %251, %249 : vector<15x15xf32>
    %253 = arith.addf %219, %252 : vector<15x15xf32>
    %c7_150 = arith.constant 7 : index
    %c1_151 = arith.constant 1 : index
    %254 = memref.load %arg1[%c7_150, %c1_151] : memref<36x8xf32, #tpu.memory_space<smem>>
    %255 = vector.broadcast %254 : f32 to vector<15x15xf32>
    %256 = arith.mulf %255, %249 : vector<15x15xf32>
    %257 = arith.addf %223, %256 : vector<15x15xf32>
    %c7_152 = arith.constant 7 : index
    %c2_153 = arith.constant 2 : index
    %258 = memref.load %arg1[%c7_152, %c2_153] : memref<36x8xf32, #tpu.memory_space<smem>>
    %259 = vector.broadcast %258 : f32 to vector<15x15xf32>
    %260 = arith.mulf %259, %249 : vector<15x15xf32>
    %261 = arith.addf %227, %260 : vector<15x15xf32>
    %c7_154 = arith.constant 7 : index
    %c3_155 = arith.constant 3 : index
    %262 = memref.load %arg1[%c7_154, %c3_155] : memref<36x8xf32, #tpu.memory_space<smem>>
    %263 = vector.broadcast %262 : f32 to vector<15x15xf32>
    %264 = arith.mulf %263, %249 : vector<15x15xf32>
    %265 = arith.addf %231, %264 : vector<15x15xf32>
    %c7_156 = arith.constant 7 : index
    %c4_157 = arith.constant 4 : index
    %266 = memref.load %arg1[%c7_156, %c4_157] : memref<36x8xf32, #tpu.memory_space<smem>>
    %267 = vector.broadcast %266 : f32 to vector<15x15xf32>
    %268 = arith.mulf %267, %249 : vector<15x15xf32>
    %269 = arith.addf %235, %268 : vector<15x15xf32>
    %c7_158 = arith.constant 7 : index
    %c5_159 = arith.constant 5 : index
    %270 = memref.load %arg1[%c7_158, %c5_159] : memref<36x8xf32, #tpu.memory_space<smem>>
    %271 = vector.broadcast %270 : f32 to vector<15x15xf32>
    %272 = arith.mulf %271, %249 : vector<15x15xf32>
    %273 = arith.addf %239, %272 : vector<15x15xf32>
    %c7_160 = arith.constant 7 : index
    %c6_161 = arith.constant 6 : index
    %274 = memref.load %arg1[%c7_160, %c6_161] : memref<36x8xf32, #tpu.memory_space<smem>>
    %275 = vector.broadcast %274 : f32 to vector<15x15xf32>
    %276 = arith.mulf %275, %249 : vector<15x15xf32>
    %277 = arith.addf %243, %276 : vector<15x15xf32>
    %c7_162 = arith.constant 7 : index
    %c7_163 = arith.constant 7 : index
    %278 = memref.load %arg1[%c7_162, %c7_163] : memref<36x8xf32, #tpu.memory_space<smem>>
    %279 = vector.broadcast %278 : f32 to vector<15x15xf32>
    %280 = arith.mulf %279, %249 : vector<15x15xf32>
    %281 = arith.addf %247, %280 : vector<15x15xf32>
    %c0_164 = arith.constant 0 : index
    %c0_165 = arith.constant 0 : index
    %c2_166 = arith.constant 2 : index
    %c2_167 = arith.constant 2 : index
    %282 = vector.load %arg2[%c0_164, %c0_165, %c2_166, %c2_167] : memref<1x4x17x17xf32, #tpu.memory_space<vmem>>, vector<1x1x15x15xf32>
    %283 = vector.shape_cast %282 : vector<1x1x15x15xf32> to vector<15x15xf32>
    %c8 = arith.constant 8 : index
    %c0_168 = arith.constant 0 : index
    %284 = memref.load %arg1[%c8, %c0_168] : memref<36x8xf32, #tpu.memory_space<smem>>
    %285 = vector.broadcast %284 : f32 to vector<15x15xf32>
    %286 = arith.mulf %285, %283 : vector<15x15xf32>
    %287 = arith.addf %253, %286 : vector<15x15xf32>
    %c8_169 = arith.constant 8 : index
    %c1_170 = arith.constant 1 : index
    %288 = memref.load %arg1[%c8_169, %c1_170] : memref<36x8xf32, #tpu.memory_space<smem>>
    %289 = vector.broadcast %288 : f32 to vector<15x15xf32>
    %290 = arith.mulf %289, %283 : vector<15x15xf32>
    %291 = arith.addf %257, %290 : vector<15x15xf32>
    %c8_171 = arith.constant 8 : index
    %c2_172 = arith.constant 2 : index
    %292 = memref.load %arg1[%c8_171, %c2_172] : memref<36x8xf32, #tpu.memory_space<smem>>
    %293 = vector.broadcast %292 : f32 to vector<15x15xf32>
    %294 = arith.mulf %293, %283 : vector<15x15xf32>
    %295 = arith.addf %261, %294 : vector<15x15xf32>
    %c8_173 = arith.constant 8 : index
    %c3_174 = arith.constant 3 : index
    %296 = memref.load %arg1[%c8_173, %c3_174] : memref<36x8xf32, #tpu.memory_space<smem>>
    %297 = vector.broadcast %296 : f32 to vector<15x15xf32>
    %298 = arith.mulf %297, %283 : vector<15x15xf32>
    %299 = arith.addf %265, %298 : vector<15x15xf32>
    %c8_175 = arith.constant 8 : index
    %c4_176 = arith.constant 4 : index
    %300 = memref.load %arg1[%c8_175, %c4_176] : memref<36x8xf32, #tpu.memory_space<smem>>
    %301 = vector.broadcast %300 : f32 to vector<15x15xf32>
    %302 = arith.mulf %301, %283 : vector<15x15xf32>
    %303 = arith.addf %269, %302 : vector<15x15xf32>
    %c8_177 = arith.constant 8 : index
    %c5_178 = arith.constant 5 : index
    %304 = memref.load %arg1[%c8_177, %c5_178] : memref<36x8xf32, #tpu.memory_space<smem>>
    %305 = vector.broadcast %304 : f32 to vector<15x15xf32>
    %306 = arith.mulf %305, %283 : vector<15x15xf32>
    %307 = arith.addf %273, %306 : vector<15x15xf32>
    %c8_179 = arith.constant 8 : index
    %c6_180 = arith.constant 6 : index
    %308 = memref.load %arg1[%c8_179, %c6_180] : memref<36x8xf32, #tpu.memory_space<smem>>
    %309 = vector.broadcast %308 : f32 to vector<15x15xf32>
    %310 = arith.mulf %309, %283 : vector<15x15xf32>
    %311 = arith.addf %277, %310 : vector<15x15xf32>
    %c8_181 = arith.constant 8 : index
    %c7_182 = arith.constant 7 : index
    %312 = memref.load %arg1[%c8_181, %c7_182] : memref<36x8xf32, #tpu.memory_space<smem>>
    %313 = vector.broadcast %312 : f32 to vector<15x15xf32>
    %314 = arith.mulf %313, %283 : vector<15x15xf32>
    %315 = arith.addf %281, %314 : vector<15x15xf32>
    %c0_183 = arith.constant 0 : index
    %c1_184 = arith.constant 1 : index
    %c0_185 = arith.constant 0 : index
    %c0_186 = arith.constant 0 : index
    %316 = vector.load %arg2[%c0_183, %c1_184, %c0_185, %c0_186] : memref<1x4x17x17xf32, #tpu.memory_space<vmem>>, vector<1x1x15x15xf32>
    %317 = vector.shape_cast %316 : vector<1x1x15x15xf32> to vector<15x15xf32>
    %c9 = arith.constant 9 : index
    %c0_187 = arith.constant 0 : index
    %318 = memref.load %arg1[%c9, %c0_187] : memref<36x8xf32, #tpu.memory_space<smem>>
    %319 = vector.broadcast %318 : f32 to vector<15x15xf32>
    %320 = arith.mulf %319, %317 : vector<15x15xf32>
    %321 = arith.addf %287, %320 : vector<15x15xf32>
    %c9_188 = arith.constant 9 : index
    %c1_189 = arith.constant 1 : index
    %322 = memref.load %arg1[%c9_188, %c1_189] : memref<36x8xf32, #tpu.memory_space<smem>>
    %323 = vector.broadcast %322 : f32 to vector<15x15xf32>
    %324 = arith.mulf %323, %317 : vector<15x15xf32>
    %325 = arith.addf %291, %324 : vector<15x15xf32>
    %c9_190 = arith.constant 9 : index
    %c2_191 = arith.constant 2 : index
    %326 = memref.load %arg1[%c9_190, %c2_191] : memref<36x8xf32, #tpu.memory_space<smem>>
    %327 = vector.broadcast %326 : f32 to vector<15x15xf32>
    %328 = arith.mulf %327, %317 : vector<15x15xf32>
    %329 = arith.addf %295, %328 : vector<15x15xf32>
    %c9_192 = arith.constant 9 : index
    %c3_193 = arith.constant 3 : index
    %330 = memref.load %arg1[%c9_192, %c3_193] : memref<36x8xf32, #tpu.memory_space<smem>>
    %331 = vector.broadcast %330 : f32 to vector<15x15xf32>
    %332 = arith.mulf %331, %317 : vector<15x15xf32>
    %333 = arith.addf %299, %332 : vector<15x15xf32>
    %c9_194 = arith.constant 9 : index
    %c4_195 = arith.constant 4 : index
    %334 = memref.load %arg1[%c9_194, %c4_195] : memref<36x8xf32, #tpu.memory_space<smem>>
    %335 = vector.broadcast %334 : f32 to vector<15x15xf32>
    %336 = arith.mulf %335, %317 : vector<15x15xf32>
    %337 = arith.addf %303, %336 : vector<15x15xf32>
    %c9_196 = arith.constant 9 : index
    %c5_197 = arith.constant 5 : index
    %338 = memref.load %arg1[%c9_196, %c5_197] : memref<36x8xf32, #tpu.memory_space<smem>>
    %339 = vector.broadcast %338 : f32 to vector<15x15xf32>
    %340 = arith.mulf %339, %317 : vector<15x15xf32>
    %341 = arith.addf %307, %340 : vector<15x15xf32>
    %c9_198 = arith.constant 9 : index
    %c6_199 = arith.constant 6 : index
    %342 = memref.load %arg1[%c9_198, %c6_199] : memref<36x8xf32, #tpu.memory_space<smem>>
    %343 = vector.broadcast %342 : f32 to vector<15x15xf32>
    %344 = arith.mulf %343, %317 : vector<15x15xf32>
    %345 = arith.addf %311, %344 : vector<15x15xf32>
    %c9_200 = arith.constant 9 : index
    %c7_201 = arith.constant 7 : index
    %346 = memref.load %arg1[%c9_200, %c7_201] : memref<36x8xf32, #tpu.memory_space<smem>>
    %347 = vector.broadcast %346 : f32 to vector<15x15xf32>
    %348 = arith.mulf %347, %317 : vector<15x15xf32>
    %349 = arith.addf %315, %348 : vector<15x15xf32>
    %c0_202 = arith.constant 0 : index
    %c1_203 = arith.constant 1 : index
    %c0_204 = arith.constant 0 : index
    %c1_205 = arith.constant 1 : index
    %350 = vector.load %arg2[%c0_202, %c1_203, %c0_204, %c1_205] : memref<1x4x17x17xf32, #tpu.memory_space<vmem>>, vector<1x1x15x15xf32>
    %351 = vector.shape_cast %350 : vector<1x1x15x15xf32> to vector<15x15xf32>
    %c10 = arith.constant 10 : index
    %c0_206 = arith.constant 0 : index
    %352 = memref.load %arg1[%c10, %c0_206] : memref<36x8xf32, #tpu.memory_space<smem>>
    %353 = vector.broadcast %352 : f32 to vector<15x15xf32>
    %354 = arith.mulf %353, %351 : vector<15x15xf32>
    %355 = arith.addf %321, %354 : vector<15x15xf32>
    %c10_207 = arith.constant 10 : index
    %c1_208 = arith.constant 1 : index
    %356 = memref.load %arg1[%c10_207, %c1_208] : memref<36x8xf32, #tpu.memory_space<smem>>
    %357 = vector.broadcast %356 : f32 to vector<15x15xf32>
    %358 = arith.mulf %357, %351 : vector<15x15xf32>
    %359 = arith.addf %325, %358 : vector<15x15xf32>
    %c10_209 = arith.constant 10 : index
    %c2_210 = arith.constant 2 : index
    %360 = memref.load %arg1[%c10_209, %c2_210] : memref<36x8xf32, #tpu.memory_space<smem>>
    %361 = vector.broadcast %360 : f32 to vector<15x15xf32>
    %362 = arith.mulf %361, %351 : vector<15x15xf32>
    %363 = arith.addf %329, %362 : vector<15x15xf32>
    %c10_211 = arith.constant 10 : index
    %c3_212 = arith.constant 3 : index
    %364 = memref.load %arg1[%c10_211, %c3_212] : memref<36x8xf32, #tpu.memory_space<smem>>
    %365 = vector.broadcast %364 : f32 to vector<15x15xf32>
    %366 = arith.mulf %365, %351 : vector<15x15xf32>
    %367 = arith.addf %333, %366 : vector<15x15xf32>
    %c10_213 = arith.constant 10 : index
    %c4_214 = arith.constant 4 : index
    %368 = memref.load %arg1[%c10_213, %c4_214] : memref<36x8xf32, #tpu.memory_space<smem>>
    %369 = vector.broadcast %368 : f32 to vector<15x15xf32>
    %370 = arith.mulf %369, %351 : vector<15x15xf32>
    %371 = arith.addf %337, %370 : vector<15x15xf32>
    %c10_215 = arith.constant 10 : index
    %c5_216 = arith.constant 5 : index
    %372 = memref.load %arg1[%c10_215, %c5_216] : memref<36x8xf32, #tpu.memory_space<smem>>
    %373 = vector.broadcast %372 : f32 to vector<15x15xf32>
    %374 = arith.mulf %373, %351 : vector<15x15xf32>
    %375 = arith.addf %341, %374 : vector<15x15xf32>
    %c10_217 = arith.constant 10 : index
    %c6_218 = arith.constant 6 : index
    %376 = memref.load %arg1[%c10_217, %c6_218] : memref<36x8xf32, #tpu.memory_space<smem>>
    %377 = vector.broadcast %376 : f32 to vector<15x15xf32>
    %378 = arith.mulf %377, %351 : vector<15x15xf32>
    %379 = arith.addf %345, %378 : vector<15x15xf32>
    %c10_219 = arith.constant 10 : index
    %c7_220 = arith.constant 7 : index
    %380 = memref.load %arg1[%c10_219, %c7_220] : memref<36x8xf32, #tpu.memory_space<smem>>
    %381 = vector.broadcast %380 : f32 to vector<15x15xf32>
    %382 = arith.mulf %381, %351 : vector<15x15xf32>
    %383 = arith.addf %349, %382 : vector<15x15xf32>
    %c0_221 = arith.constant 0 : index
    %c1_222 = arith.constant 1 : index
    %c0_223 = arith.constant 0 : index
    %c2_224 = arith.constant 2 : index
    %384 = vector.load %arg2[%c0_221, %c1_222, %c0_223, %c2_224] : memref<1x4x17x17xf32, #tpu.memory_space<vmem>>, vector<1x1x15x15xf32>
    %385 = vector.shape_cast %384 : vector<1x1x15x15xf32> to vector<15x15xf32>
    %c11 = arith.constant 11 : index
    %c0_225 = arith.constant 0 : index
    %386 = memref.load %arg1[%c11, %c0_225] : memref<36x8xf32, #tpu.memory_space<smem>>
    %387 = vector.broadcast %386 : f32 to vector<15x15xf32>
    %388 = arith.mulf %387, %385 : vector<15x15xf32>
    %389 = arith.addf %355, %388 : vector<15x15xf32>
    %c11_226 = arith.constant 11 : index
    %c1_227 = arith.constant 1 : index
    %390 = memref.load %arg1[%c11_226, %c1_227] : memref<36x8xf32, #tpu.memory_space<smem>>
    %391 = vector.broadcast %390 : f32 to vector<15x15xf32>
    %392 = arith.mulf %391, %385 : vector<15x15xf32>
    %393 = arith.addf %359, %392 : vector<15x15xf32>
    %c11_228 = arith.constant 11 : index
    %c2_229 = arith.constant 2 : index
    %394 = memref.load %arg1[%c11_228, %c2_229] : memref<36x8xf32, #tpu.memory_space<smem>>
    %395 = vector.broadcast %394 : f32 to vector<15x15xf32>
    %396 = arith.mulf %395, %385 : vector<15x15xf32>
    %397 = arith.addf %363, %396 : vector<15x15xf32>
    %c11_230 = arith.constant 11 : index
    %c3_231 = arith.constant 3 : index
    %398 = memref.load %arg1[%c11_230, %c3_231] : memref<36x8xf32, #tpu.memory_space<smem>>
    %399 = vector.broadcast %398 : f32 to vector<15x15xf32>
    %400 = arith.mulf %399, %385 : vector<15x15xf32>
    %401 = arith.addf %367, %400 : vector<15x15xf32>
    %c11_232 = arith.constant 11 : index
    %c4_233 = arith.constant 4 : index
    %402 = memref.load %arg1[%c11_232, %c4_233] : memref<36x8xf32, #tpu.memory_space<smem>>
    %403 = vector.broadcast %402 : f32 to vector<15x15xf32>
    %404 = arith.mulf %403, %385 : vector<15x15xf32>
    %405 = arith.addf %371, %404 : vector<15x15xf32>
    %c11_234 = arith.constant 11 : index
    %c5_235 = arith.constant 5 : index
    %406 = memref.load %arg1[%c11_234, %c5_235] : memref<36x8xf32, #tpu.memory_space<smem>>
    %407 = vector.broadcast %406 : f32 to vector<15x15xf32>
    %408 = arith.mulf %407, %385 : vector<15x15xf32>
    %409 = arith.addf %375, %408 : vector<15x15xf32>
    %c11_236 = arith.constant 11 : index
    %c6_237 = arith.constant 6 : index
    %410 = memref.load %arg1[%c11_236, %c6_237] : memref<36x8xf32, #tpu.memory_space<smem>>
    %411 = vector.broadcast %410 : f32 to vector<15x15xf32>
    %412 = arith.mulf %411, %385 : vector<15x15xf32>
    %413 = arith.addf %379, %412 : vector<15x15xf32>
    %c11_238 = arith.constant 11 : index
    %c7_239 = arith.constant 7 : index
    %414 = memref.load %arg1[%c11_238, %c7_239] : memref<36x8xf32, #tpu.memory_space<smem>>
    %415 = vector.broadcast %414 : f32 to vector<15x15xf32>
    %416 = arith.mulf %415, %385 : vector<15x15xf32>
    %417 = arith.addf %383, %416 : vector<15x15xf32>
    %c0_240 = arith.constant 0 : index
    %c1_241 = arith.constant 1 : index
    %c1_242 = arith.constant 1 : index
    %c0_243 = arith.constant 0 : index
    %418 = vector.load %arg2[%c0_240, %c1_241, %c1_242, %c0_243] : memref<1x4x17x17xf32, #tpu.memory_space<vmem>>, vector<1x1x15x15xf32>
    %419 = vector.shape_cast %418 : vector<1x1x15x15xf32> to vector<15x15xf32>
    %c12 = arith.constant 12 : index
    %c0_244 = arith.constant 0 : index
    %420 = memref.load %arg1[%c12, %c0_244] : memref<36x8xf32, #tpu.memory_space<smem>>
    %421 = vector.broadcast %420 : f32 to vector<15x15xf32>
    %422 = arith.mulf %421, %419 : vector<15x15xf32>
    %423 = arith.addf %389, %422 : vector<15x15xf32>
    %c12_245 = arith.constant 12 : index
    %c1_246 = arith.constant 1 : index
    %424 = memref.load %arg1[%c12_245, %c1_246] : memref<36x8xf32, #tpu.memory_space<smem>>
    %425 = vector.broadcast %424 : f32 to vector<15x15xf32>
    %426 = arith.mulf %425, %419 : vector<15x15xf32>
    %427 = arith.addf %393, %426 : vector<15x15xf32>
    %c12_247 = arith.constant 12 : index
    %c2_248 = arith.constant 2 : index
    %428 = memref.load %arg1[%c12_247, %c2_248] : memref<36x8xf32, #tpu.memory_space<smem>>
    %429 = vector.broadcast %428 : f32 to vector<15x15xf32>
    %430 = arith.mulf %429, %419 : vector<15x15xf32>
    %431 = arith.addf %397, %430 : vector<15x15xf32>
    %c12_249 = arith.constant 12 : index
    %c3_250 = arith.constant 3 : index
    %432 = memref.load %arg1[%c12_249, %c3_250] : memref<36x8xf32, #tpu.memory_space<smem>>
    %433 = vector.broadcast %432 : f32 to vector<15x15xf32>
    %434 = arith.mulf %433, %419 : vector<15x15xf32>
    %435 = arith.addf %401, %434 : vector<15x15xf32>
    %c12_251 = arith.constant 12 : index
    %c4_252 = arith.constant 4 : index
    %436 = memref.load %arg1[%c12_251, %c4_252] : memref<36x8xf32, #tpu.memory_space<smem>>
    %437 = vector.broadcast %436 : f32 to vector<15x15xf32>
    %438 = arith.mulf %437, %419 : vector<15x15xf32>
    %439 = arith.addf %405, %438 : vector<15x15xf32>
    %c12_253 = arith.constant 12 : index
    %c5_254 = arith.constant 5 : index
    %440 = memref.load %arg1[%c12_253, %c5_254] : memref<36x8xf32, #tpu.memory_space<smem>>
    %441 = vector.broadcast %440 : f32 to vector<15x15xf32>
    %442 = arith.mulf %441, %419 : vector<15x15xf32>
    %443 = arith.addf %409, %442 : vector<15x15xf32>
    %c12_255 = arith.constant 12 : index
    %c6_256 = arith.constant 6 : index
    %444 = memref.load %arg1[%c12_255, %c6_256] : memref<36x8xf32, #tpu.memory_space<smem>>
    %445 = vector.broadcast %444 : f32 to vector<15x15xf32>
    %446 = arith.mulf %445, %419 : vector<15x15xf32>
    %447 = arith.addf %413, %446 : vector<15x15xf32>
    %c12_257 = arith.constant 12 : index
    %c7_258 = arith.constant 7 : index
    %448 = memref.load %arg1[%c12_257, %c7_258] : memref<36x8xf32, #tpu.memory_space<smem>>
    %449 = vector.broadcast %448 : f32 to vector<15x15xf32>
    %450 = arith.mulf %449, %419 : vector<15x15xf32>
    %451 = arith.addf %417, %450 : vector<15x15xf32>
    %c0_259 = arith.constant 0 : index
    %c1_260 = arith.constant 1 : index
    %c1_261 = arith.constant 1 : index
    %c1_262 = arith.constant 1 : index
    %452 = vector.load %arg2[%c0_259, %c1_260, %c1_261, %c1_262] : memref<1x4x17x17xf32, #tpu.memory_space<vmem>>, vector<1x1x15x15xf32>
    %453 = vector.shape_cast %452 : vector<1x1x15x15xf32> to vector<15x15xf32>
    %c13 = arith.constant 13 : index
    %c0_263 = arith.constant 0 : index
    %454 = memref.load %arg1[%c13, %c0_263] : memref<36x8xf32, #tpu.memory_space<smem>>
    %455 = vector.broadcast %454 : f32 to vector<15x15xf32>
    %456 = arith.mulf %455, %453 : vector<15x15xf32>
    %457 = arith.addf %423, %456 : vector<15x15xf32>
    %c13_264 = arith.constant 13 : index
    %c1_265 = arith.constant 1 : index
    %458 = memref.load %arg1[%c13_264, %c1_265] : memref<36x8xf32, #tpu.memory_space<smem>>
    %459 = vector.broadcast %458 : f32 to vector<15x15xf32>
    %460 = arith.mulf %459, %453 : vector<15x15xf32>
    %461 = arith.addf %427, %460 : vector<15x15xf32>
    %c13_266 = arith.constant 13 : index
    %c2_267 = arith.constant 2 : index
    %462 = memref.load %arg1[%c13_266, %c2_267] : memref<36x8xf32, #tpu.memory_space<smem>>
    %463 = vector.broadcast %462 : f32 to vector<15x15xf32>
    %464 = arith.mulf %463, %453 : vector<15x15xf32>
    %465 = arith.addf %431, %464 : vector<15x15xf32>
    %c13_268 = arith.constant 13 : index
    %c3_269 = arith.constant 3 : index
    %466 = memref.load %arg1[%c13_268, %c3_269] : memref<36x8xf32, #tpu.memory_space<smem>>
    %467 = vector.broadcast %466 : f32 to vector<15x15xf32>
    %468 = arith.mulf %467, %453 : vector<15x15xf32>
    %469 = arith.addf %435, %468 : vector<15x15xf32>
    %c13_270 = arith.constant 13 : index
    %c4_271 = arith.constant 4 : index
    %470 = memref.load %arg1[%c13_270, %c4_271] : memref<36x8xf32, #tpu.memory_space<smem>>
    %471 = vector.broadcast %470 : f32 to vector<15x15xf32>
    %472 = arith.mulf %471, %453 : vector<15x15xf32>
    %473 = arith.addf %439, %472 : vector<15x15xf32>
    %c13_272 = arith.constant 13 : index
    %c5_273 = arith.constant 5 : index
    %474 = memref.load %arg1[%c13_272, %c5_273] : memref<36x8xf32, #tpu.memory_space<smem>>
    %475 = vector.broadcast %474 : f32 to vector<15x15xf32>
    %476 = arith.mulf %475, %453 : vector<15x15xf32>
    %477 = arith.addf %443, %476 : vector<15x15xf32>
    %c13_274 = arith.constant 13 : index
    %c6_275 = arith.constant 6 : index
    %478 = memref.load %arg1[%c13_274, %c6_275] : memref<36x8xf32, #tpu.memory_space<smem>>
    %479 = vector.broadcast %478 : f32 to vector<15x15xf32>
    %480 = arith.mulf %479, %453 : vector<15x15xf32>
    %481 = arith.addf %447, %480 : vector<15x15xf32>
    %c13_276 = arith.constant 13 : index
    %c7_277 = arith.constant 7 : index
    %482 = memref.load %arg1[%c13_276, %c7_277] : memref<36x8xf32, #tpu.memory_space<smem>>
    %483 = vector.broadcast %482 : f32 to vector<15x15xf32>
    %484 = arith.mulf %483, %453 : vector<15x15xf32>
    %485 = arith.addf %451, %484 : vector<15x15xf32>
    %c0_278 = arith.constant 0 : index
    %c1_279 = arith.constant 1 : index
    %c1_280 = arith.constant 1 : index
    %c2_281 = arith.constant 2 : index
    %486 = vector.load %arg2[%c0_278, %c1_279, %c1_280, %c2_281] : memref<1x4x17x17xf32, #tpu.memory_space<vmem>>, vector<1x1x15x15xf32>
    %487 = vector.shape_cast %486 : vector<1x1x15x15xf32> to vector<15x15xf32>
    %c14 = arith.constant 14 : index
    %c0_282 = arith.constant 0 : index
    %488 = memref.load %arg1[%c14, %c0_282] : memref<36x8xf32, #tpu.memory_space<smem>>
    %489 = vector.broadcast %488 : f32 to vector<15x15xf32>
    %490 = arith.mulf %489, %487 : vector<15x15xf32>
    %491 = arith.addf %457, %490 : vector<15x15xf32>
    %c14_283 = arith.constant 14 : index
    %c1_284 = arith.constant 1 : index
    %492 = memref.load %arg1[%c14_283, %c1_284] : memref<36x8xf32, #tpu.memory_space<smem>>
    %493 = vector.broadcast %492 : f32 to vector<15x15xf32>
    %494 = arith.mulf %493, %487 : vector<15x15xf32>
    %495 = arith.addf %461, %494 : vector<15x15xf32>
    %c14_285 = arith.constant 14 : index
    %c2_286 = arith.constant 2 : index
    %496 = memref.load %arg1[%c14_285, %c2_286] : memref<36x8xf32, #tpu.memory_space<smem>>
    %497 = vector.broadcast %496 : f32 to vector<15x15xf32>
    %498 = arith.mulf %497, %487 : vector<15x15xf32>
    %499 = arith.addf %465, %498 : vector<15x15xf32>
    %c14_287 = arith.constant 14 : index
    %c3_288 = arith.constant 3 : index
    %500 = memref.load %arg1[%c14_287, %c3_288] : memref<36x8xf32, #tpu.memory_space<smem>>
    %501 = vector.broadcast %500 : f32 to vector<15x15xf32>
    %502 = arith.mulf %501, %487 : vector<15x15xf32>
    %503 = arith.addf %469, %502 : vector<15x15xf32>
    %c14_289 = arith.constant 14 : index
    %c4_290 = arith.constant 4 : index
    %504 = memref.load %arg1[%c14_289, %c4_290] : memref<36x8xf32, #tpu.memory_space<smem>>
    %505 = vector.broadcast %504 : f32 to vector<15x15xf32>
    %506 = arith.mulf %505, %487 : vector<15x15xf32>
    %507 = arith.addf %473, %506 : vector<15x15xf32>
    %c14_291 = arith.constant 14 : index
    %c5_292 = arith.constant 5 : index
    %508 = memref.load %arg1[%c14_291, %c5_292] : memref<36x8xf32, #tpu.memory_space<smem>>
    %509 = vector.broadcast %508 : f32 to vector<15x15xf32>
    %510 = arith.mulf %509, %487 : vector<15x15xf32>
    %511 = arith.addf %477, %510 : vector<15x15xf32>
    %c14_293 = arith.constant 14 : index
    %c6_294 = arith.constant 6 : index
    %512 = memref.load %arg1[%c14_293, %c6_294] : memref<36x8xf32, #tpu.memory_space<smem>>
    %513 = vector.broadcast %512 : f32 to vector<15x15xf32>
    %514 = arith.mulf %513, %487 : vector<15x15xf32>
    %515 = arith.addf %481, %514 : vector<15x15xf32>
    %c14_295 = arith.constant 14 : index
    %c7_296 = arith.constant 7 : index
    %516 = memref.load %arg1[%c14_295, %c7_296] : memref<36x8xf32, #tpu.memory_space<smem>>
    %517 = vector.broadcast %516 : f32 to vector<15x15xf32>
    %518 = arith.mulf %517, %487 : vector<15x15xf32>
    %519 = arith.addf %485, %518 : vector<15x15xf32>
    %c0_297 = arith.constant 0 : index
    %c1_298 = arith.constant 1 : index
    %c2_299 = arith.constant 2 : index
    %c0_300 = arith.constant 0 : index
    %520 = vector.load %arg2[%c0_297, %c1_298, %c2_299, %c0_300] : memref<1x4x17x17xf32, #tpu.memory_space<vmem>>, vector<1x1x15x15xf32>
    %521 = vector.shape_cast %520 : vector<1x1x15x15xf32> to vector<15x15xf32>
    %c15 = arith.constant 15 : index
    %c0_301 = arith.constant 0 : index
    %522 = memref.load %arg1[%c15, %c0_301] : memref<36x8xf32, #tpu.memory_space<smem>>
    %523 = vector.broadcast %522 : f32 to vector<15x15xf32>
    %524 = arith.mulf %523, %521 : vector<15x15xf32>
    %525 = arith.addf %491, %524 : vector<15x15xf32>
    %c15_302 = arith.constant 15 : index
    %c1_303 = arith.constant 1 : index
    %526 = memref.load %arg1[%c15_302, %c1_303] : memref<36x8xf32, #tpu.memory_space<smem>>
    %527 = vector.broadcast %526 : f32 to vector<15x15xf32>
    %528 = arith.mulf %527, %521 : vector<15x15xf32>
    %529 = arith.addf %495, %528 : vector<15x15xf32>
    %c15_304 = arith.constant 15 : index
    %c2_305 = arith.constant 2 : index
    %530 = memref.load %arg1[%c15_304, %c2_305] : memref<36x8xf32, #tpu.memory_space<smem>>
    %531 = vector.broadcast %530 : f32 to vector<15x15xf32>
    %532 = arith.mulf %531, %521 : vector<15x15xf32>
    %533 = arith.addf %499, %532 : vector<15x15xf32>
    %c15_306 = arith.constant 15 : index
    %c3_307 = arith.constant 3 : index
    %534 = memref.load %arg1[%c15_306, %c3_307] : memref<36x8xf32, #tpu.memory_space<smem>>
    %535 = vector.broadcast %534 : f32 to vector<15x15xf32>
    %536 = arith.mulf %535, %521 : vector<15x15xf32>
    %537 = arith.addf %503, %536 : vector<15x15xf32>
    %c15_308 = arith.constant 15 : index
    %c4_309 = arith.constant 4 : index
    %538 = memref.load %arg1[%c15_308, %c4_309] : memref<36x8xf32, #tpu.memory_space<smem>>
    %539 = vector.broadcast %538 : f32 to vector<15x15xf32>
    %540 = arith.mulf %539, %521 : vector<15x15xf32>
    %541 = arith.addf %507, %540 : vector<15x15xf32>
    %c15_310 = arith.constant 15 : index
    %c5_311 = arith.constant 5 : index
    %542 = memref.load %arg1[%c15_310, %c5_311] : memref<36x8xf32, #tpu.memory_space<smem>>
    %543 = vector.broadcast %542 : f32 to vector<15x15xf32>
    %544 = arith.mulf %543, %521 : vector<15x15xf32>
    %545 = arith.addf %511, %544 : vector<15x15xf32>
    %c15_312 = arith.constant 15 : index
    %c6_313 = arith.constant 6 : index
    %546 = memref.load %arg1[%c15_312, %c6_313] : memref<36x8xf32, #tpu.memory_space<smem>>
    %547 = vector.broadcast %546 : f32 to vector<15x15xf32>
    %548 = arith.mulf %547, %521 : vector<15x15xf32>
    %549 = arith.addf %515, %548 : vector<15x15xf32>
    %c15_314 = arith.constant 15 : index
    %c7_315 = arith.constant 7 : index
    %550 = memref.load %arg1[%c15_314, %c7_315] : memref<36x8xf32, #tpu.memory_space<smem>>
    %551 = vector.broadcast %550 : f32 to vector<15x15xf32>
    %552 = arith.mulf %551, %521 : vector<15x15xf32>
    %553 = arith.addf %519, %552 : vector<15x15xf32>
    %c0_316 = arith.constant 0 : index
    %c1_317 = arith.constant 1 : index
    %c2_318 = arith.constant 2 : index
    %c1_319 = arith.constant 1 : index
    %554 = vector.load %arg2[%c0_316, %c1_317, %c2_318, %c1_319] : memref<1x4x17x17xf32, #tpu.memory_space<vmem>>, vector<1x1x15x15xf32>
    %555 = vector.shape_cast %554 : vector<1x1x15x15xf32> to vector<15x15xf32>
    %c16 = arith.constant 16 : index
    %c0_320 = arith.constant 0 : index
    %556 = memref.load %arg1[%c16, %c0_320] : memref<36x8xf32, #tpu.memory_space<smem>>
    %557 = vector.broadcast %556 : f32 to vector<15x15xf32>
    %558 = arith.mulf %557, %555 : vector<15x15xf32>
    %559 = arith.addf %525, %558 : vector<15x15xf32>
    %c16_321 = arith.constant 16 : index
    %c1_322 = arith.constant 1 : index
    %560 = memref.load %arg1[%c16_321, %c1_322] : memref<36x8xf32, #tpu.memory_space<smem>>
    %561 = vector.broadcast %560 : f32 to vector<15x15xf32>
    %562 = arith.mulf %561, %555 : vector<15x15xf32>
    %563 = arith.addf %529, %562 : vector<15x15xf32>
    %c16_323 = arith.constant 16 : index
    %c2_324 = arith.constant 2 : index
    %564 = memref.load %arg1[%c16_323, %c2_324] : memref<36x8xf32, #tpu.memory_space<smem>>
    %565 = vector.broadcast %564 : f32 to vector<15x15xf32>
    %566 = arith.mulf %565, %555 : vector<15x15xf32>
    %567 = arith.addf %533, %566 : vector<15x15xf32>
    %c16_325 = arith.constant 16 : index
    %c3_326 = arith.constant 3 : index
    %568 = memref.load %arg1[%c16_325, %c3_326] : memref<36x8xf32, #tpu.memory_space<smem>>
    %569 = vector.broadcast %568 : f32 to vector<15x15xf32>
    %570 = arith.mulf %569, %555 : vector<15x15xf32>
    %571 = arith.addf %537, %570 : vector<15x15xf32>
    %c16_327 = arith.constant 16 : index
    %c4_328 = arith.constant 4 : index
    %572 = memref.load %arg1[%c16_327, %c4_328] : memref<36x8xf32, #tpu.memory_space<smem>>
    %573 = vector.broadcast %572 : f32 to vector<15x15xf32>
    %574 = arith.mulf %573, %555 : vector<15x15xf32>
    %575 = arith.addf %541, %574 : vector<15x15xf32>
    %c16_329 = arith.constant 16 : index
    %c5_330 = arith.constant 5 : index
    %576 = memref.load %arg1[%c16_329, %c5_330] : memref<36x8xf32, #tpu.memory_space<smem>>
    %577 = vector.broadcast %576 : f32 to vector<15x15xf32>
    %578 = arith.mulf %577, %555 : vector<15x15xf32>
    %579 = arith.addf %545, %578 : vector<15x15xf32>
    %c16_331 = arith.constant 16 : index
    %c6_332 = arith.constant 6 : index
    %580 = memref.load %arg1[%c16_331, %c6_332] : memref<36x8xf32, #tpu.memory_space<smem>>
    %581 = vector.broadcast %580 : f32 to vector<15x15xf32>
    %582 = arith.mulf %581, %555 : vector<15x15xf32>
    %583 = arith.addf %549, %582 : vector<15x15xf32>
    %c16_333 = arith.constant 16 : index
    %c7_334 = arith.constant 7 : index
    %584 = memref.load %arg1[%c16_333, %c7_334] : memref<36x8xf32, #tpu.memory_space<smem>>
    %585 = vector.broadcast %584 : f32 to vector<15x15xf32>
    %586 = arith.mulf %585, %555 : vector<15x15xf32>
    %587 = arith.addf %553, %586 : vector<15x15xf32>
    %c0_335 = arith.constant 0 : index
    %c1_336 = arith.constant 1 : index
    %c2_337 = arith.constant 2 : index
    %c2_338 = arith.constant 2 : index
    %588 = vector.load %arg2[%c0_335, %c1_336, %c2_337, %c2_338] : memref<1x4x17x17xf32, #tpu.memory_space<vmem>>, vector<1x1x15x15xf32>
    %589 = vector.shape_cast %588 : vector<1x1x15x15xf32> to vector<15x15xf32>
    %c17 = arith.constant 17 : index
    %c0_339 = arith.constant 0 : index
    %590 = memref.load %arg1[%c17, %c0_339] : memref<36x8xf32, #tpu.memory_space<smem>>
    %591 = vector.broadcast %590 : f32 to vector<15x15xf32>
    %592 = arith.mulf %591, %589 : vector<15x15xf32>
    %593 = arith.addf %559, %592 : vector<15x15xf32>
    %c17_340 = arith.constant 17 : index
    %c1_341 = arith.constant 1 : index
    %594 = memref.load %arg1[%c17_340, %c1_341] : memref<36x8xf32, #tpu.memory_space<smem>>
    %595 = vector.broadcast %594 : f32 to vector<15x15xf32>
    %596 = arith.mulf %595, %589 : vector<15x15xf32>
    %597 = arith.addf %563, %596 : vector<15x15xf32>
    %c17_342 = arith.constant 17 : index
    %c2_343 = arith.constant 2 : index
    %598 = memref.load %arg1[%c17_342, %c2_343] : memref<36x8xf32, #tpu.memory_space<smem>>
    %599 = vector.broadcast %598 : f32 to vector<15x15xf32>
    %600 = arith.mulf %599, %589 : vector<15x15xf32>
    %601 = arith.addf %567, %600 : vector<15x15xf32>
    %c17_344 = arith.constant 17 : index
    %c3_345 = arith.constant 3 : index
    %602 = memref.load %arg1[%c17_344, %c3_345] : memref<36x8xf32, #tpu.memory_space<smem>>
    %603 = vector.broadcast %602 : f32 to vector<15x15xf32>
    %604 = arith.mulf %603, %589 : vector<15x15xf32>
    %605 = arith.addf %571, %604 : vector<15x15xf32>
    %c17_346 = arith.constant 17 : index
    %c4_347 = arith.constant 4 : index
    %606 = memref.load %arg1[%c17_346, %c4_347] : memref<36x8xf32, #tpu.memory_space<smem>>
    %607 = vector.broadcast %606 : f32 to vector<15x15xf32>
    %608 = arith.mulf %607, %589 : vector<15x15xf32>
    %609 = arith.addf %575, %608 : vector<15x15xf32>
    %c17_348 = arith.constant 17 : index
    %c5_349 = arith.constant 5 : index
    %610 = memref.load %arg1[%c17_348, %c5_349] : memref<36x8xf32, #tpu.memory_space<smem>>
    %611 = vector.broadcast %610 : f32 to vector<15x15xf32>
    %612 = arith.mulf %611, %589 : vector<15x15xf32>
    %613 = arith.addf %579, %612 : vector<15x15xf32>
    %c17_350 = arith.constant 17 : index
    %c6_351 = arith.constant 6 : index
    %614 = memref.load %arg1[%c17_350, %c6_351] : memref<36x8xf32, #tpu.memory_space<smem>>
    %615 = vector.broadcast %614 : f32 to vector<15x15xf32>
    %616 = arith.mulf %615, %589 : vector<15x15xf32>
    %617 = arith.addf %583, %616 : vector<15x15xf32>
    %c17_352 = arith.constant 17 : index
    %c7_353 = arith.constant 7 : index
    %618 = memref.load %arg1[%c17_352, %c7_353] : memref<36x8xf32, #tpu.memory_space<smem>>
    %619 = vector.broadcast %618 : f32 to vector<15x15xf32>
    %620 = arith.mulf %619, %589 : vector<15x15xf32>
    %621 = arith.addf %587, %620 : vector<15x15xf32>
    %c0_354 = arith.constant 0 : index
    %c2_355 = arith.constant 2 : index
    %c0_356 = arith.constant 0 : index
    %c0_357 = arith.constant 0 : index
    %622 = vector.load %arg2[%c0_354, %c2_355, %c0_356, %c0_357] : memref<1x4x17x17xf32, #tpu.memory_space<vmem>>, vector<1x1x15x15xf32>
    %623 = vector.shape_cast %622 : vector<1x1x15x15xf32> to vector<15x15xf32>
    %c18 = arith.constant 18 : index
    %c0_358 = arith.constant 0 : index
    %624 = memref.load %arg1[%c18, %c0_358] : memref<36x8xf32, #tpu.memory_space<smem>>
    %625 = vector.broadcast %624 : f32 to vector<15x15xf32>
    %626 = arith.mulf %625, %623 : vector<15x15xf32>
    %627 = arith.addf %593, %626 : vector<15x15xf32>
    %c18_359 = arith.constant 18 : index
    %c1_360 = arith.constant 1 : index
    %628 = memref.load %arg1[%c18_359, %c1_360] : memref<36x8xf32, #tpu.memory_space<smem>>
    %629 = vector.broadcast %628 : f32 to vector<15x15xf32>
    %630 = arith.mulf %629, %623 : vector<15x15xf32>
    %631 = arith.addf %597, %630 : vector<15x15xf32>
    %c18_361 = arith.constant 18 : index
    %c2_362 = arith.constant 2 : index
    %632 = memref.load %arg1[%c18_361, %c2_362] : memref<36x8xf32, #tpu.memory_space<smem>>
    %633 = vector.broadcast %632 : f32 to vector<15x15xf32>
    %634 = arith.mulf %633, %623 : vector<15x15xf32>
    %635 = arith.addf %601, %634 : vector<15x15xf32>
    %c18_363 = arith.constant 18 : index
    %c3_364 = arith.constant 3 : index
    %636 = memref.load %arg1[%c18_363, %c3_364] : memref<36x8xf32, #tpu.memory_space<smem>>
    %637 = vector.broadcast %636 : f32 to vector<15x15xf32>
    %638 = arith.mulf %637, %623 : vector<15x15xf32>
    %639 = arith.addf %605, %638 : vector<15x15xf32>
    %c18_365 = arith.constant 18 : index
    %c4_366 = arith.constant 4 : index
    %640 = memref.load %arg1[%c18_365, %c4_366] : memref<36x8xf32, #tpu.memory_space<smem>>
    %641 = vector.broadcast %640 : f32 to vector<15x15xf32>
    %642 = arith.mulf %641, %623 : vector<15x15xf32>
    %643 = arith.addf %609, %642 : vector<15x15xf32>
    %c18_367 = arith.constant 18 : index
    %c5_368 = arith.constant 5 : index
    %644 = memref.load %arg1[%c18_367, %c5_368] : memref<36x8xf32, #tpu.memory_space<smem>>
    %645 = vector.broadcast %644 : f32 to vector<15x15xf32>
    %646 = arith.mulf %645, %623 : vector<15x15xf32>
    %647 = arith.addf %613, %646 : vector<15x15xf32>
    %c18_369 = arith.constant 18 : index
    %c6_370 = arith.constant 6 : index
    %648 = memref.load %arg1[%c18_369, %c6_370] : memref<36x8xf32, #tpu.memory_space<smem>>
    %649 = vector.broadcast %648 : f32 to vector<15x15xf32>
    %650 = arith.mulf %649, %623 : vector<15x15xf32>
    %651 = arith.addf %617, %650 : vector<15x15xf32>
    %c18_371 = arith.constant 18 : index
    %c7_372 = arith.constant 7 : index
    %652 = memref.load %arg1[%c18_371, %c7_372] : memref<36x8xf32, #tpu.memory_space<smem>>
    %653 = vector.broadcast %652 : f32 to vector<15x15xf32>
    %654 = arith.mulf %653, %623 : vector<15x15xf32>
    %655 = arith.addf %621, %654 : vector<15x15xf32>
    %c0_373 = arith.constant 0 : index
    %c2_374 = arith.constant 2 : index
    %c0_375 = arith.constant 0 : index
    %c1_376 = arith.constant 1 : index
    %656 = vector.load %arg2[%c0_373, %c2_374, %c0_375, %c1_376] : memref<1x4x17x17xf32, #tpu.memory_space<vmem>>, vector<1x1x15x15xf32>
    %657 = vector.shape_cast %656 : vector<1x1x15x15xf32> to vector<15x15xf32>
    %c19 = arith.constant 19 : index
    %c0_377 = arith.constant 0 : index
    %658 = memref.load %arg1[%c19, %c0_377] : memref<36x8xf32, #tpu.memory_space<smem>>
    %659 = vector.broadcast %658 : f32 to vector<15x15xf32>
    %660 = arith.mulf %659, %657 : vector<15x15xf32>
    %661 = arith.addf %627, %660 : vector<15x15xf32>
    %c19_378 = arith.constant 19 : index
    %c1_379 = arith.constant 1 : index
    %662 = memref.load %arg1[%c19_378, %c1_379] : memref<36x8xf32, #tpu.memory_space<smem>>
    %663 = vector.broadcast %662 : f32 to vector<15x15xf32>
    %664 = arith.mulf %663, %657 : vector<15x15xf32>
    %665 = arith.addf %631, %664 : vector<15x15xf32>
    %c19_380 = arith.constant 19 : index
    %c2_381 = arith.constant 2 : index
    %666 = memref.load %arg1[%c19_380, %c2_381] : memref<36x8xf32, #tpu.memory_space<smem>>
    %667 = vector.broadcast %666 : f32 to vector<15x15xf32>
    %668 = arith.mulf %667, %657 : vector<15x15xf32>
    %669 = arith.addf %635, %668 : vector<15x15xf32>
    %c19_382 = arith.constant 19 : index
    %c3_383 = arith.constant 3 : index
    %670 = memref.load %arg1[%c19_382, %c3_383] : memref<36x8xf32, #tpu.memory_space<smem>>
    %671 = vector.broadcast %670 : f32 to vector<15x15xf32>
    %672 = arith.mulf %671, %657 : vector<15x15xf32>
    %673 = arith.addf %639, %672 : vector<15x15xf32>
    %c19_384 = arith.constant 19 : index
    %c4_385 = arith.constant 4 : index
    %674 = memref.load %arg1[%c19_384, %c4_385] : memref<36x8xf32, #tpu.memory_space<smem>>
    %675 = vector.broadcast %674 : f32 to vector<15x15xf32>
    %676 = arith.mulf %675, %657 : vector<15x15xf32>
    %677 = arith.addf %643, %676 : vector<15x15xf32>
    %c19_386 = arith.constant 19 : index
    %c5_387 = arith.constant 5 : index
    %678 = memref.load %arg1[%c19_386, %c5_387] : memref<36x8xf32, #tpu.memory_space<smem>>
    %679 = vector.broadcast %678 : f32 to vector<15x15xf32>
    %680 = arith.mulf %679, %657 : vector<15x15xf32>
    %681 = arith.addf %647, %680 : vector<15x15xf32>
    %c19_388 = arith.constant 19 : index
    %c6_389 = arith.constant 6 : index
    %682 = memref.load %arg1[%c19_388, %c6_389] : memref<36x8xf32, #tpu.memory_space<smem>>
    %683 = vector.broadcast %682 : f32 to vector<15x15xf32>
    %684 = arith.mulf %683, %657 : vector<15x15xf32>
    %685 = arith.addf %651, %684 : vector<15x15xf32>
    %c19_390 = arith.constant 19 : index
    %c7_391 = arith.constant 7 : index
    %686 = memref.load %arg1[%c19_390, %c7_391] : memref<36x8xf32, #tpu.memory_space<smem>>
    %687 = vector.broadcast %686 : f32 to vector<15x15xf32>
    %688 = arith.mulf %687, %657 : vector<15x15xf32>
    %689 = arith.addf %655, %688 : vector<15x15xf32>
    %c0_392 = arith.constant 0 : index
    %c2_393 = arith.constant 2 : index
    %c0_394 = arith.constant 0 : index
    %c2_395 = arith.constant 2 : index
    %690 = vector.load %arg2[%c0_392, %c2_393, %c0_394, %c2_395] : memref<1x4x17x17xf32, #tpu.memory_space<vmem>>, vector<1x1x15x15xf32>
    %691 = vector.shape_cast %690 : vector<1x1x15x15xf32> to vector<15x15xf32>
    %c20 = arith.constant 20 : index
    %c0_396 = arith.constant 0 : index
    %692 = memref.load %arg1[%c20, %c0_396] : memref<36x8xf32, #tpu.memory_space<smem>>
    %693 = vector.broadcast %692 : f32 to vector<15x15xf32>
    %694 = arith.mulf %693, %691 : vector<15x15xf32>
    %695 = arith.addf %661, %694 : vector<15x15xf32>
    %c20_397 = arith.constant 20 : index
    %c1_398 = arith.constant 1 : index
    %696 = memref.load %arg1[%c20_397, %c1_398] : memref<36x8xf32, #tpu.memory_space<smem>>
    %697 = vector.broadcast %696 : f32 to vector<15x15xf32>
    %698 = arith.mulf %697, %691 : vector<15x15xf32>
    %699 = arith.addf %665, %698 : vector<15x15xf32>
    %c20_399 = arith.constant 20 : index
    %c2_400 = arith.constant 2 : index
    %700 = memref.load %arg1[%c20_399, %c2_400] : memref<36x8xf32, #tpu.memory_space<smem>>
    %701 = vector.broadcast %700 : f32 to vector<15x15xf32>
    %702 = arith.mulf %701, %691 : vector<15x15xf32>
    %703 = arith.addf %669, %702 : vector<15x15xf32>
    %c20_401 = arith.constant 20 : index
    %c3_402 = arith.constant 3 : index
    %704 = memref.load %arg1[%c20_401, %c3_402] : memref<36x8xf32, #tpu.memory_space<smem>>
    %705 = vector.broadcast %704 : f32 to vector<15x15xf32>
    %706 = arith.mulf %705, %691 : vector<15x15xf32>
    %707 = arith.addf %673, %706 : vector<15x15xf32>
    %c20_403 = arith.constant 20 : index
    %c4_404 = arith.constant 4 : index
    %708 = memref.load %arg1[%c20_403, %c4_404] : memref<36x8xf32, #tpu.memory_space<smem>>
    %709 = vector.broadcast %708 : f32 to vector<15x15xf32>
    %710 = arith.mulf %709, %691 : vector<15x15xf32>
    %711 = arith.addf %677, %710 : vector<15x15xf32>
    %c20_405 = arith.constant 20 : index
    %c5_406 = arith.constant 5 : index
    %712 = memref.load %arg1[%c20_405, %c5_406] : memref<36x8xf32, #tpu.memory_space<smem>>
    %713 = vector.broadcast %712 : f32 to vector<15x15xf32>
    %714 = arith.mulf %713, %691 : vector<15x15xf32>
    %715 = arith.addf %681, %714 : vector<15x15xf32>
    %c20_407 = arith.constant 20 : index
    %c6_408 = arith.constant 6 : index
    %716 = memref.load %arg1[%c20_407, %c6_408] : memref<36x8xf32, #tpu.memory_space<smem>>
    %717 = vector.broadcast %716 : f32 to vector<15x15xf32>
    %718 = arith.mulf %717, %691 : vector<15x15xf32>
    %719 = arith.addf %685, %718 : vector<15x15xf32>
    %c20_409 = arith.constant 20 : index
    %c7_410 = arith.constant 7 : index
    %720 = memref.load %arg1[%c20_409, %c7_410] : memref<36x8xf32, #tpu.memory_space<smem>>
    %721 = vector.broadcast %720 : f32 to vector<15x15xf32>
    %722 = arith.mulf %721, %691 : vector<15x15xf32>
    %723 = arith.addf %689, %722 : vector<15x15xf32>
    %c0_411 = arith.constant 0 : index
    %c2_412 = arith.constant 2 : index
    %c1_413 = arith.constant 1 : index
    %c0_414 = arith.constant 0 : index
    %724 = vector.load %arg2[%c0_411, %c2_412, %c1_413, %c0_414] : memref<1x4x17x17xf32, #tpu.memory_space<vmem>>, vector<1x1x15x15xf32>
    %725 = vector.shape_cast %724 : vector<1x1x15x15xf32> to vector<15x15xf32>
    %c21 = arith.constant 21 : index
    %c0_415 = arith.constant 0 : index
    %726 = memref.load %arg1[%c21, %c0_415] : memref<36x8xf32, #tpu.memory_space<smem>>
    %727 = vector.broadcast %726 : f32 to vector<15x15xf32>
    %728 = arith.mulf %727, %725 : vector<15x15xf32>
    %729 = arith.addf %695, %728 : vector<15x15xf32>
    %c21_416 = arith.constant 21 : index
    %c1_417 = arith.constant 1 : index
    %730 = memref.load %arg1[%c21_416, %c1_417] : memref<36x8xf32, #tpu.memory_space<smem>>
    %731 = vector.broadcast %730 : f32 to vector<15x15xf32>
    %732 = arith.mulf %731, %725 : vector<15x15xf32>
    %733 = arith.addf %699, %732 : vector<15x15xf32>
    %c21_418 = arith.constant 21 : index
    %c2_419 = arith.constant 2 : index
    %734 = memref.load %arg1[%c21_418, %c2_419] : memref<36x8xf32, #tpu.memory_space<smem>>
    %735 = vector.broadcast %734 : f32 to vector<15x15xf32>
    %736 = arith.mulf %735, %725 : vector<15x15xf32>
    %737 = arith.addf %703, %736 : vector<15x15xf32>
    %c21_420 = arith.constant 21 : index
    %c3_421 = arith.constant 3 : index
    %738 = memref.load %arg1[%c21_420, %c3_421] : memref<36x8xf32, #tpu.memory_space<smem>>
    %739 = vector.broadcast %738 : f32 to vector<15x15xf32>
    %740 = arith.mulf %739, %725 : vector<15x15xf32>
    %741 = arith.addf %707, %740 : vector<15x15xf32>
    %c21_422 = arith.constant 21 : index
    %c4_423 = arith.constant 4 : index
    %742 = memref.load %arg1[%c21_422, %c4_423] : memref<36x8xf32, #tpu.memory_space<smem>>
    %743 = vector.broadcast %742 : f32 to vector<15x15xf32>
    %744 = arith.mulf %743, %725 : vector<15x15xf32>
    %745 = arith.addf %711, %744 : vector<15x15xf32>
    %c21_424 = arith.constant 21 : index
    %c5_425 = arith.constant 5 : index
    %746 = memref.load %arg1[%c21_424, %c5_425] : memref<36x8xf32, #tpu.memory_space<smem>>
    %747 = vector.broadcast %746 : f32 to vector<15x15xf32>
    %748 = arith.mulf %747, %725 : vector<15x15xf32>
    %749 = arith.addf %715, %748 : vector<15x15xf32>
    %c21_426 = arith.constant 21 : index
    %c6_427 = arith.constant 6 : index
    %750 = memref.load %arg1[%c21_426, %c6_427] : memref<36x8xf32, #tpu.memory_space<smem>>
    %751 = vector.broadcast %750 : f32 to vector<15x15xf32>
    %752 = arith.mulf %751, %725 : vector<15x15xf32>
    %753 = arith.addf %719, %752 : vector<15x15xf32>
    %c21_428 = arith.constant 21 : index
    %c7_429 = arith.constant 7 : index
    %754 = memref.load %arg1[%c21_428, %c7_429] : memref<36x8xf32, #tpu.memory_space<smem>>
    %755 = vector.broadcast %754 : f32 to vector<15x15xf32>
    %756 = arith.mulf %755, %725 : vector<15x15xf32>
    %757 = arith.addf %723, %756 : vector<15x15xf32>
    %c0_430 = arith.constant 0 : index
    %c2_431 = arith.constant 2 : index
    %c1_432 = arith.constant 1 : index
    %c1_433 = arith.constant 1 : index
    %758 = vector.load %arg2[%c0_430, %c2_431, %c1_432, %c1_433] : memref<1x4x17x17xf32, #tpu.memory_space<vmem>>, vector<1x1x15x15xf32>
    %759 = vector.shape_cast %758 : vector<1x1x15x15xf32> to vector<15x15xf32>
    %c22 = arith.constant 22 : index
    %c0_434 = arith.constant 0 : index
    %760 = memref.load %arg1[%c22, %c0_434] : memref<36x8xf32, #tpu.memory_space<smem>>
    %761 = vector.broadcast %760 : f32 to vector<15x15xf32>
    %762 = arith.mulf %761, %759 : vector<15x15xf32>
    %763 = arith.addf %729, %762 : vector<15x15xf32>
    %c22_435 = arith.constant 22 : index
    %c1_436 = arith.constant 1 : index
    %764 = memref.load %arg1[%c22_435, %c1_436] : memref<36x8xf32, #tpu.memory_space<smem>>
    %765 = vector.broadcast %764 : f32 to vector<15x15xf32>
    %766 = arith.mulf %765, %759 : vector<15x15xf32>
    %767 = arith.addf %733, %766 : vector<15x15xf32>
    %c22_437 = arith.constant 22 : index
    %c2_438 = arith.constant 2 : index
    %768 = memref.load %arg1[%c22_437, %c2_438] : memref<36x8xf32, #tpu.memory_space<smem>>
    %769 = vector.broadcast %768 : f32 to vector<15x15xf32>
    %770 = arith.mulf %769, %759 : vector<15x15xf32>
    %771 = arith.addf %737, %770 : vector<15x15xf32>
    %c22_439 = arith.constant 22 : index
    %c3_440 = arith.constant 3 : index
    %772 = memref.load %arg1[%c22_439, %c3_440] : memref<36x8xf32, #tpu.memory_space<smem>>
    %773 = vector.broadcast %772 : f32 to vector<15x15xf32>
    %774 = arith.mulf %773, %759 : vector<15x15xf32>
    %775 = arith.addf %741, %774 : vector<15x15xf32>
    %c22_441 = arith.constant 22 : index
    %c4_442 = arith.constant 4 : index
    %776 = memref.load %arg1[%c22_441, %c4_442] : memref<36x8xf32, #tpu.memory_space<smem>>
    %777 = vector.broadcast %776 : f32 to vector<15x15xf32>
    %778 = arith.mulf %777, %759 : vector<15x15xf32>
    %779 = arith.addf %745, %778 : vector<15x15xf32>
    %c22_443 = arith.constant 22 : index
    %c5_444 = arith.constant 5 : index
    %780 = memref.load %arg1[%c22_443, %c5_444] : memref<36x8xf32, #tpu.memory_space<smem>>
    %781 = vector.broadcast %780 : f32 to vector<15x15xf32>
    %782 = arith.mulf %781, %759 : vector<15x15xf32>
    %783 = arith.addf %749, %782 : vector<15x15xf32>
    %c22_445 = arith.constant 22 : index
    %c6_446 = arith.constant 6 : index
    %784 = memref.load %arg1[%c22_445, %c6_446] : memref<36x8xf32, #tpu.memory_space<smem>>
    %785 = vector.broadcast %784 : f32 to vector<15x15xf32>
    %786 = arith.mulf %785, %759 : vector<15x15xf32>
    %787 = arith.addf %753, %786 : vector<15x15xf32>
    %c22_447 = arith.constant 22 : index
    %c7_448 = arith.constant 7 : index
    %788 = memref.load %arg1[%c22_447, %c7_448] : memref<36x8xf32, #tpu.memory_space<smem>>
    %789 = vector.broadcast %788 : f32 to vector<15x15xf32>
    %790 = arith.mulf %789, %759 : vector<15x15xf32>
    %791 = arith.addf %757, %790 : vector<15x15xf32>
    %c0_449 = arith.constant 0 : index
    %c2_450 = arith.constant 2 : index
    %c1_451 = arith.constant 1 : index
    %c2_452 = arith.constant 2 : index
    %792 = vector.load %arg2[%c0_449, %c2_450, %c1_451, %c2_452] : memref<1x4x17x17xf32, #tpu.memory_space<vmem>>, vector<1x1x15x15xf32>
    %793 = vector.shape_cast %792 : vector<1x1x15x15xf32> to vector<15x15xf32>
    %c23 = arith.constant 23 : index
    %c0_453 = arith.constant 0 : index
    %794 = memref.load %arg1[%c23, %c0_453] : memref<36x8xf32, #tpu.memory_space<smem>>
    %795 = vector.broadcast %794 : f32 to vector<15x15xf32>
    %796 = arith.mulf %795, %793 : vector<15x15xf32>
    %797 = arith.addf %763, %796 : vector<15x15xf32>
    %c23_454 = arith.constant 23 : index
    %c1_455 = arith.constant 1 : index
    %798 = memref.load %arg1[%c23_454, %c1_455] : memref<36x8xf32, #tpu.memory_space<smem>>
    %799 = vector.broadcast %798 : f32 to vector<15x15xf32>
    %800 = arith.mulf %799, %793 : vector<15x15xf32>
    %801 = arith.addf %767, %800 : vector<15x15xf32>
    %c23_456 = arith.constant 23 : index
    %c2_457 = arith.constant 2 : index
    %802 = memref.load %arg1[%c23_456, %c2_457] : memref<36x8xf32, #tpu.memory_space<smem>>
    %803 = vector.broadcast %802 : f32 to vector<15x15xf32>
    %804 = arith.mulf %803, %793 : vector<15x15xf32>
    %805 = arith.addf %771, %804 : vector<15x15xf32>
    %c23_458 = arith.constant 23 : index
    %c3_459 = arith.constant 3 : index
    %806 = memref.load %arg1[%c23_458, %c3_459] : memref<36x8xf32, #tpu.memory_space<smem>>
    %807 = vector.broadcast %806 : f32 to vector<15x15xf32>
    %808 = arith.mulf %807, %793 : vector<15x15xf32>
    %809 = arith.addf %775, %808 : vector<15x15xf32>
    %c23_460 = arith.constant 23 : index
    %c4_461 = arith.constant 4 : index
    %810 = memref.load %arg1[%c23_460, %c4_461] : memref<36x8xf32, #tpu.memory_space<smem>>
    %811 = vector.broadcast %810 : f32 to vector<15x15xf32>
    %812 = arith.mulf %811, %793 : vector<15x15xf32>
    %813 = arith.addf %779, %812 : vector<15x15xf32>
    %c23_462 = arith.constant 23 : index
    %c5_463 = arith.constant 5 : index
    %814 = memref.load %arg1[%c23_462, %c5_463] : memref<36x8xf32, #tpu.memory_space<smem>>
    %815 = vector.broadcast %814 : f32 to vector<15x15xf32>
    %816 = arith.mulf %815, %793 : vector<15x15xf32>
    %817 = arith.addf %783, %816 : vector<15x15xf32>
    %c23_464 = arith.constant 23 : index
    %c6_465 = arith.constant 6 : index
    %818 = memref.load %arg1[%c23_464, %c6_465] : memref<36x8xf32, #tpu.memory_space<smem>>
    %819 = vector.broadcast %818 : f32 to vector<15x15xf32>
    %820 = arith.mulf %819, %793 : vector<15x15xf32>
    %821 = arith.addf %787, %820 : vector<15x15xf32>
    %c23_466 = arith.constant 23 : index
    %c7_467 = arith.constant 7 : index
    %822 = memref.load %arg1[%c23_466, %c7_467] : memref<36x8xf32, #tpu.memory_space<smem>>
    %823 = vector.broadcast %822 : f32 to vector<15x15xf32>
    %824 = arith.mulf %823, %793 : vector<15x15xf32>
    %825 = arith.addf %791, %824 : vector<15x15xf32>
    %c0_468 = arith.constant 0 : index
    %c2_469 = arith.constant 2 : index
    %c2_470 = arith.constant 2 : index
    %c0_471 = arith.constant 0 : index
    %826 = vector.load %arg2[%c0_468, %c2_469, %c2_470, %c0_471] : memref<1x4x17x17xf32, #tpu.memory_space<vmem>>, vector<1x1x15x15xf32>
    %827 = vector.shape_cast %826 : vector<1x1x15x15xf32> to vector<15x15xf32>
    %c24 = arith.constant 24 : index
    %c0_472 = arith.constant 0 : index
    %828 = memref.load %arg1[%c24, %c0_472] : memref<36x8xf32, #tpu.memory_space<smem>>
    %829 = vector.broadcast %828 : f32 to vector<15x15xf32>
    %830 = arith.mulf %829, %827 : vector<15x15xf32>
    %831 = arith.addf %797, %830 : vector<15x15xf32>
    %c24_473 = arith.constant 24 : index
    %c1_474 = arith.constant 1 : index
    %832 = memref.load %arg1[%c24_473, %c1_474] : memref<36x8xf32, #tpu.memory_space<smem>>
    %833 = vector.broadcast %832 : f32 to vector<15x15xf32>
    %834 = arith.mulf %833, %827 : vector<15x15xf32>
    %835 = arith.addf %801, %834 : vector<15x15xf32>
    %c24_475 = arith.constant 24 : index
    %c2_476 = arith.constant 2 : index
    %836 = memref.load %arg1[%c24_475, %c2_476] : memref<36x8xf32, #tpu.memory_space<smem>>
    %837 = vector.broadcast %836 : f32 to vector<15x15xf32>
    %838 = arith.mulf %837, %827 : vector<15x15xf32>
    %839 = arith.addf %805, %838 : vector<15x15xf32>
    %c24_477 = arith.constant 24 : index
    %c3_478 = arith.constant 3 : index
    %840 = memref.load %arg1[%c24_477, %c3_478] : memref<36x8xf32, #tpu.memory_space<smem>>
    %841 = vector.broadcast %840 : f32 to vector<15x15xf32>
    %842 = arith.mulf %841, %827 : vector<15x15xf32>
    %843 = arith.addf %809, %842 : vector<15x15xf32>
    %c24_479 = arith.constant 24 : index
    %c4_480 = arith.constant 4 : index
    %844 = memref.load %arg1[%c24_479, %c4_480] : memref<36x8xf32, #tpu.memory_space<smem>>
    %845 = vector.broadcast %844 : f32 to vector<15x15xf32>
    %846 = arith.mulf %845, %827 : vector<15x15xf32>
    %847 = arith.addf %813, %846 : vector<15x15xf32>
    %c24_481 = arith.constant 24 : index
    %c5_482 = arith.constant 5 : index
    %848 = memref.load %arg1[%c24_481, %c5_482] : memref<36x8xf32, #tpu.memory_space<smem>>
    %849 = vector.broadcast %848 : f32 to vector<15x15xf32>
    %850 = arith.mulf %849, %827 : vector<15x15xf32>
    %851 = arith.addf %817, %850 : vector<15x15xf32>
    %c24_483 = arith.constant 24 : index
    %c6_484 = arith.constant 6 : index
    %852 = memref.load %arg1[%c24_483, %c6_484] : memref<36x8xf32, #tpu.memory_space<smem>>
    %853 = vector.broadcast %852 : f32 to vector<15x15xf32>
    %854 = arith.mulf %853, %827 : vector<15x15xf32>
    %855 = arith.addf %821, %854 : vector<15x15xf32>
    %c24_485 = arith.constant 24 : index
    %c7_486 = arith.constant 7 : index
    %856 = memref.load %arg1[%c24_485, %c7_486] : memref<36x8xf32, #tpu.memory_space<smem>>
    %857 = vector.broadcast %856 : f32 to vector<15x15xf32>
    %858 = arith.mulf %857, %827 : vector<15x15xf32>
    %859 = arith.addf %825, %858 : vector<15x15xf32>
    %c0_487 = arith.constant 0 : index
    %c2_488 = arith.constant 2 : index
    %c2_489 = arith.constant 2 : index
    %c1_490 = arith.constant 1 : index
    %860 = vector.load %arg2[%c0_487, %c2_488, %c2_489, %c1_490] : memref<1x4x17x17xf32, #tpu.memory_space<vmem>>, vector<1x1x15x15xf32>
    %861 = vector.shape_cast %860 : vector<1x1x15x15xf32> to vector<15x15xf32>
    %c25 = arith.constant 25 : index
    %c0_491 = arith.constant 0 : index
    %862 = memref.load %arg1[%c25, %c0_491] : memref<36x8xf32, #tpu.memory_space<smem>>
    %863 = vector.broadcast %862 : f32 to vector<15x15xf32>
    %864 = arith.mulf %863, %861 : vector<15x15xf32>
    %865 = arith.addf %831, %864 : vector<15x15xf32>
    %c25_492 = arith.constant 25 : index
    %c1_493 = arith.constant 1 : index
    %866 = memref.load %arg1[%c25_492, %c1_493] : memref<36x8xf32, #tpu.memory_space<smem>>
    %867 = vector.broadcast %866 : f32 to vector<15x15xf32>
    %868 = arith.mulf %867, %861 : vector<15x15xf32>
    %869 = arith.addf %835, %868 : vector<15x15xf32>
    %c25_494 = arith.constant 25 : index
    %c2_495 = arith.constant 2 : index
    %870 = memref.load %arg1[%c25_494, %c2_495] : memref<36x8xf32, #tpu.memory_space<smem>>
    %871 = vector.broadcast %870 : f32 to vector<15x15xf32>
    %872 = arith.mulf %871, %861 : vector<15x15xf32>
    %873 = arith.addf %839, %872 : vector<15x15xf32>
    %c25_496 = arith.constant 25 : index
    %c3_497 = arith.constant 3 : index
    %874 = memref.load %arg1[%c25_496, %c3_497] : memref<36x8xf32, #tpu.memory_space<smem>>
    %875 = vector.broadcast %874 : f32 to vector<15x15xf32>
    %876 = arith.mulf %875, %861 : vector<15x15xf32>
    %877 = arith.addf %843, %876 : vector<15x15xf32>
    %c25_498 = arith.constant 25 : index
    %c4_499 = arith.constant 4 : index
    %878 = memref.load %arg1[%c25_498, %c4_499] : memref<36x8xf32, #tpu.memory_space<smem>>
    %879 = vector.broadcast %878 : f32 to vector<15x15xf32>
    %880 = arith.mulf %879, %861 : vector<15x15xf32>
    %881 = arith.addf %847, %880 : vector<15x15xf32>
    %c25_500 = arith.constant 25 : index
    %c5_501 = arith.constant 5 : index
    %882 = memref.load %arg1[%c25_500, %c5_501] : memref<36x8xf32, #tpu.memory_space<smem>>
    %883 = vector.broadcast %882 : f32 to vector<15x15xf32>
    %884 = arith.mulf %883, %861 : vector<15x15xf32>
    %885 = arith.addf %851, %884 : vector<15x15xf32>
    %c25_502 = arith.constant 25 : index
    %c6_503 = arith.constant 6 : index
    %886 = memref.load %arg1[%c25_502, %c6_503] : memref<36x8xf32, #tpu.memory_space<smem>>
    %887 = vector.broadcast %886 : f32 to vector<15x15xf32>
    %888 = arith.mulf %887, %861 : vector<15x15xf32>
    %889 = arith.addf %855, %888 : vector<15x15xf32>
    %c25_504 = arith.constant 25 : index
    %c7_505 = arith.constant 7 : index
    %890 = memref.load %arg1[%c25_504, %c7_505] : memref<36x8xf32, #tpu.memory_space<smem>>
    %891 = vector.broadcast %890 : f32 to vector<15x15xf32>
    %892 = arith.mulf %891, %861 : vector<15x15xf32>
    %893 = arith.addf %859, %892 : vector<15x15xf32>
    %c0_506 = arith.constant 0 : index
    %c2_507 = arith.constant 2 : index
    %c2_508 = arith.constant 2 : index
    %c2_509 = arith.constant 2 : index
    %894 = vector.load %arg2[%c0_506, %c2_507, %c2_508, %c2_509] : memref<1x4x17x17xf32, #tpu.memory_space<vmem>>, vector<1x1x15x15xf32>
    %895 = vector.shape_cast %894 : vector<1x1x15x15xf32> to vector<15x15xf32>
    %c26 = arith.constant 26 : index
    %c0_510 = arith.constant 0 : index
    %896 = memref.load %arg1[%c26, %c0_510] : memref<36x8xf32, #tpu.memory_space<smem>>
    %897 = vector.broadcast %896 : f32 to vector<15x15xf32>
    %898 = arith.mulf %897, %895 : vector<15x15xf32>
    %899 = arith.addf %865, %898 : vector<15x15xf32>
    %c26_511 = arith.constant 26 : index
    %c1_512 = arith.constant 1 : index
    %900 = memref.load %arg1[%c26_511, %c1_512] : memref<36x8xf32, #tpu.memory_space<smem>>
    %901 = vector.broadcast %900 : f32 to vector<15x15xf32>
    %902 = arith.mulf %901, %895 : vector<15x15xf32>
    %903 = arith.addf %869, %902 : vector<15x15xf32>
    %c26_513 = arith.constant 26 : index
    %c2_514 = arith.constant 2 : index
    %904 = memref.load %arg1[%c26_513, %c2_514] : memref<36x8xf32, #tpu.memory_space<smem>>
    %905 = vector.broadcast %904 : f32 to vector<15x15xf32>
    %906 = arith.mulf %905, %895 : vector<15x15xf32>
    %907 = arith.addf %873, %906 : vector<15x15xf32>
    %c26_515 = arith.constant 26 : index
    %c3_516 = arith.constant 3 : index
    %908 = memref.load %arg1[%c26_515, %c3_516] : memref<36x8xf32, #tpu.memory_space<smem>>
    %909 = vector.broadcast %908 : f32 to vector<15x15xf32>
    %910 = arith.mulf %909, %895 : vector<15x15xf32>
    %911 = arith.addf %877, %910 : vector<15x15xf32>
    %c26_517 = arith.constant 26 : index
    %c4_518 = arith.constant 4 : index
    %912 = memref.load %arg1[%c26_517, %c4_518] : memref<36x8xf32, #tpu.memory_space<smem>>
    %913 = vector.broadcast %912 : f32 to vector<15x15xf32>
    %914 = arith.mulf %913, %895 : vector<15x15xf32>
    %915 = arith.addf %881, %914 : vector<15x15xf32>
    %c26_519 = arith.constant 26 : index
    %c5_520 = arith.constant 5 : index
    %916 = memref.load %arg1[%c26_519, %c5_520] : memref<36x8xf32, #tpu.memory_space<smem>>
    %917 = vector.broadcast %916 : f32 to vector<15x15xf32>
    %918 = arith.mulf %917, %895 : vector<15x15xf32>
    %919 = arith.addf %885, %918 : vector<15x15xf32>
    %c26_521 = arith.constant 26 : index
    %c6_522 = arith.constant 6 : index
    %920 = memref.load %arg1[%c26_521, %c6_522] : memref<36x8xf32, #tpu.memory_space<smem>>
    %921 = vector.broadcast %920 : f32 to vector<15x15xf32>
    %922 = arith.mulf %921, %895 : vector<15x15xf32>
    %923 = arith.addf %889, %922 : vector<15x15xf32>
    %c26_523 = arith.constant 26 : index
    %c7_524 = arith.constant 7 : index
    %924 = memref.load %arg1[%c26_523, %c7_524] : memref<36x8xf32, #tpu.memory_space<smem>>
    %925 = vector.broadcast %924 : f32 to vector<15x15xf32>
    %926 = arith.mulf %925, %895 : vector<15x15xf32>
    %927 = arith.addf %893, %926 : vector<15x15xf32>
    %c0_525 = arith.constant 0 : index
    %c3_526 = arith.constant 3 : index
    %c0_527 = arith.constant 0 : index
    %c0_528 = arith.constant 0 : index
    %928 = vector.load %arg2[%c0_525, %c3_526, %c0_527, %c0_528] : memref<1x4x17x17xf32, #tpu.memory_space<vmem>>, vector<1x1x15x15xf32>
    %929 = vector.shape_cast %928 : vector<1x1x15x15xf32> to vector<15x15xf32>
    %c27 = arith.constant 27 : index
    %c0_529 = arith.constant 0 : index
    %930 = memref.load %arg1[%c27, %c0_529] : memref<36x8xf32, #tpu.memory_space<smem>>
    %931 = vector.broadcast %930 : f32 to vector<15x15xf32>
    %932 = arith.mulf %931, %929 : vector<15x15xf32>
    %933 = arith.addf %899, %932 : vector<15x15xf32>
    %c27_530 = arith.constant 27 : index
    %c1_531 = arith.constant 1 : index
    %934 = memref.load %arg1[%c27_530, %c1_531] : memref<36x8xf32, #tpu.memory_space<smem>>
    %935 = vector.broadcast %934 : f32 to vector<15x15xf32>
    %936 = arith.mulf %935, %929 : vector<15x15xf32>
    %937 = arith.addf %903, %936 : vector<15x15xf32>
    %c27_532 = arith.constant 27 : index
    %c2_533 = arith.constant 2 : index
    %938 = memref.load %arg1[%c27_532, %c2_533] : memref<36x8xf32, #tpu.memory_space<smem>>
    %939 = vector.broadcast %938 : f32 to vector<15x15xf32>
    %940 = arith.mulf %939, %929 : vector<15x15xf32>
    %941 = arith.addf %907, %940 : vector<15x15xf32>
    %c27_534 = arith.constant 27 : index
    %c3_535 = arith.constant 3 : index
    %942 = memref.load %arg1[%c27_534, %c3_535] : memref<36x8xf32, #tpu.memory_space<smem>>
    %943 = vector.broadcast %942 : f32 to vector<15x15xf32>
    %944 = arith.mulf %943, %929 : vector<15x15xf32>
    %945 = arith.addf %911, %944 : vector<15x15xf32>
    %c27_536 = arith.constant 27 : index
    %c4_537 = arith.constant 4 : index
    %946 = memref.load %arg1[%c27_536, %c4_537] : memref<36x8xf32, #tpu.memory_space<smem>>
    %947 = vector.broadcast %946 : f32 to vector<15x15xf32>
    %948 = arith.mulf %947, %929 : vector<15x15xf32>
    %949 = arith.addf %915, %948 : vector<15x15xf32>
    %c27_538 = arith.constant 27 : index
    %c5_539 = arith.constant 5 : index
    %950 = memref.load %arg1[%c27_538, %c5_539] : memref<36x8xf32, #tpu.memory_space<smem>>
    %951 = vector.broadcast %950 : f32 to vector<15x15xf32>
    %952 = arith.mulf %951, %929 : vector<15x15xf32>
    %953 = arith.addf %919, %952 : vector<15x15xf32>
    %c27_540 = arith.constant 27 : index
    %c6_541 = arith.constant 6 : index
    %954 = memref.load %arg1[%c27_540, %c6_541] : memref<36x8xf32, #tpu.memory_space<smem>>
    %955 = vector.broadcast %954 : f32 to vector<15x15xf32>
    %956 = arith.mulf %955, %929 : vector<15x15xf32>
    %957 = arith.addf %923, %956 : vector<15x15xf32>
    %c27_542 = arith.constant 27 : index
    %c7_543 = arith.constant 7 : index
    %958 = memref.load %arg1[%c27_542, %c7_543] : memref<36x8xf32, #tpu.memory_space<smem>>
    %959 = vector.broadcast %958 : f32 to vector<15x15xf32>
    %960 = arith.mulf %959, %929 : vector<15x15xf32>
    %961 = arith.addf %927, %960 : vector<15x15xf32>
    %c0_544 = arith.constant 0 : index
    %c3_545 = arith.constant 3 : index
    %c0_546 = arith.constant 0 : index
    %c1_547 = arith.constant 1 : index
    %962 = vector.load %arg2[%c0_544, %c3_545, %c0_546, %c1_547] : memref<1x4x17x17xf32, #tpu.memory_space<vmem>>, vector<1x1x15x15xf32>
    %963 = vector.shape_cast %962 : vector<1x1x15x15xf32> to vector<15x15xf32>
    %c28 = arith.constant 28 : index
    %c0_548 = arith.constant 0 : index
    %964 = memref.load %arg1[%c28, %c0_548] : memref<36x8xf32, #tpu.memory_space<smem>>
    %965 = vector.broadcast %964 : f32 to vector<15x15xf32>
    %966 = arith.mulf %965, %963 : vector<15x15xf32>
    %967 = arith.addf %933, %966 : vector<15x15xf32>
    %c28_549 = arith.constant 28 : index
    %c1_550 = arith.constant 1 : index
    %968 = memref.load %arg1[%c28_549, %c1_550] : memref<36x8xf32, #tpu.memory_space<smem>>
    %969 = vector.broadcast %968 : f32 to vector<15x15xf32>
    %970 = arith.mulf %969, %963 : vector<15x15xf32>
    %971 = arith.addf %937, %970 : vector<15x15xf32>
    %c28_551 = arith.constant 28 : index
    %c2_552 = arith.constant 2 : index
    %972 = memref.load %arg1[%c28_551, %c2_552] : memref<36x8xf32, #tpu.memory_space<smem>>
    %973 = vector.broadcast %972 : f32 to vector<15x15xf32>
    %974 = arith.mulf %973, %963 : vector<15x15xf32>
    %975 = arith.addf %941, %974 : vector<15x15xf32>
    %c28_553 = arith.constant 28 : index
    %c3_554 = arith.constant 3 : index
    %976 = memref.load %arg1[%c28_553, %c3_554] : memref<36x8xf32, #tpu.memory_space<smem>>
    %977 = vector.broadcast %976 : f32 to vector<15x15xf32>
    %978 = arith.mulf %977, %963 : vector<15x15xf32>
    %979 = arith.addf %945, %978 : vector<15x15xf32>
    %c28_555 = arith.constant 28 : index
    %c4_556 = arith.constant 4 : index
    %980 = memref.load %arg1[%c28_555, %c4_556] : memref<36x8xf32, #tpu.memory_space<smem>>
    %981 = vector.broadcast %980 : f32 to vector<15x15xf32>
    %982 = arith.mulf %981, %963 : vector<15x15xf32>
    %983 = arith.addf %949, %982 : vector<15x15xf32>
    %c28_557 = arith.constant 28 : index
    %c5_558 = arith.constant 5 : index
    %984 = memref.load %arg1[%c28_557, %c5_558] : memref<36x8xf32, #tpu.memory_space<smem>>
    %985 = vector.broadcast %984 : f32 to vector<15x15xf32>
    %986 = arith.mulf %985, %963 : vector<15x15xf32>
    %987 = arith.addf %953, %986 : vector<15x15xf32>
    %c28_559 = arith.constant 28 : index
    %c6_560 = arith.constant 6 : index
    %988 = memref.load %arg1[%c28_559, %c6_560] : memref<36x8xf32, #tpu.memory_space<smem>>
    %989 = vector.broadcast %988 : f32 to vector<15x15xf32>
    %990 = arith.mulf %989, %963 : vector<15x15xf32>
    %991 = arith.addf %957, %990 : vector<15x15xf32>
    %c28_561 = arith.constant 28 : index
    %c7_562 = arith.constant 7 : index
    %992 = memref.load %arg1[%c28_561, %c7_562] : memref<36x8xf32, #tpu.memory_space<smem>>
    %993 = vector.broadcast %992 : f32 to vector<15x15xf32>
    %994 = arith.mulf %993, %963 : vector<15x15xf32>
    %995 = arith.addf %961, %994 : vector<15x15xf32>
    %c0_563 = arith.constant 0 : index
    %c3_564 = arith.constant 3 : index
    %c0_565 = arith.constant 0 : index
    %c2_566 = arith.constant 2 : index
    %996 = vector.load %arg2[%c0_563, %c3_564, %c0_565, %c2_566] : memref<1x4x17x17xf32, #tpu.memory_space<vmem>>, vector<1x1x15x15xf32>
    %997 = vector.shape_cast %996 : vector<1x1x15x15xf32> to vector<15x15xf32>
    %c29 = arith.constant 29 : index
    %c0_567 = arith.constant 0 : index
    %998 = memref.load %arg1[%c29, %c0_567] : memref<36x8xf32, #tpu.memory_space<smem>>
    %999 = vector.broadcast %998 : f32 to vector<15x15xf32>
    %1000 = arith.mulf %999, %997 : vector<15x15xf32>
    %1001 = arith.addf %967, %1000 : vector<15x15xf32>
    %c29_568 = arith.constant 29 : index
    %c1_569 = arith.constant 1 : index
    %1002 = memref.load %arg1[%c29_568, %c1_569] : memref<36x8xf32, #tpu.memory_space<smem>>
    %1003 = vector.broadcast %1002 : f32 to vector<15x15xf32>
    %1004 = arith.mulf %1003, %997 : vector<15x15xf32>
    %1005 = arith.addf %971, %1004 : vector<15x15xf32>
    %c29_570 = arith.constant 29 : index
    %c2_571 = arith.constant 2 : index
    %1006 = memref.load %arg1[%c29_570, %c2_571] : memref<36x8xf32, #tpu.memory_space<smem>>
    %1007 = vector.broadcast %1006 : f32 to vector<15x15xf32>
    %1008 = arith.mulf %1007, %997 : vector<15x15xf32>
    %1009 = arith.addf %975, %1008 : vector<15x15xf32>
    %c29_572 = arith.constant 29 : index
    %c3_573 = arith.constant 3 : index
    %1010 = memref.load %arg1[%c29_572, %c3_573] : memref<36x8xf32, #tpu.memory_space<smem>>
    %1011 = vector.broadcast %1010 : f32 to vector<15x15xf32>
    %1012 = arith.mulf %1011, %997 : vector<15x15xf32>
    %1013 = arith.addf %979, %1012 : vector<15x15xf32>
    %c29_574 = arith.constant 29 : index
    %c4_575 = arith.constant 4 : index
    %1014 = memref.load %arg1[%c29_574, %c4_575] : memref<36x8xf32, #tpu.memory_space<smem>>
    %1015 = vector.broadcast %1014 : f32 to vector<15x15xf32>
    %1016 = arith.mulf %1015, %997 : vector<15x15xf32>
    %1017 = arith.addf %983, %1016 : vector<15x15xf32>
    %c29_576 = arith.constant 29 : index
    %c5_577 = arith.constant 5 : index
    %1018 = memref.load %arg1[%c29_576, %c5_577] : memref<36x8xf32, #tpu.memory_space<smem>>
    %1019 = vector.broadcast %1018 : f32 to vector<15x15xf32>
    %1020 = arith.mulf %1019, %997 : vector<15x15xf32>
    %1021 = arith.addf %987, %1020 : vector<15x15xf32>
    %c29_578 = arith.constant 29 : index
    %c6_579 = arith.constant 6 : index
    %1022 = memref.load %arg1[%c29_578, %c6_579] : memref<36x8xf32, #tpu.memory_space<smem>>
    %1023 = vector.broadcast %1022 : f32 to vector<15x15xf32>
    %1024 = arith.mulf %1023, %997 : vector<15x15xf32>
    %1025 = arith.addf %991, %1024 : vector<15x15xf32>
    %c29_580 = arith.constant 29 : index
    %c7_581 = arith.constant 7 : index
    %1026 = memref.load %arg1[%c29_580, %c7_581] : memref<36x8xf32, #tpu.memory_space<smem>>
    %1027 = vector.broadcast %1026 : f32 to vector<15x15xf32>
    %1028 = arith.mulf %1027, %997 : vector<15x15xf32>
    %1029 = arith.addf %995, %1028 : vector<15x15xf32>
    %c0_582 = arith.constant 0 : index
    %c3_583 = arith.constant 3 : index
    %c1_584 = arith.constant 1 : index
    %c0_585 = arith.constant 0 : index
    %1030 = vector.load %arg2[%c0_582, %c3_583, %c1_584, %c0_585] : memref<1x4x17x17xf32, #tpu.memory_space<vmem>>, vector<1x1x15x15xf32>
    %1031 = vector.shape_cast %1030 : vector<1x1x15x15xf32> to vector<15x15xf32>
    %c30 = arith.constant 30 : index
    %c0_586 = arith.constant 0 : index
    %1032 = memref.load %arg1[%c30, %c0_586] : memref<36x8xf32, #tpu.memory_space<smem>>
    %1033 = vector.broadcast %1032 : f32 to vector<15x15xf32>
    %1034 = arith.mulf %1033, %1031 : vector<15x15xf32>
    %1035 = arith.addf %1001, %1034 : vector<15x15xf32>
    %c30_587 = arith.constant 30 : index
    %c1_588 = arith.constant 1 : index
    %1036 = memref.load %arg1[%c30_587, %c1_588] : memref<36x8xf32, #tpu.memory_space<smem>>
    %1037 = vector.broadcast %1036 : f32 to vector<15x15xf32>
    %1038 = arith.mulf %1037, %1031 : vector<15x15xf32>
    %1039 = arith.addf %1005, %1038 : vector<15x15xf32>
    %c30_589 = arith.constant 30 : index
    %c2_590 = arith.constant 2 : index
    %1040 = memref.load %arg1[%c30_589, %c2_590] : memref<36x8xf32, #tpu.memory_space<smem>>
    %1041 = vector.broadcast %1040 : f32 to vector<15x15xf32>
    %1042 = arith.mulf %1041, %1031 : vector<15x15xf32>
    %1043 = arith.addf %1009, %1042 : vector<15x15xf32>
    %c30_591 = arith.constant 30 : index
    %c3_592 = arith.constant 3 : index
    %1044 = memref.load %arg1[%c30_591, %c3_592] : memref<36x8xf32, #tpu.memory_space<smem>>
    %1045 = vector.broadcast %1044 : f32 to vector<15x15xf32>
    %1046 = arith.mulf %1045, %1031 : vector<15x15xf32>
    %1047 = arith.addf %1013, %1046 : vector<15x15xf32>
    %c30_593 = arith.constant 30 : index
    %c4_594 = arith.constant 4 : index
    %1048 = memref.load %arg1[%c30_593, %c4_594] : memref<36x8xf32, #tpu.memory_space<smem>>
    %1049 = vector.broadcast %1048 : f32 to vector<15x15xf32>
    %1050 = arith.mulf %1049, %1031 : vector<15x15xf32>
    %1051 = arith.addf %1017, %1050 : vector<15x15xf32>
    %c30_595 = arith.constant 30 : index
    %c5_596 = arith.constant 5 : index
    %1052 = memref.load %arg1[%c30_595, %c5_596] : memref<36x8xf32, #tpu.memory_space<smem>>
    %1053 = vector.broadcast %1052 : f32 to vector<15x15xf32>
    %1054 = arith.mulf %1053, %1031 : vector<15x15xf32>
    %1055 = arith.addf %1021, %1054 : vector<15x15xf32>
    %c30_597 = arith.constant 30 : index
    %c6_598 = arith.constant 6 : index
    %1056 = memref.load %arg1[%c30_597, %c6_598] : memref<36x8xf32, #tpu.memory_space<smem>>
    %1057 = vector.broadcast %1056 : f32 to vector<15x15xf32>
    %1058 = arith.mulf %1057, %1031 : vector<15x15xf32>
    %1059 = arith.addf %1025, %1058 : vector<15x15xf32>
    %c30_599 = arith.constant 30 : index
    %c7_600 = arith.constant 7 : index
    %1060 = memref.load %arg1[%c30_599, %c7_600] : memref<36x8xf32, #tpu.memory_space<smem>>
    %1061 = vector.broadcast %1060 : f32 to vector<15x15xf32>
    %1062 = arith.mulf %1061, %1031 : vector<15x15xf32>
    %1063 = arith.addf %1029, %1062 : vector<15x15xf32>
    %c0_601 = arith.constant 0 : index
    %c3_602 = arith.constant 3 : index
    %c1_603 = arith.constant 1 : index
    %c1_604 = arith.constant 1 : index
    %1064 = vector.load %arg2[%c0_601, %c3_602, %c1_603, %c1_604] : memref<1x4x17x17xf32, #tpu.memory_space<vmem>>, vector<1x1x15x15xf32>
    %1065 = vector.shape_cast %1064 : vector<1x1x15x15xf32> to vector<15x15xf32>
    %c31 = arith.constant 31 : index
    %c0_605 = arith.constant 0 : index
    %1066 = memref.load %arg1[%c31, %c0_605] : memref<36x8xf32, #tpu.memory_space<smem>>
    %1067 = vector.broadcast %1066 : f32 to vector<15x15xf32>
    %1068 = arith.mulf %1067, %1065 : vector<15x15xf32>
    %1069 = arith.addf %1035, %1068 : vector<15x15xf32>
    %c31_606 = arith.constant 31 : index
    %c1_607 = arith.constant 1 : index
    %1070 = memref.load %arg1[%c31_606, %c1_607] : memref<36x8xf32, #tpu.memory_space<smem>>
    %1071 = vector.broadcast %1070 : f32 to vector<15x15xf32>
    %1072 = arith.mulf %1071, %1065 : vector<15x15xf32>
    %1073 = arith.addf %1039, %1072 : vector<15x15xf32>
    %c31_608 = arith.constant 31 : index
    %c2_609 = arith.constant 2 : index
    %1074 = memref.load %arg1[%c31_608, %c2_609] : memref<36x8xf32, #tpu.memory_space<smem>>
    %1075 = vector.broadcast %1074 : f32 to vector<15x15xf32>
    %1076 = arith.mulf %1075, %1065 : vector<15x15xf32>
    %1077 = arith.addf %1043, %1076 : vector<15x15xf32>
    %c31_610 = arith.constant 31 : index
    %c3_611 = arith.constant 3 : index
    %1078 = memref.load %arg1[%c31_610, %c3_611] : memref<36x8xf32, #tpu.memory_space<smem>>
    %1079 = vector.broadcast %1078 : f32 to vector<15x15xf32>
    %1080 = arith.mulf %1079, %1065 : vector<15x15xf32>
    %1081 = arith.addf %1047, %1080 : vector<15x15xf32>
    %c31_612 = arith.constant 31 : index
    %c4_613 = arith.constant 4 : index
    %1082 = memref.load %arg1[%c31_612, %c4_613] : memref<36x8xf32, #tpu.memory_space<smem>>
    %1083 = vector.broadcast %1082 : f32 to vector<15x15xf32>
    %1084 = arith.mulf %1083, %1065 : vector<15x15xf32>
    %1085 = arith.addf %1051, %1084 : vector<15x15xf32>
    %c31_614 = arith.constant 31 : index
    %c5_615 = arith.constant 5 : index
    %1086 = memref.load %arg1[%c31_614, %c5_615] : memref<36x8xf32, #tpu.memory_space<smem>>
    %1087 = vector.broadcast %1086 : f32 to vector<15x15xf32>
    %1088 = arith.mulf %1087, %1065 : vector<15x15xf32>
    %1089 = arith.addf %1055, %1088 : vector<15x15xf32>
    %c31_616 = arith.constant 31 : index
    %c6_617 = arith.constant 6 : index
    %1090 = memref.load %arg1[%c31_616, %c6_617] : memref<36x8xf32, #tpu.memory_space<smem>>
    %1091 = vector.broadcast %1090 : f32 to vector<15x15xf32>
    %1092 = arith.mulf %1091, %1065 : vector<15x15xf32>
    %1093 = arith.addf %1059, %1092 : vector<15x15xf32>
    %c31_618 = arith.constant 31 : index
    %c7_619 = arith.constant 7 : index
    %1094 = memref.load %arg1[%c31_618, %c7_619] : memref<36x8xf32, #tpu.memory_space<smem>>
    %1095 = vector.broadcast %1094 : f32 to vector<15x15xf32>
    %1096 = arith.mulf %1095, %1065 : vector<15x15xf32>
    %1097 = arith.addf %1063, %1096 : vector<15x15xf32>
    %c0_620 = arith.constant 0 : index
    %c3_621 = arith.constant 3 : index
    %c1_622 = arith.constant 1 : index
    %c2_623 = arith.constant 2 : index
    %1098 = vector.load %arg2[%c0_620, %c3_621, %c1_622, %c2_623] : memref<1x4x17x17xf32, #tpu.memory_space<vmem>>, vector<1x1x15x15xf32>
    %1099 = vector.shape_cast %1098 : vector<1x1x15x15xf32> to vector<15x15xf32>
    %c32 = arith.constant 32 : index
    %c0_624 = arith.constant 0 : index
    %1100 = memref.load %arg1[%c32, %c0_624] : memref<36x8xf32, #tpu.memory_space<smem>>
    %1101 = vector.broadcast %1100 : f32 to vector<15x15xf32>
    %1102 = arith.mulf %1101, %1099 : vector<15x15xf32>
    %1103 = arith.addf %1069, %1102 : vector<15x15xf32>
    %c32_625 = arith.constant 32 : index
    %c1_626 = arith.constant 1 : index
    %1104 = memref.load %arg1[%c32_625, %c1_626] : memref<36x8xf32, #tpu.memory_space<smem>>
    %1105 = vector.broadcast %1104 : f32 to vector<15x15xf32>
    %1106 = arith.mulf %1105, %1099 : vector<15x15xf32>
    %1107 = arith.addf %1073, %1106 : vector<15x15xf32>
    %c32_627 = arith.constant 32 : index
    %c2_628 = arith.constant 2 : index
    %1108 = memref.load %arg1[%c32_627, %c2_628] : memref<36x8xf32, #tpu.memory_space<smem>>
    %1109 = vector.broadcast %1108 : f32 to vector<15x15xf32>
    %1110 = arith.mulf %1109, %1099 : vector<15x15xf32>
    %1111 = arith.addf %1077, %1110 : vector<15x15xf32>
    %c32_629 = arith.constant 32 : index
    %c3_630 = arith.constant 3 : index
    %1112 = memref.load %arg1[%c32_629, %c3_630] : memref<36x8xf32, #tpu.memory_space<smem>>
    %1113 = vector.broadcast %1112 : f32 to vector<15x15xf32>
    %1114 = arith.mulf %1113, %1099 : vector<15x15xf32>
    %1115 = arith.addf %1081, %1114 : vector<15x15xf32>
    %c32_631 = arith.constant 32 : index
    %c4_632 = arith.constant 4 : index
    %1116 = memref.load %arg1[%c32_631, %c4_632] : memref<36x8xf32, #tpu.memory_space<smem>>
    %1117 = vector.broadcast %1116 : f32 to vector<15x15xf32>
    %1118 = arith.mulf %1117, %1099 : vector<15x15xf32>
    %1119 = arith.addf %1085, %1118 : vector<15x15xf32>
    %c32_633 = arith.constant 32 : index
    %c5_634 = arith.constant 5 : index
    %1120 = memref.load %arg1[%c32_633, %c5_634] : memref<36x8xf32, #tpu.memory_space<smem>>
    %1121 = vector.broadcast %1120 : f32 to vector<15x15xf32>
    %1122 = arith.mulf %1121, %1099 : vector<15x15xf32>
    %1123 = arith.addf %1089, %1122 : vector<15x15xf32>
    %c32_635 = arith.constant 32 : index
    %c6_636 = arith.constant 6 : index
    %1124 = memref.load %arg1[%c32_635, %c6_636] : memref<36x8xf32, #tpu.memory_space<smem>>
    %1125 = vector.broadcast %1124 : f32 to vector<15x15xf32>
    %1126 = arith.mulf %1125, %1099 : vector<15x15xf32>
    %1127 = arith.addf %1093, %1126 : vector<15x15xf32>
    %c32_637 = arith.constant 32 : index
    %c7_638 = arith.constant 7 : index
    %1128 = memref.load %arg1[%c32_637, %c7_638] : memref<36x8xf32, #tpu.memory_space<smem>>
    %1129 = vector.broadcast %1128 : f32 to vector<15x15xf32>
    %1130 = arith.mulf %1129, %1099 : vector<15x15xf32>
    %1131 = arith.addf %1097, %1130 : vector<15x15xf32>
    %c0_639 = arith.constant 0 : index
    %c3_640 = arith.constant 3 : index
    %c2_641 = arith.constant 2 : index
    %c0_642 = arith.constant 0 : index
    %1132 = vector.load %arg2[%c0_639, %c3_640, %c2_641, %c0_642] : memref<1x4x17x17xf32, #tpu.memory_space<vmem>>, vector<1x1x15x15xf32>
    %1133 = vector.shape_cast %1132 : vector<1x1x15x15xf32> to vector<15x15xf32>
    %c33 = arith.constant 33 : index
    %c0_643 = arith.constant 0 : index
    %1134 = memref.load %arg1[%c33, %c0_643] : memref<36x8xf32, #tpu.memory_space<smem>>
    %1135 = vector.broadcast %1134 : f32 to vector<15x15xf32>
    %1136 = arith.mulf %1135, %1133 : vector<15x15xf32>
    %1137 = arith.addf %1103, %1136 : vector<15x15xf32>
    %c33_644 = arith.constant 33 : index
    %c1_645 = arith.constant 1 : index
    %1138 = memref.load %arg1[%c33_644, %c1_645] : memref<36x8xf32, #tpu.memory_space<smem>>
    %1139 = vector.broadcast %1138 : f32 to vector<15x15xf32>
    %1140 = arith.mulf %1139, %1133 : vector<15x15xf32>
    %1141 = arith.addf %1107, %1140 : vector<15x15xf32>
    %c33_646 = arith.constant 33 : index
    %c2_647 = arith.constant 2 : index
    %1142 = memref.load %arg1[%c33_646, %c2_647] : memref<36x8xf32, #tpu.memory_space<smem>>
    %1143 = vector.broadcast %1142 : f32 to vector<15x15xf32>
    %1144 = arith.mulf %1143, %1133 : vector<15x15xf32>
    %1145 = arith.addf %1111, %1144 : vector<15x15xf32>
    %c33_648 = arith.constant 33 : index
    %c3_649 = arith.constant 3 : index
    %1146 = memref.load %arg1[%c33_648, %c3_649] : memref<36x8xf32, #tpu.memory_space<smem>>
    %1147 = vector.broadcast %1146 : f32 to vector<15x15xf32>
    %1148 = arith.mulf %1147, %1133 : vector<15x15xf32>
    %1149 = arith.addf %1115, %1148 : vector<15x15xf32>
    %c33_650 = arith.constant 33 : index
    %c4_651 = arith.constant 4 : index
    %1150 = memref.load %arg1[%c33_650, %c4_651] : memref<36x8xf32, #tpu.memory_space<smem>>
    %1151 = vector.broadcast %1150 : f32 to vector<15x15xf32>
    %1152 = arith.mulf %1151, %1133 : vector<15x15xf32>
    %1153 = arith.addf %1119, %1152 : vector<15x15xf32>
    %c33_652 = arith.constant 33 : index
    %c5_653 = arith.constant 5 : index
    %1154 = memref.load %arg1[%c33_652, %c5_653] : memref<36x8xf32, #tpu.memory_space<smem>>
    %1155 = vector.broadcast %1154 : f32 to vector<15x15xf32>
    %1156 = arith.mulf %1155, %1133 : vector<15x15xf32>
    %1157 = arith.addf %1123, %1156 : vector<15x15xf32>
    %c33_654 = arith.constant 33 : index
    %c6_655 = arith.constant 6 : index
    %1158 = memref.load %arg1[%c33_654, %c6_655] : memref<36x8xf32, #tpu.memory_space<smem>>
    %1159 = vector.broadcast %1158 : f32 to vector<15x15xf32>
    %1160 = arith.mulf %1159, %1133 : vector<15x15xf32>
    %1161 = arith.addf %1127, %1160 : vector<15x15xf32>
    %c33_656 = arith.constant 33 : index
    %c7_657 = arith.constant 7 : index
    %1162 = memref.load %arg1[%c33_656, %c7_657] : memref<36x8xf32, #tpu.memory_space<smem>>
    %1163 = vector.broadcast %1162 : f32 to vector<15x15xf32>
    %1164 = arith.mulf %1163, %1133 : vector<15x15xf32>
    %1165 = arith.addf %1131, %1164 : vector<15x15xf32>
    %c0_658 = arith.constant 0 : index
    %c3_659 = arith.constant 3 : index
    %c2_660 = arith.constant 2 : index
    %c1_661 = arith.constant 1 : index
    %1166 = vector.load %arg2[%c0_658, %c3_659, %c2_660, %c1_661] : memref<1x4x17x17xf32, #tpu.memory_space<vmem>>, vector<1x1x15x15xf32>
    %1167 = vector.shape_cast %1166 : vector<1x1x15x15xf32> to vector<15x15xf32>
    %c34 = arith.constant 34 : index
    %c0_662 = arith.constant 0 : index
    %1168 = memref.load %arg1[%c34, %c0_662] : memref<36x8xf32, #tpu.memory_space<smem>>
    %1169 = vector.broadcast %1168 : f32 to vector<15x15xf32>
    %1170 = arith.mulf %1169, %1167 : vector<15x15xf32>
    %1171 = arith.addf %1137, %1170 : vector<15x15xf32>
    %c34_663 = arith.constant 34 : index
    %c1_664 = arith.constant 1 : index
    %1172 = memref.load %arg1[%c34_663, %c1_664] : memref<36x8xf32, #tpu.memory_space<smem>>
    %1173 = vector.broadcast %1172 : f32 to vector<15x15xf32>
    %1174 = arith.mulf %1173, %1167 : vector<15x15xf32>
    %1175 = arith.addf %1141, %1174 : vector<15x15xf32>
    %c34_665 = arith.constant 34 : index
    %c2_666 = arith.constant 2 : index
    %1176 = memref.load %arg1[%c34_665, %c2_666] : memref<36x8xf32, #tpu.memory_space<smem>>
    %1177 = vector.broadcast %1176 : f32 to vector<15x15xf32>
    %1178 = arith.mulf %1177, %1167 : vector<15x15xf32>
    %1179 = arith.addf %1145, %1178 : vector<15x15xf32>
    %c34_667 = arith.constant 34 : index
    %c3_668 = arith.constant 3 : index
    %1180 = memref.load %arg1[%c34_667, %c3_668] : memref<36x8xf32, #tpu.memory_space<smem>>
    %1181 = vector.broadcast %1180 : f32 to vector<15x15xf32>
    %1182 = arith.mulf %1181, %1167 : vector<15x15xf32>
    %1183 = arith.addf %1149, %1182 : vector<15x15xf32>
    %c34_669 = arith.constant 34 : index
    %c4_670 = arith.constant 4 : index
    %1184 = memref.load %arg1[%c34_669, %c4_670] : memref<36x8xf32, #tpu.memory_space<smem>>
    %1185 = vector.broadcast %1184 : f32 to vector<15x15xf32>
    %1186 = arith.mulf %1185, %1167 : vector<15x15xf32>
    %1187 = arith.addf %1153, %1186 : vector<15x15xf32>
    %c34_671 = arith.constant 34 : index
    %c5_672 = arith.constant 5 : index
    %1188 = memref.load %arg1[%c34_671, %c5_672] : memref<36x8xf32, #tpu.memory_space<smem>>
    %1189 = vector.broadcast %1188 : f32 to vector<15x15xf32>
    %1190 = arith.mulf %1189, %1167 : vector<15x15xf32>
    %1191 = arith.addf %1157, %1190 : vector<15x15xf32>
    %c34_673 = arith.constant 34 : index
    %c6_674 = arith.constant 6 : index
    %1192 = memref.load %arg1[%c34_673, %c6_674] : memref<36x8xf32, #tpu.memory_space<smem>>
    %1193 = vector.broadcast %1192 : f32 to vector<15x15xf32>
    %1194 = arith.mulf %1193, %1167 : vector<15x15xf32>
    %1195 = arith.addf %1161, %1194 : vector<15x15xf32>
    %c34_675 = arith.constant 34 : index
    %c7_676 = arith.constant 7 : index
    %1196 = memref.load %arg1[%c34_675, %c7_676] : memref<36x8xf32, #tpu.memory_space<smem>>
    %1197 = vector.broadcast %1196 : f32 to vector<15x15xf32>
    %1198 = arith.mulf %1197, %1167 : vector<15x15xf32>
    %1199 = arith.addf %1165, %1198 : vector<15x15xf32>
    %c0_677 = arith.constant 0 : index
    %c3_678 = arith.constant 3 : index
    %c2_679 = arith.constant 2 : index
    %c2_680 = arith.constant 2 : index
    %1200 = vector.load %arg2[%c0_677, %c3_678, %c2_679, %c2_680] : memref<1x4x17x17xf32, #tpu.memory_space<vmem>>, vector<1x1x15x15xf32>
    %1201 = vector.shape_cast %1200 : vector<1x1x15x15xf32> to vector<15x15xf32>
    %c35 = arith.constant 35 : index
    %c0_681 = arith.constant 0 : index
    %1202 = memref.load %arg1[%c35, %c0_681] : memref<36x8xf32, #tpu.memory_space<smem>>
    %1203 = vector.broadcast %1202 : f32 to vector<15x15xf32>
    %1204 = arith.mulf %1203, %1201 : vector<15x15xf32>
    %1205 = arith.addf %1171, %1204 : vector<15x15xf32>
    %c35_682 = arith.constant 35 : index
    %c1_683 = arith.constant 1 : index
    %1206 = memref.load %arg1[%c35_682, %c1_683] : memref<36x8xf32, #tpu.memory_space<smem>>
    %1207 = vector.broadcast %1206 : f32 to vector<15x15xf32>
    %1208 = arith.mulf %1207, %1201 : vector<15x15xf32>
    %1209 = arith.addf %1175, %1208 : vector<15x15xf32>
    %c35_684 = arith.constant 35 : index
    %c2_685 = arith.constant 2 : index
    %1210 = memref.load %arg1[%c35_684, %c2_685] : memref<36x8xf32, #tpu.memory_space<smem>>
    %1211 = vector.broadcast %1210 : f32 to vector<15x15xf32>
    %1212 = arith.mulf %1211, %1201 : vector<15x15xf32>
    %1213 = arith.addf %1179, %1212 : vector<15x15xf32>
    %c35_686 = arith.constant 35 : index
    %c3_687 = arith.constant 3 : index
    %1214 = memref.load %arg1[%c35_686, %c3_687] : memref<36x8xf32, #tpu.memory_space<smem>>
    %1215 = vector.broadcast %1214 : f32 to vector<15x15xf32>
    %1216 = arith.mulf %1215, %1201 : vector<15x15xf32>
    %1217 = arith.addf %1183, %1216 : vector<15x15xf32>
    %c35_688 = arith.constant 35 : index
    %c4_689 = arith.constant 4 : index
    %1218 = memref.load %arg1[%c35_688, %c4_689] : memref<36x8xf32, #tpu.memory_space<smem>>
    %1219 = vector.broadcast %1218 : f32 to vector<15x15xf32>
    %1220 = arith.mulf %1219, %1201 : vector<15x15xf32>
    %1221 = arith.addf %1187, %1220 : vector<15x15xf32>
    %c35_690 = arith.constant 35 : index
    %c5_691 = arith.constant 5 : index
    %1222 = memref.load %arg1[%c35_690, %c5_691] : memref<36x8xf32, #tpu.memory_space<smem>>
    %1223 = vector.broadcast %1222 : f32 to vector<15x15xf32>
    %1224 = arith.mulf %1223, %1201 : vector<15x15xf32>
    %1225 = arith.addf %1191, %1224 : vector<15x15xf32>
    %c35_692 = arith.constant 35 : index
    %c6_693 = arith.constant 6 : index
    %1226 = memref.load %arg1[%c35_692, %c6_693] : memref<36x8xf32, #tpu.memory_space<smem>>
    %1227 = vector.broadcast %1226 : f32 to vector<15x15xf32>
    %1228 = arith.mulf %1227, %1201 : vector<15x15xf32>
    %1229 = arith.addf %1195, %1228 : vector<15x15xf32>
    %c35_694 = arith.constant 35 : index
    %c7_695 = arith.constant 7 : index
    %1230 = memref.load %arg1[%c35_694, %c7_695] : memref<36x8xf32, #tpu.memory_space<smem>>
    %1231 = vector.broadcast %1230 : f32 to vector<15x15xf32>
    %1232 = arith.mulf %1231, %1201 : vector<15x15xf32>
    %1233 = arith.addf %1199, %1232 : vector<15x15xf32>
    %c0_696 = arith.constant 0 : index
    %c0_697 = arith.constant 0 : index
    %c0_698 = arith.constant 0 : index
    %c0_699 = arith.constant 0 : index
    %1234 = vector.load %arg3[%c0_696, %c0_697, %c0_698, %c0_699] : memref<1x8x16x16xf32, #tpu.memory_space<vmem>>, vector<1x1x15x15xf32>
    %1235 = vector.shape_cast %1234 : vector<1x1x15x15xf32> to vector<15x15xf32>
    %1236 = vector.shape_cast %1205 : vector<15x15xf32> to vector<1x1x15x15xf32>
    tpu.vector_store %arg3[%c0_696, %c0_697, %c0_698, %c0_699], %1236 {strides = array<i32>} : memref<1x8x16x16xf32, #tpu.memory_space<vmem>>, vector<1x1x15x15xf32>,
    %c0_700 = arith.constant 0 : index
    %c1_701 = arith.constant 1 : index
    %c0_702 = arith.constant 0 : index
    %c0_703 = arith.constant 0 : index
    %1237 = vector.load %arg3[%c0_700, %c1_701, %c0_702, %c0_703] : memref<1x8x16x16xf32, #tpu.memory_space<vmem>>, vector<1x1x15x15xf32>
    %1238 = vector.shape_cast %1237 : vector<1x1x15x15xf32> to vector<15x15xf32>
    %1239 = vector.shape_cast %1209 : vector<15x15xf32> to vector<1x1x15x15xf32>
    tpu.vector_store %arg3[%c0_700, %c1_701, %c0_702, %c0_703], %1239 {strides = array<i32>} : memref<1x8x16x16xf32, #tpu.memory_space<vmem>>, vector<1x1x15x15xf32>,
    %c0_704 = arith.constant 0 : index
    %c2_705 = arith.constant 2 : index
    %c0_706 = arith.constant 0 : index
    %c0_707 = arith.constant 0 : index
    %1240 = vector.load %arg3[%c0_704, %c2_705, %c0_706, %c0_707] : memref<1x8x16x16xf32, #tpu.memory_space<vmem>>, vector<1x1x15x15xf32>
    %1241 = vector.shape_cast %1240 : vector<1x1x15x15xf32> to vector<15x15xf32>
    %1242 = vector.shape_cast %1213 : vector<15x15xf32> to vector<1x1x15x15xf32>
    tpu.vector_store %arg3[%c0_704, %c2_705, %c0_706, %c0_707], %1242 {strides = array<i32>} : memref<1x8x16x16xf32, #tpu.memory_space<vmem>>, vector<1x1x15x15xf32>,
    %c0_708 = arith.constant 0 : index
    %c3_709 = arith.constant 3 : index
    %c0_710 = arith.constant 0 : index
    %c0_711 = arith.constant 0 : index
    %1243 = vector.load %arg3[%c0_708, %c3_709, %c0_710, %c0_711] : memref<1x8x16x16xf32, #tpu.memory_space<vmem>>, vector<1x1x15x15xf32>
    %1244 = vector.shape_cast %1243 : vector<1x1x15x15xf32> to vector<15x15xf32>
    %1245 = vector.shape_cast %1217 : vector<15x15xf32> to vector<1x1x15x15xf32>
    tpu.vector_store %arg3[%c0_708, %c3_709, %c0_710, %c0_711], %1245 {strides = array<i32>} : memref<1x8x16x16xf32, #tpu.memory_space<vmem>>, vector<1x1x15x15xf32>,
    %c0_712 = arith.constant 0 : index
    %c4_713 = arith.constant 4 : index
    %c0_714 = arith.constant 0 : index
    %c0_715 = arith.constant 0 : index
    %1246 = vector.load %arg3[%c0_712, %c4_713, %c0_714, %c0_715] : memref<1x8x16x16xf32, #tpu.memory_space<vmem>>, vector<1x1x15x15xf32>
    %1247 = vector.shape_cast %1246 : vector<1x1x15x15xf32> to vector<15x15xf32>
    %1248 = vector.shape_cast %1221 : vector<15x15xf32> to vector<1x1x15x15xf32>
    tpu.vector_store %arg3[%c0_712, %c4_713, %c0_714, %c0_715], %1248 {strides = array<i32>} : memref<1x8x16x16xf32, #tpu.memory_space<vmem>>, vector<1x1x15x15xf32>,
    %c0_716 = arith.constant 0 : index
    %c5_717 = arith.constant 5 : index
    %c0_718 = arith.constant 0 : index
    %c0_719 = arith.constant 0 : index
    %1249 = vector.load %arg3[%c0_716, %c5_717, %c0_718, %c0_719] : memref<1x8x16x16xf32, #tpu.memory_space<vmem>>, vector<1x1x15x15xf32>
    %1250 = vector.shape_cast %1249 : vector<1x1x15x15xf32> to vector<15x15xf32>
    %1251 = vector.shape_cast %1225 : vector<15x15xf32> to vector<1x1x15x15xf32>
    tpu.vector_store %arg3[%c0_716, %c5_717, %c0_718, %c0_719], %1251 {strides = array<i32>} : memref<1x8x16x16xf32, #tpu.memory_space<vmem>>, vector<1x1x15x15xf32>,
    %c0_720 = arith.constant 0 : index
    %c6_721 = arith.constant 6 : index
    %c0_722 = arith.constant 0 : index
    %c0_723 = arith.constant 0 : index
    %1252 = vector.load %arg3[%c0_720, %c6_721, %c0_722, %c0_723] : memref<1x8x16x16xf32, #tpu.memory_space<vmem>>, vector<1x1x15x15xf32>
    %1253 = vector.shape_cast %1252 : vector<1x1x15x15xf32> to vector<15x15xf32>
    %1254 = vector.shape_cast %1229 : vector<15x15xf32> to vector<1x1x15x15xf32>
    tpu.vector_store %arg3[%c0_720, %c6_721, %c0_722, %c0_723], %1254 {strides = array<i32>} : memref<1x8x16x16xf32, #tpu.memory_space<vmem>>, vector<1x1x15x15xf32>,
    %c0_724 = arith.constant 0 : index
    %c7_725 = arith.constant 7 : index
    %c0_726 = arith.constant 0 : index
    %c0_727 = arith.constant 0 : index
    %1255 = vector.load %arg3[%c0_724, %c7_725, %c0_726, %c0_727] : memref<1x8x16x16xf32, #tpu.memory_space<vmem>>, vector<1x1x15x15xf32>
    %1256 = vector.shape_cast %1255 : vector<1x1x15x15xf32> to vector<15x15xf32>
    %1257 = vector.shape_cast %1233 : vector<15x15xf32> to vector<1x1x15x15xf32>
    tpu.vector_store %arg3[%c0_724, %c7_725, %c0_726, %c0_727], %1257 {strides = array<i32>} : memref<1x8x16x16xf32, #tpu.memory_space<vmem>>, vector<1x1x15x15xf32>,
    return
  }
  func.func @transform_0(%arg0: i32) -> (i32, i32) {
    %c0_i32 = arith.constant 0 : i32
    %c0_i32_0 = arith.constant 0 : i32
    %c0_i32_1 = arith.constant 0 : i32
    return %c0_i32, %c0_i32_0 : i32, i32
  }
  func.func @transform_1(%arg0: i32) -> (i32, i32, i32, i32) {
    %c0_i32 = arith.constant 0 : i32
    %c0_i32_0 = arith.constant 0 : i32
    %c0_i32_1 = arith.constant 0 : i32
    %c0_i32_2 = arith.constant 0 : i32
    return %arg0, %c0_i32, %c0_i32_0, %c0_i32_1 : i32, i32, i32, i32
  }
  func.func @transform_2(%arg0: i32) -> (i32, i32, i32, i32) {
    %c0_i32 = arith.constant 0 : i32
    %c0_i32_0 = arith.constant 0 : i32
    %c0_i32_1 = arith.constant 0 : i32
    %c0_i32_2 = arith.constant 0 : i32
    return %arg0, %c0_i32, %c0_i32_0, %c0_i32_1 : i32, i32, i32, i32
  }
}

</mosaic_0001>

<bundles_post_ra>
// kernel: tpu_custom_call.1
= control target key start
LH: loop header
LB: loop body
LE: loop exit
PB: predicated region body
PF: predicated region fallthrough
CT: control target
= control target key end

     0   :  { %s7218_s0 = inlined_call_operand.vmem [shape: f32[36,8], index: 0, kind: input, shape index: {}]   ;;  %s7219_s1 = inlined_call_operand.vmem [shape: f32[2,4,17,17], index: 1, kind: input, shape index: {}]   ;;  %s7220_s2 = inlined_call_operand.hbm [shape: f32[2,8,16,16], index: 2, kind: output, shape index: {}]  }
   0x1   :  { %7242 = sst [smem:[#allocation184_spill]] %s7218_s0 }
   0x2   :  { %7243 = sst [smem:[#allocation185_spill]] %s7219_s1 }
   0x3   :  { %7 = vsyncpa [#allocation4], 0 }
   0x4   :  { %8 = vsyncpa [#allocation3], 0 }
   0x5   :  { %10 = vsyncpa [#allocation3 + $0x1], 0  ;;  %s4098_s9 = smov 0   ;;  %s4100_s10 = smov 0  }
   0x6   :  { %s4102_s11 = smov 0   ;;  %s4104_s12 = smov 0  }
   0x7 LB: > { %s4119_s13 = sadd.s32 4294967295, %s4073_s12   ;;  %s3581_s14 = sadd.s32 4294967294, %s4073_s12   ;;  %s4073_s12 = sphi %s4104_s12, %s7669_s12   ;;  %s4069_s11 = sphi %s4102_s11, %s7668_s11   ;;  %s4065_s10 = sphi %s4100_s10, %s7667_s10   ;;  %s4061_s9 = sphi %s4098_s9, %s7666_s9  }
   0x8   : > { %s4123_s15 = sadd.s32 1, %s4073_s12   ;;  %s70_s16 = sadd.s32 1, %s4069_s11 }
   0x9   : > { %s67_s17 = ssub.s32 %s4073_s12, %s4123_s15  ;;  %p80_p0 = scmp.ne.s32.totalorder %s4069_s11, %s4065_s10 }
   0xa   : > { %p68_p1 = scmp.eq.s32.totalorder %s67_s17, 0  ;;  %p81_p2 = scmp.eq.s32.totalorder %s4119_s13, 1 }
   0xb   : > { %p86_p3 = scmp.ne.s32.totalorder %s4065_s10, %s4061_s9  ;;  %p87_p4 = scmp.eq.s32.totalorder %s3581_s14, 1 }
   0xc   : > { %s4134_s18 = scalar_select %p68_p1, %s4069_s11, %s70_s16  }
   0xd   : > { %p4136_p5 = por %p81_p2, %p80_p0  ;;  %p4140_p6 = por %p87_p4, %p86_p3 }
   0xe   : > { %p3582_p7 = scmp.ge.s32.totalorder %s4073_s12, 1  ;;  %p94_p8 = scmp.lt.s32.totalorder %s4073_s12, 3 }
   0xf   : > { %p3929_p9 = scmp.eq.s32.totalorder %s4119_s13, 0  ;;  %s7246_s0 = sld [smem:[#allocation184_spill]] }
  0x10   : > { %p95_p10 = pnand %p3582_p7, %p94_p8  ;;  %s4075_s24 = smov [#allocation2]  }
  0x11   : > { %s4076_s25 = smov 128   ;;  %s4077_s26 = smov 8  }
  0x12   : > { %p3921_p11 = pneg %p95_p10  ;;  %129 = sbr.rel (%p95_p10) target bundleno = 1179 (0x49b), region = 28 }
  0x14   : > { %p3922_p12 = pnand %p3929_p9, %p3921_p11 }
  0x15   : > { %s105_s23 = sshll.u32 %s7246_s0, 4  ;;  %s106_s23 = int_to_ptr.vmem [resolvable:$true] %s105_s23 }
  0x16   : > { %3924 = dma.vmem_to_smem (!%p3922_p12), %s106_s23, 640, %s4075_s24, [#allocation4], %s4076_s25, %s4076_s25, %s4077_s26  }
  0x17   : > { %4052 = dma.done.wait (%p3929_p9), [#allocation4], 640  }
  0x18   : > { %4054 = vsyncadd (%p3929_p9), [#allocation4], 4294966656 }
  0x19   : > { %136 = sfence }
  0x1a   : > { %p153_p13 = scmp.lt.s32.totalorder %s4119_s13, 1  ;;  %s3598_s27 = sld [smem:[#allocation2 + $0x82]]  ;;  %vm158_vm0 = vcmask 130048   ;;  %vm3466_vm1 = vcmask 121856   ;;  %vm3468_vm2 = vcmask 120832  }
  0x1b   : > { %s3597_s29 = sld [smem:[#allocation2 + $0x81]]  ;;  %s4078_s7 = smov 127  }
  0x1c   : > { %s154_s28 = scalar_select %p153_p13, %s4119_s13, 1 }
  0x1d   : > { %s3596_s3 = sld [smem:[#allocation2 + $0x80]]  ;;  %s7233_s25 = smov 126  }
  0x1e   : > { %s3914_s30 = smul.u32 96, %s154_s28  ;;  %s7247_s1 = sld [smem:[#allocation185_spill]] }
  0x1f   : > { %s3600_s8 = sld [smem:[#allocation2 + $0x84]] }
  0x20   : > { %v254_v1 = vstv %s3598_s27  ;;  %s3599_s14 = sld [smem:[#allocation2 + $0x83]] }
  0x21   : > { %v240_v3 = vstv %s3597_s29  ;;  %s3601_s16 = sld [smem:[#allocation2 + $0x85]] }
  0x22   : > { %s3603_s17 = sld [smem:[#allocation2 + $0x87]] }
  0x23   : > { %v226_v5 = vstv %s3596_s3  ;;  %s3602_s21 = sld [smem:[#allocation2 + $0x86]] }
  0x24   : > { %s4155_s6 = scalar_lea.vmem %s7247_s1, %s3914_s30  ;;  %s3604_s22 = sld [smem:[#allocation2 + $0x100]] }
  0x25   : > { %v4158_v0 = vld [vmem:[%s4155_s6] sm:$0xff]  ;;  %v4164_v6 = vld [vmem:[%s4155_s6 + $0x8] sm:$0x7f]  ;;  %v282_v11 = vstv %s3600_s8  ;;  %s3606_s23 = sld [smem:[#allocation2 + $0x102]] }
  0x26   : > { %v255_v2 = vmul.f32 %v254_v1, %v4158_v0  ;;  %v241_v4 = vmul.f32 %v240_v3, %v4158_v0  ;;  %v227_v7 = vmul.f32 %v226_v5, %v4158_v0  ;;  %v256_v8 = vmul.f32 %v254_v1, %v4164_v6  ;;  %s3605_s24 = sld [smem:[#allocation2 + $0x101]]  ;;  %v4222_v47 = vld [vmem:[%s4155_s6 + $0x1] sm:$0xff]  ;;  %v4231_v53 = vld [vmem:[%s4155_s6 + $0x9] sm:$0x7f] }
  0x27   : > { %v242_v9 = vmul.f32 %v240_v3, %v4164_v6  ;;  %v228_v10 = vmul.f32 %v226_v5, %v4164_v6  ;;  %v268_v12 = vstv %s3599_s14  ;;  %v283_v13 = vmul.f32 %v282_v11, %v4158_v0  ;;  %s3607_s26 = sld [smem:[#allocation2 + $0x103]] }
  0x28   : > { %259 = vrot.lane.b32.xlu2 %v255_v2, %s4078_s7  ;;  %245 = vrot.lane.b32.xlu1 %v241_v4, %s4078_s7  ;;  %v270_v14 = vmul.f32 %v268_v12, %v4164_v6  ;;  %v269_v15 = vmul.f32 %v268_v12, %v4158_v0  ;;  %v296_v16 = vstv %s3601_s16  ;;  %v284_v19 = vmul.f32 %v282_v11, %v4164_v6  ;;  %s3609_s27 = sld [smem:[#allocation2 + $0x105]] }
  0x29   : > { %231 = vrot.lane.b32.xlu0 %v227_v7, %s4078_s7  ;;  %v298_v17 = vmul.f32 %v296_v16, %v4164_v6  ;;  %v297_v18 = vmul.f32 %v296_v16, %v4158_v0  ;;  %v324_v20 = vstv %s3603_s17  ;;  %v310_v21 = vstv %s3602_s21  ;;  %s3608_s28 = sld [smem:[#allocation2 + $0x104]] }
  0x2a   : > { %v325_v22 = vmul.f32 %v324_v20, %v4158_v0  ;;  %v312_v23 = vmul.f32 %v310_v21, %v4164_v6  ;;  %v311_v24 = vmul.f32 %v310_v21, %v4158_v0  ;;  %v338_v25 = vstv %s3604_s22  ;;  %s3610_s29 = sld [smem:[#allocation2 + $0x106]] }
  0x2b   : > { %v340_v26 = vmul.f32 %v338_v25, %v4164_v6  ;;  %v339_v27 = vmul.f32 %v338_v25, %v4158_v0  ;;  %v326_v28 = vmul.f32 %v324_v20, %v4164_v6  ;;  %v366_v29 = vstv %s3606_s23  ;;  %s3620_s30 = sld [smem:[#allocation2 + $0x200]] }
  0x2c   : > { %v352_v30 = vstv %s3605_s24  ;;  %v367_v31 = vmul.f32 %v366_v29, %v4158_v0  ;;  %v368_v37 = vmul.f32 %v366_v29, %v4164_v6  ;;  %s3611_s3 = sld [smem:[#allocation2 + $0x107]] }
  0x2d   : > { %v354_v32 = vmul.f32 %v352_v30, %v4164_v6  ;;  %v353_v33 = vmul.f32 %v352_v30, %v4158_v0  ;;  %v380_v34 = vstv %s3607_s26  ;;  %s3621_s4 = sld [smem:[#allocation2 + $0x201]] }
  0x2e   : > { %v382_v35 = vmul.f32 %v380_v34, %v4164_v6  ;;  %v381_v36 = vmul.f32 %v380_v34, %v4158_v0  ;;  %v408_v38 = vstv %s3609_s27  ;;  %s3623_s5 = sld [smem:[#allocation2 + $0x203]] }
  0x2f   : > { %v394_v39 = vstv %s3608_s28  ;;  %v409_v40 = vmul.f32 %v408_v38, %v4158_v0  ;;  %v410_v46 = vmul.f32 %v408_v38, %v4164_v6  ;;  %s3622_s8 = sld [smem:[#allocation2 + $0x202]] }
  0x30   : > { %261 = vrot.lane.b32.xlu2 %v256_v8, %s4078_s7  ;;  %247 = vrot.lane.b32.xlu1 %v242_v9, %s4078_s7  ;;  %v396_v41 = vmul.f32 %v394_v39, %v4164_v6  ;;  %v395_v42 = vmul.f32 %v394_v39, %v4158_v0  ;;  %v422_v43 = vstv %s3610_s29  ;;  %s3624_s14 = sld [smem:[#allocation2 + $0x204]] }
  0x31   : > { %233 = vrot.lane.b32.xlu0 %v228_v10, %s4078_s7  ;;  %v424_v44 = vmul.f32 %v422_v43, %v4164_v6  ;;  %v423_v45 = vmul.f32 %v422_v43, %v4158_v0  ;;  %v500_v48 = vstv %s3620_s30  ;;  %s3626_s16 = sld [smem:[#allocation2 + $0x206]] }
  0x32   : > { %v436_v49 = vstv %s3611_s3  ;;  %v501_v50 = vmul.f32 %v500_v48, %v4222_v47  ;;  %v502_v57 = vmul.f32 %v500_v48, %v4231_v53  ;;  %s3625_s17 = sld [smem:[#allocation2 + $0x205]] }
  0x33   : > { %v438_v51 = vmul.f32 %v436_v49, %v4164_v6  ;;  %v437_v52 = vmul.f32 %v436_v49, %v4158_v0  ;;  %v514_v54 = vstv %s3621_s4  ;;  %s3627_s21 = sld [smem:[#allocation2 + $0x207]] }
  0x34   : > { %v516_v55 = vmul.f32 %v514_v54, %v4231_v53  ;;  %v515_v56 = vmul.f32 %v514_v54, %v4222_v47  ;;  %v542_v58 = vstv %s3623_s5  ;;  %s4263_s22 = sld [smem:[#allocation2 + $0x281]] }
  0x35   : > { %v528_v60 = vstv %s3622_s8  ;;  %v543_v61 = vmul.f32 %v542_v58, %v4222_v47  ;;  %v544_v4 = vmul.f32 %v542_v58, %v4231_v53  ;;  %s3628_s23 = sld [smem:[#allocation2 + $0x280]]  ;;  %v4345_v58 = vld [vmem:[%s4155_s6 + $0xa] sm:$0x7f] }
  0x36   : > { %v530_v62 = vmul.f32 %v528_v60, %v4231_v53  ;;  %v529_v63 = vmul.f32 %v528_v60, %v4222_v47  ;;  %v556_v0 = vstv %s3624_s14  ;;  %s3630_s24 = sld [smem:[#allocation2 + $0x282]] }
  0x37   : > { %v558_v2 = vmul.f32 %v556_v0, %v4231_v53  ;;  %v557_v3 = vmul.f32 %v556_v0, %v4222_v47  ;;  %v584_v5 = vstv %s3626_s16  ;;  %s4290_s26 = sld [smem:[#allocation2 + $0x284]] }
  0x38   : > { %287 = vrot.lane.b32.xlu2 %v283_v13, %s4078_s7  ;;  %275 = vrot.lane.b32.xlu1 %v270_v14, %s4078_s7  ;;  %v570_v7 = vstv %s3625_s17  ;;  %v585_v8 = vmul.f32 %v584_v5, %v4222_v47  ;;  %s3631_s27 = sld [smem:[#allocation2 + $0x283]] }
  0x39   : > { %273 = vrot.lane.b32.xlu0 %v269_v15, %s4078_s7  ;;  %v572_v9 = vmul.f32 %v570_v7, %v4231_v53  ;;  %v571_v10 = vmul.f32 %v570_v7, %v4222_v47  ;;  %v598_v11 = vstv %s3627_s21  ;;  %s3633_s28 = sld [smem:[#allocation2 + $0x285]] }
  0x3a   : > { %v600_v14 = vmul.f32 %v598_v11, %v4231_v53  ;;  %v599_v16 = vmul.f32 %v598_v11, %v4222_v47  ;;  %s4317_s29 = sld [smem:[#allocation2 + $0x287]] }
  0x3b   : > { %v612_v20 = vstv %s3628_s23  ;;  %s3634_s30 = sld [smem:[#allocation2 + $0x286]] }
  0x3c   : > { %v613_v25 = vmul.f32 %v612_v20, %v4222_v47  ;;  %s3644_s3 = sld [smem:[#allocation2 + $0x380]] }
  0x3d   : > { %s4347_s4 = sld [smem:[#allocation2 + $0x382]] }
  0x3e   : > { %s3645_s5 = sld [smem:[#allocation2 + $0x381]] }
  0x3f   : > { %s3647_s8 = sld [smem:[#allocation2 + $0x383]] }
  0x40   : > { %303 = vrot.lane.b32.xlu2 %v298_v17, %s4078_s7  ;;  %301 = vrot.lane.b32.xlu1 %v297_v18, %s4078_s7  ;;  %v586_v17 = vmul.f32 %v584_v5, %v4231_v53  ;;  %v626_v18 = vstv %s4263_s22  ;;  %v710_v49 = vstv %s4317_s29  ;;  %s4377_s14 = sld [smem:[#allocation2 + $0x385]] }
  0x41   : > { %289 = vrot.lane.b32.xlu0 %v284_v19, %s4078_s7  ;;  %v711_v54 = vmul.f32 %v710_v49, %v4222_v47  ;;  %s3648_s16 = sld [smem:[#allocation2 + $0x384]] }
  0x42   : > { %v774_v60 = vstv %s3644_s3  ;;  %s3650_s17 = sld [smem:[#allocation2 + $0x386]] }
  0x43   : > { %s4404_s21 = sld [smem:[#allocation2 + $0x400]] }
  0x44   : > { %v788_v7 = vstv %s3645_s5  ;;  %s3651_s22 = sld [smem:[#allocation2 + $0x387]] }
  0x45   : > { %v790_v11 = vmul.f32 %v788_v7, %v4345_v58  ;;  %s3653_s23 = sld [smem:[#allocation2 + $0x401]] }
  0x46   : > { %s3657_s29 = sld [smem:[#allocation2 + $0x405]] }
  0x47   : > { %s4485_s3 = sld [smem:[#allocation2 + $0x501]] }
  0x48   : > { %329 = vrot.lane.b32.xlu2 %v325_v22, %s4078_s7  ;;  %317 = vrot.lane.b32.xlu1 %v312_v23, %s4078_s7  ;;  %v627_v22 = vmul.f32 %v626_v18, %v4222_v47  ;;  %s3672_s5 = sld [smem:[#allocation2 + $0x502]] }
  0x49   : > { %315 = vrot.lane.b32.xlu0 %v311_v24, %s4078_s7  ;;  %v614_v24 = vmul.f32 %v612_v20, %v4231_v53  ;;  %s6228_s0 = sld [smem:[#allocation2 + $0xc03]] }
  0x4a   : > { %s6307_s1 = sld [smem:[#allocation2 + $0xc05]] }
  0x50   : > { %345 = vrot.lane.b32.xlu2 %v340_v26, %s7233_s25  ;;  %343 = vrot.lane.b32.xlu1 %v339_v27, %s7233_s25  ;;  %v640_v26 = vstv %s3630_s24  ;;  %s4431_s24 = sld [smem:[#allocation2 + $0x403]] }
  0x51   : > { %331 = vrot.lane.b32.xlu0 %v326_v28, %s4078_s7  ;;  %v642_v29 = vmul.f32 %v640_v26, %v4231_v53 }
  0x58   : > { %371 = vrot.lane.b32.xlu2 %v367_v31, %s7233_s25  ;;  %359 = vrot.lane.b32.xlu1 %v354_v32, %s7233_s25  ;;  %v641_v31 = vmul.f32 %v640_v26, %v4222_v47  ;;  %v628_v32 = vmul.f32 %v626_v18, %v4231_v53 }
  0x59   : > { %357 = vrot.lane.b32.xlu0 %v353_v33, %s7233_s25  ;;  %v668_v33 = vstv %s4290_s26  ;;  %s3654_s26 = sld [smem:[#allocation2 + $0x402]] }
  0x5a   : > { %v670_v48 = vmul.f32 %v668_v33, %v4231_v53 }
  0x60   : > { %387 = vrot.lane.b32.xlu2 %v382_v35, %s7233_s25  ;;  %385 = vrot.lane.b32.xlu1 %v381_v36, %s7233_s25  ;;  %v654_v35 = vstv %s3631_s27  ;;  %s3656_s27 = sld [smem:[#allocation2 + $0x404]] }
  0x61   : > { %373 = vrot.lane.b32.xlu0 %v368_v37, %s7233_s25  ;;  %v669_v37 = vmul.f32 %v668_v33, %v4222_v47  ;;  %v656_v39 = vmul.f32 %v654_v35, %v4231_v53 }
  0x68   : > { %413 = vrot.lane.b32.xlu2 %v409_v40, %s7233_s25  ;;  %401 = vrot.lane.b32.xlu1 %v396_v41, %s7233_s25  ;;  %v655_v40 = vmul.f32 %v654_v35, %v4222_v47  ;;  %v682_v41 = vstv %s3633_s28  ;;  %s4458_s28 = sld [smem:[#allocation2 + $0x406]] }
  0x69   : > { %399 = vrot.lane.b32.xlu0 %v395_v42, %s7233_s25 }
  0x70   : > { %429 = vrot.lane.b32.xlu2 %v424_v44, %s7233_s25  ;;  %427 = vrot.lane.b32.xlu1 %v423_v45, %s7233_s25  ;;  %v684_v44 = vmul.f32 %v682_v41, %v4231_v53 }
  0x71   : > { %415 = vrot.lane.b32.xlu0 %v410_v46, %s7233_s25  ;;  %v683_v46 = vmul.f32 %v682_v41, %v4222_v47 }
  0x78   : > { %505 = vrot.lane.b32.xlu2 %v501_v50, %s4078_s7  ;;  %443 = vrot.lane.b32.xlu1 %v438_v51, %s7233_s25  ;;  %v696_v51 = vstv %s3634_s30  ;;  %s3659_s30 = sld [smem:[#allocation2 + $0x407]] }
  0x79   : > { %441 = vrot.lane.b32.xlu0 %v437_v52, %s7233_s25 }
  0x80   : > { %521 = vrot.lane.b32.xlu2 %v516_v55, %s4078_s7  ;;  %519 = vrot.lane.b32.xlu1 %v515_v56, %s4078_s7  ;;  %v698_v56 = vmul.f32 %v696_v51, %v4231_v53 }
  0x81   : > { %507 = vrot.lane.b32.xlu0 %v502_v57, %s4078_s7  ;;  %v697_v57 = vmul.f32 %v696_v51, %v4222_v47  ;;  %v776_v47 = vmul.f32 %v774_v60, %v4345_v58  ;;  %v886_v51 = vstv %s4404_s21  ;;  %s3676_s21 = sld [smem:[#allocation2 + $0x506]] }
  0x82   : > { %v4240_v59 = vpop.permute.xlu2 %259 }
  0x88   : > { %547 = vrot.lane.b32.xlu2 %v543_v61, %s4078_s7  ;;  %535 = vrot.lane.b32.xlu1 %v530_v62, %s4078_s7  ;;  %v4354_v62 = vld [vmem:[%s4155_s6 + $0x2] sm:$0xff] }
  0x89   : > { %533 = vrot.lane.b32.xlu0 %v529_v63, %s4078_s7 }
  0x8a   : > { %v4248_v1 = vpop.permute.xlu2 %261 }
  0x90   : > { %563 = vrot.lane.b32.xlu2 %v558_v2, %s4078_s7  ;;  %561 = vrot.lane.b32.xlu1 %v557_v3, %s4078_s7  ;;  %v775_v2 = vmul.f32 %v774_v60, %v4354_v62  ;;  %v712_v3 = vmul.f32 %v710_v49, %v4231_v53  ;;  %v789_v53 = vmul.f32 %v788_v7, %v4354_v62 }
  0x91   : > { %549 = vrot.lane.b32.xlu0 %v544_v4, %s4078_s7  ;;  %v802_v4 = vstv %s4347_s4  ;;  %v887_v60 = vmul.f32 %v886_v51, %v4354_v62  ;;  %s3670_s4 = sld [smem:[#allocation2 + $0x500]] }
  0x92   : > { %v4256_v6 = vpop.permute.xlu2 %287 }
  0x98   : > { %589 = vrot.lane.b32.xlu2 %v585_v8, %s4078_s7  ;;  %577 = vrot.lane.b32.xlu1 %v572_v9, %s4078_s7  ;;  %v803_v9 = vmul.f32 %v802_v4, %v4354_v62 }
  0x99   : > { %575 = vrot.lane.b32.xlu0 %v571_v10, %s4078_s7 }
  0x9a   : > { %v4266_v12 = vpop.permute.xlu2 %303  ;;  %v4269_v13 = vpop.permute.xlu1 %245 }
  0x9b   : > { %v4272_v15 = vpop.permute.xlu0 %231 }
  0xa0   : > { %605 = vrot.lane.b32.xlu2 %v600_v14, %s4078_s7  ;;  %603 = vrot.lane.b32.xlu1 %v599_v16, %s4078_s7  ;;  %v816_v14 = vstv %s3647_s8  ;;  %s4518_s8 = sld [smem:[#allocation2 + $0x504]] }
  0xa1   : > { %591 = vrot.lane.b32.xlu0 %v586_v17, %s4078_s7  ;;  %v818_v18 = vmul.f32 %v816_v14, %v4345_v58 }
  0xa2   : > { %v4279_v19 = vpop.permute.xlu2 %329  ;;  %v4282_v21 = vpop.permute.xlu1 %247 }
  0xa3   : > { %v4285_v23 = vpop.permute.xlu0 %233 }
  0xa8   : > { %631 = vrot.lane.b32.xlu2 %v627_v22, %s7233_s25  ;;  %619 = vrot.lane.b32.xlu1 %v614_v24, %s7233_s25  ;;  %v817_v22 = vmul.f32 %v816_v14, %v4354_v62  ;;  %v804_v24 = vmul.f32 %v802_v4, %v4345_v58  ;;  %v900_v4 = vstv %s3653_s23  ;;  %s4572_s23 = sld [smem:[#allocation2 + $0x582]] }
  0xa9   : > { %617 = vrot.lane.b32.xlu0 %v613_v25, %s7233_s25  ;;  %v844_v25 = vstv %s4377_s14  ;;  %v901_v14 = vmul.f32 %v900_v4, %v4354_v62  ;;  %s3673_s14 = sld [smem:[#allocation2 + $0x503]] }
  0xaa   : > { %v4293_v27 = vpop.permute.xlu2 %345  ;;  %v4296_v28 = vpop.permute.xlu1 %275  ;;  %v846_v49 = vmul.f32 %v844_v25, %v4345_v58 }
  0xab   : > { %v4299_v30 = vpop.permute.xlu0 %273 }
  0xb0   : > { %647 = vrot.lane.b32.xlu2 %v642_v29, %s7233_s25  ;;  %645 = vrot.lane.b32.xlu1 %v641_v31, %s7233_s25  ;;  %v830_v29 = vstv %s3648_s16  ;;  %s3675_s16 = sld [smem:[#allocation2 + $0x505]] }
  0xb1   : > { %633 = vrot.lane.b32.xlu0 %v628_v32, %s7233_s25  ;;  %v845_v32 = vmul.f32 %v844_v25, %v4354_v62  ;;  %v832_v35 = vmul.f32 %v830_v29, %v4345_v58  ;;  %v914_v25 = vstv %s3654_s26  ;;  %s3681_s26 = sld [smem:[#allocation2 + $0x583]] }
  0xb2   : > { %v4306_v34 = vpop.permute.xlu2 %371  ;;  %v4309_v36 = vpop.permute.xlu1 %301 }
  0xb3   : > { %v4312_v38 = vpop.permute.xlu0 %289 }
  0xb8   : > { %673 = vrot.lane.b32.xlu2 %v669_v37, %s7233_s25  ;;  %661 = vrot.lane.b32.xlu1 %v656_v39, %s7233_s25  ;;  %v831_v37 = vmul.f32 %v830_v29, %v4354_v62  ;;  %v858_v39 = vstv %s3650_s17  ;;  %s4545_s17 = sld [smem:[#allocation2 + $0x507]] }
  0xb9   : > { %659 = vrot.lane.b32.xlu0 %v655_v40, %s7233_s25 }
  0xba   : > { %v4320_v42 = vpop.permute.xlu2 %387  ;;  %v4323_v43 = vpop.permute.xlu1 %317 }
  0xbb   : > { %v4326_v45 = vpop.permute.xlu0 %315 }
  0xc0   : > { %689 = vrot.lane.b32.xlu2 %v684_v44, %s7233_s25  ;;  %687 = vrot.lane.b32.xlu1 %v683_v46, %s7233_s25  ;;  %v860_v44 = vmul.f32 %v858_v39, %v4345_v58 }
  0xc1   : > { %675 = vrot.lane.b32.xlu0 %v670_v48, %s7233_s25  ;;  %v859_v48 = vmul.f32 %v858_v39, %v4354_v62  ;;  %v915_v39 = vmul.f32 %v914_v25, %v4354_v62 }
  0xc2   : > { %v4333_v50 = vpop.permute.xlu2 %413  ;;  %v4336_v52 = vpop.permute.xlu1 %343 }
  0xc3   : > { %v4339_v55 = vpop.permute.xlu0 %331 }
  0xc8   : > { %715 = vrot.lane.b32.xlu2 %v711_v54, %s7233_s25  ;;  %703 = vrot.lane.b32.xlu1 %v698_v56, %s7233_s25  ;;  %v872_v56 = vstv %s3651_s22  ;;  %s3678_s22 = sld [smem:[#allocation2 + $0x580]] }
  0xc9   : > { %701 = vrot.lane.b32.xlu0 %v697_v57, %s7233_s25 }
  0xca   : > { %v4350_v61 = vpop.permute.xlu2 %429  ;;  %v4356_v63 = vpop.permute.xlu1 %359 }
  0xcb   : > { %v4359_v0 = vpop.permute.xlu0 %357 }
  0xd0   : > { %781 = vrot.lane.b32.xlu2 %v776_v47, %s4078_s7  ;;  %779 = vrot.lane.b32.xlu1 %v775_v2, %s4078_s7  ;;  %v874_v2 = vmul.f32 %v872_v56, %v4345_v58 }
  0xd1   : > { %717 = vrot.lane.b32.xlu0 %v712_v3, %s7233_s25  ;;  %v873_v3 = vmul.f32 %v872_v56, %v4354_v62 }
  0xd2   : > { %v4366_v5 = vpop.permute.xlu2 %505  ;;  %v4369_v8 = vpop.permute.xlu1 %385 }
  0xd3   : > { %v4372_v10 = vpop.permute.xlu0 %373 }
  0xd8   : > { %807 = vrot.lane.b32.xlu2 %v803_v9, %s4078_s7  ;;  %795 = vrot.lane.b32.xlu1 %v790_v11, %s4078_s7  ;;  %v902_v11 = vmul.f32 %v900_v4, %v4345_v58 }
  0xd9   : > { %793 = vrot.lane.b32.xlu0 %v789_v53, %s4078_s7 }
  0xda   : > { %v4380_v16 = vpop.permute.xlu2 %521  ;;  %v4383_v17 = vpop.permute.xlu1 %401 }
  0xdb   : > { %7248 = vst [vmem:[#allocation8_spill] sm:$0xff] %v4380_v16  ;;  %v4386_v20 = vpop.permute.xlu0 %399 }
  0xe0   : > { %823 = vrot.lane.b32.xlu2 %v818_v18, %s4078_s7  ;;  %821 = vrot.lane.b32.xlu1 %v817_v22, %s4078_s7  ;;  %v888_v18 = vmul.f32 %v886_v51, %v4345_v58  ;;  %v928_v22 = vstv %s4431_s24  ;;  %s3679_s24 = sld [smem:[#allocation2 + $0x581]] }
  0xe1   : > { %809 = vrot.lane.b32.xlu0 %v804_v24, %s4078_s7 }
  0xe2   : > { %v4393_v26 = vpop.permute.xlu2 %547  ;;  %v4396_v31 = vpop.permute.xlu1 %427 }
  0xe3   : > { %7249 = vst [vmem:[#allocation9_spill] sm:$0xff] %v4393_v26  ;;  %v4399_v33 = vpop.permute.xlu0 %415 }
  0xe8   : > { %849 = vrot.lane.b32.xlu2 %v845_v32, %s4078_s7  ;;  %837 = vrot.lane.b32.xlu1 %v832_v35, %s4078_s7  ;;  %v929_v32 = vmul.f32 %v928_v22, %v4354_v62 }
  0xe9   : > { %835 = vrot.lane.b32.xlu0 %v831_v37, %s4078_s7  ;;  %v916_v37 = vmul.f32 %v914_v25, %v4345_v58 }
  0xea   : > { %v4407_v40 = vpop.permute.xlu2 %563  ;;  %v4410_v41 = vpop.permute.xlu1 %443 }
  0xeb   : > { %7250 = vst [vmem:[#allocation10_spill] sm:$0xff] %v4407_v40  ;;  %v4413_v46 = vpop.permute.xlu0 %441 }
  0xec   : > { %7251 = vst [vmem:[#allocation11_spill] sm:$0xff] %v4410_v41 }
  0xed   : > { %7252 = vst [vmem:[#allocation12_spill] sm:$0xff] %v4413_v46 }
  0xf0   : > { %865 = vrot.lane.b32.xlu2 %v860_v44, %s4078_s7  ;;  %863 = vrot.lane.b32.xlu1 %v859_v48, %s4078_s7  ;;  %v942_v44 = vstv %s3656_s27  ;;  %s4599_s27 = sld [smem:[#allocation2 + $0x585]] }
  0xf1   : > { %851 = vrot.lane.b32.xlu0 %v846_v49, %s4078_s7  ;;  %v944_v51 = vmul.f32 %v942_v44, %v4345_v58 }
  0xf2   : > { %v4420_v54 = vpop.permute.xlu2 %589  ;;  %v4423_v57 = vpop.permute.xlu1 %519 }
  0xf3   : > { %7253 = vst [vmem:[#allocation13_spill] sm:$0xff] %v4420_v54  ;;  %v4426_v47 = vpop.permute.xlu0 %507 }
  0xf4   : > { %7254 = vst [vmem:[#allocation14_spill] sm:$0xff] %v4423_v57 }
  0xf5   : > { %7255 = vst [vmem:[#allocation15_spill] sm:$0xff] %v4426_v47 }
  0xf8   : > { %891 = vrot.lane.b32.xlu2 %v887_v60, %s7233_s25  ;;  %879 = vrot.lane.b32.xlu1 %v874_v2, %s4078_s7  ;;  %v943_v60 = vmul.f32 %v942_v44, %v4354_v62  ;;  %v930_v2 = vmul.f32 %v928_v22, %v4345_v58 }
  0xf9   : > { %877 = vrot.lane.b32.xlu0 %v873_v3, %s4078_s7  ;;  %v970_v3 = vstv %s4458_s28  ;;  %s3682_s28 = sld [smem:[#allocation2 + $0x584]] }
  0xfa   : > { %v4434_v7 = vpop.permute.xlu2 %605  ;;  %v4437_v9 = vpop.permute.xlu1 %535 }
  0xfb   : > { %7256 = vst [vmem:[#allocation16_spill] sm:$0xff] %v4434_v7  ;;  %v4440_v53 = vpop.permute.xlu0 %533 }
  0xfc   : > { %7257 = vst [vmem:[#allocation17_spill] sm:$0xff] %v4437_v9 }
  0xfd   : > { %7258 = vst [vmem:[#allocation18_spill] sm:$0xff] %v4440_v53 }
 0x100   : > { %907 = vrot.lane.b32.xlu2 %v902_v11, %s7233_s25  ;;  %905 = vrot.lane.b32.xlu1 %v901_v14, %s7233_s25  ;;  %v956_v11 = vstv %s3657_s29  ;;  %s3684_s29 = sld [smem:[#allocation2 + $0x586]] }
 0x101   : > { %893 = vrot.lane.b32.xlu0 %v888_v18, %s7233_s25  ;;  %v971_v18 = vmul.f32 %v970_v3, %v4354_v62  ;;  %v958_v22 = vmul.f32 %v956_v11, %v4345_v58 }
 0x102   : > { %v4447_v24 = vpop.permute.xlu2 %631  ;;  %v4450_v29 = vpop.permute.xlu1 %561 }
 0x103   : > { %7259 = vst [vmem:[#allocation19_spill] sm:$0xff] %v4447_v24  ;;  %v4453_v35 = vpop.permute.xlu0 %549 }
 0x104   : > { %7260 = vst [vmem:[#allocation20_spill] sm:$0xff] %v4450_v29 }
 0x105   : > { %7261 = vst [vmem:[#allocation21_spill] sm:$0xff] %v4453_v35 }
 0x108   : > { %933 = vrot.lane.b32.xlu2 %v929_v32, %s7233_s25  ;;  %921 = vrot.lane.b32.xlu1 %v916_v37, %s7233_s25  ;;  %v957_v32 = vmul.f32 %v956_v11, %v4354_v62  ;;  %v984_v37 = vstv %s3659_s30  ;;  %v972_v11 = vmul.f32 %v970_v3, %v4345_v58  ;;  %s4626_s30 = sld [smem:[#allocation2 + $0x680]] }
 0x109   : > { %919 = vrot.lane.b32.xlu0 %v915_v39, %s7233_s25 }
 0x10a   : > { %v4461_v48 = vpop.permute.xlu2 %647  ;;  %v4464_v49 = vpop.permute.xlu1 %577 }
 0x10b   : > { %7262 = vst [vmem:[#allocation22_spill] sm:$0xff] %v4461_v48  ;;  %v4467_v56 = vpop.permute.xlu0 %575 }
 0x10c   : > { %7263 = vst [vmem:[#allocation23_spill] sm:$0xff] %v4464_v49 }
 0x10d   : > { %7264 = vst [vmem:[#allocation24_spill] sm:$0xff] %v4467_v56 }
 0x110   : > { %949 = vrot.lane.b32.xlu2 %v944_v51, %s7233_s25  ;;  %947 = vrot.lane.b32.xlu1 %v943_v60, %s7233_s25  ;;  %v986_v51 = vmul.f32 %v984_v37, %v4345_v58 }
 0x111   : > { %935 = vrot.lane.b32.xlu0 %v930_v2, %s7233_s25  ;;  %v985_v2 = vmul.f32 %v984_v37, %v4354_v62 }
 0x112   : > { %v4474_v4 = vpop.permute.xlu2 %673  ;;  %v4477_v14 = vpop.permute.xlu1 %603 }
 0x113   : > { %7265 = vst [vmem:[#allocation25_spill] sm:$0xff] %v4474_v4  ;;  %v4480_v25 = vpop.permute.xlu0 %591 }
 0x114   : > { %7266 = vst [vmem:[#allocation26_spill] sm:$0xff] %v4477_v14 }
 0x115   : > { %7267 = vst [vmem:[#allocation27_spill] sm:$0xff] %v4480_v25  ;;  %v4508_v25 = vld [vmem:[%s4155_s6 + $0x20] sm:$0x7f] }
 0x118   : > { %975 = vrot.lane.b32.xlu2 %v971_v18, %s7233_s25  ;;  %963 = vrot.lane.b32.xlu1 %v958_v22, %s7233_s25  ;;  %v4500_v18 = vld [vmem:[%s4155_s6 + $0x18] sm:$0xff]  ;;  %v1063_v22 = vstv %s4485_s3  ;;  %s3685_s3 = sld [smem:[#allocation2 + $0x587]] }
 0x119   : > { %961 = vrot.lane.b32.xlu0 %v957_v32, %s7233_s25  ;;  %v1064_v62 = vmul.f32 %v4500_v18, %v1063_v22 }
 0x11a   : > { %v4488_v39 = vpop.permute.xlu2 %689  ;;  %v4491_v44 = vpop.permute.xlu1 %619 }
 0x11b   : > { %7268 = vst [vmem:[#allocation28_spill] sm:$0xff] %v4488_v39  ;;  %v4494_v60 = vpop.permute.xlu0 %617  ;;  %v4657_v39 = vld [vmem:[%s4155_s6 + $0x21] sm:$0x7f] }
 0x11c   : > { %7269 = vst [vmem:[#allocation29_spill] sm:$0xff] %v4491_v44  ;;  %v1049_v44 = vstv %s3670_s4  ;;  %s3697_s4 = sld [smem:[#allocation2 + $0x681]] }
 0x11d   : > { %7270 = vst [vmem:[#allocation30_spill] sm:$0xff] %v4494_v60  ;;  %v1051_v3 = vmul.f32 %v4508_v25, %v1049_v44  ;;  %v1050_v37 = vmul.f32 %v4500_v18, %v1049_v44 }
 0x120   : > { %991 = vrot.lane.b32.xlu2 %v986_v51, %s7233_s25  ;;  %989 = vrot.lane.b32.xlu1 %v985_v2, %s7233_s25  ;;  %v1077_v51 = vstv %s3672_s5  ;;  %s4659_s5 = sld [smem:[#allocation2 + $0x683]] }
 0x121   : > { %977 = vrot.lane.b32.xlu0 %v972_v11, %s7233_s25  ;;  %v1078_v44 = vmul.f32 %v4500_v18, %v1077_v51 }
 0x122   : > { %v4504_v32 = vpop.permute.xlu2 %715  ;;  %v4510_v60 = vpop.permute.xlu1 %645 }
 0x123   : > { %7271 = vst [vmem:[#allocation31_spill] sm:$0xff] %v4504_v32  ;;  %v4513_v58 = vpop.permute.xlu0 %633  ;;  %v1105_v32 = vstv %s4518_s8  ;;  %s3698_s8 = sld [smem:[#allocation2 + $0x682]] }
 0x124   : > { %7272 = vst [vmem:[#allocation32_spill] sm:$0xff] %v4510_v60 }
 0x125   : > { %7273 = vst [vmem:[#allocation33_spill] sm:$0xff] %v4513_v58  ;;  %v1079_v58 = vmul.f32 %v4508_v25, %v1077_v51 }
 0x128   : > { %1068 = vrot.lane.b32.xlu2 %v1064_v62, %s4078_s7  ;;  %1056 = vrot.lane.b32.xlu1 %v1051_v3, %s4078_s7  ;;  %v1065_v62 = vmul.f32 %v4508_v25, %v1063_v22 }
 0x129   : > { %1054 = vrot.lane.b32.xlu0 %v1050_v37, %s4078_s7  ;;  %v1091_v37 = vstv %s3673_s14  ;;  %s3700_s14 = sld [smem:[#allocation2 + $0x684]] }
 0x12a   : > { %v4521_v2 = vpop.permute.xlu2 %781  ;;  %v4524_v11 = vpop.permute.xlu1 %661  ;;  %v1093_v51 = vmul.f32 %v4508_v25, %v1091_v37  ;;  %v1092_v22 = vmul.f32 %v4500_v18, %v1091_v37 }
 0x12b   : > { %7274 = vst [vmem:[#allocation34_spill] sm:$0xff] %v4521_v2  ;;  %v4527_v60 = vpop.permute.xlu0 %659 }
 0x12c   : > { %7275 = vst [vmem:[#allocation35_spill] sm:$0xff] %v4524_v11  ;;  %v1106_v11 = vmul.f32 %v4500_v18, %v1105_v32 }
 0x12d   : > { %7276 = vst [vmem:[#allocation36_spill] sm:$0xff] %v4527_v60 }
 0x130   : > { %1084 = vrot.lane.b32.xlu2 %v1079_v58, %s4078_s7  ;;  %1082 = vrot.lane.b32.xlu1 %v1078_v44, %s4078_s7  ;;  %v1119_v58 = vstv %s3675_s16  ;;  %s4686_s16 = sld [smem:[#allocation2 + $0x686]] }
 0x131   : > { %1070 = vrot.lane.b32.xlu0 %v1065_v62, %s4078_s7  ;;  %v1120_v37 = vmul.f32 %v4500_v18, %v1119_v58 }
 0x132   : > { %v4534_v3 = vpop.permute.xlu2 %807  ;;  %v4537_v2 = vpop.permute.xlu1 %687 }
 0x133   : > { %7277 = vst [vmem:[#allocation37_spill] sm:$0xff] %v4534_v3  ;;  %v4540_v60 = vpop.permute.xlu0 %675  ;;  %v1121_v3 = vmul.f32 %v4508_v25, %v1119_v58 }
 0x134   : > { %7278 = vst [vmem:[#allocation38_spill] sm:$0xff] %v4537_v2  ;;  %v1147_v2 = vstv %s4545_s17  ;;  %s3701_s17 = sld [smem:[#allocation2 + $0x685]] }
 0x135   : > { %7279 = vst [vmem:[#allocation39_spill] sm:$0xff] %v4540_v60 }
 0x138   : > { %1110 = vrot.lane.b32.xlu2 %v1106_v11, %s4078_s7  ;;  %1098 = vrot.lane.b32.xlu1 %v1093_v51, %s4078_s7  ;;  %v1107_v11 = vmul.f32 %v4508_v25, %v1105_v32 }
 0x139   : > { %1096 = vrot.lane.b32.xlu0 %v1092_v22, %s4078_s7  ;;  %v1133_v22 = vstv %s3676_s21  ;;  %s3703_s21 = sld [smem:[#allocation2 + $0x687]] }
 0x13a   : > { %v4548_v44 = vpop.permute.xlu2 %823  ;;  %v4551_v62 = vpop.permute.xlu1 %703  ;;  %v1135_v58 = vmul.f32 %v4508_v25, %v1133_v22  ;;  %v1134_v32 = vmul.f32 %v4500_v18, %v1133_v22 }
 0x13b   : > { %7280 = vst [vmem:[#allocation40_spill] sm:$0xff] %v4548_v44  ;;  %v4554_v60 = vpop.permute.xlu0 %701 }
 0x13c   : > { %7281 = vst [vmem:[#allocation41_spill] sm:$0xff] %v4551_v62  ;;  %v1148_v62 = vmul.f32 %v4500_v18, %v1147_v2 }
 0x13d   : > { %7282 = vst [vmem:[#allocation42_spill] sm:$0xff] %v4554_v60 }
 0x140   : > { %1126 = vrot.lane.b32.xlu2 %v1121_v3, %s4078_s7  ;;  %1124 = vrot.lane.b32.xlu1 %v1120_v37, %s4078_s7  ;;  %v1161_v3 = vstv %s3678_s22  ;;  %s4713_s22 = sld [smem:[#allocation2 + $0x701]] }
 0x141   : > { %1112 = vrot.lane.b32.xlu0 %v1107_v11, %s4078_s7  ;;  %v1162_v22 = vmul.f32 %v4500_v18, %v1161_v3 }
 0x142   : > { %v4561_v51 = vpop.permute.xlu2 %849  ;;  %v4564_v44 = vpop.permute.xlu1 %779 }
 0x143   : > { %7283 = vst [vmem:[#allocation43_spill] sm:$0xff] %v4561_v51  ;;  %v4567_v60 = vpop.permute.xlu0 %717  ;;  %v1163_v51 = vmul.f32 %v4508_v25, %v1161_v3 }
 0x144   : > { %7284 = vst [vmem:[#allocation44_spill] sm:$0xff] %v4564_v44  ;;  %v1189_v44 = vstv %s4572_s23  ;;  %s3704_s23 = sld [smem:[#allocation2 + $0x700]] }
 0x145   : > { %7285 = vst [vmem:[#allocation45_spill] sm:$0xff] %v4567_v60 }
 0x148   : > { %1152 = vrot.lane.b32.xlu2 %v1148_v62, %s4078_s7  ;;  %1140 = vrot.lane.b32.xlu1 %v1135_v58, %s4078_s7  ;;  %v1149_v62 = vmul.f32 %v4508_v25, %v1147_v2 }
 0x149   : > { %1138 = vrot.lane.b32.xlu0 %v1134_v32, %s4078_s7  ;;  %v1175_v32 = vstv %s3679_s24  ;;  %s3706_s24 = sld [smem:[#allocation2 + $0x702]] }
 0x14a   : > { %v4575_v37 = vpop.permute.xlu2 %865  ;;  %v4578_v11 = vpop.permute.xlu1 %795  ;;  %v1177_v3 = vmul.f32 %v4508_v25, %v1175_v32  ;;  %v1176_v2 = vmul.f32 %v4500_v18, %v1175_v32 }
 0x14b   : > { %7286 = vst [vmem:[#allocation46_spill] sm:$0xff] %v4575_v37  ;;  %v4581_v60 = vpop.permute.xlu0 %793 }
 0x14c   : > { %7287 = vst [vmem:[#allocation47_spill] sm:$0xff] %v4578_v11  ;;  %v1190_v11 = vmul.f32 %v4500_v18, %v1189_v44 }
 0x14d   : > { %7288 = vst [vmem:[#allocation48_spill] sm:$0xff] %v4581_v60 }
 0x150   : > { %1168 = vrot.lane.b32.xlu2 %v1163_v51, %s7233_s25  ;;  %1166 = vrot.lane.b32.xlu1 %v1162_v22, %s7233_s25  ;;  %v1203_v51 = vstv %s3681_s26  ;;  %s4740_s26 = sld [smem:[#allocation2 + $0x704]] }
 0x151   : > { %1154 = vrot.lane.b32.xlu0 %v1149_v62, %s4078_s7  ;;  %v1204_v32 = vmul.f32 %v4500_v18, %v1203_v51 }
 0x152   : > { %v4588_v58 = vpop.permute.xlu2 %891  ;;  %v4591_v37 = vpop.permute.xlu1 %821 }
 0x153   : > { %7289 = vst [vmem:[#allocation49_spill] sm:$0xff] %v4588_v58  ;;  %v4594_v60 = vpop.permute.xlu0 %809  ;;  %v1231_v58 = vstv %s4599_s27  ;;  %s3707_s27 = sld [smem:[#allocation2 + $0x703]] }
 0x154   : > { %7290 = vst [vmem:[#allocation50_spill] sm:$0xff] %v4591_v37 }
 0x155   : > { %7291 = vst [vmem:[#allocation51_spill] sm:$0xff] %v4594_v60  ;;  %v1205_v60 = vmul.f32 %v4508_v25, %v1203_v51  ;;  %v1245_v51 = vstv %s3684_s29  ;;  %s4767_s29 = sld [smem:[#allocation2 + $0x707]] }
 0x158   : > { %1194 = vrot.lane.b32.xlu2 %v1190_v11, %s7233_s25  ;;  %1182 = vrot.lane.b32.xlu1 %v1177_v3, %s7233_s25  ;;  %v1191_v11 = vmul.f32 %v4508_v25, %v1189_v44 }
 0x159   : > { %1180 = vrot.lane.b32.xlu0 %v1176_v2, %s7233_s25  ;;  %v1217_v2 = vstv %s3682_s28  ;;  %s3709_s28 = sld [smem:[#allocation2 + $0x705]] }
 0x15a   : > { %v4602_v22 = vpop.permute.xlu2 %907  ;;  %v4605_v62 = vpop.permute.xlu1 %837  ;;  %v1219_v44 = vmul.f32 %v4508_v25, %v1217_v2 }
 0x15b   : > { %7292 = vst [vmem:[#allocation52_spill] sm:$0xff] %v4602_v22  ;;  %v4608_v37 = vpop.permute.xlu0 %835  ;;  %v1232_v22 = vmul.f32 %v4500_v18, %v1231_v58 }
 0x15c   : > { %7293 = vst [vmem:[#allocation53_spill] sm:$0xff] %v4605_v62 }
 0x15d   : > { %7294 = vst [vmem:[#allocation54_spill] sm:$0xff] %v4608_v37 }
 0x160   : > { %1210 = vrot.lane.b32.xlu2 %v1205_v60, %s7233_s25  ;;  %1208 = vrot.lane.b32.xlu1 %v1204_v32, %s7233_s25  ;;  %v1218_v60 = vmul.f32 %v4500_v18, %v1217_v2  ;;  %v1246_v2 = vmul.f32 %v4500_v18, %v1245_v51 }
 0x161   : > { %1196 = vrot.lane.b32.xlu0 %v1191_v11, %s7233_s25 }
 0x162   : > { %v4615_v3 = vpop.permute.xlu2 %933  ;;  %v4618_v62 = vpop.permute.xlu1 %863 }
 0x163   : > { %7295 = vst [vmem:[#allocation55_spill] sm:$0xff] %v4615_v3  ;;  %v4621_v37 = vpop.permute.xlu0 %851  ;;  %v4641_v3 = vld [vmem:[%s4155_s6 + $0x19] sm:$0xff] }
 0x164   : > { %7296 = vst [vmem:[#allocation56_spill] sm:$0xff] %v4618_v62 }
 0x165   : > { %7297 = vst [vmem:[#allocation57_spill] sm:$0xff] %v4621_v37  ;;  %v1247_v37 = vmul.f32 %v4508_v25, %v1245_v51 }
 0x168   : > { %1236 = vrot.lane.b32.xlu2 %v1232_v22, %s7233_s25  ;;  %1224 = vrot.lane.b32.xlu1 %v1219_v44, %s7233_s25  ;;  %v1233_v22 = vmul.f32 %v4508_v25, %v1231_v58  ;;  %v1323_v44 = vstv %s4626_s30  ;;  %s3710_s30 = sld [smem:[#allocation2 + $0x706]] }
 0x169   : > { %1222 = vrot.lane.b32.xlu0 %v1218_v60, %s7233_s25  ;;  %v1324_v51 = vmul.f32 %v4641_v3, %v1323_v44 }
 0x16a   : > { %v4629_v32 = vpop.permute.xlu2 %949  ;;  %v4632_v11 = vpop.permute.xlu1 %879 }
 0x16b   : > { %7298 = vst [vmem:[#allocation58_spill] sm:$0xff] %v4629_v32  ;;  %v4635_v62 = vpop.permute.xlu0 %877 }
 0x16c   : > { %7299 = vst [vmem:[#allocation59_spill] sm:$0xff] %v4632_v11  ;;  %v1259_v11 = vstv %s3685_s3  ;;  %s3722_s3 = sld [smem:[#allocation2 + $0x800]] }
 0x16d   : > { %7300 = vst [vmem:[#allocation60_spill] sm:$0xff] %v4635_v62  ;;  %v1261_v58 = vmul.f32 %v4508_v25, %v1259_v11 }
 0x170   : > { %1252 = vrot.lane.b32.xlu2 %v1247_v37, %s7233_s25  ;;  %1250 = vrot.lane.b32.xlu1 %v1246_v2, %s7233_s25  ;;  %v1260_v37 = vmul.f32 %v4500_v18, %v1259_v11  ;;  %v1337_v2 = vstv %s3697_s4  ;;  %s4797_s4 = sld [smem:[#allocation2 + $0x802]] }
 0x171   : > { %1238 = vrot.lane.b32.xlu0 %v1233_v22, %s7233_s25  ;;  %v1339_v25 = vmul.f32 %v4657_v39, %v1337_v2  ;;  %v1338_v11 = vmul.f32 %v4641_v3, %v1337_v2 }
 0x172   : > { %v4645_v60 = vpop.permute.xlu2 %975  ;;  %v4648_v32 = vpop.permute.xlu1 %905 }
 0x173   : > { %7301 = vst [vmem:[#allocation61_spill] sm:$0xff] %v4645_v60  ;;  %v4651_v62 = vpop.permute.xlu0 %893 }
 0x174   : > { %7302 = vst [vmem:[#allocation62_spill] sm:$0xff] %v4648_v32  ;;  %v1365_v32 = vstv %s4659_s5  ;;  %s3723_s5 = sld [smem:[#allocation2 + $0x801]] }
 0x175   : > { %7303 = vst [vmem:[#allocation63_spill] sm:$0xff] %v4651_v62 }
 0x178   : > { %1328 = vrot.lane.b32.xlu2 %v1324_v51, %s4078_s7  ;;  %1266 = vrot.lane.b32.xlu1 %v1261_v58, %s7233_s25  ;;  %v1325_v51 = vmul.f32 %v4657_v39, %v1323_v44 }
 0x179   : > { %1264 = vrot.lane.b32.xlu0 %v1260_v37, %s7233_s25  ;;  %v1351_v37 = vstv %s3698_s8  ;;  %s3725_s8 = sld [smem:[#allocation2 + $0x803]] }
 0x17a   : > { %v4662_v22 = vpop.permute.xlu2 %991  ;;  %v4665_v62 = vpop.permute.xlu1 %921  ;;  %v1353_v2 = vmul.f32 %v4657_v39, %v1351_v37  ;;  %v1352_v44 = vmul.f32 %v4641_v3, %v1351_v37 }
 0x17b   : > { %7304 = vst [vmem:[#allocation64_spill] sm:$0xff] %v4662_v22  ;;  %v4668_v18 = vpop.permute.xlu0 %919  ;;  %v1366_v22 = vmul.f32 %v4641_v3, %v1365_v32 }
 0x17c   : > { %7305 = vst [vmem:[#allocation65_spill] sm:$0xff] %v4665_v62 }
 0x17d   : > { %7306 = vst [vmem:[#allocation66_spill] sm:$0xff] %v4668_v18 }
 0x180   : > { %1344 = vrot.lane.b32.xlu2 %v1339_v25, %s4078_s7  ;;  %1342 = vrot.lane.b32.xlu1 %v1338_v11, %s4078_s7  ;;  %v1379_v25 = vstv %s3700_s14  ;;  %s4827_s14 = sld [smem:[#allocation2 + $0x805]] }
 0x181   : > { %1330 = vrot.lane.b32.xlu0 %v1325_v51, %s4078_s7  ;;  %v1380_v37 = vmul.f32 %v4641_v3, %v1379_v25 }
 0x182   : > { %v4675_v58 = vpop.permute.xlu2 %1068  ;;  %v4678_v62 = vpop.permute.xlu1 %947 }
 0x183   : > { %7307 = vst [vmem:[#allocation67_spill] sm:$0xff] %v4675_v58  ;;  %v4681_v18 = vpop.permute.xlu0 %935  ;;  %v1381_v58 = vmul.f32 %v4657_v39, %v1379_v25 }
 0x184   : > { %7308 = vst [vmem:[#allocation68_spill] sm:$0xff] %v4678_v62  ;;  %v1407_v62 = vstv %s4686_s16  ;;  %s3726_s16 = sld [smem:[#allocation2 + $0x804]] }
 0x185   : > { %7309 = vst [vmem:[#allocation69_spill] sm:$0xff] %v4681_v18 }
 0x188   : > { %1370 = vrot.lane.b32.xlu2 %v1366_v22, %s4078_s7  ;;  %1358 = vrot.lane.b32.xlu1 %v1353_v2, %s4078_s7  ;;  %v1367_v22 = vmul.f32 %v4657_v39, %v1365_v32 }
 0x189   : > { %1356 = vrot.lane.b32.xlu0 %v1352_v44, %s4078_s7  ;;  %v1393_v44 = vstv %s3701_s17  ;;  %s3728_s17 = sld [smem:[#allocation2 + $0x806]] }
 0x18a   : > { %v4689_v11 = vpop.permute.xlu2 %1084  ;;  %v4692_v51 = vpop.permute.xlu1 %963  ;;  %v1395_v25 = vmul.f32 %v4657_v39, %v1393_v44  ;;  %v1394_v32 = vmul.f32 %v4641_v3, %v1393_v44 }
 0x18b   : > { %7310 = vst [vmem:[#allocation70_spill] sm:$0xff] %v4689_v11  ;;  %v4695_v18 = vpop.permute.xlu0 %961 }
 0x18c   : > { %7311 = vst [vmem:[#allocation71_spill] sm:$0xff] %v4692_v51  ;;  %v1408_v51 = vmul.f32 %v4641_v3, %v1407_v62 }
 0x18d   : > { %7312 = vst [vmem:[#allocation72_spill] sm:$0xff] %v4695_v18 }
 0x190   : > { %1386 = vrot.lane.b32.xlu2 %v1381_v58, %s4078_s7  ;;  %1384 = vrot.lane.b32.xlu1 %v1380_v37, %s4078_s7  ;;  %v1421_v58 = vstv %s3703_s21  ;;  %s4854_s21 = sld [smem:[#allocation2 + $0x880]] }
 0x191   : > { %1372 = vrot.lane.b32.xlu0 %v1367_v22, %s4078_s7  ;;  %v1422_v44 = vmul.f32 %v4641_v3, %v1421_v58 }
 0x192   : > { %v4702_v2 = vpop.permute.xlu2 %1110  ;;  %v4705_v11 = vpop.permute.xlu1 %989 }
 0x193   : > { %7313 = vst [vmem:[#allocation73_spill] sm:$0xff] %v4702_v2  ;;  %v4708_v18 = vpop.permute.xlu0 %977  ;;  %v1423_v2 = vmul.f32 %v4657_v39, %v1421_v58 }
 0x194   : > { %7314 = vst [vmem:[#allocation74_spill] sm:$0xff] %v4705_v11  ;;  %v1449_v11 = vstv %s4713_s22  ;;  %s3729_s22 = sld [smem:[#allocation2 + $0x807]] }
 0x195   : > { %7315 = vst [vmem:[#allocation75_spill] sm:$0xff] %v4708_v18 }
 0x198   : > { %1412 = vrot.lane.b32.xlu2 %v1408_v51, %s4078_s7  ;;  %1400 = vrot.lane.b32.xlu1 %v1395_v25, %s4078_s7  ;;  %v1409_v51 = vmul.f32 %v4657_v39, %v1407_v62 }
 0x199   : > { %1398 = vrot.lane.b32.xlu0 %v1394_v32, %s4078_s7  ;;  %v1435_v32 = vstv %s3704_s23  ;;  %s3731_s23 = sld [smem:[#allocation2 + $0x881]] }
 0x19a   : > { %v4716_v37 = vpop.permute.xlu2 %1126  ;;  %v4719_v22 = vpop.permute.xlu1 %1056  ;;  %v1437_v58 = vmul.f32 %v4657_v39, %v1435_v32  ;;  %v1436_v62 = vmul.f32 %v4641_v3, %v1435_v32 }
 0x19b   : > { %7316 = vst [vmem:[#allocation76_spill] sm:$0xff] %v4716_v37  ;;  %v4722_v18 = vpop.permute.xlu0 %1054 }
 0x19c   : > { %7317 = vst [vmem:[#allocation77_spill] sm:$0xff] %v4719_v22  ;;  %v1450_v22 = vmul.f32 %v4641_v3, %v1449_v11 }
 0x19d   : > { %7318 = vst [vmem:[#allocation78_spill] sm:$0xff] %v4722_v18 }
 0x1a0   : > { %1428 = vrot.lane.b32.xlu2 %v1423_v2, %s4078_s7  ;;  %1426 = vrot.lane.b32.xlu1 %v1422_v44, %s4078_s7  ;;  %v1463_v2 = vstv %s3706_s24  ;;  %s4881_s24 = sld [smem:[#allocation2 + $0x883]] }
 0x1a1   : > { %1414 = vrot.lane.b32.xlu0 %v1409_v51, %s4078_s7  ;;  %v1464_v32 = vmul.f32 %v4641_v3, %v1463_v2 }
 0x1a2   : > { %v4729_v25 = vpop.permute.xlu2 %1152  ;;  %v4732_v37 = vpop.permute.xlu1 %1082 }
 0x1a3   : > { %7319 = vst [vmem:[#allocation79_spill] sm:$0xff] %v4729_v25  ;;  %v4735_v18 = vpop.permute.xlu0 %1070 }
 0x1a4   : > { %7320 = vst [vmem:[#allocation80_spill] sm:$0xff] %v4732_v37  ;;  %v1491_v37 = vstv %s4740_s26  ;;  %s3732_s26 = sld [smem:[#allocation2 + $0x882]] }
 0x1a5   : > { %7321 = vst [vmem:[#allocation81_spill] sm:$0xff] %v4735_v18  ;;  %v1465_v18 = vmul.f32 %v4657_v39, %v1463_v2 }
 0x1a8   : > { %1454 = vrot.lane.b32.xlu2 %v1450_v22, %s7233_s25  ;;  %1442 = vrot.lane.b32.xlu1 %v1437_v58, %s7233_s25  ;;  %v1451_v22 = vmul.f32 %v4657_v39, %v1449_v11 }
 0x1a9   : > { %1440 = vrot.lane.b32.xlu0 %v1436_v62, %s7233_s25  ;;  %v1477_v62 = vstv %s3707_s27  ;;  %s3734_s27 = sld [smem:[#allocation2 + $0x884]] }
 0x1aa   : > { %v4743_v44 = vpop.permute.xlu2 %1168  ;;  %v4746_v51 = vpop.permute.xlu1 %1098  ;;  %v1479_v2 = vmul.f32 %v4657_v39, %v1477_v62  ;;  %v1478_v11 = vmul.f32 %v4641_v3, %v1477_v62  ;;  %v1493_v62 = vmul.f32 %v4657_v39, %v1491_v37 }
 0x1ab   : > { %7322 = vst [vmem:[#allocation82_spill] sm:$0xff] %v4743_v44  ;;  %v4749_v25 = vpop.permute.xlu0 %1096  ;;  %v1492_v44 = vmul.f32 %v4641_v3, %v1491_v37 }
 0x1ac   : > { %7323 = vst [vmem:[#allocation83_spill] sm:$0xff] %v4746_v51 }
 0x1ad   : > { %7324 = vst [vmem:[#allocation84_spill] sm:$0xff] %v4749_v25 }
 0x1b0   : > { %1470 = vrot.lane.b32.xlu2 %v1465_v18, %s7233_s25  ;;  %1468 = vrot.lane.b32.xlu1 %v1464_v32, %s7233_s25  ;;  %v1505_v18 = vstv %s3709_s28  ;;  %s4908_s28 = sld [smem:[#allocation2 + $0x886]] }
 0x1b1   : > { %1456 = vrot.lane.b32.xlu0 %v1451_v22, %s7233_s25 }
 0x1b2   : > { %v4756_v58 = vpop.permute.xlu2 %1194  ;;  %v4759_v51 = vpop.permute.xlu1 %1124 }
 0x1b3   : > { %7325 = vst [vmem:[#allocation85_spill] sm:$0xff] %v4756_v58  ;;  %v4762_v25 = vpop.permute.xlu0 %1112  ;;  %v1533_v58 = vstv %s4767_s29  ;;  %s3735_s29 = sld [smem:[#allocation2 + $0x885]] }
 0x1b4   : > { %7326 = vst [vmem:[#allocation86_spill] sm:$0xff] %v4759_v51 }
 0x1b5   : > { %7327 = vst [vmem:[#allocation87_spill] sm:$0xff] %v4762_v25  ;;  %v1507_v25 = vmul.f32 %v4657_v39, %v1505_v18 }
 0x1b8   : > { %1496 = vrot.lane.b32.xlu2 %v1492_v44, %s7233_s25  ;;  %1484 = vrot.lane.b32.xlu1 %v1479_v2, %s7233_s25  ;;  %v1506_v44 = vmul.f32 %v4641_v3, %v1505_v18  ;;  %v4795_v18 = vld [vmem:[%s4155_s6 + $0x22] sm:$0x7f] }
 0x1b9   : > { %1482 = vrot.lane.b32.xlu0 %v1478_v11, %s7233_s25  ;;  %v1519_v11 = vstv %s3710_s30  ;;  %s3737_s30 = sld [smem:[#allocation2 + $0x887]] }
 0x1ba   : > { %v4770_v32 = vpop.permute.xlu2 %1210  ;;  %v4773_v22 = vpop.permute.xlu1 %1140  ;;  %v1521_v37 = vmul.f32 %v4657_v39, %v1519_v11 }
 0x1bb   : > { %7328 = vst [vmem:[#allocation88_spill] sm:$0xff] %v4770_v32  ;;  %v4776_v51 = vpop.permute.xlu0 %1138 }
 0x1bc   : > { %7329 = vst [vmem:[#allocation89_spill] sm:$0xff] %v4773_v22 }
 0x1bd   : > { %7330 = vst [vmem:[#allocation90_spill] sm:$0xff] %v4776_v51  ;;  %v1534_v51 = vmul.f32 %v4641_v3, %v1533_v58 }
 0x1c0   : > { %1512 = vrot.lane.b32.xlu2 %v1507_v25, %s7233_s25  ;;  %1510 = vrot.lane.b32.xlu1 %v1506_v44, %s7233_s25  ;;  %v1520_v25 = vmul.f32 %v4641_v3, %v1519_v11  ;;  %v1597_v44 = vstv %s3722_s3  ;;  %s4935_s3 = sld [smem:[#allocation2 + $0x981]] }
 0x1c1   : > { %1498 = vrot.lane.b32.xlu0 %v1493_v62, %s7233_s25  ;;  %v1599_v3 = vmul.f32 %v4795_v18, %v1597_v44 }
 0x1c2   : > { %v4783_v2 = vpop.permute.xlu2 %1236  ;;  %v4786_v22 = vpop.permute.xlu1 %1166 }
 0x1c3   : > { %7331 = vst [vmem:[#allocation91_spill] sm:$0xff] %v4783_v2  ;;  %v4789_v32 = vpop.permute.xlu0 %1154  ;;  %v1535_v2 = vmul.f32 %v4657_v39, %v1533_v58  ;;  %v1639_v58 = vstv %s3725_s8  ;;  %s4968_s8 = sld [smem:[#allocation2 + $0x984]] }
 0x1c4   : > { %7332 = vst [vmem:[#allocation92_spill] sm:$0xff] %v4786_v22  ;;  %v4804_v22 = vld [vmem:[%s4155_s6 + $0x1a] sm:$0xff] }
 0x1c5   : > { %7333 = vst [vmem:[#allocation93_spill] sm:$0xff] %v4789_v32  ;;  %v1598_v11 = vmul.f32 %v4804_v22, %v1597_v44 }
 0x1c8   : > { %1538 = vrot.lane.b32.xlu2 %v1534_v51, %s7233_s25  ;;  %1526 = vrot.lane.b32.xlu1 %v1521_v37, %s7233_s25  ;;  %v1625_v37 = vstv %s4797_s4  ;;  %s3748_s4 = sld [smem:[#allocation2 + $0x980]] }
 0x1c9   : > { %1524 = vrot.lane.b32.xlu0 %v1520_v25, %s7233_s25  ;;  %v1626_v60 = vmul.f32 %v4804_v22, %v1625_v37 }
 0x1ca   : > { %v4800_v62 = vpop.permute.xlu2 %1252  ;;  %v4806_v32 = vpop.permute.xlu1 %1182 }
 0x1cb   : > { %7334 = vst [vmem:[#allocation94_spill] sm:$0xff] %v4800_v62  ;;  %v4809_v51 = vpop.permute.xlu0 %1180  ;;  %v1611_v62 = vstv %s3723_s5  ;;  %s3750_s5 = sld [smem:[#allocation2 + $0x982]] }
 0x1cc   : > { %7335 = vst [vmem:[#allocation95_spill] sm:$0xff] %v4806_v32  ;;  %v1613_v44 = vmul.f32 %v4795_v18, %v1611_v62  ;;  %v1612_v39 = vmul.f32 %v4804_v22, %v1611_v62  ;;  %v1640_v62 = vmul.f32 %v4804_v22, %v1639_v58 }
 0x1cd   : > { %7336 = vst [vmem:[#allocation96_spill] sm:$0xff] %v4809_v51 }
 0x1d0   : > { %1604 = vrot.lane.b32.xlu2 %v1599_v3, %s4078_s7  ;;  %1602 = vrot.lane.b32.xlu1 %v1598_v11, %s4078_s7  ;;  %v1641_v11 = vmul.f32 %v4795_v18, %v1639_v58 }
 0x1d1   : > { %1540 = vrot.lane.b32.xlu0 %v1535_v2, %s7233_s25 }
 0x1d2   : > { %v4816_v25 = vpop.permute.xlu2 %1328  ;;  %v4819_v32 = vpop.permute.xlu1 %1208 }
 0x1d3   : > { %7337 = vst [vmem:[#allocation97_spill] sm:$0xff] %v4816_v25  ;;  %v4822_v51 = vpop.permute.xlu0 %1196 }
 0x1d4   : > { %7338 = vst [vmem:[#allocation98_spill] sm:$0xff] %v4819_v32  ;;  %v5107_v32 = vld [vmem:[%s4155_s6 + $0x39] sm:$0x7f] }
 0x1d5   : > { %7339 = vst [vmem:[#allocation99_spill] sm:$0xff] %v4822_v51  ;;  %v1667_v51 = vstv %s4827_s14  ;;  %s3751_s14 = sld [smem:[#allocation2 + $0x983]] }
 0x1d8   : > { %1630 = vrot.lane.b32.xlu2 %v1626_v60, %s4078_s7  ;;  %1618 = vrot.lane.b32.xlu1 %v1613_v44, %s4078_s7  ;;  %v1627_v60 = vmul.f32 %v4795_v18, %v1625_v37 }
 0x1d9   : > { %1616 = vrot.lane.b32.xlu0 %v1612_v39, %s4078_s7  ;;  %v1653_v39 = vstv %s3726_s16  ;;  %s3753_s16 = sld [smem:[#allocation2 + $0x985]] }
 0x1da   : > { %v4830_v2 = vpop.permute.xlu2 %1344  ;;  %v4833_v3 = vpop.permute.xlu1 %1224  ;;  %v1655_v58 = vmul.f32 %v4795_v18, %v1653_v39  ;;  %v1654_v37 = vmul.f32 %v4804_v22, %v1653_v39 }
 0x1db   : > { %7340 = vst [vmem:[#allocation100_spill] sm:$0xff] %v4830_v2  ;;  %v4836_v25 = vpop.permute.xlu0 %1222 }
 0x1dc   : > { %7341 = vst [vmem:[#allocation101_spill] sm:$0xff] %v4833_v3  ;;  %v1668_v3 = vmul.f32 %v4804_v22, %v1667_v51 }
 0x1dd   : > { %7342 = vst [vmem:[#allocation102_spill] sm:$0xff] %v4836_v25 }
 0x1e0   : > { %1646 = vrot.lane.b32.xlu2 %v1641_v11, %s4078_s7  ;;  %1644 = vrot.lane.b32.xlu1 %v1640_v62, %s4078_s7  ;;  %v1681_v11 = vstv %s3728_s17  ;;  %s4995_s17 = sld [smem:[#allocation2 + $0x987]] }
 0x1e1   : > { %1632 = vrot.lane.b32.xlu0 %v1627_v60, %s4078_s7  ;;  %v1682_v39 = vmul.f32 %v4804_v22, %v1681_v11 }
 0x1e2   : > { %v4843_v44 = vpop.permute.xlu2 %1370  ;;  %v4846_v2 = vpop.permute.xlu1 %1250 }
 0x1e3   : > { %7343 = vst [vmem:[#allocation103_spill] sm:$0xff] %v4843_v44  ;;  %v4849_v25 = vpop.permute.xlu0 %1238  ;;  %v1683_v44 = vmul.f32 %v4795_v18, %v1681_v11 }
 0x1e4   : > { %7344 = vst [vmem:[#allocation104_spill] sm:$0xff] %v4846_v2  ;;  %v1709_v2 = vstv %s4854_s21  ;;  %s3754_s21 = sld [smem:[#allocation2 + $0x986]] }
 0x1e5   : > { %7345 = vst [vmem:[#allocation105_spill] sm:$0xff] %v4849_v25 }
 0x1e8   : > { %1672 = vrot.lane.b32.xlu2 %v1668_v3, %s4078_s7  ;;  %1660 = vrot.lane.b32.xlu1 %v1655_v58, %s4078_s7  ;;  %v1669_v3 = vmul.f32 %v4795_v18, %v1667_v51 }
 0x1e9   : > { %1658 = vrot.lane.b32.xlu0 %v1654_v37, %s4078_s7  ;;  %v1695_v37 = vstv %s3729_s22  ;;  %s3756_s22 = sld [smem:[#allocation2 + $0xa00]] }
 0x1ea   : > { %v4857_v62 = vpop.permute.xlu2 %1386  ;;  %v4860_v60 = vpop.permute.xlu1 %1266  ;;  %v1697_v11 = vmul.f32 %v4795_v18, %v1695_v37  ;;  %v1696_v51 = vmul.f32 %v4804_v22, %v1695_v37 }
 0x1eb   : > { %7346 = vst [vmem:[#allocation106_spill] sm:$0xff] %v4857_v62  ;;  %v4863_v25 = vpop.permute.xlu0 %1264 }
 0x1ec   : > { %7347 = vst [vmem:[#allocation107_spill] sm:$0xff] %v4860_v60  ;;  %v1710_v60 = vmul.f32 %v4804_v22, %v1709_v2 }
 0x1ed   : > { %7348 = vst [vmem:[#allocation108_spill] sm:$0xff] %v4863_v25 }
 0x1f0   : > { %1688 = vrot.lane.b32.xlu2 %v1683_v44, %s4078_s7  ;;  %1686 = vrot.lane.b32.xlu1 %v1682_v39, %s4078_s7  ;;  %v1723_v44 = vstv %s3731_s23  ;;  %s5022_s23 = sld [smem:[#allocation2 + $0xa02]] }
 0x1f1   : > { %1674 = vrot.lane.b32.xlu0 %v1669_v3, %s4078_s7  ;;  %v1724_v37 = vmul.f32 %v4804_v22, %v1723_v44 }
 0x1f2   : > { %v4870_v58 = vpop.permute.xlu2 %1412  ;;  %v4873_v62 = vpop.permute.xlu1 %1342 }
 0x1f3   : > { %7349 = vst [vmem:[#allocation109_spill] sm:$0xff] %v4870_v58  ;;  %v4876_v25 = vpop.permute.xlu0 %1330  ;;  %v1751_v58 = vstv %s4881_s24  ;;  %s3757_s24 = sld [smem:[#allocation2 + $0xa01]] }
 0x1f4   : > { %7350 = vst [vmem:[#allocation110_spill] sm:$0xff] %v4873_v62 }
 0x1f5   : > { %7351 = vst [vmem:[#allocation111_spill] sm:$0xff] %v4876_v25  ;;  %v1725_v25 = vmul.f32 %v4795_v18, %v1723_v44 }
 0x1f8   : > { %1714 = vrot.lane.b32.xlu2 %v1710_v60, %s7233_s25  ;;  %1702 = vrot.lane.b32.xlu1 %v1697_v11, %s4078_s7  ;;  %v1711_v60 = vmul.f32 %v4795_v18, %v1709_v2 }
 0x1f9   : > { %1700 = vrot.lane.b32.xlu0 %v1696_v51, %s4078_s7  ;;  %v1737_v51 = vstv %s3732_s26  ;;  %s3759_s26 = sld [smem:[#allocation2 + $0xa03]] }
 0x1fa   : > { %v4884_v39 = vpop.permute.xlu2 %1428  ;;  %v4887_v3 = vpop.permute.xlu1 %1358  ;;  %v1739_v44 = vmul.f32 %v4795_v18, %v1737_v51  ;;  %v1738_v2 = vmul.f32 %v4804_v22, %v1737_v51 }
 0x1fb   : > { %7352 = vst [vmem:[#allocation112_spill] sm:$0xff] %v4884_v39  ;;  %v4890_v62 = vpop.permute.xlu0 %1356 }
 0x1fc   : > { %7353 = vst [vmem:[#allocation113_spill] sm:$0xff] %v4887_v3  ;;  %v1752_v3 = vmul.f32 %v4804_v22, %v1751_v58 }
 0x1fd   : > { %7354 = vst [vmem:[#allocation114_spill] sm:$0xff] %v4890_v62 }
 0x200   : > { %1730 = vrot.lane.b32.xlu2 %v1725_v25, %s7233_s25  ;;  %1728 = vrot.lane.b32.xlu1 %v1724_v37, %s7233_s25  ;;  %v1765_v25 = vstv %s3734_s27  ;;  %s5049_s27 = sld [smem:[#allocation2 + $0xa05]] }
 0x201   : > { %1716 = vrot.lane.b32.xlu0 %v1711_v60, %s7233_s25  ;;  %v1766_v51 = vmul.f32 %v4804_v22, %v1765_v25 }
 0x202   : > { %v4897_v11 = vpop.permute.xlu2 %1454  ;;  %v4900_v39 = vpop.permute.xlu1 %1384 }
 0x203   : > { %7355 = vst [vmem:[#allocation115_spill] sm:$0xff] %v4897_v11  ;;  %v4903_v62 = vpop.permute.xlu0 %1372  ;;  %v1793_v11 = vstv %s4908_s28  ;;  %s3760_s28 = sld [smem:[#allocation2 + $0xa04]] }
 0x204   : > { %7356 = vst [vmem:[#allocation116_spill] sm:$0xff] %v4900_v39 }
 0x205   : > { %7357 = vst [vmem:[#allocation117_spill] sm:$0xff] %v4903_v62  ;;  %v1767_v62 = vmul.f32 %v4795_v18, %v1765_v25  ;;  %v1807_v25 = vstv %s3737_s30  ;;  %s5076_s30 = sld [smem:[#allocation2 + $0xb00]] }
 0x208   : > { %1756 = vrot.lane.b32.xlu2 %v1752_v3, %s7233_s25  ;;  %1744 = vrot.lane.b32.xlu1 %v1739_v44, %s7233_s25  ;;  %v1753_v3 = vmul.f32 %v4795_v18, %v1751_v58 }
 0x209   : > { %1742 = vrot.lane.b32.xlu0 %v1738_v2, %s7233_s25  ;;  %v1779_v2 = vstv %s3735_s29  ;;  %s3762_s29 = sld [smem:[#allocation2 + $0xa06]] }
 0x20a   : > { %v4911_v37 = vpop.permute.xlu2 %1470  ;;  %v4914_v60 = vpop.permute.xlu1 %1400  ;;  %v1781_v58 = vmul.f32 %v4795_v18, %v1779_v2 }
 0x20b   : > { %7358 = vst [vmem:[#allocation118_spill] sm:$0xff] %v4911_v37  ;;  %v4917_v39 = vpop.permute.xlu0 %1398  ;;  %v1794_v37 = vmul.f32 %v4804_v22, %v1793_v11 }
 0x20c   : > { %7359 = vst [vmem:[#allocation119_spill] sm:$0xff] %v4914_v60 }
 0x20d   : > { %7360 = vst [vmem:[#allocation120_spill] sm:$0xff] %v4917_v39 }
 0x210   : > { %1772 = vrot.lane.b32.xlu2 %v1767_v62, %s7233_s25  ;;  %1770 = vrot.lane.b32.xlu1 %v1766_v51, %s7233_s25  ;;  %v1780_v62 = vmul.f32 %v4804_v22, %v1779_v2  ;;  %v1795_v2 = vmul.f32 %v4795_v18, %v1793_v11 }
 0x211   : > { %1758 = vrot.lane.b32.xlu0 %v1753_v3, %s7233_s25 }
 0x212   : > { %v4924_v44 = vpop.permute.xlu2 %1496  ;;  %v4927_v60 = vpop.permute.xlu1 %1426 }
 0x213   : > { %7361 = vst [vmem:[#allocation121_spill] sm:$0xff] %v4924_v44  ;;  %v4930_v39 = vpop.permute.xlu0 %1414 }
 0x214   : > { %7362 = vst [vmem:[#allocation122_spill] sm:$0xff] %v4927_v60  ;;  %v4950_v60 = vld [vmem:[%s4155_s6 + $0x30] sm:$0xff] }
 0x215   : > { %7363 = vst [vmem:[#allocation123_spill] sm:$0xff] %v4930_v39  ;;  %v1809_v39 = vmul.f32 %v4795_v18, %v1807_v25 }
 0x218   : > { %1798 = vrot.lane.b32.xlu2 %v1794_v37, %s7233_s25  ;;  %1786 = vrot.lane.b32.xlu1 %v1781_v58, %s7233_s25  ;;  %v1808_v37 = vmul.f32 %v4804_v22, %v1807_v25  ;;  %v1886_v58 = vstv %s4935_s3  ;;  %v1900_v25 = vstv %s3750_s5  ;;  %s3763_s3 = sld [smem:[#allocation2 + $0xa07]] }
 0x219   : > { %1784 = vrot.lane.b32.xlu0 %v1780_v62, %s7233_s25  ;;  %v1887_v22 = vmul.f32 %v4950_v60, %v1886_v58  ;;  %s5109_s5 = sld [smem:[#allocation2 + $0xb03]] }
 0x21a   : > { %v4938_v51 = vpop.permute.xlu2 %1512  ;;  %v4941_v3 = vpop.permute.xlu1 %1442 }
 0x21b   : > { %7364 = vst [vmem:[#allocation124_spill] sm:$0xff] %v4938_v51  ;;  %v4944_v44 = vpop.permute.xlu0 %1440  ;;  %v4958_v51 = vld [vmem:[%s4155_s6 + $0x38] sm:$0x7f] }
 0x21c   : > { %7365 = vst [vmem:[#allocation125_spill] sm:$0xff] %v4941_v3  ;;  %v1872_v3 = vstv %s3748_s4  ;;  %s3775_s4 = sld [smem:[#allocation2 + $0xb01]] }
 0x21d   : > { %7366 = vst [vmem:[#allocation126_spill] sm:$0xff] %v4944_v44  ;;  %v1873_v11 = vmul.f32 %v4950_v60, %v1872_v3 }
 0x220   : > { %1814 = vrot.lane.b32.xlu2 %v1809_v39, %s7233_s25  ;;  %1812 = vrot.lane.b32.xlu1 %v1808_v37, %s7233_s25  ;;  %v1874_v39 = vmul.f32 %v4958_v51, %v1872_v3  ;;  %v1901_v3 = vmul.f32 %v4950_v60, %v1900_v25 }
 0x221   : > { %1800 = vrot.lane.b32.xlu0 %v1795_v2, %s7233_s25 }
 0x222   : > { %v4954_v62 = vpop.permute.xlu2 %1538  ;;  %v4960_v44 = vpop.permute.xlu1 %1468 }
 0x223   : > { %7367 = vst [vmem:[#allocation127_spill] sm:$0xff] %v4954_v62  ;;  %v4963_v18 = vpop.permute.xlu0 %1456  ;;  %v1928_v62 = vstv %s4968_s8  ;;  %s3776_s8 = sld [smem:[#allocation2 + $0xb02]] }
 0x224   : > { %7368 = vst [vmem:[#allocation128_spill] sm:$0xff] %v4960_v44 }
 0x225   : > { %7369 = vst [vmem:[#allocation129_spill] sm:$0xff] %v4963_v18  ;;  %v1902_v18 = vmul.f32 %v4958_v51, %v1900_v25 }
 0x228   : > { %1891 = vrot.lane.b32.xlu2 %v1887_v22, %s4078_s7  ;;  %1879 = vrot.lane.b32.xlu1 %v1874_v39, %s4078_s7  ;;  %v1888_v22 = vmul.f32 %v4958_v51, %v1886_v58 }
 0x229   : > { %1877 = vrot.lane.b32.xlu0 %v1873_v11, %s4078_s7  ;;  %v1914_v11 = vstv %s3751_s14  ;;  %s3778_s14 = sld [smem:[#allocation2 + $0xb04]] }
 0x22a   : > { %v4971_v37 = vpop.permute.xlu2 %1604  ;;  %v4974_v2 = vpop.permute.xlu1 %1484  ;;  %v1916_v25 = vmul.f32 %v4958_v51, %v1914_v11  ;;  %v1915_v58 = vmul.f32 %v4950_v60, %v1914_v11 }
 0x22b   : > { %7370 = vst [vmem:[#allocation130_spill] sm:$0xff] %v4971_v37  ;;  %v4977_v44 = vpop.permute.xlu0 %1482  ;;  %v1929_v37 = vmul.f32 %v4950_v60, %v1928_v62 }
 0x22c   : > { %7371 = vst [vmem:[#allocation131_spill] sm:$0xff] %v4974_v2 }
 0x22d   : > { %7372 = vst [vmem:[#allocation132_spill] sm:$0xff] %v4977_v44 }
 0x230   : > { %1907 = vrot.lane.b32.xlu2 %v1902_v18, %s4078_s7  ;;  %1905 = vrot.lane.b32.xlu1 %v1901_v3, %s4078_s7  ;;  %v1942_v18 = vstv %s3753_s16  ;;  %s5136_s16 = sld [smem:[#allocation2 + $0xb06]] }
 0x231   : > { %1893 = vrot.lane.b32.xlu0 %v1888_v22, %s4078_s7  ;;  %v1943_v11 = vmul.f32 %v4950_v60, %v1942_v18 }
 0x232   : > { %v4984_v39 = vpop.permute.xlu2 %1630  ;;  %v4987_v2 = vpop.permute.xlu1 %1510 }
 0x233   : > { %7373 = vst [vmem:[#allocation133_spill] sm:$0xff] %v4984_v39  ;;  %v4990_v44 = vpop.permute.xlu0 %1498  ;;  %v1970_v39 = vstv %s4995_s17  ;;  %s3779_s17 = sld [smem:[#allocation2 + $0xb05]] }
 0x234   : > { %7374 = vst [vmem:[#allocation134_spill] sm:$0xff] %v4987_v2 }
 0x235   : > { %7375 = vst [vmem:[#allocation135_spill] sm:$0xff] %v4990_v44  ;;  %v1944_v44 = vmul.f32 %v4958_v51, %v1942_v18 }
 0x238   : > { %1933 = vrot.lane.b32.xlu2 %v1929_v37, %s4078_s7  ;;  %1921 = vrot.lane.b32.xlu1 %v1916_v25, %s4078_s7  ;;  %v1930_v37 = vmul.f32 %v4958_v51, %v1928_v62 }
 0x239   : > { %1919 = vrot.lane.b32.xlu0 %v1915_v58, %s4078_s7  ;;  %v1956_v58 = vstv %s3754_s21  ;;  %s3781_s21 = sld [smem:[#allocation2 + $0xb07]] }
 0x23a   : > { %v4998_v3 = vpop.permute.xlu2 %1646  ;;  %v5001_v22 = vpop.permute.xlu1 %1526  ;;  %v1958_v18 = vmul.f32 %v4958_v51, %v1956_v58  ;;  %v1957_v62 = vmul.f32 %v4950_v60, %v1956_v58 }
 0x23b   : > { %7376 = vst [vmem:[#allocation136_spill] sm:$0xff] %v4998_v3  ;;  %v5004_v2 = vpop.permute.xlu0 %1524  ;;  %v1971_v3 = vmul.f32 %v4950_v60, %v1970_v39 }
 0x23c   : > { %7377 = vst [vmem:[#allocation137_spill] sm:$0xff] %v5001_v22 }
 0x23d   : > { %7378 = vst [vmem:[#allocation138_spill] sm:$0xff] %v5004_v2 }
 0x240   : > { %1949 = vrot.lane.b32.xlu2 %v1944_v44, %s4078_s7  ;;  %1947 = vrot.lane.b32.xlu1 %v1943_v11, %s4078_s7  ;;  %v1984_v44 = vstv %s3756_s22  ;;  %s5163_s22 = sld [smem:[#allocation2 + $0xb81]] }
 0x241   : > { %1935 = vrot.lane.b32.xlu0 %v1930_v37, %s4078_s7  ;;  %v1985_v58 = vmul.f32 %v4950_v60, %v1984_v44 }
 0x242   : > { %v5011_v25 = vpop.permute.xlu2 %1672  ;;  %v5014_v22 = vpop.permute.xlu1 %1602 }
 0x243   : > { %7379 = vst [vmem:[#allocation139_spill] sm:$0xff] %v5011_v25  ;;  %v5017_v2 = vpop.permute.xlu0 %1540 }
 0x244   : > { %7380 = vst [vmem:[#allocation140_spill] sm:$0xff] %v5014_v22  ;;  %v1986_v22 = vmul.f32 %v4958_v51, %v1984_v44 }
 0x245   : > { %7381 = vst [vmem:[#allocation141_spill] sm:$0xff] %v5017_v2  ;;  %v2012_v2 = vstv %s5022_s23  ;;  %s3782_s23 = sld [smem:[#allocation2 + $0xb80]] }
 0x248   : > { %1975 = vrot.lane.b32.xlu2 %v1971_v3, %s4078_s7  ;;  %1963 = vrot.lane.b32.xlu1 %v1958_v18, %s4078_s7  ;;  %v1972_v3 = vmul.f32 %v4958_v51, %v1970_v39 }
 0x249   : > { %1961 = vrot.lane.b32.xlu0 %v1957_v62, %s4078_s7  ;;  %v1998_v62 = vstv %s3757_s24  ;;  %s5174_s24 = sld [smem:[#allocation2 + $0x2]] }
 0x24a   : > { %v5025_v11 = vpop.permute.xlu2 %1688  ;;  %v5028_v37 = vpop.permute.xlu1 %1618  ;;  %v2000_v44 = vmul.f32 %v4958_v51, %v1998_v62  ;;  %v1999_v39 = vmul.f32 %v4950_v60, %v1998_v62 }
 0x24b   : > { %7382 = vst [vmem:[#allocation142_spill] sm:$0xff] %v5025_v11  ;;  %v5031_v25 = vpop.permute.xlu0 %1616  ;;  %v2013_v11 = vmul.f32 %v4950_v60, %v2012_v2 }
 0x24c   : > { %7383 = vst [vmem:[#allocation143_spill] sm:$0xff] %v5028_v37 }
 0x24d   : > { %7384 = vst [vmem:[#allocation144_spill] sm:$0xff] %v5031_v25 }
 0x250   : > { %1991 = vrot.lane.b32.xlu2 %v1986_v22, %s7233_s25  ;;  %1989 = vrot.lane.b32.xlu1 %v1985_v58, %s7233_s25  ;;  %v2026_v22 = vstv %s3759_s26  ;;  %s5177_s26 = sld [smem:[#allocation2 + $0x4]] }
 0x251   : > { %1977 = vrot.lane.b32.xlu0 %v1972_v3, %s4078_s7  ;;  %v2027_v62 = vmul.f32 %v4950_v60, %v2026_v22 }
 0x252   : > { %v5038_v18 = vpop.permute.xlu2 %1714  ;;  %v5041_v37 = vpop.permute.xlu1 %1644 }
 0x253   : > { %7385 = vst [vmem:[#allocation145_spill] sm:$0xff] %v5038_v18  ;;  %v5044_v25 = vpop.permute.xlu0 %1632  ;;  %v2054_v18 = vstv %s5049_s27  ;;  %s5180_s27 = sld [smem:[#allocation2 + $0x5]] }
 0x254   : > { %7386 = vst [vmem:[#allocation146_spill] sm:$0xff] %v5041_v37 }
 0x255   : > { %7387 = vst [vmem:[#allocation147_spill] sm:$0xff] %v5044_v25  ;;  %v2028_v25 = vmul.f32 %v4958_v51, %v2026_v22  ;;  %v2068_v22 = vstv %s3762_s29  ;;  %s5186_s29 = sld [smem:[#allocation2 + $0x1]] }
 0x258   : > { %2017 = vrot.lane.b32.xlu2 %v2013_v11, %s7233_s25  ;;  %2005 = vrot.lane.b32.xlu1 %v2000_v44, %s7233_s25  ;;  %v2014_v11 = vmul.f32 %v4958_v51, %v2012_v2 }
 0x259   : > { %2003 = vrot.lane.b32.xlu0 %v1999_v39, %s7233_s25  ;;  %v2040_v39 = vstv %s3760_s28  ;;  %s5184_s28 = sld [smem:[#allocation2 + $0xb82]] }
 0x25a   : > { %v5052_v58 = vpop.permute.xlu2 %1730  ;;  %v5055_v3 = vpop.permute.xlu1 %1660  ;;  %v2042_v2 = vmul.f32 %v4958_v51, %v2040_v39 }
 0x25b   : > { %7388 = vst [vmem:[#allocation148_spill] sm:$0xff] %v5052_v58  ;;  %v5058_v37 = vpop.permute.xlu0 %1658  ;;  %v2055_v58 = vmul.f32 %v4950_v60, %v2054_v18 }
 0x25c   : > { %7389 = vst [vmem:[#allocation149_spill] sm:$0xff] %v5055_v3 }
 0x25d   : > { %7390 = vst [vmem:[#allocation150_spill] sm:$0xff] %v5058_v37 }
 0x260   : > { %2033 = vrot.lane.b32.xlu2 %v2028_v25, %s7233_s25  ;;  %2031 = vrot.lane.b32.xlu1 %v2027_v62, %s7233_s25  ;;  %v2041_v25 = vmul.f32 %v4950_v60, %v2040_v39  ;;  %v2069_v39 = vmul.f32 %v4950_v60, %v2068_v22 }
 0x261   : > { %2019 = vrot.lane.b32.xlu0 %v2014_v11, %s7233_s25 }
 0x262   : > { %v5065_v44 = vpop.permute.xlu2 %1756  ;;  %v5068_v3 = vpop.permute.xlu1 %1686 }
 0x263   : > { %7391 = vst [vmem:[#allocation151_spill] sm:$0xff] %v5065_v44  ;;  %v5071_v37 = vpop.permute.xlu0 %1674  ;;  %v5091_v44 = vld [vmem:[%s4155_s6 + $0x31] sm:$0xff] }
 0x264   : > { %7392 = vst [vmem:[#allocation152_spill] sm:$0xff] %v5068_v3 }
 0x265   : > { %7393 = vst [vmem:[#allocation153_spill] sm:$0xff] %v5071_v37  ;;  %v2070_v37 = vmul.f32 %v4958_v51, %v2068_v22 }
 0x268   : > { %2059 = vrot.lane.b32.xlu2 %v2055_v58, %s7233_s25  ;;  %2047 = vrot.lane.b32.xlu1 %v2042_v2, %s7233_s25  ;;  %v2056_v58 = vmul.f32 %v4958_v51, %v2054_v18  ;;  %v2146_v2 = vstv %s5076_s30  ;;  %s5191_s30 = sld [smem:[#allocation2]] }
 0x269   : > { %2045 = vrot.lane.b32.xlu0 %v2041_v25, %s7233_s25  ;;  %v2147_v22 = vmul.f32 %v5091_v44, %v2146_v2 }
 0x26a   : > { %v5079_v62 = vpop.permute.xlu2 %1772  ;;  %v5082_v11 = vpop.permute.xlu1 %1702 }
 0x26b   : > { %7394 = vst [vmem:[#allocation154_spill] sm:$0xff] %v5079_v62  ;;  %v5085_v3 = vpop.permute.xlu0 %1700  ;;  %v2082_v62 = vstv %s3763_s3  ;;  %s5194_s3 = sld [smem:[#allocation2 + $0x7]] }
 0x26c   : > { %7395 = vst [vmem:[#allocation155_spill] sm:$0xff] %v5082_v11  ;;  %v2084_v18 = vmul.f32 %v4958_v51, %v2082_v62 }
 0x26d   : > { %7396 = vst [vmem:[#allocation156_spill] sm:$0xff] %v5085_v3 }
 0x26e   : > { %v178_v14 = vstv %s5191_s30  ;;  %s5330_s30 = sld [smem:[#allocation2 + $0xb86]] }
 0x270   : > { %2075 = vrot.lane.b32.xlu2 %v2070_v37, %s7233_s25  ;;  %2073 = vrot.lane.b32.xlu1 %v2069_v39, %s7233_s25  ;;  %v2083_v37 = vmul.f32 %v4950_v60, %v2082_v62  ;;  %v2160_v39 = vstv %s3775_s4  ;;  %s5199_s4 = sld [smem:[#allocation2 + $0x3]] }
 0x271   : > { %2061 = vrot.lane.b32.xlu0 %v2056_v58, %s7233_s25  ;;  %v2162_v51 = vmul.f32 %v5107_v32, %v2160_v39  ;;  %v2161_v62 = vmul.f32 %v5091_v44, %v2160_v39  ;;  %v220_v49 = vstv %s5194_s3  ;;  %s5338_s3 = sld [smem:[#allocation2 + $0x301]] }
 0x272   : > { %v5095_v25 = vpop.permute.xlu2 %1798  ;;  %v5098_v11 = vpop.permute.xlu1 %1728 }
 0x273   : > { %7397 = vst [vmem:[#allocation157_spill] sm:$0xff] %v5095_v25  ;;  %v5101_v3 = vpop.permute.xlu0 %1716 }
 0x274   : > { %7398 = vst [vmem:[#allocation158_spill] sm:$0xff] %v5098_v11  ;;  %v2188_v11 = vstv %s5109_s5  ;;  %s5203_s5 = sld [smem:[#allocation2 + $0x180]] }
 0x275   : > { %7399 = vst [vmem:[#allocation159_spill] sm:$0xff] %v5101_v3 }
 0x278   : > { %2151 = vrot.lane.b32.xlu2 %v2147_v22, %s4078_s7  ;;  %2089 = vrot.lane.b32.xlu1 %v2084_v18, %s7233_s25  ;;  %v2148_v22 = vmul.f32 %v5107_v32, %v2146_v2 }
 0x279   : > { %2087 = vrot.lane.b32.xlu0 %v2083_v37, %s7233_s25  ;;  %v2174_v37 = vstv %s3776_s8  ;;  %s5206_s8 = sld [smem:[#allocation2 + $0x6]] }
 0x27a   : > { %v5112_v58 = vpop.permute.xlu2 %1814  ;;  %v5115_v25 = vpop.permute.xlu1 %1744  ;;  %v2176_v39 = vmul.f32 %v5107_v32, %v2174_v37  ;;  %v2175_v2 = vmul.f32 %v5091_v44, %v2174_v37  ;;  %v452_v47 = vstv %s5203_s5  ;;  %s5359_s5 = sld [smem:[#allocation2 + $0x304]] }
 0x27b   : > { %7400 = vst [vmem:[#allocation160_spill] sm:$0xff] %v5112_v58  ;;  %v5118_v60 = vpop.permute.xlu0 %1742  ;;  %v2189_v58 = vmul.f32 %v5091_v44, %v2188_v11 }
 0x27c   : > { %7401 = vst [vmem:[#allocation161_spill] sm:$0xff] %v5115_v25 }
 0x27d   : > { %7402 = vst [vmem:[#allocation162_spill] sm:$0xff] %v5118_v60 }
 0x27f   : > { %v214_v57 = vstv %s5206_s8  ;;  %s5368_s8 = sld [smem:[#allocation2 + $0x300]] }
 0x280   : > { %2167 = vrot.lane.b32.xlu2 %v2162_v51, %s4078_s7  ;;  %2165 = vrot.lane.b32.xlu1 %v2161_v62, %s4078_s7  ;;  %v2202_v51 = vstv %s3778_s14  ;;  %s5210_s14 = sld [smem:[#allocation2 + $0x182]] }
 0x281   : > { %2153 = vrot.lane.b32.xlu0 %v2148_v22, %s4078_s7  ;;  %v2203_v37 = vmul.f32 %v5091_v44, %v2202_v51 }
 0x282   : > { %v5125_v18 = vpop.permute.xlu2 %1891  ;;  %v5128_v25 = vpop.permute.xlu1 %1770 }
 0x283   : > { %7403 = vst [vmem:[#allocation163_spill] sm:$0xff] %v5125_v18  ;;  %v5131_v60 = vpop.permute.xlu0 %1758 }
 0x284   : > { %7404 = vst [vmem:[#allocation164_spill] sm:$0xff] %v5128_v25  ;;  %v2204_v25 = vmul.f32 %v5107_v32, %v2202_v51 }
 0x285   : > { %7405 = vst [vmem:[#allocation165_spill] sm:$0xff] %v5131_v60  ;;  %v2230_v60 = vstv %s5136_s16  ;;  %s5214_s16 = sld [smem:[#allocation2 + $0xb84]] }
 0x286   : > { %v7422_v26 = vstv %s5210_s14 }
 0x288   : > { %2193 = vrot.lane.b32.xlu2 %v2189_v58, %s4078_s7  ;;  %2181 = vrot.lane.b32.xlu1 %v2176_v39, %s4078_s7  ;;  %v2190_v58 = vmul.f32 %v5107_v32, %v2188_v11 }
 0x289   : > { %2179 = vrot.lane.b32.xlu0 %v2175_v2, %s4078_s7  ;;  %v2216_v2 = vstv %s3779_s17  ;;  %s5219_s17 = sld [smem:[#allocation2 + $0x183]] }
 0x28a   : > { %v5139_v62 = vpop.permute.xlu2 %1907  ;;  %v5142_v22 = vpop.permute.xlu1 %1786  ;;  %v2218_v51 = vmul.f32 %v5107_v32, %v2216_v2  ;;  %v2217_v11 = vmul.f32 %v5091_v44, %v2216_v2  ;;  %v2232_v2 = vmul.f32 %v5107_v32, %v2230_v60 }
 0x28b   : > { %7406 = vst [vmem:[#allocation166_spill] sm:$0xff] %v5139_v62  ;;  %v5145_v18 = vpop.permute.xlu0 %1784  ;;  %v2231_v62 = vmul.f32 %v5091_v44, %v2230_v60  ;;  %v2258_v60 = vstv %s3782_s23  ;;  %s5240_s23 = sld [smem:[#allocation2 + $0x181]] }
 0x28c   : > { %7407 = vst [vmem:[#allocation167_spill] sm:$0xff] %v5142_v22 }
 0x28d   : > { %7408 = vst [vmem:[#allocation168_spill] sm:$0xff] %v5145_v18 }
 0x290   : > { %2209 = vrot.lane.b32.xlu2 %v2204_v25, %s4078_s7  ;;  %2207 = vrot.lane.b32.xlu1 %v2203_v37, %s4078_s7  ;;  %v2244_v25 = vstv %s3781_s21  ;;  %s5227_s21 = sld [smem:[#allocation2 + $0xb83]] }
 0x291   : > { %2195 = vrot.lane.b32.xlu0 %v2190_v58, %s4078_s7 }
 0x292   : > { %v5152_v39 = vpop.permute.xlu2 %1933  ;;  %v5155_v22 = vpop.permute.xlu1 %1812 }
 0x293   : > { %7409 = vst [vmem:[#allocation169_spill] sm:$0xff] %v5152_v39  ;;  %v5158_v18 = vpop.permute.xlu0 %1800  ;;  %v2246_v39 = vmul.f32 %v5107_v32, %v2244_v25 }
 0x294   : > { %7410 = vst [vmem:[#allocation170_spill] sm:$0xff] %v5155_v22 }
 0x295   : > { %7411 = vst [vmem:[#allocation171_spill] sm:$0xff] %v5158_v18 }
 0x298   : > { %2235 = vrot.lane.b32.xlu2 %v2231_v62, %s4078_s7  ;;  %2223 = vrot.lane.b32.xlu1 %v2218_v51, %s4078_s7  ;;  %v2245_v62 = vmul.f32 %v5091_v44, %v2244_v25  ;;  %v2272_v51 = vstv %s5163_s22  ;;  %s5235_s22 = sld [smem:[#allocation2 + $0x185]] }
 0x299   : > { %2221 = vrot.lane.b32.xlu0 %v2217_v11, %s4078_s7  ;;  %v2273_v25 = vmul.f32 %v5091_v44, %v2272_v51  ;;  %v2274_v54 = vmul.f32 %v5107_v32, %v2272_v51  ;;  %v5274_v51 = vld [vmem:[%s4155_s6 + $0x1] sm:$0xff] }
 0x29a   : > { %v5166_v37 = vpop.permute.xlu2 %1949  ;;  %v5169_v58 = vpop.permute.xlu1 %1879 }
 0x29b   : > { %7412 = vst [vmem:[#allocation172_spill] sm:$0xff] %v5166_v37  ;;  %v5172_v18 = vpop.permute.xlu0 %1877  ;;  %v2260_v37 = vmul.f32 %v5107_v32, %v2258_v60 }
 0x29c   : > { %7413 = vst [vmem:[#allocation173_spill] sm:$0xff] %v5169_v58  ;;  %v208_v58 = vstv %s5180_s27  ;;  %s5265_s27 = sld [smem:[#allocation2 + $0x184]] }
 0x29d   : > { %7414 = vst [vmem:[#allocation174_spill] sm:$0xff] %v5172_v18  ;;  %v190_v18 = vstv %s5174_s24  ;;  %s5244_s24 = sld [smem:[#allocation2 + $0x186]] }
 0x2a0   : > { %2251 = vrot.lane.b32.xlu2 %v2246_v39, %s4078_s7  ;;  %2249 = vrot.lane.b32.xlu1 %v2245_v62, %s4078_s7 }
 0x2a1   : > { %2237 = vrot.lane.b32.xlu0 %v2232_v2, %s4078_s7  ;;  %v2259_v2 = vmul.f32 %v5091_v44, %v2258_v60  ;;  %v3972_v60 = vld [vmem:[%s4155_s6] sm:$0xff] }
 0x2a2   : > { %v5189_v11 = vpop.permute.xlu2 %1975  ;;  %v5196_v39 = vpop.permute.xlu1 %1905  ;;  %v191_v22 = vmul.f32 %v3972_v60, %v190_v18  ;;  %v221_v24 = vmul.f32 %v3972_v60, %v220_v49 }
 0x2a3   : > { %7415 = vst [vmem:[#allocation175_spill] sm:$0xff] %v5189_v11  ;;  %v5201_v62 = vpop.permute.xlu0 %1893  ;;  %v184_v11 = vstv %s5186_s29  ;;  %s5315_s29 = sld [smem:[#allocation2 + $0xb87]] }
 0x2a4   : > { %7416 = vst [vmem:[#allocation176_spill] sm:$0xff] %v5196_v39  ;;  %v2286_v39 = vstv %s5184_s28  ;;  %v5290_v41 = vadd.f32 %v4279_v19, %v221_v24  ;;  %s5299_s28 = sld [smem:[#allocation2 + $0x187]]  ;;  %v488_v24 = vstv %s5244_s24 }
 0x2a5   : > { %7417 = vst [vmem:[#allocation177_spill] sm:$0xff] %v5201_v62  ;;  %v202_v62 = vstv %s5177_s26  ;;  %v2288_v35 = vmul.f32 %v5107_v32, %v2286_v39  ;;  %s5261_s26 = sld [smem:[#allocation2 + $0xb85]] }
 0x2a6   : > { %v203_v48 = vmul.f32 %v3972_v60, %v202_v62  ;;  %s5464_s24 = sld [smem:[#allocation2 + $0xc81]] }
 0x2a8   : > { %2277 = vrot.lane.b32.xlu2 %v2273_v25, %s7233_s25  ;;  %2265 = vrot.lane.b32.xlu1 %v2260_v37, %s7233_s25  ;;  %v3973_v25 = vld [vmem:[%s4155_s6 + $0x8] sm:$0x7f]  ;;  %v185_v37 = vmul.f32 %v3972_v60, %v184_v11 }
 0x2a9   : > { %2263 = vrot.lane.b32.xlu0 %v2259_v2, %s7233_s25  ;;  %v192_v56 = vmul.f32 %v3973_v25, %v190_v18  ;;  %v210_v29 = vmul.f32 %v3973_v25, %v208_v58  ;;  %v179_v2 = vmul.f32 %v3972_v60, %v178_v14  ;;  %v180_v7 = vmul.f32 %v3973_v25, %v178_v14 }
 0x2aa   : > { %v5222_v3 = vpop.permute.xlu2 %1991  ;;  %v5231_v4 = vpop.permute.xlu1 %1921  ;;  %v2287_v18 = vmul.f32 %v5091_v44, %v2286_v39  ;;  %v186_v9 = vmul.f32 %v3973_v25, %v184_v11  ;;  %v5254_v39 = vadd.f32 %v4256_v6, %v203_v48  ;;  %v204_v40 = vmul.f32 %v3973_v25, %v202_v62 }
 0x2ab   : > { %7418 = vst [vmem:[#allocation178_spill] sm:$0xff] %v5222_v3  ;;  %v196_v3 = vstv %s5199_s4  ;;  %v5237_v53 = vpop.permute.xlu0 %1919  ;;  %v5271_v48 = vadd.f32 %v4266_v12, %v210_v29  ;;  %v7423_v12 = vstv %s5214_s16  ;;  %v237_v46 = vadd.f32 %v4272_v15, %v179_v2  ;;  %s5347_s4 = sld [smem:[#allocation2 + $0x302]] }
 0x2ac   : > { %7419 = vst [vmem:[#allocation179_spill] sm:$0xff] %v5231_v4  ;;  %v265_v4 = vadd.f32 %v4240_v59, %v191_v22  ;;  %v198_v14 = vmul.f32 %v3973_v25, %v196_v3  ;;  %v197_v59 = vmul.f32 %v3972_v60, %v196_v3  ;;  %v5257_v22 = vld [vmem:[%s4155_s6 + $0x9] sm:$0x7f]  ;;  %v216_v3 = vmul.f32 %v3973_v25, %v214_v57 }
 0x2ad   : > { %7420 = vst [vmem:[#allocation180_spill] sm:$0xff] %v5237_v53  ;;  %v5248_v53 = vadd.f32 %v4248_v1, %v192_v56  ;;  %v454_v11 = vmul.f32 %v5257_v22, %v452_v47  ;;  %v238_v1 = vadd.f32 %v4285_v23, %v180_v7  ;;  %v209_v56 = vmul.f32 %v3972_v60, %v208_v58 }
 0x2ae   : > { %v465_v23 = vmul.f32 %v5274_v51, %v7422_v26  ;;  %v2300_v7 = vstv %s5227_s21  ;;  %v251_v58 = vadd.f32 %v4269_v13, %v185_v37  ;;  %v2315_v29 = vmul.f32 %v5091_v44, %v7423_v12  ;;  %s5409_s21 = sld [smem:[#allocation2 + $0x303]] }
 0x2af   : > { %v350_v62 = vadd.f32 %v4293_v27, %v238_v1  ;;  %v280_v13 = vadd.f32 %v4296_v28, %v198_v14  ;;  %v377_v27 = vadd.f32 %v4306_v34, %v265_v4  ;;  %v252_v15 = vadd.f32 %v4282_v21, %v186_v9 }
 0x2b0   : > { %2293 = vrot.lane.b32.xlu2 %v2288_v35, %s7233_s25  ;;  %v470_v35 = vstv %s5219_s17  ;;  %2291 = vrot.lane.b32.xlu1 %v2287_v18, %s7233_s25  ;;  %v215_v18 = vmul.f32 %v3972_v60, %v214_v57  ;;  %v458_v57 = vstv %s5240_s23  ;;  %v2302_v60 = vmul.f32 %v5107_v32, %v2300_v7  ;;  %s5395_s17 = sld [smem:[#allocation2 + $0x307]] }
 0x2b1   : > { %2279 = vrot.lane.b32.xlu0 %v2274_v54, %s7233_s25  ;;  %v472_v26 = vmul.f32 %v5257_v22, %v470_v35  ;;  %v482_v54 = vstv %s5235_s22  ;;  %v222_v19 = vmul.f32 %v3973_v25, %v220_v49  ;;  %v2301_v37 = vmul.f32 %v5091_v44, %v2300_v7  ;;  %s5437_s22 = sld [smem:[#allocation2 + $0xc82]] }
 0x2b2   : > { %v5268_v6 = vpop.permute.xlu2 %2017  ;;  %v392_v2 = vadd.f32 %v4320_v42, %v280_v13  ;;  %v453_v1 = vmul.f32 %v5274_v51, %v452_v47  ;;  %v5307_v28 = vadd.f32 %v454_v11, %v350_v62  ;;  %v483_v34 = vmul.f32 %v5274_v51, %v482_v54  ;;  %s5445_s23 = sld [smem:[#allocation2 + $0x306]] }
 0x2b3   : > { %7421 = vst [vmem:[#allocation181_spill] sm:$0xff] %v5268_v6  ;;  %v5283_v6 = vpop.permute.xlu1 %1947  ;;  %v5294_v16 = vpop.permute.xlu0 %1935  ;;  %v279_v4 = vadd.f32 %v4299_v30, %v197_v59  ;;  %v307_v14 = vadd.f32 %v4309_v36, %v209_v56  ;;  %v460_v21 = vmul.f32 %v5257_v22, %v458_v57  ;;  %v2328_v9 = vstv %s5261_s26  ;;  %s5496_s26 = sld [smem:[#allocation2 + $0x480]] }
 0x2b4   : > { %7424 = vst [vmem:[#allocation182_spill] sm:$0xff] %v5294_v16  ;;  %v476_v49 = vstv %s5265_s27  ;;  %v459_v42 = vmul.f32 %v5274_v51, %v458_v57  ;;  %v5319_v47 = vadd.f32 %v465_v23, %v377_v27  ;;  %v490_v25 = vmul.f32 %v5257_v22, %v488_v24  ;;  %s5503_s27 = sld [smem:[#allocation2 + $0xc83]] }
 0x2b5   : > { %v294_v30 = vadd.f32 %v4312_v38, %v204_v40  ;;  %v322_v36 = vadd.f32 %v4323_v43, %v216_v3  ;;  %v419_v59 = vadd.f32 %v4333_v50, %v307_v14  ;;  %v471_v56 = vmul.f32 %v5274_v51, %v470_v35 }
 0x2b6   : > { %v349_v23 = vadd.f32 %v4336_v52, %v237_v46  ;;  %v7425_v7 = vstv %s5210_s14  ;;  %v5336_v12 = vadd.f32 %v472_v26, %v392_v2  ;;  %v2330_v43 = vmul.f32 %v5107_v32, %v2328_v9  ;;  %s5376_s14 = sld [smem:[#allocation2 + $0xc80]] }
 0x2b7   : > { %v466_v62 = vmul.f32 %v5257_v22, %v7425_v7  ;;  %v321_v50 = vadd.f32 %v4326_v45, %v215_v18  ;;  %v434_v40 = vadd.f32 %v4350_v61, %v322_v36  ;;  %v478_v35 = vmul.f32 %v5257_v22, %v476_v49  ;;  %v5418_v7 = vld [vmem:[%s4155_s6 + $0x2] sm:$0xff] }
 0x2b8   : > { %2319 = vrot.lane.b32.xlu2 %v2315_v29, %s7233_s25  ;;  %2307 = vrot.lane.b32.xlu1 %v2302_v60, %s7233_s25  ;;  %v477_v52 = vmul.f32 %v5274_v51, %v476_v49  ;;  %v364_v3 = vadd.f32 %v4356_v63, %v252_v15  ;;  %v363_v29 = vadd.f32 %v4359_v0, %v251_v58  ;;  %v494_v26 = vstv %s5299_s28  ;;  %s5511_s28 = sld [smem:[#allocation2 + $0x481]] }
 0x2b9   : > { %2305 = vrot.lane.b32.xlu0 %v2301_v37, %s7233_s25  ;;  %v2329_v13 = vmul.f32 %v5091_v44, %v2328_v9  ;;  %v336_v45 = vadd.f32 %v4339_v55, %v222_v19  ;;  %v489_v61 = vmul.f32 %v5274_v51, %v488_v24  ;;  %v5357_v18 = vadd.f32 %v483_v34, %v419_v59 }
 0x2ba   : > { %v5323_v11 = vpop.permute.xlu2 %2033  ;;  %v7427_v27 = vstv %s5214_s16  ;;  %v455_v60 = vadd.f32 %v453_v1, %v349_v23  ;;  %v391_v63 = vadd.f32 %v4369_v8, %v279_v4  ;;  %v378_v0 = vadd.f32 %v4372_v10, %v5248_v53  ;;  %s5381_s16 = sld [smem:[#allocation2 + $0x305]]  ;;  %v7428_v4 = vld [vmem:[#allocation8_spill] sm:$0xff] }
 0x2bb   : > { %v5340_v38 = vpop.permute.xlu1 %1963  ;;  %v5349_v46 = vpop.permute.xlu0 %1961  ;;  %v2316_v57 = vmul.f32 %v5107_v32, %v7427_v27  ;;  %v484_v58 = vmul.f32 %v5257_v22, %v482_v54  ;;  %v496_v55 = vmul.f32 %v5257_v22, %v494_v26  ;;  %v495_v15 = vmul.f32 %v5274_v51, %v494_v26  ;;  %v7434_v27 = vld [vmem:[#allocation13_spill] sm:$0xff] }
 0x2bc   : > { %7426 = vst [vmem:[#allocation183_spill] sm:$0xff] %v5349_v46  ;;  %v5373_v19 = vadd.f32 %v490_v25, %v434_v40  ;;  %v2356_v24 = vstv %s5315_s29  ;;  %v462_v8 = vadd.f32 %v460_v21, %v364_v3  ;;  %v406_v10 = vadd.f32 %v4383_v17, %v294_v30  ;;  %v7433_v40 = vld [vmem:[#allocation14_spill] sm:$0xff]  ;;  %s5528_s29 = sld [smem:[#allocation2 + $0x483]] }
 0x2bd   : > { %v405_v53 = vadd.f32 %v4386_v20, %v5254_v39  ;;  %v461_v54 = vadd.f32 %v459_v42, %v363_v29  ;;  %v5387_v51 = vadd.f32 %v4366_v5, %v455_v60  ;;  %v433_v37 = vadd.f32 %v4396_v31, %v321_v50  ;;  %v7429_v31 = vld [vmem:[#allocation11_spill] sm:$0xff]  ;;  %v7431_v42 = vld [vmem:[#allocation9_spill] sm:$0xff] }
 0x2be   : > { %v420_v17 = vadd.f32 %v4399_v33, %v5271_v48  ;;  %v2342_v2 = vstv %s5330_s30  ;;  %v473_v20 = vadd.f32 %v471_v56, %v391_v63  ;;  %v468_v39 = vadd.f32 %v466_v62, %v378_v0  ;;  %v7430_v33 = vld [vmem:[#allocation12_spill] sm:$0xff]  ;;  %v5427_v3 = vld [vmem:[%s4155_s6 + $0xa] sm:$0x7f]  ;;  %v7436_v0 = vld [vmem:[#allocation19_spill] sm:$0xff]  ;;  %s5544_s30 = sld [smem:[#allocation2 + $0x484]] }
 0x2bf   : > { %v732_v1 = vstv %s5338_s3  ;;  %v2357_v5 = vmul.f32 %v5091_v44, %v2356_v24  ;;  %v5403_v14 = vadd.f32 %v7428_v4, %v462_v8  ;;  %v448_v21 = vadd.f32 %v7429_v31, %v336_v45  ;;  %v7435_v60 = vld [vmem:[#allocation17_spill] sm:$0xff]  ;;  %v7441_v4 = vld [vmem:[#allocation22_spill] sm:$0xff]  ;;  %s5551_s3 = sld [smem:[#allocation2 + $0x486]] }
 0x2c0   : > { %2335 = vrot.lane.b32.xlu2 %v2330_v43, %s7233_s25  ;;  %2333 = vrot.lane.b32.xlu1 %v2329_v13, %s7233_s25  ;;  %v447_v48 = vadd.f32 %v7430_v33, %v5290_v41  ;;  %v738_v9 = vstv %s5347_s4  ;;  %v5414_v25 = vadd.f32 %v7431_v42, %v473_v20  ;;  %v480_v30 = vadd.f32 %v478_v35, %v406_v10  ;;  %v7432_v43 = vld [vmem:[#allocation10_spill] sm:$0xff]  ;;  %s5556_s4 = sld [smem:[#allocation2 + $0x482]] }
 0x2c1   : > { %2321 = vrot.lane.b32.xlu0 %v2316_v57, %s7233_s25  ;;  %v479_v36 = vadd.f32 %v477_v52, %v405_v53  ;;  %v2344_v59 = vmul.f32 %v5107_v32, %v2342_v2  ;;  %v491_v56 = vadd.f32 %v489_v61, %v433_v37  ;;  %v486_v23 = vadd.f32 %v484_v58, %v420_v17  ;;  %v5434_v61 = vld [vmem:[%s4155_s6 + $0x3a] sm:$0x7f]  ;;  %v7439_v37 = vld [vmem:[#allocation18_spill] sm:$0xff] }
 0x2c2   : > { %v5384_v22 = vpop.permute.xlu2 %2059  ;;  %v733_v41 = vmul.f32 %v5418_v7, %v732_v1  ;;  %v2343_v62 = vmul.f32 %v5091_v44, %v2342_v2  ;;  %v5423_v50 = vadd.f32 %v7432_v43, %v480_v30  ;;  %v525_v35 = vadd.f32 %v7433_v40, %v461_v54  ;;  %v7438_v53 = vld [vmem:[#allocation16_spill] sm:$0xff]  ;;  %v5462_v20 = vld [vmem:[%s4155_s6 + $0x32] sm:$0xff] }
 0x2c3   : > { %v5397_v34 = vpop.permute.xlu1 %1989  ;;  %v5411_v49 = vpop.permute.xlu0 %1977  ;;  %v740_v52 = vmul.f32 %v5427_v3, %v738_v9  ;;  %v750_v29 = vstv %s5359_s5  ;;  %v498_v26 = vadd.f32 %v496_v55, %v448_v21  ;;  %v497_v13 = vadd.f32 %v495_v15, %v447_v48  ;;  %v7437_v15 = vld [vmem:[#allocation15_spill] sm:$0xff]  ;;  %s5567_s5 = sld [smem:[#allocation2 + $0xc85]] }
 0x2c4   : > { %v726_v45 = vstv %s5368_s8  ;;  %v2420_v44 = vstv %s5376_s14  ;;  %v5440_v57 = vadd.f32 %v7434_v27, %v491_v56  ;;  %v540_v63 = vadd.f32 %v7435_v60, %v468_v39  ;;  %v7440_v39 = vld [vmem:[#allocation20_spill] sm:$0xff]  ;;  %v7442_v56 = vld [vmem:[#allocation21_spill] sm:$0xff]  ;;  %s5573_s8 = sld [smem:[#allocation2 + $0x487]] }
 0x2c5   : > { %v637_v58 = vadd.f32 %v7436_v0, %v525_v35  ;;  %v756_v8 = vstv %s5381_s16  ;;  %v512_v10 = vadd.f32 %v7437_v15, %v5307_v28  ;;  %v5453_v54 = vadd.f32 %v7438_v53, %v498_v26  ;;  %v7444_v26 = vld [vmem:[#allocation23_spill] sm:$0xff]  ;;  %v7445_v0 = vld [vmem:[#allocation24_spill] sm:$0xff]  ;;  %s5586_s14 = sld [smem:[#allocation2 + $0xc84]] }
 0x2c6   : > { %v539_v17 = vadd.f32 %v7439_v37, %v5319_v47  ;;  %v751_v2 = vmul.f32 %v5418_v7, %v750_v29  ;;  %v652_v31 = vadd.f32 %v7441_v4, %v540_v63  ;;  %v728_v28 = vmul.f32 %v5427_v3, %v726_v45  ;;  %s5611_s16 = sld [smem:[#allocation2 + $0x485]] }
 0x2c7   : > { %v2422_v47 = vmul.f32 %v5434_v61, %v2420_v44  ;;  %v744_v33 = vstv %s5409_s21  ;;  %v727_v48 = vmul.f32 %v5418_v7, %v726_v45  ;;  %v758_v42 = vmul.f32 %v5427_v3, %v756_v8  ;;  %s5657_s21 = sld [smem:[#allocation2 + $0x600]] }
 0x2c8   : > { %2361 = vrot.lane.b32.xlu2 %v2357_v5, %s7233_s25  ;;  %2349 = vrot.lane.b32.xlu1 %v2344_v59, %s7233_s25  ;;  %v567_v5 = vadd.f32 %v7440_v39, %v479_v36  ;;  %v768_v30 = vstv %s5395_s17  ;;  %v554_v36 = vadd.f32 %v7442_v56, %v5336_v12  ;;  %v5481_v40 = vadd.f32 %v733_v41, %v637_v58  ;;  %v7448_v58 = vld [vmem:[#allocation29_spill] sm:$0xff]  ;;  %s5629_s17 = sld [smem:[#allocation2 + $0xc86]] }
 0x2c9   : > { %2347 = vrot.lane.b32.xlu0 %v2343_v62, %s7233_s25  ;;  %v7443_v62 = vld [vmem:[#allocation25_spill] sm:$0xff]  ;;  %v2421_v35 = vmul.f32 %v5462_v20, %v2420_v44  ;;  %v582_v27 = vadd.f32 %v7444_v26, %v486_v23  ;;  %v739_v45 = vmul.f32 %v5418_v7, %v738_v9  ;;  %v734_v60 = vmul.f32 %v5427_v3, %v732_v1  ;;  %v7446_v23 = vld [vmem:[#allocation26_spill] sm:$0xff]  ;;  %v7447_v44 = vld [vmem:[#allocation28_spill] sm:$0xff] }
 0x2ca   : > { %v5448_v55 = vpop.permute.xlu2 %2075  ;;  %v679_v43 = vadd.f32 %v7443_v62, %v567_v5  ;;  %v2358_v63 = vmul.f32 %v5107_v32, %v2356_v24  ;;  %v581_v12 = vadd.f32 %v7445_v0, %v5357_v18  ;;  %v746_v15 = vmul.f32 %v5427_v3, %v744_v33  ;;  %v7449_v18 = vld [vmem:[#allocation30_spill] sm:$0xff]  ;;  %v7452_v62 = vld [vmem:[#allocation32_spill] sm:$0xff] }
 0x2cb   : > { %v5469_v21 = vpop.permute.xlu1 %2005  ;;  %v5476_v59 = vpop.permute.xlu0 %2003  ;;  %v5493_v53 = vadd.f32 %v740_v52, %v652_v31  ;;  %v769_v41 = vmul.f32 %v5418_v7, %v768_v30  ;;  %v609_v9 = vadd.f32 %v7446_v23, %v497_v13  ;;  %v694_v1 = vadd.f32 %v7447_v44, %v582_v27  ;;  %v7451_v31 = vld [vmem:[#allocation31_spill] sm:$0xff] }
 0x2cc   : > { %v624_v32 = vadd.f32 %v7448_v58, %v512_v10  ;;  %v2448_v24 = vstv %s5437_s22  ;;  %v623_v52 = vadd.f32 %v7449_v18, %v5387_v51  ;;  %v762_v37 = vstv %s5445_s23  ;;  %v7450_v10 = vld [vmem:[#allocation27_spill] sm:$0xff]  ;;  %v7458_v58 = vld [vmem:[#allocation38_spill] sm:$0xff]  ;;  %s5670_s22 = sld [smem:[#allocation2 + $0x602]] }
 0x2cd   : > { %v745_v39 = vmul.f32 %v5418_v7, %v744_v33  ;;  %v5509_v5 = vadd.f32 %v751_v2, %v679_v43  ;;  %v596_v4 = vadd.f32 %v7450_v10, %v5373_v19  ;;  %v757_v56 = vmul.f32 %v5418_v7, %v756_v8  ;;  %v7453_v2 = vld [vmem:[#allocation33_spill] sm:$0xff]  ;;  %s5678_s23 = sld [smem:[#allocation2 + $0x603]] }
 0x2ce   : > { %v2434_v51 = vstv %s5464_s24  ;;  %v651_v33 = vadd.f32 %v7452_v62, %v539_v17  ;;  %v638_v43 = vadd.f32 %v7453_v2, %v5403_v14  ;;  %v2449_v19 = vmul.f32 %v5462_v20, %v2448_v24  ;;  %v7456_v14 = vld [vmem:[#allocation35_spill] sm:$0xff]  ;;  %v7466_v2 = vld [vmem:[#allocation45_spill] sm:$0xff]  ;;  %s5687_s24 = sld [smem:[#allocation2 + $0xd00]] }
 0x2cf   : > { %v730_v27 = vadd.f32 %v728_v28, %v624_v32  ;;  %v764_v8 = vmul.f32 %v5427_v3, %v762_v37  ;;  %v5537_v0 = vadd.f32 %v758_v42, %v694_v1  ;;  %v666_v23 = vadd.f32 %v7456_v14, %v554_v36 }
 0x2d0   : > { %2427 = vrot.lane.b32.xlu2 %v2422_v47, %s4078_s7  ;;  %2425 = vrot.lane.b32.xlu1 %v2421_v35, %s4078_s7  ;;  %v721_v47 = vadd.f32 %v7451_v31, %v609_v9  ;;  %v752_v35 = vmul.f32 %v5427_v3, %v750_v29  ;;  %v7457_v29 = vld [vmem:[#allocation36_spill] sm:$0xff]  ;;  %v729_v44 = vadd.f32 %v727_v48, %v623_v52  ;;  %v1001_v52 = vstv %s5496_s26  ;;  %s5702_s26 = sld [smem:[#allocation2 + $0xc87]] }
 0x2d1   : > { %2363 = vrot.lane.b32.xlu0 %v2358_v63, %s7233_s25  ;;  %v763_v63 = vmul.f32 %v5418_v7, %v762_v37  ;;  %v665_v9 = vadd.f32 %v7457_v29, %v5414_v25  ;;  %v2436_v28 = vmul.f32 %v5434_v61, %v2434_v51  ;;  %v693_v32 = vadd.f32 %v7458_v58, %v581_v12  ;;  %v7459_v25 = vld [vmem:[#allocation39_spill] sm:$0xff]  ;;  %v7460_v12 = vld [vmem:[#allocation34_spill] sm:$0xff]  ;;  %v5597_v58 = vld [vmem:[%s4155_s6 + $0x20] sm:$0x7f] }
 0x2d2   : > { %v5514_v13 = vpop.permute.xlu2 %2151  ;;  %v770_v7 = vmul.f32 %v5427_v3, %v768_v30  ;;  %v5549_v42 = vadd.f32 %v769_v41, %v721_v47  ;;  %v2435_v36 = vmul.f32 %v5462_v20, %v2434_v51  ;;  %v741_v1 = vadd.f32 %v739_v45, %v651_v33  ;;  %v7461_v30 = vld [vmem:[#allocation41_spill] sm:$0xff]  ;;  %v7462_v37 = vld [vmem:[#allocation42_spill] sm:$0xff]  ;;  %v7465_v33 = vld [vmem:[#allocation44_spill] sm:$0xff] }
 0x2d3   : > { %v5530_v26 = vpop.permute.xlu1 %2031  ;;  %v5539_v17 = vpop.permute.xlu0 %2019  ;;  %v680_v48 = vadd.f32 %v7459_v25, %v5423_v50  ;;  %v736_v18 = vadd.f32 %v734_v60, %v638_v43  ;;  %v5561_v3 = vadd.f32 %v7460_v12, %v730_v27  ;;  %v708_v41 = vadd.f32 %v7461_v30, %v596_v4  ;;  %v7463_v45 = vld [vmem:[#allocation37_spill] sm:$0xff] }
 0x2d4   : > { %7454 = vst [vmem:[#allocation8_spill] sm:$0xff] %v5530_v26  ;;  %v707_v10 = vadd.f32 %v7462_v37, %v5440_v57  ;;  %v2462_v31 = vstv %s5503_s27  ;;  %v5570_v50 = vadd.f32 %v7463_v45, %v741_v1  ;;  %v748_v60 = vadd.f32 %v746_v15, %v666_v23  ;;  %v7467_v15 = vld [vmem:[#allocation40_spill] sm:$0xff]  ;;  %v7471_v1 = vld [vmem:[#allocation43_spill] sm:$0xff]  ;;  %s5708_s27 = sld [smem:[#allocation2 + $0x605]] }
 0x2d5   : > { %7455 = vst [vmem:[#allocation11_spill] sm:$0xff] %v5539_v17  ;;  %v747_v47 = vadd.f32 %v745_v39, %v665_v9  ;;  %v1007_v51 = vstv %s5511_s28  ;;  %v759_v4 = vadd.f32 %v757_v56, %v693_v32  ;;  %v785_v57 = vadd.f32 %v7465_v33, %v729_v44  ;;  %v7469_v9 = vld [vmem:[#allocation49_spill] sm:$0xff]  ;;  %v7474_v45 = vld [vmem:[#allocation48_spill] sm:$0xff]  ;;  %s5717_s28 = sld [smem:[#allocation2 + $0x601]]  ;;  %v6047_v26 = vld [vmem:[%s4155_s6 + $0x38] sm:$0x7f] }
 0x2d6   : > { %v722_v43 = vadd.f32 %v7466_v2, %v5453_v54  ;;  %v5589_v39 = vadd.f32 %v7467_v15, %v748_v60  ;;  %v754_v14 = vadd.f32 %v752_v35, %v680_v48  ;;  %v1019_v23 = vstv %s5528_s29  ;;  %v7472_v35 = vld [vmem:[#allocation47_spill] sm:$0xff]  ;;  %v7475_v60 = vld [vmem:[#allocation50_spill] sm:$0xff]  ;;  %v7476_v33 = vld [vmem:[#allocation52_spill] sm:$0xff]  ;;  %s5724_s29 = sld [smem:[#allocation2 + $0x606]] }
 0x2d7   : > { %v2464_v29 = vmul.f32 %v5434_v61, %v2462_v31  ;;  %v766_v54 = vadd.f32 %v764_v8, %v708_v41  ;;  %v897_v44 = vadd.f32 %v7469_v9, %v785_v57  ;;  %v1009_v32 = vmul.f32 %v5597_v58, %v1007_v51  ;;  %v7473_v8 = vld [vmem:[#allocation46_spill] sm:$0xff] }
 0x2d8   : > { %2453 = vrot.lane.b32.xlu2 %v2449_v19, %s4078_s7  ;;  %2441 = vrot.lane.b32.xlu1 %v2436_v28, %s4078_s7  ;;  %v5582_v19 = vld [vmem:[%s4155_s6 + $0x18] sm:$0xff]  ;;  %v765_v28 = vadd.f32 %v763_v63, %v707_v10  ;;  %v5603_v25 = vadd.f32 %v7471_v1, %v759_v4  ;;  %v800_v48 = vadd.f32 %v7472_v35, %v736_v18  ;;  %v1025_v12 = vstv %s5544_s30  ;;  %v7480_v35 = vld [vmem:[#allocation53_spill] sm:$0xff]  ;;  %s5738_s30 = sld [smem:[#allocation2 + $0x604]] }
 0x2d9   : > { %v1002_v27 = vmul.f32 %v5582_v19, %v1001_v52  ;;  %2439 = vrot.lane.b32.xlu0 %v2435_v36, %s4078_s7  ;;  %v2463_v30 = vmul.f32 %v5462_v20, %v2462_v31  ;;  %v5609_v41 = vadd.f32 %v7473_v8, %v766_v54  ;;  %v772_v63 = vadd.f32 %v770_v7, %v722_v43  ;;  %v7477_v7 = vld [vmem:[#allocation51_spill] sm:$0xff]  ;;  %v7481_v8 = vld [vmem:[#allocation54_spill] sm:$0xff] }
 0x2da   : > { %v5576_v62 = vpop.permute.xlu2 %2167  ;;  %v1020_v37 = vmul.f32 %v5582_v19, %v1019_v23  ;;  %v2450_v10 = vmul.f32 %v5434_v61, %v2448_v24  ;;  %v799_v18 = vadd.f32 %v7474_v45, %v5481_v40  ;;  %v827_v4 = vadd.f32 %v7475_v60, %v747_v47  ;;  %v7478_v24 = vld [vmem:[#allocation55_spill] sm:$0xff]  ;;  %v7482_v60 = vld [vmem:[#allocation56_spill] sm:$0xff] }
 0x2db   : > { %7464 = vst [vmem:[#allocation12_spill] sm:$0xff] %v5576_v62  ;;  %v5592_v56 = vpop.permute.xlu1 %2047  ;;  %v5600_v36 = vpop.permute.xlu0 %2045  ;;  %v912_v31 = vadd.f32 %v7476_v33, %v800_v48  ;;  %v1037_v57 = vstv %s5551_s3  ;;  %v814_v2 = vadd.f32 %v7477_v7, %v5493_v53  ;;  %v5625_v43 = vadd.f32 %v1002_v27, %v897_v44  ;;  %v7484_v33 = vld [vmem:[#allocation58_spill] sm:$0xff]  ;;  %s5749_s3 = sld [smem:[#allocation2 + $0xd01]]  ;;  %v7579_v62 = vld [vmem:[#allocation129_spill] sm:$0xff] }
 0x2dc   : > { %7468 = vst [vmem:[#allocation9_spill] sm:$0xff] %v5592_v56  ;;  %v1027_v15 = vmul.f32 %v5597_v58, %v1025_v12  ;;  %v7221_v54 = vstv %s5567_s5  ;;  %v939_v40 = vadd.f32 %v7478_v24, %v827_v4  ;;  %v1008_v47 = vmul.f32 %v5582_v19, %v1007_v51 }
 0x2dd   : > { %7470 = vst [vmem:[#allocation10_spill] sm:$0xff] %v5600_v36  ;;  %v1013_v9 = vstv %s5556_s4  ;;  %v1043_v1 = vstv %s5573_s8  ;;  %v842_v53 = vadd.f32 %v7480_v35, %v754_v14  ;;  %v1003_v27 = vmul.f32 %v5597_v58, %v1001_v52  ;;  %s5784_s4 = sld [smem:[#allocation2 + $0x607]] }
 0x2de   : > { %v1038_v44 = vmul.f32 %v5582_v19, %v1037_v57  ;;  %v2476_v48 = vstv %s5586_s14  ;;  %v841_v45 = vadd.f32 %v7481_v8, %v5509_v5  ;;  %v869_v51 = vadd.f32 %v7482_v60, %v765_v28  ;;  %v7486_v28 = vld [vmem:[#allocation59_spill] sm:$0xff]  ;;  %s5815_s8 = sld [smem:[#allocation2 + $0x781]] }
 0x2df   : > { %v5646_v4 = vadd.f32 %v1009_v32, %v912_v31  ;;  %v2491_v14 = vmul.f32 %v5462_v20, %v7221_v54  ;;  %v954_v52 = vadd.f32 %v7484_v33, %v842_v53  ;;  %v1015_v7 = vmul.f32 %v5597_v58, %v1013_v9  ;;  %v7487_v31 = vld [vmem:[#allocation61_spill] sm:$0xff]  ;;  %v7489_v54 = vld [vmem:[#allocation62_spill] sm:$0xff]  ;;  %s5829_s14 = sld [smem:[#allocation2 + $0xd02]] }
 0x2e0   : > { %2469 = vrot.lane.b32.xlu2 %v2464_v29, %s4078_s7  ;;  %2467 = vrot.lane.b32.xlu1 %v2463_v30, %s4078_s7  ;;  %v1045_v24 = vmul.f32 %v5597_v58, %v1043_v1  ;;  %v884_v32 = vadd.f32 %v7486_v28, %v772_v63  ;;  %v981_v35 = vadd.f32 %v7487_v31, %v869_v51  ;;  %v7488_v53 = vld [vmem:[#allocation57_spill] sm:$0xff]  ;;  %v7491_v28 = vld [vmem:[#allocation64_spill] sm:$0xff] }
 0x2e1   : > { %2455 = vrot.lane.b32.xlu0 %v2450_v10, %s4078_s7  ;;  %v1014_v10 = vmul.f32 %v5582_v19, %v1013_v9  ;;  %v5663_v8 = vadd.f32 %v1020_v37, %v939_v40  ;;  %v2478_v60 = vmul.f32 %v5434_v61, %v2476_v48  ;;  %v856_v33 = vadd.f32 %v7488_v53, %v5537_v0  ;;  %v7492_v0 = vld [vmem:[#allocation60_spill] sm:$0xff] }
 0x2e2   : > { %v5636_v29 = vpop.permute.xlu2 %2193  ;;  %v911_v9 = vadd.f32 %v7489_v54, %v799_v18  ;;  %v2477_v46 = vmul.f32 %v5462_v20, %v2476_v48  ;;  %v996_v51 = vadd.f32 %v7491_v28, %v884_v32  ;;  %v1026_v37 = vmul.f32 %v5582_v19, %v1025_v12  ;;  %v7493_v54 = vld [vmem:[#allocation65_spill] sm:$0xff] }
 0x2e3   : > { %7479 = vst [vmem:[#allocation14_spill] sm:$0xff] %v5636_v29  ;;  %v5648_v30 = vpop.permute.xlu1 %2073  ;;  %v5659_v5 = vpop.permute.xlu0 %2061  ;;  %v1021_v40 = vmul.f32 %v5597_v58, %v1019_v23  ;;  %v883_v18 = vadd.f32 %v7492_v0, %v5549_v42  ;;  %v926_v31 = vadd.f32 %v7493_v54, %v814_v2  ;;  %v5684_v53 = vadd.f32 %v1027_v15, %v954_v52  ;;  %v7496_v2 = vld [vmem:[#allocation68_spill] sm:$0xff] }
 0x2e4   : > { %7483 = vst [vmem:[#allocation13_spill] sm:$0xff] %v5648_v30  ;;  %v1031_v30 = vstv %s5611_s16  ;;  %v2504_v48 = vstv %s5629_s17  ;;  %v5693_v32 = vadd.f32 %v1038_v44, %v981_v35  ;;  %v1010_v42 = vadd.f32 %v1008_v47, %v911_v9  ;;  %v7501_v9 = vld [vmem:[#allocation75_spill] sm:$0xff]  ;;  %s5834_s16 = sld [smem:[#allocation2 + $0x782]] }
 0x2e5   : > { %7485 = vst [vmem:[#allocation17_spill] sm:$0xff] %v5659_v5  ;;  %v7490_v5 = vld [vmem:[#allocation63_spill] sm:$0xff]  ;;  %v1033_v12 = vmul.f32 %v5597_v58, %v1031_v30  ;;  %v1032_v23 = vmul.f32 %v5582_v19, %v1031_v30  ;;  %v953_v15 = vadd.f32 %v7496_v2, %v841_v45  ;;  %v1044_v52 = vmul.f32 %v5582_v19, %v1043_v1  ;;  %v7504_v2 = vld [vmem:[#allocation70_spill] sm:$0xff]  ;;  %s5851_s17 = sld [smem:[#allocation2 + $0x784]] }
 0x2e6   : > { %v898_v63 = vadd.f32 %v7490_v5, %v5561_v3  ;;  %v7494_v3 = vld [vmem:[#allocation66_spill] sm:$0xff]  ;;  %v1039_v28 = vmul.f32 %v5597_v58, %v1037_v57  ;;  %v5706_v35 = vadd.f32 %v1045_v24, %v996_v51  ;;  %v2506_v19 = vmul.f32 %v5434_v61, %v2504_v48  ;;  %v7498_v58 = vld [vmem:[#allocation71_spill] sm:$0xff] }
 0x2e7   : > { %v925_v5 = vadd.f32 %v7494_v3, %v5570_v50  ;;  %v7497_v50 = vld [vmem:[#allocation69_spill] sm:$0xff]  ;;  %v1017_v1 = vadd.f32 %v1015_v7, %v926_v31  ;;  %v968_v57 = vadd.f32 %v7498_v58, %v856_v33  ;;  %v2505_v7 = vmul.f32 %v5462_v20, %v2504_v48  ;;  %v7502_v33 = vld [vmem:[#allocation67_spill] sm:$0xff] }
 0x2e8   : > { %2495 = vrot.lane.b32.xlu2 %v2491_v14, %s4078_s7  ;;  %2483 = vrot.lane.b32.xlu1 %v2478_v60, %s4078_s7  ;;  %v940_v44 = vadd.f32 %v7497_v50, %v5589_v39  ;;  %v1005_v30 = vadd.f32 %v1003_v27, %v898_v63  ;;  %v1275_v60 = vstv %s5657_s21  ;;  %v7500_v27 = vld [vmem:[#allocation74_spill] sm:$0xff]  ;;  %v982_v63 = vadd.f32 %v7501_v9, %v5609_v41  ;;  %s5857_s21 = sld [smem:[#allocation2 + $0x780]] }
 0x2e9   : > { %2481 = vrot.lane.b32.xlu0 %v2477_v46, %s4078_s7  ;;  %v7499_v46 = vld [vmem:[#allocation72_spill] sm:$0xff]  ;;  %v995_v24 = vadd.f32 %v7500_v27, %v883_v18  ;;  %v1016_v51 = vadd.f32 %v1014_v10, %v925_v5  ;;  %v5728_v0 = vadd.f32 %v7502_v33, %v1010_v42  ;;  %v7223_v54 = vstv %s5670_s22 }
 0x2ea   : > { %v5696_v14 = vpop.permute.xlu2 %2209  ;;  %v967_v45 = vadd.f32 %v7499_v46, %v5603_v25  ;;  %v1028_v25 = vadd.f32 %v1026_v37, %v953_v15  ;;  %v7503_v31 = vstv %s5567_s5  ;;  %v5735_v18 = vadd.f32 %v7504_v2, %v1017_v1  ;;  %v5741_v5 = vld [vmem:[%s4155_s6 + $0x21] sm:$0x7f]  ;;  %v7505_v37 = vld [vmem:[#allocation73_spill] sm:$0xff]  ;;  %v5753_v27 = vld [vmem:[%s4155_s6 + $0x19] sm:$0xff]  ;;  %s5807_s5 = sld [smem:[#allocation2 + $0xd03]] }
 0x2eb   : > { %7495 = vst [vmem:[#allocation19_spill] sm:$0xff] %v5696_v14  ;;  %v5710_v47 = vpop.permute.xlu1 %2089  ;;  %v5719_v39 = vpop.permute.xlu0 %2087  ;;  %v2492_v3 = vmul.f32 %v5434_v61, %v7503_v31  ;;  %v1023_v41 = vadd.f32 %v1021_v40, %v940_v44  ;;  %v1293_v10 = vstv %s5678_s23  ;;  %v1277_v48 = vmul.f32 %v5741_v5, %v1275_v60  ;;  %v7506_v40 = vld [vmem:[#allocation77_spill] sm:$0xff]  ;;  %v7513_v2 = vld [vmem:[#allocation79_spill] sm:$0xff]  ;;  %s5873_s23 = sld [smem:[#allocation2 + $0xd04]] }
 0x2ec   : > { %v5746_v42 = vadd.f32 %v7505_v37, %v1028_v25  ;;  %v1035_v15 = vadd.f32 %v1033_v12, %v968_v57  ;;  %v1034_v50 = vadd.f32 %v1032_v23, %v967_v45  ;;  %v7222_v58 = vstv %s5687_s24  ;;  %v7508_v12 = vld [vmem:[#allocation76_spill] sm:$0xff]  ;;  %v7509_v57 = vld [vmem:[#allocation78_spill] sm:$0xff] }
 0x2ed   : > { %v1061_v44 = vadd.f32 %v7506_v40, %v1005_v30  ;;  %v1046_v1 = vadd.f32 %v1044_v52, %v995_v24  ;;  %v1041_v46 = vadd.f32 %v1039_v28, %v982_v63  ;;  %v1060_v45 = vadd.f32 %v7509_v57, %v5625_v43  ;;  %v7510_v28 = vld [vmem:[#allocation80_spill] sm:$0xff]  ;;  %v7511_v63 = vld [vmem:[#allocation82_spill] sm:$0xff]  ;;  %v7514_v43 = vld [vmem:[#allocation81_spill] sm:$0xff] }
 0x2ee   : > { %v5762_v23 = vadd.f32 %v7508_v12, %v1035_v15  ;;  %v1295_v30 = vmul.f32 %v5741_v5, %v1293_v10  ;;  %v2518_v52 = vstv %s5702_s26  ;;  %v1088_v24 = vadd.f32 %v7510_v28, %v1016_v51  ;;  %v7515_v40 = vld [vmem:[#allocation83_spill] sm:$0xff]  ;;  %s5904_s26 = sld [smem:[#allocation2 + $0x783]] }
 0x2ef   : > { %v1173_v33 = vadd.f32 %v7511_v63, %v1061_v44  ;;  %v1305_v25 = vstv %s5708_s27  ;;  %v2533_v31 = vmul.f32 %v5462_v20, %v7222_v58  ;;  %v5778_v37 = vadd.f32 %v7513_v2, %v1046_v1  ;;  %v7516_v44 = vld [vmem:[#allocation85_spill] sm:$0xff]  ;;  %v7517_v2 = vld [vmem:[#allocation86_spill] sm:$0xff]  ;;  %s5928_s27 = sld [smem:[#allocation2 + $0x786]] }
 0x2f0   : > { %2511 = vrot.lane.b32.xlu2 %v2506_v19, %s4078_s7  ;;  %v1288_v19 = vmul.f32 %v5753_v27, %v7223_v54  ;;  %2509 = vrot.lane.b32.xlu1 %v2505_v7, %s4078_s7  ;;  %v1075_v15 = vadd.f32 %v7514_v43, %v5646_v4  ;;  %v1103_v12 = vadd.f32 %v7515_v40, %v1023_v41  ;;  %v1311_v63 = vstv %s5724_s29  ;;  %v7518_v54 = vld [vmem:[#allocation88_spill] sm:$0xff]  ;;  %s5945_s29 = sld [smem:[#allocation2 + $0x907]] }
 0x2f1   : > { %2497 = vrot.lane.b32.xlu0 %v2492_v3, %s4078_s7  ;;  %v1281_v3 = vstv %s5717_s28  ;;  %v1200_v57 = vadd.f32 %v7516_v44, %v1088_v24  ;;  %v1276_v28 = vmul.f32 %v5753_v27, %v1275_v60  ;;  %v2520_v1 = vmul.f32 %v5434_v61, %v2518_v52  ;;  %v7519_v40 = vld [vmem:[#allocation84_spill] sm:$0xff]  ;;  %v7520_v60 = vld [vmem:[#allocation91_spill] sm:$0xff]  ;;  %s5937_s28 = sld [smem:[#allocation2 + $0xd06]] }
 0x2f2   : > { %v5759_v9 = vpop.permute.xlu2 %2235  ;;  %v1130_v58 = vadd.f32 %v7517_v2, %v1034_v50  ;;  %v1215_v4 = vadd.f32 %v7518_v54, %v1103_v12  ;;  %v1306_v41 = vmul.f32 %v5753_v27, %v1305_v25  ;;  %v2519_v43 = vmul.f32 %v5462_v20, %v2518_v52  ;;  %v7521_v52 = vld [vmem:[#allocation87_spill] sm:$0xff] }
 0x2f3   : > { %7507 = vst [vmem:[#allocation15_spill] sm:$0xff] %v5759_v9  ;;  %v5772_v7 = vpop.permute.xlu1 %2165  ;;  %v5786_v51 = vpop.permute.xlu0 %2153  ;;  %v1102_v9 = vadd.f32 %v7519_v40, %v5663_v8  ;;  %v1283_v14 = vmul.f32 %v5741_v5, %v1281_v3  ;;  %v1282_v24 = vmul.f32 %v5753_v27, %v1281_v3  ;;  %v5800_v44 = vadd.f32 %v1277_v48, %v1173_v33  ;;  %v7522_v40 = vld [vmem:[#allocation89_spill] sm:$0xff]  ;;  %v7524_v33 = vld [vmem:[#allocation90_spill] sm:$0xff] }
 0x2f4   : > { %7512 = vst [vmem:[#allocation16_spill] sm:$0xff] %v5772_v7  ;;  %v1242_v50 = vadd.f32 %v7520_v60, %v1130_v58  ;;  %v1299_v2 = vstv %s5738_s30  ;;  %v1313_v54 = vmul.f32 %v5741_v5, %v1311_v63  ;;  %v2546_v12 = vstv %s5749_s3  ;;  %v7525_v60 = vld [vmem:[#allocation92_spill] sm:$0xff]  ;;  %s5960_s30 = sld [smem:[#allocation2 + $0xd05]] }
 0x2f5   : > { %v1117_v8 = vadd.f32 %v7521_v52, %v5684_v53  ;;  %v1145_v36 = vadd.f32 %v7522_v40, %v1041_v46  ;;  %v1294_v3 = vmul.f32 %v5753_v27, %v1293_v10  ;;  %v5813_v48 = vadd.f32 %v1288_v19, %v1200_v57  ;;  %v7527_v10 = vld [vmem:[#allocation94_spill] sm:$0xff]  ;;  %s5965_s3 = sld [smem:[#allocation2 + $0x900]] }
 0x2f6   : > { %v1172_v56 = vadd.f32 %v7525_v60, %v1060_v45  ;;  %v7526_v29 = vstv %s5670_s22  ;;  %v5826_v46 = vadd.f32 %v1295_v30, %v1215_v4  ;;  %v1301_v57 = vmul.f32 %v5741_v5, %v1299_v2  ;;  %v7530_v4 = vld [vmem:[#allocation96_spill] sm:$0xff]  ;;  %s5867_s22 = sld [smem:[#allocation2 + $0x787]] }
 0x2f7   : > { %v1289_v53 = vmul.f32 %v5741_v5, %v7526_v29  ;;  %v1257_v19 = vadd.f32 %v7527_v10, %v1145_v36  ;;  %v2548_v45 = vmul.f32 %v5434_v61, %v2546_v12  ;;  %v7529_v29 = vld [vmem:[#allocation95_spill] sm:$0xff]  ;;  %v1317_v52 = vstv %s5784_s4  ;;  %s5988_s4 = sld [smem:[#allocation2 + $0x902]] }
 0x2f8   : > { %2537 = vrot.lane.b32.xlu2 %v2533_v31, %s7233_s25  ;;  %2525 = vrot.lane.b32.xlu1 %v2520_v1, %s4078_s7  ;;  %v1144_v31 = vadd.f32 %v7524_v33, %v5693_v32  ;;  %v1300_v1 = vmul.f32 %v5753_v27, %v1299_v2  ;;  %v1187_v30 = vadd.f32 %v7529_v29, %v1075_v15  ;;  %v7531_v33 = vld [vmem:[#allocation93_spill] sm:$0xff] }
 0x2f9   : > { %2523 = vrot.lane.b32.xlu0 %v2519_v43, %s4078_s7  ;;  %v1186_v43 = vadd.f32 %v7530_v4, %v5728_v0  ;;  %v5843_v40 = vadd.f32 %v1306_v41, %v1242_v50  ;;  %v1159_v2 = vadd.f32 %v7531_v33, %v5706_v35  ;;  %v1312_v60 = vmul.f32 %v5753_v27, %v1311_v63  ;;  %v7533_v41 = vld [vmem:[#allocation99_spill] sm:$0xff]  ;;  %v7535_v33 = vld [vmem:[#allocation101_spill] sm:$0xff] }
 0x2fa   : > { %v5818_v58 = vpop.permute.xlu2 %2251  ;;  %v1307_v10 = vmul.f32 %v5741_v5, %v1305_v25  ;;  %v2547_v15 = vmul.f32 %v5462_v20, %v2546_v12  ;;  %v1278_v29 = vadd.f32 %v1276_v28, %v1172_v56  ;;  %v1201_v50 = vadd.f32 %v7533_v41, %v5735_v18  ;;  %v7536_v18 = vld [vmem:[#allocation102_spill] sm:$0xff] }
 0x2fb   : > { %7523 = vst [vmem:[#allocation18_spill] sm:$0xff] %v5818_v58  ;;  %v5836_v32 = vpop.permute.xlu1 %2181  ;;  %v5845_v36 = vpop.permute.xlu0 %2179  ;;  %v7534_v4 = vstv %s5687_s24  ;;  %v1229_v63 = vadd.f32 %v7535_v33, %v1117_v8  ;;  %v1319_v25 = vmul.f32 %v5741_v5, %v1317_v52  ;;  %v1318_v16 = vmul.f32 %v5753_v27, %v1317_v52  ;;  %v7537_v8 = vld [vmem:[#allocation97_spill] sm:$0xff]  ;;  %v7538_v27 = vld [vmem:[#allocation104_spill] sm:$0xff]  ;;  %s5881_s24 = sld [smem:[#allocation2 + $0x785]] }
 0x2fc   : > { %7528 = vst [vmem:[#allocation20_spill] sm:$0xff] %v5836_v32  ;;  %v7532_v32 = vld [vmem:[#allocation98_spill] sm:$0xff]  ;;  %v2534_v35 = vmul.f32 %v5434_v61, %v7534_v4  ;;  %v5865_v17 = vadd.f32 %v1313_v54, %v1257_v19  ;;  %v1285_v56 = vadd.f32 %v1283_v14, %v1187_v30  ;;  %v1284_v28 = vadd.f32 %v1282_v24, %v1186_v43  ;;  %v7539_v19 = vld [vmem:[#allocation105_spill] sm:$0xff]  ;;  %v7544_v33 = vld [vmem:[#allocation100_spill] sm:$0xff] }
 0x2fd   : > { %v1214_v0 = vadd.f32 %v7532_v32, %v1102_v9  ;;  %v1228_v9 = vadd.f32 %v7536_v18, %v5746_v42  ;;  %v7226_v12 = vstv %s5807_s5  ;;  %v5876_v5 = vadd.f32 %v7537_v8, %v1278_v29  ;;  %v7542_v29 = vld [vmem:[#allocation107_spill] sm:$0xff] }
 0x2fe   : > { %v1256_v54 = vadd.f32 %v7538_v27, %v1144_v31  ;;  %v1243_v32 = vadd.f32 %v7539_v19, %v5762_v23  ;;  %v7227_v14 = vstv %s5815_s8  ;;  %v1291_v43 = vadd.f32 %v1289_v53, %v1201_v50 }
 0x2ff   : > { %v1296_v24 = vadd.f32 %v1294_v3, %v1214_v0  ;;  %v2560_v31 = vstv %s5829_s14  ;;  %v1303_v52 = vadd.f32 %v1301_v57, %v1229_v63  ;;  %v1271_v23 = vadd.f32 %v7542_v29, %v1159_v2  ;;  %v7545_v0 = vld [vmem:[#allocation103_spill] sm:$0xff]  ;;  %s6016_s14 = sld [smem:[#allocation2 + $0xa80]] }
 0x300   : > { %2553 = vrot.lane.b32.xlu2 %v2548_v45, %s7233_s25  ;;  %2551 = vrot.lane.b32.xlu1 %v2547_v15, %s7233_s25  ;;  %v7541_v45 = vld [vmem:[#allocation108_spill] sm:$0xff]  ;;  %v1561_v41 = vstv %s5834_s16  ;;  %v2575_v15 = vmul.f32 %v5462_v20, %v7226_v12  ;;  %v5899_v3 = vadd.f32 %v7544_v33, %v1285_v56  ;;  %v1302_v53 = vadd.f32 %v1300_v1, %v1228_v9  ;;  %s6034_s16 = sld [smem:[#allocation2 + $0x901]] }
 0x301   : > { %v1270_v30 = vadd.f32 %v7541_v45, %v5778_v37  ;;  %2539 = vrot.lane.b32.xlu0 %v2534_v35, %s7233_s25  ;;  %v5902_v37 = vadd.f32 %v7545_v0, %v1296_v24  ;;  %v5907_v57 = vld [vmem:[%s4155_s6 + $0x1a] sm:$0xff]  ;;  %v7546_v35 = vld [vmem:[#allocation106_spill] sm:$0xff]  ;;  %v1314_v18 = vadd.f32 %v1312_v60, %v1256_v54  ;;  %v1309_v56 = vadd.f32 %v1307_v10, %v1243_v32  ;;  %v5919_v9 = vld [vmem:[%s4155_s6 + $0x22] sm:$0x7f] }
 0x302   : > { %v5885_v42 = vpop.permute.xlu2 %2277  ;;  %v1556_v2 = vmul.f32 %v5907_v57, %v7227_v14  ;;  %v5915_v63 = vadd.f32 %v7546_v35, %v1303_v52  ;;  %v2562_v8 = vmul.f32 %v5434_v61, %v2560_v31  ;;  %v1563_v27 = vmul.f32 %v5919_v9, %v1561_v41  ;;  %v7547_v45 = vld [vmem:[#allocation109_spill] sm:$0xff]  ;;  %v7548_v52 = vld [vmem:[#allocation110_spill] sm:$0xff] }
 0x303   : > { %7540 = vst [vmem:[#allocation22_spill] sm:$0xff] %v5885_v42  ;;  %v5893_v4 = vpop.permute.xlu1 %2207  ;;  %v5912_v50 = vpop.permute.xlu0 %2195  ;;  %v1320_v1 = vadd.f32 %v1318_v16, %v1270_v30  ;;  %v7225_v19 = vstv %s5851_s17  ;;  %v2561_v24 = vmul.f32 %v5462_v20, %v2560_v31  ;;  %v5925_v29 = vadd.f32 %v7547_v45, %v1314_v18  ;;  %v7549_v16 = vld [vmem:[#allocation111_spill] sm:$0xff]  ;;  %v7550_v30 = vld [vmem:[#allocation122_spill] sm:$0xff]  ;;  %v7551_v31 = vld [vmem:[#allocation113_spill] sm:$0xff] }
 0x304   : > { %7543 = vst [vmem:[#allocation21_spill] sm:$0xff] %v5893_v4  ;;  %v1348_v60 = vadd.f32 %v7548_v52, %v1284_v28  ;;  %v1321_v54 = vadd.f32 %v1319_v25, %v1271_v23  ;;  %v7224_v10 = vstv %s5867_s22  ;;  %v1335_v32 = vadd.f32 %v7549_v16, %v5800_v44  ;;  %v7552_v45 = vld [vmem:[#allocation115_spill] sm:$0xff]  ;;  %v7555_v52 = vld [vmem:[#allocation114_spill] sm:$0xff] }
 0x305   : > { %v1432_v33 = vadd.f32 %v7550_v30, %v1320_v1  ;;  %v1549_v0 = vstv %s5857_s21  ;;  %v2588_v35 = vstv %s5873_s23  ;;  %v1363_v18 = vadd.f32 %v7551_v31, %v1291_v43  ;;  %v7556_v43 = vld [vmem:[#allocation127_spill] sm:$0xff]  ;;  %v7557_v31 = vld [vmem:[#allocation118_spill] sm:$0xff]  ;;  %s6066_s21 = sld [smem:[#allocation2 + $0x903]] }
 0x306   : > { %v1460_v28 = vadd.f32 %v7552_v45, %v1348_v60  ;;  %v1579_v25 = vstv %s5881_s24  ;;  %v1574_v23 = vmul.f32 %v5907_v57, %v7225_v19  ;;  %v1362_v16 = vadd.f32 %v7555_v52, %v5813_v48  ;;  %v7562_v4 = vld [vmem:[#allocation119_spill] sm:$0xff]  ;;  %s6080_s23 = sld [smem:[#allocation2 + $0xe01]] }
 0x307   : > { %v1544_v30 = vadd.f32 %v7556_v43, %v1432_v33  ;;  %v1592_v60 = vmul.f32 %v5907_v57, %v7224_v10  ;;  %v1551_v45 = vmul.f32 %v5919_v9, %v1549_v0  ;;  %v2590_v33 = vmul.f32 %v5434_v61, %v2588_v35  ;;  %v7560_v43 = vld [vmem:[#allocation125_spill] sm:$0xff]  ;;  %v7576_v42 = vld [vmem:[#allocation159_spill] sm:$0xff]  ;;  %s6089_s24 = sld [smem:[#allocation2 + $0xc00]] }
 0x308   : > { %2579 = vrot.lane.b32.xlu2 %v2575_v15, %s7233_s25  ;;  %2567 = vrot.lane.b32.xlu1 %v2562_v8, %s7233_s25  ;;  %v7554_v15 = vld [vmem:[#allocation112_spill] sm:$0xff]  ;;  %v1475_v8 = vadd.f32 %v7557_v31, %v1363_v18  ;;  %v1567_v10 = vstv %s5904_s26  ;;  %v1581_v19 = vmul.f32 %v5919_v9, %v1579_v25  ;;  %v7561_v31 = vld [vmem:[#allocation117_spill] sm:$0xff]  ;;  %v5979_v14 = vadd.f32 %v1556_v2, %v1460_v28  ;;  %s6102_s26 = sld [smem:[#allocation2 + $0xe00]] }
 0x309   : > { %v5951_v1 = vadd.f32 %v7554_v15, %v1321_v54  ;;  %2565 = vrot.lane.b32.xlu0 %v2561_v24, %s7233_s25  ;;  %v1550_v54 = vmul.f32 %v5907_v57, %v1549_v0  ;;  %v7559_v15 = vld [vmem:[#allocation116_spill] sm:$0xff]  ;;  %v1447_v24 = vadd.f32 %v7560_v43, %v1335_v32  ;;  %v1377_v12 = vadd.f32 %v7561_v31, %v5826_v46  ;;  %v7566_v28 = vld [vmem:[#allocation121_spill] sm:$0xff] }
 0x30a   : > { %v5948_v44 = vpop.permute.xlu2 %2293  ;;  %v1390_v52 = vadd.f32 %v7559_v15, %v1302_v53  ;;  %v1562_v0 = vmul.f32 %v5907_v57, %v1561_v41  ;;  %v7563_v53 = vstv %s5815_s8  ;;  %v1594_v15 = vadd.f32 %v1592_v60, %v1544_v30  ;;  %v7565_v41 = vld [vmem:[#allocation120_spill] sm:$0xff]  ;;  %s6001_s8 = sld [smem:[#allocation2 + $0xa87]] }
 0x30b   : > { %7553 = vst [vmem:[#allocation25_spill] sm:$0xff] %v5948_v44  ;;  %v5967_v48 = vpop.permute.xlu1 %2223  ;;  %v5974_v18 = vpop.permute.xlu0 %2221  ;;  %v1405_v44 = vadd.f32 %v7562_v4, %v1309_v56  ;;  %v5986_v32 = vmul.f32 %v5919_v9, %v7563_v53  ;;  %v7564_v43 = vstv %s5807_s5  ;;  %v1404_v2 = vadd.f32 %v7565_v41, %v5843_v40  ;;  %v7567_v60 = vld [vmem:[#allocation156_spill] sm:$0xff]  ;;  %s6009_s5 = sld [smem:[#allocation2 + $0xd07]] }
 0x30c   : > { %7558 = vst [vmem:[#allocation23_spill] sm:$0xff] %v5967_v48  ;;  %v2589_v48 = vmul.f32 %v5462_v20, %v2588_v35  ;;  %v2576_v46 = vmul.f32 %v5434_v61, %v7564_v43  ;;  %v1502_v31 = vadd.f32 %v7566_v28, %v1390_v52  ;;  %v5997_v35 = vmul.f32 %v5919_v9, %v1567_v10  ;;  %v7568_v52 = vld [vmem:[#allocation124_spill] sm:$0xff] }
 0x30d   : > { %v5999_v4 = vadd.f32 %v1563_v27, %v1475_v8  ;;  %v1553_v56 = vadd.f32 %v1551_v45, %v1447_v24  ;;  %v6005_v30 = vmul.f32 %v5907_v57, %v1567_v10  ;;  %v1706_v40 = vadd.f32 %v7567_v60, %v1594_v15  ;;  %v7569_v27 = vld [vmem:[#allocation126_spill] sm:$0xff] }
 0x30e   : > { %v1517_v43 = vadd.f32 %v7568_v52, %v1405_v44  ;;  %v1446_v8 = vadd.f32 %v7569_v27, %v5876_v5  ;;  %v1585_v41 = vstv %s5928_s27  ;;  %v7571_v45 = vld [vmem:[#allocation130_spill] sm:$0xff]  ;;  %v2602_v5 = vstv %s5960_s30  ;;  %v7573_v52 = vld [vmem:[#allocation128_spill] sm:$0xff]  ;;  %s6137_s27 = sld [smem:[#allocation2 + $0x905]] }
 0x30f   : > { %v1609_v24 = vadd.f32 %v7571_v45, %v1553_v56  ;;  %v7572_v15 = vld [vmem:[#allocation170_spill] sm:$0xff]  ;;  %v1474_v27 = vadd.f32 %v7573_v52, %v1362_v16  ;;  %v6032_v53 = vadd.f32 %v1574_v23, %v1502_v31  ;;  %v7574_v56 = vstv %s5937_s28  ;;  %v7575_v45 = vld [vmem:[#allocation123_spill] sm:$0xff]  ;;  %s6151_s30 = sld [smem:[#allocation2 + $0x906]] }
 0x310   : > { %2595 = vrot.lane.b32.xlu2 %v2590_v33, %s7233_s25  ;;  %v7228_v33 = vstv %s5945_s29  ;;  %2593 = vrot.lane.b32.xlu1 %v2589_v48, %s7233_s25  ;;  %v1818_v28 = vadd.f32 %v7572_v15, %v1706_v40  ;;  %v6024_v60 = vld [vmem:[%s4155_s6 + $0x30] sm:$0xff]  ;;  %v2617_v40 = vmul.f32 %v5462_v20, %v7574_v56  ;;  %v1419_v15 = vadd.f32 %v7575_v45, %v5865_v17 }
 0x311   : > { %v1867_v44 = vmul.f32 %v6024_v60, %v7228_v33  ;;  %2581 = vrot.lane.b32.xlu0 %v2576_v46, %s7233_s25  ;;  %v1824_v48 = vstv %s5965_s3  ;;  %v1580_v33 = vmul.f32 %v5907_v57, %v1579_v25  ;;  %v1721_v46 = vadd.f32 %v7576_v42, %v1609_v24  ;;  %s6164_s3 = sld [smem:[#allocation2 + $0xa83]] }
 0x312   : > { %v6019_v10 = vpop.permute.xlu2 %2319  ;;  %v1826_v23 = vmul.f32 %v6047_v26, %v1824_v48  ;;  %v6053_v31 = vmul.f32 %v5919_v9, %v1585_v41  ;;  %v7577_v52 = vstv %s5851_s17  ;;  %v6058_v7 = vadd.f32 %v1581_v19, %v1517_v43  ;;  %v7580_v19 = vld [vmem:[#allocation131_spill] sm:$0xff]  ;;  %s6073_s17 = sld [smem:[#allocation2 + $0xa82]] }
 0x313   : > { %7570 = vst [vmem:[#allocation24_spill] sm:$0xff] %v6019_v10  ;;  %v6037_v10 = vpop.permute.xlu1 %2249  ;;  %v6050_v16 = vpop.permute.xlu0 %2237  ;;  %v1575_v56 = vmul.f32 %v5919_v9, %v7577_v52  ;;  %v2604_v17 = vmul.f32 %v5434_v61, %v2602_v5  ;;  %v6061_v25 = vadd.f32 %v1550_v54, %v1446_v8  ;;  %v6064_v42 = vmul.f32 %v5907_v57, %v1585_v41  ;;  %v7581_v57 = vld [vmem:[#allocation132_spill] sm:$0xff]  ;;  %v7582_v41 = vld [vmem:[#allocation175_spill] sm:$0xff] }
 0x314   : > { %7578 = vst [vmem:[#allocation26_spill] sm:$0xff] %v6058_v7  ;;  %v1869_v24 = vadd.f32 %v1867_v44, %v1818_v28  ;;  %v2603_v45 = vmul.f32 %v5462_v20, %v2602_v5  ;;  %v1461_v52 = vadd.f32 %v7579_v62, %v5899_v3  ;;  %v1489_v43 = vadd.f32 %v7580_v19, %v1377_v12  ;;  %v7583_v62 = vld [vmem:[#allocation133_spill] sm:$0xff]  ;;  %v7584_v3 = vld [vmem:[#allocation134_spill] sm:$0xff] }
 0x315   : > { %v1564_v7 = vadd.f32 %v1562_v0, %v1474_v27  ;;  %v7229_v58 = vstv %s6001_s8  ;;  %v1488_v54 = vadd.f32 %v7581_v57, %v5902_v37  ;;  %v1828_v8 = vadd.f32 %v1826_v23, %v1721_v46  ;;  %v7585_v37 = vld [vmem:[#allocation135_spill] sm:$0xff]  ;;  %v7586_v23 = vld [vmem:[#allocation173_spill] sm:$0xff] }
 0x316   : > { %v1981_v28 = vadd.f32 %v7582_v41, %v1869_v24  ;;  %v2630_v44 = vstv %s6009_s5  ;;  %v1516_v0 = vadd.f32 %v7584_v3, %v1404_v2  ;;  %v7230_v5 = vstv %s5988_s4  ;;  %v6096_v19 = vld [vmem:[%s4155_s6 + $0x31] sm:$0xff]  ;;  %s6184_s5 = sld [smem:[#allocation2 + $0xc02]] }
 0x317   : > { %v1636_v12 = vadd.f32 %v7583_v62, %v1564_v7  ;;  %v7231_v27 = vstv %s6016_s14  ;;  %v1503_v46 = vadd.f32 %v7585_v37, %v5915_v63  ;;  %v1884_v24 = vadd.f32 %v7586_v23, %v1828_v8  ;;  %v7589_v37 = vld [vmem:[#allocation178_spill] sm:$0xff]  ;;  %v6118_v23 = vld [vmem:[%s4155_s6 + $0x39] sm:$0x7f] }
 0x318   : > { %2621 = vrot.lane.b32.xlu2 %v2617_v40, %s7233_s25  ;;  %2609 = vrot.lane.b32.xlu1 %v2604_v17, %s7233_s25  ;;  %v2093_v7 = vadd.f32 %v5719_v39, %v1981_v28  ;;  %v2141_v2 = vmul.f32 %v6096_v19, %v7229_v58  ;;  %v6105_v17 = vadd.f32 %v5986_v32, %v1461_v52  ;;  %v7587_v57 = vstv %s5867_s22  ;;  %v7588_v39 = vld [vmem:[#allocation162_spill] sm:$0xff]  ;;  %s6129_s22 = sld [smem:[#allocation2 + $0x904]] }
 0x319   : > { %2607 = vrot.lane.b32.xlu0 %v2603_v45, %s7233_s25  ;;  %v1593_v63 = vmul.f32 %v5919_v9, %v7587_v57  ;;  %v2632_v8 = vmul.f32 %v5434_v61, %v2630_v44  ;;  %v1748_v28 = vadd.f32 %v7588_v39, %v1636_v12  ;;  %v1837_v3 = vmul.f32 %v6024_v60, %v7230_v5  ;;  %v7592_v5 = vld [vmem:[#allocation137_spill] sm:$0xff] }
 0x31a   : > { %v6087_v40 = vpop.permute.xlu2 %2335  ;;  %v1996_v45 = vadd.f32 %v7589_v37, %v1884_v24  ;;  %v2100_v32 = vmul.f32 %v6118_v23, %v7231_v27  ;;  %v1571_v9 = vadd.f32 %v5997_v35, %v1489_v43  ;;  %v6127_v57 = vadd.f32 %v6005_v30, %v1488_v54  ;;  %v7591_v43 = vld [vmem:[#allocation136_spill] sm:$0xff]  ;;  %v7593_v27 = vld [vmem:[#allocation138_spill] sm:$0xff] }
 0x31b   : > { %v2266_v62 = vpop.permute.xlu1 %2265  ;;  %v6123_v52 = vpop.permute.xlu0 %2263  ;;  %v6132_v12 = vmul.f32 %v6024_v60, %v1824_v48  ;;  %v2631_v24 = vmul.f32 %v5462_v20, %v2630_v44  ;;  %v1582_v39 = vadd.f32 %v1580_v33, %v1516_v0  ;;  %v6135_v37 = vadd.f32 %v1575_v56, %v1503_v46  ;;  %v6156_v46 = vld [vmem:[%s4155_s6 + $0x48] sm:$0xff] }
 0x31c   : > { %v2143_v58 = vadd.f32 %v2141_v2, %v2093_v7  ;;  %v7590_v35 = vstv %s5937_s28  ;;  %v1651_v54 = vadd.f32 %v7591_v43, %v1571_v9  ;;  %v1531_v48 = vadd.f32 %v7592_v5, %v1419_v15  ;;  %s6159_s28 = sld [smem:[#allocation2 + $0xe02]]  ;;  %v7597_v9 = vld [vmem:[#allocation165_spill] sm:$0xff] }
 0x31d   : > { %v2618_v30 = vmul.f32 %v5434_v61, %v7590_v35  ;;  %v1530_v41 = vadd.f32 %v7593_v27, %v5925_v29  ;;  %v7594_v20 = vstv %s6034_s16  ;;  %v1839_v56 = vadd.f32 %v1837_v3, %v1748_v28  ;;  %v7595_v29 = vld [vmem:[#allocation141_spill] sm:$0xff] }
 0x31e   : > { %v6149_v33 = vmul.f32 %v6047_v26, %v7594_v20  ;;  %v2102_v44 = vadd.f32 %v2100_v32, %v1996_v45  ;;  %v2255_v0 = vadd.f32 %v6037_v10, %v2143_v58  ;;  %v2709_v15 = vstv %s6080_s23  ;;  %v7596_v58 = vld [vmem:[#allocation176_spill] sm:$0xff]  ;;  %s6287_s23 = sld [smem:[#allocation2 + $0xa81]] }
 0x31f   : > { %v1545_v5 = vadd.f32 %v7595_v29, %v5951_v1  ;;  %v1842_v27 = vstv %s6066_s21  ;;  %v7232_v7 = vstv %s6073_s17  ;;  %v1911_v10 = vadd.f32 %v7596_v58, %v1839_v56  ;;  %v6175_v1 = vld [vmem:[%s4155_s6 + $0x50] sm:$0x7f]  ;;  %v7600_v29 = vld [vmem:[#allocation140_spill] sm:$0xff]  ;;  %s6206_s21 = sld [smem:[#allocation2 + $0xa85]] }
 0x320   : > { %2637 = vrot.lane.b32.xlu2 %v2632_v8, %s7233_s25  ;;  %2635 = vrot.lane.b32.xlu1 %v2631_v24, %s7233_s25  ;;  %v2372_v8 = vstv %s6089_s24  ;;  %v2158_v28 = vadd.f32 %v5786_v51, %v2102_v44  ;;  %v2695_v45 = vstv %s6102_s26  ;;  %v1589_v32 = vadd.f32 %v6053_v31, %v1531_v48  ;;  %v7598_v51 = vld [vmem:[#allocation181_spill] sm:$0xff]  ;;  %s6215_s26 = sld [smem:[#allocation2 + $0xa86]] }
 0x321   : > { %2623 = vrot.lane.b32.xlu0 %v2618_v30, %s7233_s25  ;;  %v1763_v24 = vadd.f32 %v7597_v9, %v1651_v54  ;;  %v1844_v35 = vmul.f32 %v6047_v26, %v1842_v27  ;;  %v2710_v20 = vmul.f32 %v6156_v46, %v2709_v15  ;;  %v2023_v30 = vadd.f32 %v7598_v51, %v1911_v10  ;;  %v7599_v54 = vld [vmem:[#allocation139_spill] sm:$0xff]  ;;  %s6219_s25 = sld [smem:[#allocation2 + $0xe04]] }
 0x322   : > { %v2362_v2 = vpop.permute.xlu2 %2361  ;;  %v2111_v56 = vmul.f32 %v6096_v19, %v7232_v7  ;;  %v2270_v44 = vadd.f32 %v2266_v62, %v2158_v28  ;;  %v2374_v31 = vmul.f32 %v5434_v61, %v2372_v8  ;;  %v1678_v48 = vadd.f32 %v7599_v54, %v1582_v39  ;;  %v7601_v39 = vld [vmem:[#allocation142_spill] sm:$0xff]  ;;  %v7603_v28 = vld [vmem:[#allocation144_spill] sm:$0xff]  ;;  %s6441_s24 = sld [smem:[#allocation2 + $0xe82]] }
 0x323   : > { %v6172_v3 = vadd.f32 %v2362_v2, %v2255_v0  ;;  %v2292_v43 = vpop.permute.xlu1 %2291  ;;  %v6190_v0 = vpop.permute.xlu0 %2279  ;;  %v1608_v2 = vadd.f32 %v7600_v29, %v6061_v25  ;;  %v6199_v58 = vadd.f32 %v6064_v42, %v1530_v41  ;;  %v2697_v10 = vmul.f32 %v6175_v1, %v2695_v45  ;;  %v7602_v42 = vld [vmem:[#allocation143_spill] sm:$0xff] }
 0x324   : > { %v1595_v9 = vadd.f32 %v1593_v63, %v1545_v5  ;;  %v7235_v51 = vstv %s6137_s27  ;;  %v6204_v62 = vmul.f32 %v6024_v60, %v1842_v27  ;;  %v2696_v61 = vmul.f32 %v6156_v46, %v2695_v45  ;;  %v7604_v45 = vld [vmem:[#allocation145_spill] sm:$0xff] }
 0x325   : > { %v1693_v25 = vadd.f32 %v7601_v39, %v1589_v32  ;;  %v1623_v41 = vadd.f32 %v7602_v42, %v6105_v17  ;;  %v1622_v54 = vadd.f32 %v7603_v28, %v5979_v14  ;;  %v7239_v63 = vstv %s6129_s22 }
 0x326   : > { %v1846_v5 = vadd.f32 %v1844_v35, %v1763_v24  ;;  %v2113_v27 = vadd.f32 %v2111_v56, %v2023_v30  ;;  %v2376_v29 = vadd.f32 %v2374_v31, %v2270_v44  ;;  %v2723_v7 = vstv %s6159_s28  ;;  %v7605_v24 = vld [vmem:[#allocation179_spill] sm:$0xff]  ;;  %s6238_s28 = sld [smem:[#allocation2 + $0xe03]]  ;;  %v7606_v44 = vld [vmem:[#allocation168_spill] sm:$0xff] }
 0x327   : > { %v1720_v32 = vadd.f32 %v7604_v45, %v1608_v2  ;;  %v1855_v17 = vmul.f32 %v6024_v60, %v7235_v51  ;;  %v7236_v39 = vstv %s6151_s30  ;;  %v7238_v14 = vstv %s6164_s3  ;;  %v7607_v2 = vld [vmem:[#allocation171_spill] sm:$0xff] }
 0x328   : > { %2714 = vrot.lane.b32.xlu2 %v2710_v20, %s4078_s7  ;;  %2702 = vrot.lane.b32.xlu1 %v2697_v10, %s4078_s7  ;;  %v1926_v35 = vadd.f32 %v7605_v24, %v1846_v5  ;;  %v1862_v20 = vmul.f32 %v6047_v26, %v7236_v39  ;;  %v2185_v30 = vadd.f32 %v5845_v36, %v2113_v27  ;;  %v7237_v45 = vstv %s6184_s5 }
 0x329   : > { %2700 = vrot.lane.b32.xlu0 %v2696_v61, %s4078_s7  ;;  %v1790_v31 = vadd.f32 %v7606_v44, %v1678_v48  ;;  %v1805_v10 = vadd.f32 %v7607_v2, %v1693_v25  ;;  %v2725_v5 = vmul.f32 %v6175_v1, %v2723_v7  ;;  %v2118_v36 = vmul.f32 %v6118_v23, %v7238_v14  ;;  %v7608_v25 = vld [vmem:[#allocation146_spill] sm:$0xff]  ;;  %v7610_v2 = vld [vmem:[#allocation148_spill] sm:$0xff] }
 0x32a   : > { %v2428_v42 = vpop.permute.xlu2 %2427  ;;  %v2038_v24 = vadd.f32 %v5323_v11, %v1926_v35  ;;  %v2297_v61 = vadd.f32 %v2292_v43, %v2185_v30  ;;  %v1827_v44 = vadd.f32 %v6132_v12, %v1720_v32  ;;  %v6262_v11 = vmul.f32 %v6047_v26, %v7239_v63  ;;  %v7609_v35 = vld [vmem:[#allocation147_spill] sm:$0xff] }
 0x32b   : > { %v6236_v56 = vadd.f32 %v2428_v42, %v2376_v29  ;;  %v2308_v28 = vpop.permute.xlu1 %2307  ;;  %v6248_v27 = vpop.permute.xlu0 %2305  ;;  %v6251_v29 = vld [vmem:[%s4155_s6 + $0x32] sm:$0xff]  ;;  %v1650_v42 = vadd.f32 %v7608_v25, %v6127_v57  ;;  %v2724_v43 = vmul.f32 %v6156_v46, %v2723_v7  ;;  %v1637_v30 = vadd.f32 %v7609_v35, %v5999_v4  ;;  %v7612_v25 = vld [vmem:[#allocation149_spill] sm:$0xff] }
 0x32c   : > { %v2385_v48 = vmul.f32 %v6251_v29, %v7237_v45  ;;  %v1735_v51 = vadd.f32 %v7610_v2, %v1623_v41  ;;  %v7611_v39 = vstv %s6034_s16  ;;  %v2711_v57 = vmul.f32 %v6175_v1, %v2709_v15  ;;  %s6282_s16 = sld [smem:[#allocation2 + $0xe05]]  ;;  %v7613_v15 = vld [vmem:[#allocation155_spill] sm:$0xff]  ;;  %v7614_v2 = vld [vmem:[#allocation158_spill] sm:$0xff] }
 0x32d   : > { %v1831_v45 = vmul.f32 %v6024_v60, %v7611_v39  ;;  %v6276_v12 = vadd.f32 %v7612_v25, %v6135_v37  ;;  %v1857_v32 = vadd.f32 %v1855_v17, %v1790_v31  ;;  %v1864_v14 = vadd.f32 %v1862_v20, %v1805_v10 }
 0x32e   : > { %v7240_v63 = vstv %s6206_s21  ;;  %v7241_v7 = vstv %s6215_s26  ;;  %v2120_v4 = vadd.f32 %v2118_v36, %v2038_v24  ;;  %v2387_v41 = vadd.f32 %v2385_v48, %v2297_v61  ;;  %v7615_v24 = vld [vmem:[#allocation174_spill] sm:$0xff] }
 0x32f   : > { %v2751_v35 = vstv %s6219_s25  ;;  %v1707_v39 = vadd.f32 %v7613_v15, %v1595_v9  ;;  %v1734_v37 = vadd.f32 %v7614_v2, %v1622_v54  ;;  %v1953_v17 = vadd.f32 %v5283_v6, %v1857_v32  ;;  %v7616_v32 = vld [vmem:[#allocation160_spill] sm:$0xff]  ;;  %s6393_s25 = sld [smem:[#allocation2 + $0xe80]] }
 0x330   : > { %2730 = vrot.lane.b32.xlu2 %v2725_v5, %s4078_s7  ;;  %2728 = vrot.lane.b32.xlu1 %v2724_v43, %s4078_s7  ;;  %v2390_v31 = vstv %s6228_s0  ;;  %v1968_v10 = vadd.f32 %v5340_v38, %v1864_v14  ;;  %v2200_v5 = vadd.f32 %v5912_v50, %v2120_v4  ;;  %v2737_v54 = vstv %s6238_s28  ;;  %s6367_s28 = sld [smem:[#allocation2 + $0xc01]] }
 0x331   : > { %2716 = vrot.lane.b32.xlu0 %v2711_v57, %s4078_s7  ;;  %v1883_v6 = vadd.f32 %v7615_v24, %v1827_v44  ;;  %v2129_v36 = vmul.f32 %v6096_v19, %v7240_v63  ;;  %v2136_v61 = vmul.f32 %v6118_v23, %v7241_v7  ;;  %v2752_v38 = vmul.f32 %v6156_v46, %v2751_v35  ;;  %v6314_v57 = vld [vmem:[%s4155_s6 + $0x3a] sm:$0x7f]  ;;  %s6516_s0 = sld [smem:[#allocation2 + $0xe85]] }
 0x332   : > { %v2454_v20 = vpop.permute.xlu2 %2453  ;;  %v2065_v50 = vadd.f32 %v5384_v22, %v1953_v17  ;;  %v2080_v14 = vadd.f32 %v5448_v55, %v1968_v10  ;;  %v2312_v43 = vadd.f32 %v2308_v28, %v2200_v5  ;;  %v2392_v25 = vmul.f32 %v6314_v57, %v2390_v31  ;;  %v7618_v55 = vld [vmem:[#allocation150_spill] sm:$0xff]  ;;  %v7624_v7 = vld [vmem:[#allocation163_spill] sm:$0xff] }
 0x333   : > { %v6294_v9 = vadd.f32 %v2454_v20, %v2387_v41  ;;  %v2334_v48 = vpop.permute.xlu1 %2333  ;;  %v6311_v44 = vpop.permute.xlu0 %2321  ;;  %v1819_v4 = vadd.f32 %v7616_v32, %v1707_v39  ;;  %v1834_v41 = vadd.f32 %v6149_v33, %v1735_v51  ;;  %v7617_v15 = vstv %s5945_s29  ;;  %v7620_v39 = vld [vmem:[#allocation151_spill] sm:$0xff]  ;;  %v7621_v33 = vld [vmem:[#allocation152_spill] sm:$0xff]  ;;  %s6342_s29 = sld [smem:[#allocation2 + $0xe07]] }
 0x334   : > { %v1868_v2 = vmul.f32 %v6047_v26, %v7617_v15  ;;  %v2739_v22 = vmul.f32 %v6175_v1, %v2737_v54  ;;  %v1664_v28 = vadd.f32 %v7618_v55, %v6032_v53  ;;  %v1995_v17 = vadd.f32 %v5397_v34, %v1883_v6 }
 0x335   : > { %v7619_v20 = vstv %s6016_s14  ;;  %v2738_v5 = vmul.f32 %v6156_v46, %v2737_v54  ;;  %v1762_v24 = vadd.f32 %v7620_v39, %v1650_v42  ;;  %v6335_v51 = vadd.f32 %v7621_v33, %v6199_v58  ;;  %s6355_s14 = sld [smem:[#allocation2 + $0xe06]] }
 0x336   : > { %v2099_v10 = vmul.f32 %v6096_v19, %v7619_v20  ;;  %v1833_v32 = vadd.f32 %v1831_v45, %v1734_v37  ;;  %v7622_v15 = vstv %s5988_s4  ;;  %v2131_v53 = vadd.f32 %v2129_v36, %v2065_v50  ;;  %v7623_v20 = vld [vmem:[#allocation161_spill] sm:$0xff]  ;;  %s6348_s4 = sld [smem:[#allocation2 + $0xc06]] }
 0x337   : > { %v1838_v63 = vmul.f32 %v6047_v26, %v7622_v15  ;;  %v2138_v34 = vadd.f32 %v2136_v61, %v2080_v14  ;;  %v2394_v6 = vadd.f32 %v2392_v25, %v2312_v43  ;;  %v2765_v55 = vstv %s6282_s16  ;;  %s6575_s16 = sld [smem:[#allocation2 + $0xf81]] }
 0x338   : > { %2756 = vrot.lane.b32.xlu2 %v2752_v38, %s4078_s7  ;;  %v1749_v54 = vadd.f32 %v7623_v20, %v1637_v30  ;;  %v1897_v42 = vadd.f32 %v7624_v7, %v1833_v32  ;;  %v1870_v39 = vadd.f32 %v1868_v2, %v1819_v4  ;;  %v2104_v58 = vstv %s6287_s23  ;;  %2744 = vrot.lane.b32.xlu1 %v2739_v22, %s4078_s7  ;;  %v7625_v7 = vld [vmem:[#allocation177_spill] sm:$0xff]  ;;  %s6582_s23 = sld [smem:[#allocation2 + $0xd81]] }
 0x339   : > { %v2101_v37 = vadd.f32 %v2099_v10, %v1995_v17  ;;  %v2227_v36 = vadd.f32 %v5974_v18, %v2131_v53  ;;  %v2242_v61 = vadd.f32 %v6050_v16, %v2138_v34  ;;  %2742 = vrot.lane.b32.xlu0 %v2738_v5, %s4078_s7  ;;  %v1898_v38 = vadd.f32 %v7625_v7, %v1834_v41 }
 0x33a   : > { %v2470_v45 = vpop.permute.xlu2 %2469  ;;  %v1982_v50 = vadd.f32 %v5411_v49, %v1870_v39  ;;  %v2767_v43 = vmul.f32 %v6175_v1, %v2765_v55  ;;  %v2402_v25 = vstv %s6307_s1  ;;  %v2106_v49 = vmul.f32 %v6118_v23, %v2104_v58  ;;  %s6557_s1 = sld [smem:[#allocation2 + $0xf80]] }
 0x33b   : > { %v6353_v30 = vadd.f32 %v2470_v45, %v2394_v6  ;;  %v2350_v14 = vpop.permute.xlu1 %2349  ;;  %v2157_v18 = vadd.f32 %v5514_v13, %v2101_v37  ;;  %v2339_v16 = vadd.f32 %v2334_v48, %v2227_v36  ;;  %v6362_v2 = vpop.permute.xlu0 %2347  ;;  %v2403_v22 = vmul.f32 %v6251_v29, %v2402_v25  ;;  %v7631_v45 = vld [vmem:[#allocation180_spill] sm:$0xff] }
 0x33c   : > { %v2354_v4 = vadd.f32 %v2350_v14, %v2242_v61  ;;  %v2094_v41 = vadd.f32 %v5710_v47, %v1982_v50  ;;  %v7626_v17 = vstv %s6001_s8  ;;  %v2766_v13 = vmul.f32 %v6156_v46, %v2765_v55  ;;  %s6399_s8 = sld [smem:[#allocation2 + $0xa84]]  ;;  %v7632_v61 = vld [vmem:[#allocation18_spill] sm:$0xff]  ;;  %v7633_v14 = vld [vmem:[#allocation12_spill] sm:$0xff] }
 0x33d   : > { %v2142_v10 = vmul.f32 %v6118_v23, %v7626_v17  ;;  %v2010_v48 = vadd.f32 %v5469_v21, %v1898_v38  ;;  %v2269_v5 = vadd.f32 %v6123_v52, %v2157_v18  ;;  %v2753_v33 = vmul.f32 %v6175_v1, %v2751_v35  ;;  %v7627_v21 = vld [vmem:[#allocation154_spill] sm:$0xff] }
 0x33e   : > { %v2373_v32 = vmul.f32 %v6251_v29, %v2372_v8  ;;  %v1840_v15 = vadd.f32 %v1838_v63, %v1749_v54  ;;  %v1845_v53 = vadd.f32 %v6204_v62, %v1762_v24  ;;  %v2009_v47 = vadd.f32 %v5476_v59, %v1897_v42  ;;  %v7629_v8 = vld [vmem:[#allocation164_spill] sm:$0xff]  ;;  %v7630_v62 = vld [vmem:[#allocation166_spill] sm:$0xff] }
 0x33f   : > { %v2105_v34 = vmul.f32 %v6096_v19, %v2104_v58  ;;  %v1777_v6 = vadd.f32 %v7627_v21, %v6276_v12  ;;  %v7628_v52 = vstv %s6129_s22  ;;  %v2405_v55 = vadd.f32 %v2403_v22, %v2339_v16  ;;  %s6461_s22 = sld [smem:[#allocation2 + $0xc04]] }
 0x340   : > { %2772 = vrot.lane.b32.xlu2 %v2767_v43, %s4078_s7  ;;  %v1849_v35 = vmul.f32 %v6024_v60, %v7628_v52  ;;  %v2793_v20 = vstv %s6342_s29  ;;  %v1776_v63 = vadd.f32 %v7629_v8, %v1664_v28  ;;  %v1912_v59 = vadd.f32 %v7630_v62, %v1840_v15  ;;  %2770 = vrot.lane.b32.xlu1 %v2766_v13, %s4078_s7  ;;  %v7639_v8 = vld [vmem:[#allocation22_spill] sm:$0xff]  ;;  %s6595_s29 = sld [smem:[#allocation2 + $0xf83]] }
 0x341   : > { %v2144_v24 = vadd.f32 %v2142_v10, %v2094_v41  ;;  %v2408_v42 = vstv %s6348_s4  ;;  %v2108_v12 = vadd.f32 %v2106_v49, %v2010_v48  ;;  %2758 = vrot.lane.b32.xlu0 %v2753_v33, %s4078_s7  ;;  %v2375_v58 = vadd.f32 %v2373_v32, %v2269_v5  ;;  %v7635_v10 = vld [vmem:[#allocation16_spill] sm:$0xff]  ;;  %s6598_s4 = sld [smem:[#allocation2 + $0xd82]] }
 0x342   : > { %v2496_v54 = vpop.permute.xlu2 %2495  ;;  %v2779_v28 = vstv %s6355_s14  ;;  %v1925_v37 = vadd.f32 %v7631_v45, %v1845_v53  ;;  %v2107_v36 = vadd.f32 %v2105_v34, %v2009_v47  ;;  %v2794_v50 = vmul.f32 %v6156_v46, %v2793_v20  ;;  %v7636_v33 = vld [vmem:[#allocation8_spill] sm:$0xff]  ;;  %v7637_v34 = vld [vmem:[#allocation11_spill] sm:$0xff]  ;;  %s3854_s14 = sld [smem:[#allocation2 + $0xf82]] }
 0x343   : > { %v6402_v39 = vadd.f32 %v2496_v54, %v2405_v55  ;;  %v2256_v7 = vadd.f32 %v7632_v61, %v2144_v24  ;;  %v2426_v38 = vpop.permute.xlu1 %2425  ;;  %v2172_v43 = vadd.f32 %v7633_v14, %v2108_v12  ;;  %v2364_v16 = vpop.permute.xlu0 %2363  ;;  %v2410_v22 = vmul.f32 %v6314_v57, %v2408_v42  ;;  %v7640_v54 = vld [vmem:[#allocation26_spill] sm:$0xff]  ;;  %v7641_v12 = vld [vmem:[#allocation153_spill] sm:$0xff] }
 0x344   : > { %v6411_v18 = vadd.f32 %v2426_v38, %v2375_v58  ;;  %v2378_v49 = vstv %s6367_s28  ;;  %v7634_v41 = vstv %s6164_s3  ;;  %v2171_v13 = vadd.f32 %v7635_v10, %v2107_v36  ;;  %v7648_v10 = vld [vmem:[#allocation14_spill] sm:$0xff]  ;;  %s6522_s3 = sld [smem:[#allocation2 + $0xe84]] }
 0x345   : > { %v2117_v17 = vmul.f32 %v6096_v19, %v7634_v41  ;;  %v6421_v48 = vadd.f32 %v2364_v16, %v2256_v7  ;;  %v2781_v5 = vmul.f32 %v6175_v1, %v2779_v28  ;;  %v2037_v32 = vadd.f32 %v7636_v33, %v1925_v37  ;;  %v7647_v41 = vld [vmem:[#allocation182_spill] sm:$0xff]  ;;  %s6616_s28 = sld [smem:[#allocation2 + $0xf84]] }
 0x346   : > { %v2284_v15 = vadd.f32 %v6190_v0, %v2172_v43  ;;  %v2780_v53 = vmul.f32 %v6156_v46, %v2779_v28  ;;  %v2380_v47 = vmul.f32 %v6314_v57, %v2378_v49  ;;  %v2024_v21 = vadd.f32 %v7637_v34, %v1912_v59  ;;  %v7643_v59 = vld [vmem:[#allocation157_spill] sm:$0xff] }
 0x347   : > { %v7638_v52 = vstv %s6073_s17  ;;  %v2283_v62 = vadd.f32 %v7639_v8, %v2171_v13  ;;  %v2379_v24 = vmul.f32 %v6251_v29, %v2378_v49  ;;  %v1679_v58 = vadd.f32 %v7641_v12, %v7640_v54  ;;  %s6454_s17 = sld [smem:[#allocation2 + $0xe81]] }
 0x348   : > { %v2112_v55 = vmul.f32 %v6118_v23, %v7638_v52  ;;  %2798 = vrot.lane.b32.xlu2 %v2794_v50, %s4078_s7  ;;  %v7642_v0 = vstv %s6151_s30  ;;  %v2412_v45 = vadd.f32 %v2410_v22, %v2354_v4  ;;  %v2807_v37 = vstv %s6393_s25  ;;  %2786 = vrot.lane.b32.xlu1 %v2781_v5, %s4078_s7  ;;  %v7645_v22 = vld [vmem:[#allocation167_spill] sm:$0xff]  ;;  %s6484_s30 = sld [smem:[#allocation2 + $0xe83]] }
 0x349   : > { %v1861_v28 = vmul.f32 %v6024_v60, %v7642_v0  ;;  %v1804_v36 = vadd.f32 %v7643_v59, %v6335_v51  ;;  %v1851_v61 = vadd.f32 %v1849_v35, %v1776_v63  ;;  %v7644_v7 = vstv %s6137_s27  ;;  %2784 = vrot.lane.b32.xlu0 %v2780_v53, %s4078_s7  ;;  %s7653_s27 = smov 126   ;;  %s6624_s25 = sld [smem:[#allocation2 + $0xd84]] }
 0x34a   : > { %v1856_v38 = vmul.f32 %v6047_v26, %v7644_v7  ;;  %v1852_v50 = vadd.f32 %v6262_v11, %v1777_v6  ;;  %v2512_v14 = vpop.permute.xlu2 %2511  ;;  %v2119_v43 = vadd.f32 %v2117_v17, %v2037_v32  ;;  %v2122_v16 = vstv %s6399_s8  ;;  %v7646_v6 = vld [vmem:[#allocation169_spill] sm:$0xff]  ;;  %s6637_s8 = sld [smem:[#allocation2 + $0xf86]] }
 0x34b   : > { %v6452_v60 = vadd.f32 %v2512_v14, %v2412_v45  ;;  %v2382_v4 = vadd.f32 %v2380_v47, %v2284_v15  ;;  %v1791_v51 = vadd.f32 %v7645_v22, %v1679_v58  ;;  %v2114_v35 = vadd.f32 %v2112_v55, %v2024_v21  ;;  %v2442_v63 = vpop.permute.xlu1 %2441  ;;  %v2440_v33 = vpop.permute.xlu0 %2439  ;;  %v7649_v15 = vld [vmem:[#allocation20_spill] sm:$0xff]  ;;  %v7650_v21 = vld [vmem:[#allocation9_spill] sm:$0xff] }
 0x34c   : > { %v2381_v26 = vadd.f32 %v2379_v24, %v2283_v62  ;;  %v2809_v11 = vmul.f32 %v6175_v1, %v2807_v37  ;;  %v1939_v49 = vadd.f32 %v7646_v6, %v1851_v61  ;;  %v1940_v17 = vadd.f32 %v7647_v41, %v1852_v50  ;;  %v7651_v24 = vld [vmem:[#allocation10_spill] sm:$0xff]  ;;  %v7652_v58 = vld [vmem:[#allocation25_spill] sm:$0xff] }
 0x34d   : > { %v2199_v13 = vadd.f32 %v7648_v10, %v2119_v43  ;;  %v2446_v5 = vadd.f32 %v2442_v63, %v2382_v4  ;;  %v2124_v32 = vmul.f32 %v6118_v23, %v2122_v16  ;;  %v2186_v53 = vadd.f32 %v7649_v15, %v2114_v35  ;;  %v7655_v43 = vld [vmem:[#allocation172_spill] sm:$0xff]  ;;  %v7659_v41 = vld [vmem:[#allocation21_spill] sm:$0xff] }
 0x34e   : > { %v6465_v47 = vadd.f32 %v2440_v33, %v2381_v26  ;;  %v2808_v34 = vmul.f32 %v6156_v46, %v2807_v37  ;;  %v2052_v52 = vadd.f32 %v7650_v21, %v1940_v17  ;;  %v2795_v8 = vmul.f32 %v6175_v1, %v2793_v20  ;;  %v7660_v33 = vld [vmem:[#allocation13_spill] sm:$0xff] }
 0x34f   : > { %v2311_v55 = vadd.f32 %v6248_v27, %v2199_v13  ;;  %v2391_v62 = vmul.f32 %v6251_v29, %v2390_v31  ;;  %v2051_v54 = vadd.f32 %v7651_v24, %v1939_v49  ;;  %v2123_v12 = vmul.f32 %v6096_v19, %v2122_v16  ;;  %v7661_v21 = vld [vmem:[#allocation17_spill] sm:$0xff] }
 0x350   : > { %v2298_v0 = vadd.f32 %v7652_v58, %v2186_v53  ;;  %2814 = vrot.lane.b32.xlu2 %v2809_v11, %s7653_s27  ;;  %v7654_v45 = vstv %s6184_s5  ;;  %v2835_v59 = vstv %s6441_s24  ;;  %v1858_v27 = vadd.f32 %v1856_v38, %v1791_v51  ;;  %2812 = vrot.lane.b32.xlu1 %v2808_v34, %s7653_s27  ;;  %v7657_v51 = vld [vmem:[#allocation19_spill] sm:$0xff]  ;;  %s3799_s5 = sld [smem:[#allocation2 + $0xc07]] }
 0x351   : > { %v2386_v37 = vmul.f32 %v6314_v57, %v7654_v45  ;;  %v1863_v20 = vadd.f32 %v1861_v28, %v1804_v36  ;;  %v2126_v61 = vadd.f32 %v2124_v32, %v2052_v52  ;;  %2800 = vrot.lane.b32.xlu0 %v2795_v8, %s4078_s7  ;;  %v2393_v50 = vadd.f32 %v2391_v62, %v2311_v55  ;;  %v7656_v36 = vld [vmem:[#allocation183_spill] sm:$0xff]  ;;  %s6640_s24 = sld [smem:[#allocation2 + $0xd85]] }
 0x352   : > { %v2538_v31 = vpop.permute.xlu2 %2537  ;;  %v2821_v14 = vstv %s6454_s17  ;;  %v1954_v16 = vadd.f32 %v7655_v43, %v1858_v27  ;;  %v2125_v4 = vadd.f32 %v2123_v12, %v2051_v54  ;;  %v2836_v28 = vmul.f32 %v6156_v46, %v2835_v59  ;;  %s3857_s17 = sld [smem:[#allocation2 + $0xf85]] }
 0x353   : > { %v6489_v7 = vadd.f32 %v2538_v31, %v6411_v18  ;;  %v2468_v22 = vpop.permute.xlu1 %2467  ;;  %v2388_v35 = vadd.f32 %v2386_v37, %v2298_v0  ;;  %v1967_v38 = vadd.f32 %v7656_v36, %v1863_v20  ;;  %v2214_v63 = vadd.f32 %v7657_v51, %v2126_v61  ;;  %v2456_v11 = vpop.permute.xlu0 %2455  ;;  %v7664_v20 = vld [vmem:[#allocation15_spill] sm:$0xff] }
 0x354   : > { %v2473_v26 = vadd.f32 %v2468_v22, %v2393_v50  ;;  %v2396_v6 = vstv %s6461_s22  ;;  %v7658_v18 = vstv %s6215_s26  ;;  %v2213_v17 = vadd.f32 %v7659_v41, %v2125_v4  ;;  %s3841_s26 = sld [smem:[#allocation2 + $0xe87]] }
 0x355   : > { %v2135_v49 = vmul.f32 %v6096_v19, %v7658_v18  ;;  %v6501_v10 = vadd.f32 %v2456_v11, %v2388_v35  ;;  %v2823_v13 = vmul.f32 %v6175_v1, %v2821_v14  ;;  %v2079_v32 = vadd.f32 %v7660_v33, %v1967_v38  ;;  %v7663_v19 = vld [vmem:[#allocation24_spill] sm:$0xff]  ;;  %s3818_s22 = sld [smem:[#allocation2 + $0xd80]] }
 0x356   : > { %v2326_v15 = vadd.f32 %v6311_v44, %v2214_v63  ;;  %v2822_v53 = vmul.f32 %v6156_v46, %v2821_v14  ;;  %v2398_v34 = vmul.f32 %v6314_v57, %v2396_v6  ;;  %v2066_v52 = vadd.f32 %v7661_v21, %v1954_v16  ;;  %v7665_v14 = vld [vmem:[#allocation23_spill] sm:$0xff] }
 0x357   : > { %v7662_v55 = vstv %s6206_s21  ;;  %v2325_v62 = vadd.f32 %v7663_v19, %v2213_v17  ;;  %v2397_v24 = vmul.f32 %v6251_v29, %v2396_v6  ;;  %v2849_v54 = vstv %s6484_s30  ;;  %s6541_s21 = sld [smem:[#allocation2 + $0xe86]] }
 0x358   : > { %v2130_v8 = vmul.f32 %v6118_v23, %v7662_v55  ;;  %2840 = vrot.lane.b32.xlu2 %v2836_v28, %s7653_s27  ;;  %2828 = vrot.lane.b32.xlu1 %v2823_v13, %s7653_s27  ;;  %v2137_v12 = vadd.f32 %v2135_v49, %v2079_v32  ;;  %v2400_v0 = vadd.f32 %v2398_v34, %v2326_v15  ;;  %v2877_v38 = vstv %s6516_s0  ;;  %s6658_s30 = sld [smem:[#allocation2 + $0xf87]] }
 0x359   : > { %2826 = vrot.lane.b32.xlu0 %v2822_v53, %s7653_s27  ;;  %v2399_v37 = vadd.f32 %v2397_v24, %v2325_v62  ;;  %v2851_v27 = vmul.f32 %v6175_v1, %v2849_v54  ;;  %v2850_v16 = vmul.f32 %v6156_v46, %v2849_v54  ;;  %v2837_v22 = vmul.f32 %v6175_v1, %v2835_v59  ;;  %v6572_v62 = vld [vmem:[%s4155_s6 + $0x49] sm:$0xff]  ;;  %s6666_s0 = sld [smem:[#allocation2 + $0xd87]] }
 0x35a   : > { %v2554_v44 = vpop.permute.xlu2 %2553  ;;  %v2132_v23 = vadd.f32 %v2130_v8, %v2066_v52  ;;  %v2241_v31 = vadd.f32 %v7664_v20, %v2137_v12  ;;  %v2409_v35 = vmul.f32 %v6251_v29, %v2408_v42  ;;  %v2404_v36 = vmul.f32 %v6314_v57, %v2402_v25  ;;  %v6592_v20 = vld [vmem:[%s4155_s6 + $0x51] sm:$0x7f] }
 0x35b   : > { %v6520_v58 = vadd.f32 %v2554_v44, %v2446_v5  ;;  %v2484_v45 = vpop.permute.xlu1 %2483  ;;  %v2482_v50 = vpop.permute.xlu0 %2481  ;;  %v2863_v42 = vstv %s6522_s3  ;;  %v2878_v11 = vmul.f32 %v6156_v46, %v2877_v38  ;;  %v2414_v25 = vstv %s3799_s5  ;;  %s6681_s3 = sld [smem:[#allocation2 + $0x1001]] }
 0x35c   : > { %v2488_v61 = vadd.f32 %v2484_v45, %v2400_v0  ;;  %v2228_v43 = vadd.f32 %v7665_v14, %v2132_v23  ;;  %v6527_v5 = vadd.f32 %v2482_v50, %v2399_v37  ;;  %v2353_v4 = vadd.f32 %v6362_v2, %v2241_v31  ;;  %s6688_s5 = sld [smem:[#allocation2 + $0x1000]] }
 0x35d   : > { %v2865_v41 = vmul.f32 %v6175_v1, %v2863_v42  ;;  %v2864_v17 = vmul.f32 %v6156_v46, %v2863_v42  ;;  %v2416_v13 = vmul.f32 %v6314_v57, %v2414_v25  ;;  %v2891_v33 = vstv %s6541_s21  ;;  %s3821_s21 = sld [smem:[#allocation2 + $0xd83]] }
 0x35e   : > { %v2340_v28 = vadd.f32 %v6087_v40, %v2228_v43  ;;  %v2411_v59 = vadd.f32 %v2409_v35, %v2353_v4  ;;  %v2892_v8 = vmul.f32 %v6156_v46, %v2891_v33  ;;  %v2879_v19 = vmul.f32 %v6175_v1, %v2877_v38 }
 0x35f   : > { %v2418_v53 = vadd.f32 %v2416_v13, %v6421_v48  ;;  %v2969_v24 = vstv %s6557_s1  ;;  %v2905_v54 = vstv %s3841_s26  ;;  %v2983_v31 = vstv %s6575_s16  ;;  %s6708_s1 = sld [smem:[#allocation2 + $0x1002]] }
 0x360   : > { %2856 = vrot.lane.b32.xlu2 %v2851_v27, %s7653_s27  ;;  %2854 = vrot.lane.b32.xlu1 %v2850_v16, %s7653_s27  ;;  %v2406_v40 = vadd.f32 %v2404_v36, %v2340_v28  ;;  %v2970_v12 = vmul.f32 %v6572_v62, %v2969_v24  ;;  %v2907_v37 = vmul.f32 %v6175_v1, %v2905_v54  ;;  %v2653_v14 = vstv %s6582_s23  ;;  %s6726_s26 = sld [smem:[#allocation2 + $0x1004]] }
 0x361   : > { %2842 = vrot.lane.b32.xlu0 %v2837_v22, %s7653_s27  ;;  %v2906_v27 = vmul.f32 %v6156_v46, %v2905_v54  ;;  %v2985_v50 = vmul.f32 %v6592_v20, %v2983_v31  ;;  %v2654_v4 = vmul.f32 %v6156_v46, %v2653_v14  ;;  %v2984_v35 = vmul.f32 %v6572_v62, %v2983_v31  ;;  %s3863_s16 = sld [smem:[#allocation2 + $0x1003]] }
 0x362   : > { %v2580_v51 = vpop.permute.xlu2 %2579  ;;  %v2971_v28 = vmul.f32 %v6592_v20, %v2969_v24  ;;  %v3011_v38 = vstv %s6595_s29  ;;  %v3025_v13 = vstv %s6616_s28  ;;  %v2677_v24 = vstv %s6640_s24  ;;  %s3824_s23 = sld [smem:[#allocation2 + $0xd86]] }
 0x363   : > { %v6545_v2 = vadd.f32 %v2580_v51, %v2473_v26  ;;  %v2510_v63 = vpop.permute.xlu1 %2509  ;;  %v2498_v18 = vpop.permute.xlu0 %2497  ;;  %v2415_v26 = vmul.f32 %v6251_v29, %v2414_v25  ;;  %v2893_v29 = vmul.f32 %v6175_v1, %v2891_v33  ;;  %v2659_v51 = vstv %s6598_s4  ;;  %s6747_s29 = sld [smem:[#allocation2 + $0x1005]] }
 0x364   : > { %v2515_v6 = vadd.f32 %v2510_v63, %v2411_v59  ;;  %v6549_v49 = vadd.f32 %v2498_v18, %v2406_v40  ;;  %v2997_v59 = vstv %s3854_s14  ;;  %v3012_v63 = vmul.f32 %v6572_v62, %v3011_v38  ;;  %s6764_s4 = sld [smem:[#allocation2 + $0x1007]] }
 0x365   : > { %v2417_v34 = vadd.f32 %v2415_v26, %v6172_v3  ;;  %v2999_v25 = vmul.f32 %v6592_v20, %v2997_v59  ;;  %v3027_v33 = vmul.f32 %v6592_v20, %v3025_v13  ;;  %s3866_s14 = sld [smem:[#allocation2 + $0x1006]] }
 0x366   : > { %s6782_s28 = sld [smem:[#allocation2 + $0x1100]] }
 0x367   : > { %s6805_s24 = sld [smem:[#allocation2 + $0xf01]] }
 0x368   : > { %2882 = vrot.lane.b32.xlu2 %v2878_v11, %s7653_s27  ;;  %2870 = vrot.lane.b32.xlu1 %v2865_v41, %s7653_s27  ;;  %v2998_v41 = vmul.f32 %v6572_v62, %v2997_v59 }
 0x369   : > { %2868 = vrot.lane.b32.xlu0 %v2864_v17, %s7653_s27 }
 0x36a   : > { %v2596_v32 = vpop.permute.xlu2 %2595 }
 0x36b   : > { %v6561_v15 = vadd.f32 %v2596_v32, %v2488_v61  ;;  %v2526_v57 = vpop.permute.xlu1 %2525  ;;  %v2524_v52 = vpop.permute.xlu0 %2523  ;;  %v2671_v32 = vstv %s6624_s25  ;;  %s6790_s25 = sld [smem:[#allocation2 + $0xf00]] }
 0x36c   : > { %v2530_v21 = vadd.f32 %v2526_v57, %v2418_v53  ;;  %v6566_v55 = vadd.f32 %v2524_v52, %v2417_v34  ;;  %v2672_v34 = vmul.f32 %v6156_v46, %v2671_v32  ;;  %v3013_v52 = vmul.f32 %v6592_v20, %v3011_v38 }
 0x36d   : > { %v2689_v38 = vstv %s6666_s0  ;;  %s6850_s0 = sld [smem:[#allocation2 + $0xf04]] }
 0x370   : > { %2898 = vrot.lane.b32.xlu2 %v2893_v29, %s7653_s27  ;;  %2896 = vrot.lane.b32.xlu1 %v2892_v8, %s7653_s27 }
 0x371   : > { %2884 = vrot.lane.b32.xlu0 %v2879_v19, %s7653_s27  ;;  %v3053_v19 = vstv %s6637_s8  ;;  %s6802_s8 = sld [smem:[#allocation2 + $0x1102]] }
 0x372   : > { %v2622_v3 = vpop.permute.xlu2 %2621 }
 0x373   : > { %v6579_v48 = vadd.f32 %v2622_v3, %v2515_v6  ;;  %v2552_v44 = vpop.permute.xlu1 %2551  ;;  %v2540_v23 = vpop.permute.xlu0 %2539  ;;  %v2661_v6 = vmul.f32 %v6175_v1, %v2659_v51 }
 0x374   : > { %v2557_v0 = vadd.f32 %v2552_v44, %v6465_v47  ;;  %v6586_v45 = vadd.f32 %v2540_v23, %v6236_v56  ;;  %v3054_v44 = vmul.f32 %v6572_v62, %v3053_v19  ;;  %v2679_v23 = vmul.f32 %v6175_v1, %v2677_v24 }
 0x376   : > { %v2656_v36 = vadd.f32 %v2654_v4, %v2557_v0 }
 0x378   : > { %2974 = vrot.lane.b32.xlu2 %v2970_v12, %s4078_s7  ;;  %2912 = vrot.lane.b32.xlu1 %v2907_v37, %s7653_s27  ;;  %v2647_v37 = vstv %s3818_s22  ;;  %s6834_s22 = sld [smem:[#allocation2 + $0xf03]] }
 0x379   : > { %2910 = vrot.lane.b32.xlu0 %v2906_v27, %s7653_s27 }
 0x37a   : > { %v2638_v47 = vpop.permute.xlu2 %2637 }
 0x37b   : > { %v6601_v56 = vadd.f32 %v2638_v47, %v2530_v21  ;;  %v2568_v61 = vpop.permute.xlu1 %2567  ;;  %v2566_v16 = vpop.permute.xlu0 %2565  ;;  %v3026_v21 = vmul.f32 %v6572_v62, %v3025_v13 }
 0x37c   : > { %v2572_v43 = vadd.f32 %v2568_v61, %v6501_v10  ;;  %v6610_v22 = vadd.f32 %v2566_v16, %v6294_v9  ;;  %v2649_v61 = vmul.f32 %v6175_v1, %v2647_v37 }
 0x37e   : > { %v2663_v17 = vadd.f32 %v2661_v6, %v2572_v43  ;;  %v3067_v43 = vstv %s6658_s30  ;;  %v2651_v4 = vadd.f32 %v2649_v61, %v6586_v45  ;;  %v2678_v61 = vmul.f32 %v6156_v46, %v2677_v24  ;;  %s6847_s30 = sld [smem:[#allocation2 + $0x1105]] }
 0x37f   : > { %v3068_v45 = vmul.f32 %v6572_v62, %v3067_v43 }
 0x380   : > { %2990 = vrot.lane.b32.xlu2 %v2985_v50, %s4078_s7  ;;  %2988 = vrot.lane.b32.xlu1 %v2984_v35, %s4078_s7  ;;  %v2648_v50 = vmul.f32 %v6156_v46, %v2647_v37 }
 0x381   : > { %2976 = vrot.lane.b32.xlu0 %v2971_v28, %s4078_s7 }
 0x382   : > { %v2715_v10 = vpop.permute.xlu2 %2714  ;;  %v2650_v28 = vadd.f32 %v2648_v50, %v6489_v7  ;;  %v2655_v7 = vmul.f32 %v6175_v1, %v2653_v14 }
 0x383   : > { %v6621_v9 = vadd.f32 %v2715_v10, %v2656_v36  ;;  %v2594_v42 = vpop.permute.xlu1 %2593  ;;  %v2582_v11 = vpop.permute.xlu0 %2581  ;;  %v3069_v36 = vmul.f32 %v6592_v20, %v3067_v43 }
 0x384   : > { %v2599_v40 = vadd.f32 %v2594_v42, %v6527_v5  ;;  %v6631_v18 = vadd.f32 %v2582_v11, %v6353_v30  ;;  %v2690_v42 = vmul.f32 %v6156_v46, %v2689_v38  ;;  %v2660_v11 = vmul.f32 %v6156_v46, %v2659_v51 }
 0x385   : > { %v3081_v51 = vstv %s6688_s5  ;;  %s6868_s5 = sld [smem:[#allocation2 + $0x1106]] }
 0x386   : > { %v2674_v8 = vadd.f32 %v2672_v34, %v2599_v40  ;;  %v3055_v40 = vmul.f32 %v6592_v20, %v3053_v19  ;;  %v2662_v13 = vadd.f32 %v2660_v11, %v6610_v22  ;;  %v3109_v19 = vstv %s6708_s1  ;;  %s6889_s1 = sld [smem:[#allocation2 + $0x1180]] }
 0x388   : > { %3016 = vrot.lane.b32.xlu2 %v3012_v63, %s4078_s7  ;;  %3004 = vrot.lane.b32.xlu1 %v2999_v25, %s4078_s7  ;;  %v3095_v25 = vstv %s6681_s3  ;;  %s3882_s3 = sld [smem:[#allocation2 + $0x1104]] }
 0x389   : > { %3002 = vrot.lane.b32.xlu0 %v2998_v41, %s4078_s7  ;;  %v3096_v14 = vmul.f32 %v6572_v62, %v3095_v25 }
 0x38a   : > { %v2731_v5 = vpop.permute.xlu2 %2730 }
 0x38b   : > { %v6643_v30 = vadd.f32 %v2731_v5, %v2663_v17  ;;  %v2610_v26 = vpop.permute.xlu1 %2609  ;;  %v2608_v57 = vpop.permute.xlu0 %2607 }
 0x38c   : > { %v2614_v53 = vadd.f32 %v2610_v26, %v6549_v49  ;;  %v6652_v29 = vadd.f32 %v2608_v57, %v6402_v39  ;;  %v3039_v39 = vstv %s3857_s17  ;;  %v2657_v26 = vadd.f32 %v2655_v7, %v6520_v58  ;;  %s3879_s17 = sld [smem:[#allocation2 + $0x1101]] }
 0x38d   : > { %v3041_v31 = vmul.f32 %v6592_v20, %v3039_v39  ;;  %v3040_v47 = vmul.f32 %v6572_v62, %v3039_v39  ;;  %v2665_v57 = vstv %s3821_s21  ;;  %s6876_s21 = sld [smem:[#allocation2 + $0xf06]] }
 0x38e   : > { %v2666_v22 = vmul.f32 %v6156_v46, %v2665_v57  ;;  %v2680_v43 = vadd.f32 %v2678_v61, %v6652_v29  ;;  %v3123_v46 = vstv %s3863_s16  ;;  %v3990_v29 = vld [vmem:[%s4155_s6 + $0x48] sm:$0xff]  ;;  %s6897_s16 = sld [smem:[#allocation2 + $0x1107]] }
 0x390   : > { %3032 = vrot.lane.b32.xlu2 %v3027_v33, %s4078_s7  ;;  %3030 = vrot.lane.b32.xlu1 %v3026_v21, %s4078_s7  ;;  %v3083_v21 = vmul.f32 %v6592_v20, %v3081_v51 }
 0x391   : > { %3018 = vrot.lane.b32.xlu0 %v3013_v52, %s4078_s7  ;;  %v3082_v52 = vmul.f32 %v6572_v62, %v3081_v51 }
 0x392   : > { %v2757_v49 = vpop.permute.xlu2 %2756 }
 0x393   : > { %v6663_v3 = vadd.f32 %v2757_v49, %v2674_v8  ;;  %v2636_v54 = vpop.permute.xlu1 %2635  ;;  %v2624_v0 = vpop.permute.xlu0 %2623  ;;  %v2667_v8 = vmul.f32 %v6175_v1, %v2665_v57  ;;  %v3165_v57 = vstv %s3866_s14  ;;  %s3888_s14 = sld [smem:[#allocation2 + $0x1182]] }
 0x394   : > { %v2641_v12 = vadd.f32 %v2636_v54, %v6566_v55  ;;  %v6673_v27 = vadd.f32 %v2624_v0, %v6452_v60  ;;  %v2681_v55 = vadd.f32 %v2679_v23, %v2614_v53 }
 0x395   : > { %v2669_v39 = vadd.f32 %v2667_v8, %v6631_v18  ;;  %v2673_v18 = vmul.f32 %v6175_v1, %v2671_v32 }
 0x396   : > { %v2692_v6 = vadd.f32 %v2690_v42, %v2641_v12  ;;  %v3111_v12 = vmul.f32 %v6592_v20, %v3109_v19 }
 0x398   : > { %3058 = vrot.lane.b32.xlu2 %v3054_v44, %s4078_s7  ;;  %3046 = vrot.lane.b32.xlu1 %v3041_v31, %s4078_s7  ;;  %v2668_v44 = vadd.f32 %v2666_v22, %v6545_v2  ;;  %v3110_v31 = vmul.f32 %v6572_v62, %v3109_v19  ;;  %v3137_v2 = vstv %s6726_s26  ;;  %s6892_s26 = sld [smem:[#allocation2 + $0xf07]] }
 0x399   : > { %3044 = vrot.lane.b32.xlu0 %v3040_v47, %s4078_s7  ;;  %v3097_v47 = vmul.f32 %v6592_v20, %v3095_v25  ;;  %v3138_v32 = vmul.f32 %v6572_v62, %v3137_v2 }
 0x39a   : > { %v2773_v60 = vpop.permute.xlu2 %2772 }
 0x39b   : > { %v6685_v16 = vadd.f32 %v2773_v60, %v2681_v55  ;;  %v2703_v35 = vpop.permute.xlu1 %2702  ;;  %v2701_v59 = vpop.permute.xlu0 %2700  ;;  %v2675_v60 = vadd.f32 %v2673_v18, %v6561_v15 }
 0x39c   : > { %v2707_v10 = vadd.f32 %v2703_v35, %v2651_v4  ;;  %v6696_v63 = vadd.f32 %v2701_v59, %v2650_v28  ;;  %v2683_v28 = vstv %s3824_s23  ;;  %v3124_v59 = vmul.f32 %v6572_v62, %v3123_v46  ;;  %s3846_s23 = sld [smem:[#allocation2 + $0xf02]] }
 0x39d   : > { %v2685_v42 = vmul.f32 %v6175_v1, %v2683_v28 }
 0x39f   : > { %v2687_v7 = vadd.f32 %v2685_v42, %v6673_v27  ;;  %v3179_v27 = vstv %s6764_s4  ;;  %s6940_s4 = sld [smem:[#allocation2 + $0x1183]] }
 0x3a0   : > { %3074 = vrot.lane.b32.xlu2 %v3069_v36, %s4078_s7  ;;  %3072 = vrot.lane.b32.xlu1 %v3068_v45, %s4078_s7  ;;  %v2684_v45 = vmul.f32 %v3990_v29, %v2683_v28  ;;  %v3180_v8 = vmul.f32 %v6572_v62, %v3179_v27 }
 0x3a1   : > { %3060 = vrot.lane.b32.xlu0 %v3055_v40, %s4078_s7  ;;  %v3151_v40 = vstv %s6747_s29  ;;  %s6918_s29 = sld [smem:[#allocation2 + $0x1181]] }
 0x3a2   : > { %v2799_v41 = vpop.permute.xlu2 %2798  ;;  %v3153_v25 = vmul.f32 %v6592_v20, %v3151_v40 }
 0x3a3   : > { %v6712_v17 = vadd.f32 %v2799_v41, %v2692_v6  ;;  %v2729_v5 = vpop.permute.xlu1 %2728  ;;  %v2717_v53 = vpop.permute.xlu0 %2716  ;;  %v2686_v6 = vadd.f32 %v2684_v45, %v6579_v48 }
 0x3a4   : > { %v2734_v33 = vadd.f32 %v2729_v5, %v2662_v13  ;;  %v6718_v34 = vadd.f32 %v2717_v53, %v2657_v26  ;;  %v3152_v5 = vmul.f32 %v6572_v62, %v3151_v40  ;;  %v3139_v26 = vmul.f32 %v6592_v20, %v3137_v2 }
 0x3a8   : > { %3100 = vrot.lane.b32.xlu2 %v3096_v14, %s7653_s27  ;;  %3088 = vrot.lane.b32.xlu1 %v3083_v21, %s7653_s27  ;;  %v3991_v14 = vld [vmem:[%s4155_s6 + $0x50] sm:$0x7f] }
 0x3a9   : > { %3086 = vrot.lane.b32.xlu0 %v3082_v52, %s7653_s27 }
 0x3aa   : > { %v2815_v58 = vpop.permute.xlu2 %2814 }
 0x3ab   : > { %v6730_v49 = vadd.f32 %v2815_v58, %v2707_v10  ;;  %v2745_v54 = vpop.permute.xlu1 %2744  ;;  %v2743_v23 = vpop.permute.xlu0 %2742  ;;  %v3125_v10 = vmul.f32 %v6592_v20, %v3123_v46  ;;  %v3167_v58 = vmul.f32 %v6592_v20, %v3165_v57 }
 0x3ac   : > { %v2749_v0 = vadd.f32 %v2745_v54, %v2669_v39  ;;  %v6735_v37 = vadd.f32 %v2743_v23, %v2668_v44  ;;  %v3166_v39 = vmul.f32 %v6572_v62, %v3165_v57  ;;  %v6799_v54 = vld [vmem:[%s4155_s6 + $0x52] sm:$0x7f]  ;;  %v3299_v57 = vstv %s3882_s3  ;;  %s7066_s3 = sld [smem:[#allocation2 + $0x1085]] }
 0x3b0   : > { %3116 = vrot.lane.b32.xlu2 %v3111_v12, %s7653_s27  ;;  %3114 = vrot.lane.b32.xlu1 %v3110_v31, %s7653_s27  ;;  %v6811_v12 = vld [vmem:[%s4155_s6 + $0x4a] sm:$0xff]  ;;  %v2921_v31 = vstv %s6790_s25  ;;  %s6826_s6 = sld [smem:[#allocation2 + $0x1103]] }
 0x3b1   : > { %3102 = vrot.lane.b32.xlu0 %v3097_v47, %s7653_s27  ;;  %v2922_v18 = vmul.f32 %v6572_v62, %v2921_v31  ;;  %s6978_s25 = sld [smem:[#allocation2 + $0x1186]] }
 0x3b2   : > { %v2841_v50 = vpop.permute.xlu2 %2840 }
 0x3b3   : > { %v6751_v55 = vadd.f32 %v2841_v50, %v2734_v33  ;;  %v2771_v24 = vpop.permute.xlu1 %2770  ;;  %v2759_v35 = vpop.permute.xlu0 %2758  ;;  %v2691_v33 = vmul.f32 %v3991_v14, %v2689_v38 }
 0x3b4   : > { %v2776_v4 = vadd.f32 %v2771_v24, %v2680_v43  ;;  %v6756_v36 = vadd.f32 %v2759_v35, %v2675_v60  ;;  %v3181_v43 = vmul.f32 %v6592_v20, %v3179_v27  ;;  %v3271_v24 = vstv %s6802_s8  ;;  %s3891_s8 = sld [smem:[#allocation2 + $0x1185]] }
 0x3b5   : > { %v2693_v52 = vadd.f32 %v2691_v33, %v6601_v56  ;;  %v3243_v56 = vstv %s6782_s28  ;;  %v2927_v60 = vstv %s6805_s24  ;;  %v3272_v35 = vmul.f32 %v6811_v12, %v3271_v24  ;;  %s3849_s28 = sld [smem:[#allocation2 + $0xf05]] }
 0x3b6   : > { %v3245_v23 = vmul.f32 %v6799_v54, %v3243_v56  ;;  %v3244_v50 = vmul.f32 %v6811_v12, %v3243_v56  ;;  %v3273_v14 = vmul.f32 %v6799_v54, %v3271_v24  ;;  %v3313_v27 = vstv %s6847_s30  ;;  %s3893_s24 = sld [smem:[#allocation2 + $0x1187]] }
 0x3b7   : > { %v3300_v56 = vmul.f32 %v6811_v12, %v3299_v57 }
 0x3b8   : > { %3142 = vrot.lane.b32.xlu2 %v3138_v32, %s7653_s27  ;;  %3130 = vrot.lane.b32.xlu1 %v3125_v10, %s7653_s27  ;;  %v3257_v32 = vstv %s3879_s17  ;;  %s7012_s17 = sld [smem:[#allocation2 + $0x1080]] }
 0x3b9   : > { %3128 = vrot.lane.b32.xlu0 %v3124_v59, %s7653_s27  ;;  %v2929_v59 = vmul.f32 %v6592_v20, %v2927_v60  ;;  %v3259_v29 = vmul.f32 %v6799_v54, %v3257_v32  ;;  %v3258_v45 = vmul.f32 %v6811_v12, %v3257_v32  ;;  %v2928_v32 = vmul.f32 %v6572_v62, %v2927_v60 }
 0x3ba   : > { %v2857_v15 = vpop.permute.xlu2 %2856 }
 0x3bb   : > { %v6768_v11 = vadd.f32 %v2857_v15, %v2749_v0  ;;  %v2787_v1 = vpop.permute.xlu1 %2786  ;;  %v2785_v13 = vpop.permute.xlu0 %2784  ;;  %v3285_v15 = vstv %s6826_s6  ;;  %s7029_s6 = sld [smem:[#allocation2 + $0x1082]] }
 0x3bc   : > { %v2791_v41 = vadd.f32 %v2787_v1, %v2687_v7  ;;  %v6773_v51 = vadd.f32 %v2785_v13, %v2686_v6  ;;  %v3287_v1 = vmul.f32 %v6799_v54, %v3285_v15  ;;  %v2939_v6 = vstv %s6834_s22  ;;  %s150_s22 = sand.u32 1, %s4065_s10  }
 0x3bd   : > { %v2940_v13 = vmul.f32 %v6572_v62, %v2939_v6  ;;  %s3587_s30 = sshll.u32 %s150_s22, 7 }
 0x3c0   : > { %3158 = vrot.lane.b32.xlu2 %v3153_v25, %s7653_s27  ;;  %3156 = vrot.lane.b32.xlu1 %v3152_v5, %s7653_s27 }
 0x3c1   : > { %3144 = vrot.lane.b32.xlu0 %v3139_v26, %s7653_s27  ;;  %v3286_v26 = vmul.f32 %v6811_v12, %v3285_v15 }
 0x3c2   : > { %v2883_v48 = vpop.permute.xlu2 %2882 }
 0x3c3   : > { %v6786_v53 = vadd.f32 %v2883_v48, %v2776_v4  ;;  %v2813_v21 = vpop.permute.xlu1 %2812  ;;  %v2801_v22 = vpop.permute.xlu0 %2800  ;;  %v2945_v48 = vstv %s6850_s0  ;;  %s7051_s0 = scalar_lea.vmem [#allocation5], %s3587_s30 }
 0x3c4   : > { %v2818_v38 = vadd.f32 %v2813_v21, %v6696_v63  ;;  %v6793_v19 = vadd.f32 %v2801_v22, %v2693_v52  ;;  %v3314_v52 = vmul.f32 %v6811_v12, %v3313_v27  ;;  %v2947_v22 = vmul.f32 %v6592_v20, %v2945_v48 }
 0x3c6   : > { %v2924_v46 = vadd.f32 %v2922_v18, %v2818_v38 }
 0x3c8   : > { %3184 = vrot.lane.b32.xlu2 %v3180_v8, %s7653_s27  ;;  %3172 = vrot.lane.b32.xlu1 %v3167_v58, %s7653_s27 }
 0x3c9   : > { %3170 = vrot.lane.b32.xlu0 %v3166_v39, %s7653_s27  ;;  %v3301_v39 = vmul.f32 %v6799_v54, %v3299_v57 }
 0x3ca   : > { %v2899_v44 = vpop.permute.xlu2 %2898 }
 0x3cb   : > { %v6808_v63 = vadd.f32 %v2899_v44, %v2791_v41  ;;  %v2829_v0 = vpop.permute.xlu1 %2828  ;;  %v2827_v61 = vpop.permute.xlu0 %2826 }
 0x3cc   : > { %v2833_v47 = vadd.f32 %v2829_v0, %v6718_v34  ;;  %v6820_v2 = vadd.f32 %v2827_v61, %v6621_v9  ;;  %v3327_v0 = vstv %s6868_s5  ;;  %v2957_v61 = vstv %s6876_s21  ;;  %s7082_s5 = sld [smem:[#allocation2 + $0x1086]] }
 0x3cd   : > { %v3328_v24 = vmul.f32 %v6811_v12, %v3327_v0  ;;  %s7105_s21 = sld [smem:[#allocation2 + $0x1081]] }
 0x3ce   : > { %v2931_v40 = vadd.f32 %v2929_v59, %v2833_v47  ;;  %v3329_v47 = vmul.f32 %v6799_v54, %v3327_v0  ;;  %v2930_v60 = vadd.f32 %v2928_v32, %v6820_v2  ;;  %v3341_v59 = vstv %s6897_s16  ;;  %s3913_s16 = sshll.u32 %s4119_s13, 7  ;;  %s3504_s13 = sshll.u32 %s7051_s0, 4  ;;  %s3505_s13 = int_to_ptr.vmem [resolvable:$true] %s3504_s13 }
 0x3d0   : > { %3250 = vrot.lane.b32.xlu2 %v3245_v23, %s4078_s7  ;;  %3248 = vrot.lane.b32.xlu1 %v3244_v50, %s4078_s7 }
 0x3d1   : > { %3186 = vrot.lane.b32.xlu0 %v3181_v43, %s7653_s27  ;;  %v2958_v43 = vmul.f32 %v6572_v62, %v2957_v61 }
 0x3d2   : > { %v2975_v34 = vpop.permute.xlu2 %2974 }
 0x3d3   : > { %v6831_v9 = vadd.f32 %v2975_v34, %v2924_v46  ;;  %v2855_v4 = vpop.permute.xlu1 %2854  ;;  %v2843_v10 = vpop.permute.xlu0 %2842  ;;  %v3315_v34 = vmul.f32 %v6799_v54, %v3313_v27 }
 0x3d4   : > { %v2860_v28 = vadd.f32 %v2855_v4, %v6735_v37  ;;  %v6841_v42 = vadd.f32 %v2843_v10, %v6643_v30 }
 0x3d6   : > { %v2942_v33 = vadd.f32 %v2940_v13, %v2860_v28  ;;  %v2963_v28 = vstv %s6892_s26  ;;  %s7132_s26 = sld [smem:[#allocation2 + $0x1087]] }
 0x3d8   : > { %3276 = vrot.lane.b32.xlu2 %v3272_v35, %s4078_s7  ;;  %3264 = vrot.lane.b32.xlu1 %v3259_v29, %s4078_s7  ;;  %v3355_v35 = vstv %s6889_s1  ;;  %s7120_s1 = sld [smem:[#allocation2 + $0x1084]] }
 0x3d9   : > { %3262 = vrot.lane.b32.xlu0 %v3258_v45, %s4078_s7  ;;  %v3356_v45 = vmul.f32 %v6811_v12, %v3355_v35 }
 0x3da   : > { %v2991_v37 = vpop.permute.xlu2 %2990 }
 0x3db   : > { %v6853_v30 = vadd.f32 %v2991_v37, %v2931_v40  ;;  %v2871_v7 = vpop.permute.xlu1 %2870  ;;  %v2869_v41 = vpop.permute.xlu0 %2868  ;;  %v2965_v37 = vmul.f32 %v6592_v20, %v2963_v28 }
 0x3dc   : > { %v2875_v25 = vadd.f32 %v2871_v7, %v6756_v36  ;;  %v6862_v5 = vadd.f32 %v2869_v41, %v6663_v3  ;;  %v2933_v7 = vstv %s3846_s23  ;;  %v3342_v41 = vmul.f32 %v6811_v12, %v3341_v59 }
 0x3dd   : > { %v2935_v2 = vmul.f32 %v6592_v20, %v2933_v7 }
 0x3de   : > { %v2949_v44 = vadd.f32 %v2947_v22, %v2875_v25  ;;  %v3343_v25 = vmul.f32 %v6799_v54, %v3341_v59 }
 0x3df   : > { %v2937_v27 = vadd.f32 %v2935_v2, %v6841_v42  ;;  %v2941_v42 = vmul.f32 %v6592_v20, %v2939_v6 }
 0x3e0   : > { %3292 = vrot.lane.b32.xlu2 %v3287_v1, %s4078_s7  ;;  %3290 = vrot.lane.b32.xlu1 %v3286_v26, %s4078_s7  ;;  %v3369_v26 = vstv %s6918_s29 }
 0x3e1   : > { %3278 = vrot.lane.b32.xlu0 %v3273_v14, %s4078_s7  ;;  %v3370_v22 = vmul.f32 %v6811_v12, %v3369_v26 }
 0x3e2   : > { %v3017_v36 = vpop.permute.xlu2 %3016 }
 0x3e3   : > { %v6873_v3 = vadd.f32 %v3017_v36, %v2942_v33  ;;  %v2897_v21 = vpop.permute.xlu1 %2896  ;;  %v2885_v38 = vpop.permute.xlu0 %2884 }
 0x3e4   : > { %v2902_v8 = vadd.f32 %v2897_v21, %v6773_v51  ;;  %v6883_v58 = vadd.f32 %v2885_v38, %v6685_v16  ;;  %v3371_v21 = vmul.f32 %v6799_v54, %v3369_v26 }
 0x3e6   : > { %v2960_v4 = vadd.f32 %v2958_v43, %v2902_v8  ;;  %v2951_v43 = vstv %s3849_s28  ;;  %s3492_s28 = scalar_lea.sflag [#allocation3], %s150_s22 }
 0x3e8   : > { %3318 = vrot.lane.b32.xlu2 %v3314_v52, %s4078_s7  ;;  %3306 = vrot.lane.b32.xlu1 %v3301_v39, %s4078_s7  ;;  %v3357_v39 = vmul.f32 %v6799_v54, %v3355_v35 }
 0x3e9   : > { %3304 = vrot.lane.b32.xlu0 %v3300_v56, %s4078_s7  ;;  %v2946_v56 = vmul.f32 %v6572_v62, %v2945_v48 }
 0x3ea   : > { %v3033_v51 = vpop.permute.xlu2 %3032 }
 0x3eb   : > { %v6895_v16 = vadd.f32 %v3033_v51, %v2949_v44  ;;  %v2913_v23 = vpop.permute.xlu1 %2912  ;;  %v2911_v50 = vpop.permute.xlu0 %2910  ;;  %v2948_v51 = vadd.f32 %v2946_v56, %v6862_v5  ;;  %v2952_v5 = vmul.f32 %v6572_v62, %v2951_v43 }
 0x3ec   : > { %v2917_v18 = vadd.f32 %v2913_v23, %v6793_v19  ;;  %v6906_v46 = vadd.f32 %v2911_v50, %v6712_v17  ;;  %v2923_v19 = vmul.f32 %v6592_v20, %v2921_v31  ;;  %v3383_v23 = vstv %s3888_s14 }
 0x3ed   : > { %v3384_v32 = vmul.f32 %v6811_v12, %v3383_v23  ;;  %v2954_v59 = vadd.f32 %v2952_v5, %v6786_v53 }
 0x3ee   : > { %v2925_v31 = vadd.f32 %v2923_v19, %v6730_v49  ;;  %v2934_v49 = vmul.f32 %v6572_v62, %v2933_v7  ;;  %v2967_v13 = vadd.f32 %v2965_v37, %v2917_v18  ;;  %v2953_v19 = vmul.f32 %v6592_v20, %v2951_v43 }
 0x3ef   : > { %v2964_v7 = vmul.f32 %v6572_v62, %v2963_v28 }
 0x3f0   : > { %3334 = vrot.lane.b32.xlu2 %v3329_v47, %s4078_s7  ;;  %3332 = vrot.lane.b32.xlu1 %v3328_v24, %s4078_s7  ;;  %v2936_v57 = vadd.f32 %v2934_v49, %v6751_v55  ;;  %v3397_v55 = vstv %s6940_s4  ;;  %v2943_v47 = vadd.f32 %v2941_v42, %v6768_v11  ;;  %v3425_v49 = vstv %s3891_s8  ;;  %s3503_s4 = scalar_lea.hbm %s7220_s2, %s3913_s16 }
 0x3f1   : > { %3320 = vrot.lane.b32.xlu0 %v3315_v34, %s4078_s7  ;;  %v3398_v18 = vmul.f32 %v6811_v12, %v3397_v55  ;;  %v3385_v34 = vmul.f32 %v6799_v54, %v3383_v23  ;;  %v3399_v37 = vmul.f32 %v6799_v54, %v3397_v55  ;;  %v2966_v2 = vadd.f32 %v2964_v7, %v6906_v46  ;;  %s3506_s14 = sshll.u32 %s3503_s4, 4  ;;  %s3507_s14 = int_to_ptr.hbm [resolvable:$true] %s3506_s14 }
 0x3f2   : > { %v3059_v17 = vpop.permute.xlu2 %3058  ;;  %v3195_v42 = vstv %s7012_s17  ;;  %s4027_s17 = scalar_lea.hbm %s7220_s2, 256 }
 0x3f3   : > { %v6923_v10 = vadd.f32 %v3059_v17, %v2960_v4  ;;  %v2989_v29 = vpop.permute.xlu1 %2988  ;;  %v2977_v15 = vpop.permute.xlu0 %2976  ;;  %v2955_v17 = vadd.f32 %v2953_v19, %v6883_v58  ;;  %v2959_v58 = vmul.f32 %v6592_v20, %v2957_v61  ;;  %v3427_v61 = vmul.f32 %v6799_v54, %v3425_v49 }
 0x3f4   : > { %v2994_v40 = vadd.f32 %v2989_v29, %v2930_v60  ;;  %v6932_v1 = vadd.f32 %v2977_v15, %v2925_v31  ;;  %v3197_v23 = vmul.f32 %v6799_v54, %v3195_v42 }
 0x3f5   : > { %v2961_v62 = vadd.f32 %v2959_v58, %v6808_v63 }
 0x3f8   : > { %3360 = vrot.lane.b32.xlu2 %v3356_v45, %s7653_s27  ;;  %3348 = vrot.lane.b32.xlu1 %v3343_v25, %s4078_s7  ;;  %v3439_v25 = vstv %s6978_s25 }
 0x3f9   : > { %3346 = vrot.lane.b32.xlu0 %v3342_v41, %s4078_s7  ;;  %s6961_s7 = sld [smem:[#allocation2 + $0x1184]]  ;;  %v3440_v28 = vmul.f32 %v6811_v12, %v3439_v25 }
 0x3fa   : > { %v3075_v14 = vpop.permute.xlu2 %3074 }
 0x3fb   : > { %v6944_v33 = vadd.f32 %v3075_v14, %v2967_v13  ;;  %v3005_v36 = vpop.permute.xlu1 %3004  ;;  %v3003_v8 = vpop.permute.xlu0 %3002 }
 0x3fc   : > { %v3009_v52 = vadd.f32 %v3005_v36, %v2937_v27  ;;  %v6949_v38 = vadd.f32 %v3003_v8, %v2936_v57  ;;  %v3426_v27 = vmul.f32 %v6811_v12, %v3425_v49  ;;  %v3453_v36 = vstv %s3893_s24 }
 0x3ff   : > { %v3411_v4 = vstv %s6961_s7  ;;  %s4021_s7 = sshra.s32 %s3507_s14, 4  ;;  %s4022_s7 = int_to_ptr.hbm [resolvable:$true] %s4021_s7 }
 0x400   : > { %3376 = vrot.lane.b32.xlu2 %v3371_v21, %s7653_s27  ;;  %3374 = vrot.lane.b32.xlu1 %v3370_v22, %s7653_s27  ;;  %v3413_v29 = vmul.f32 %v6799_v54, %v3411_v4  ;;  %v3412_v15 = vmul.f32 %v6811_v12, %v3411_v4  ;;  %v3455_v21 = vmul.f32 %v6799_v54, %v3453_v36  ;;  %s4023_s25 = scalar_lea.hbm %s4022_s7, 128  ;;  %p4028_p3 = scmp.lt.s32.totalorder %s4022_s7, %s7220_s2 }
 0x401   : > { %3362 = vrot.lane.b32.xlu0 %v3357_v39, %s7653_s27  ;;  %v3454_v22 = vmul.f32 %v6811_v12, %v3453_v36  ;;  %v3441_v39 = vmul.f32 %v6799_v54, %v3439_v25  ;;  %p4024_p0 = scmp.ne.s32.totalorder %s4022_s7, %s4023_s25  ;;  %p4029_p4 = scmp.lt.s32.totalorder %s4027_s17, %s4023_s25 }
 0x402   : > { %v3101_v44 = vpop.permute.xlu2 %3100 }
 0x403   : > { %v6965_v0 = vadd.f32 %v3101_v44, %v2994_v40  ;;  %v3031_v48 = vpop.permute.xlu1 %3030  ;;  %v3019_v50 = vpop.permute.xlu0 %3018  ;;  %p4025_p1 = pnand %p4024_p0, %p4136_p5  ;;  %p4030_p7 = por %p4029_p4, %p4028_p3 }
 0x404   : > { %v3036_v6 = vadd.f32 %v3031_v48, %v2948_v51  ;;  %v6970_v24 = vadd.f32 %v3019_v50, %v2943_v47  ;;  %v3207_v50 = vstv %s7029_s6 }
 0x405   : > { %p4026_p2 = pneg %p4025_p1 }
 0x407   : > { %p4031_p8 = pnand %p4030_p7, %p4026_p2 }
 0x408   : > { %3402 = vrot.lane.b32.xlu2 %v3398_v18, %s7653_s27  ;;  %3390 = vrot.lane.b32.xlu1 %v3385_v34, %s7653_s27  ;;  %v3208_v34 = vmul.f32 %v6811_v12, %v3207_v50 }
 0x409   : > { %3388 = vrot.lane.b32.xlu0 %v3384_v32, %s7653_s27  ;;  %v4080_v32 = vmov 0.0  }
 0x40a   : > { %v3117_v11 = vpop.permute.xlu2 %3116  ;;  %159 = vst.msk [vmem:[%s7051_s0] sm:$0xff] %vm158_vm0, %v4080_v32 }
 0x40b   : > { %v6982_v35 = vadd.f32 %v3117_v11, %v3009_v52  ;;  %v3047_v60 = vpop.permute.xlu1 %3046  ;;  %v3045_v45 = vpop.permute.xlu0 %3044  ;;  %160 = vst.msk [vmem:[%s7051_s0 + $0x8] sm:$0xff] %vm158_vm0, %v4080_v32 }
 0x40c   : > { %v3051_v31 = vadd.f32 %v3047_v60, %v2955_v17  ;;  %v6987_v40 = vadd.f32 %v3045_v45, %v2954_v59  ;;  %161 = vst.msk [vmem:[%s7051_s0 + $0x10] sm:$0xff] %vm158_vm0, %v4080_v32 }
 0x40d   : > { %162 = vst.msk [vmem:[%s7051_s0 + $0x18] sm:$0xff] %vm158_vm0, %v4080_v32 }
 0x40e   : > { %163 = vst.msk [vmem:[%s7051_s0 + $0x20] sm:$0xff] %vm158_vm0, %v4080_v32 }
 0x40f   : > { %164 = vst.msk [vmem:[%s7051_s0 + $0x28] sm:$0xff] %vm158_vm0, %v4080_v32 }
 0x410   : > { %3418 = vrot.lane.b32.xlu2 %v3413_v29, %s7653_s27  ;;  %3416 = vrot.lane.b32.xlu1 %v3412_v15, %s7653_s27  ;;  %165 = vst.msk [vmem:[%s7051_s0 + $0x30] sm:$0xff] %vm158_vm0, %v4080_v32  ;;  %v3225_v15 = vstv %s7066_s3 }
 0x411   : > { %3404 = vrot.lane.b32.xlu0 %v3399_v37, %s7653_s27  ;;  %166 = vst.msk [vmem:[%s7051_s0 + $0x38] sm:$0xff] %vm158_vm0, %v4080_v32  ;;  %v3226_v58 = vmul.f32 %v6811_v12, %v3225_v15 }
 0x412   : > { %v3143_v53 = vpop.permute.xlu2 %3142  ;;  %167 = vst.msk [vmem:[%s7051_s0 + $0x40] sm:$0xff] %vm158_vm0, %v4080_v32 }
 0x413   : > { %v7001_v41 = vadd.f32 %v3143_v53, %v3036_v6  ;;  %v3073_v13 = vpop.permute.xlu1 %3072  ;;  %v3061_v14 = vpop.permute.xlu0 %3060  ;;  %168 = vst.msk [vmem:[%s7051_s0 + $0x48] sm:$0xff] %vm158_vm0, %v4080_v32 }
 0x414   : > { %v3078_v26 = vadd.f32 %v3073_v13, %v2966_v2  ;;  %v7006_v20 = vadd.f32 %v3061_v14, %v2961_v62  ;;  %169 = vst.msk [vmem:[%s7051_s0 + $0x50] sm:$0xff] %vm158_vm0, %v4080_v32  ;;  %v3231_v2 = vstv %s7082_s5 }
 0x415   : > { %170 = vst.msk [vmem:[%s7051_s0 + $0x58] sm:$0xff] %vm158_vm0, %v4080_v32 }
 0x416   : > { %171 = vst.msk [vmem:[%s7051_s0 + $0x60] sm:$0xff] %vm158_vm0, %v4080_v32 }
 0x417   : > { %172 = vst.msk [vmem:[%s7051_s0 + $0x68] sm:$0xff] %vm158_vm0, %v4080_v32 }
 0x418   : > { %3444 = vrot.lane.b32.xlu2 %v3440_v28, %s7653_s27  ;;  %3432 = vrot.lane.b32.xlu1 %v3427_v61, %s7653_s27  ;;  %173 = vst.msk [vmem:[%s7051_s0 + $0x70] sm:$0xff] %vm158_vm0, %v4080_v32  ;;  %v3233_v28 = vmul.f32 %v6799_v54, %v3231_v2  ;;  %v3196_v61 = vmul.f32 %v6811_v12, %v3195_v42 }
 0x419   : > { %3430 = vrot.lane.b32.xlu0 %v3426_v27, %s7653_s27  ;;  %174 = vst.msk [vmem:[%s7051_s0 + $0x78] sm:$0xff] %vm158_vm0, %v4080_v32  ;;  %v3219_v32 = vstv %s7120_s1 }
 0x41a   : > { %v3159_v46 = vpop.permute.xlu2 %3158 }
 0x41b   : > { %v7015_v63 = vadd.f32 %v3159_v46, %v3051_v31  ;;  %v3089_v57 = vpop.permute.xlu1 %3088  ;;  %v7019_v8 = vpop.permute.xlu0 %3086 }
 0x41c   : > { %v3093_v52 = vadd.f32 %v3089_v57, %v6932_v1 }
 0x41e   : > { %v3199_v48 = vadd.f32 %v3197_v23, %v3093_v52  ;;  %v3201_v52 = vstv %s7105_s21 }
 0x420   : > { %3460 = vrot.lane.b32.xlu2 %v3455_v21, %s7653_s27  ;;  %3458 = vrot.lane.b32.xlu1 %v3454_v22, %s7653_s27 }
 0x421   : > { %3446 = vrot.lane.b32.xlu0 %v3441_v39, %s7653_s27  ;;  %s7040_s27 = sld [smem:[#allocation2 + $0x1083]] }
 0x422   : > { %v3185_v56 = vpop.permute.xlu2 %3184 }
 0x423   : > { %v7027_v55 = vadd.f32 %v3185_v56, %v3078_v26  ;;  %v3115_v44 = vpop.permute.xlu1 %3114  ;;  %v7032_v51 = vpop.permute.xlu0 %3102  ;;  %v3203_v56 = vmul.f32 %v6799_v54, %v3201_v52 }
 0x424   : > { %v3120_v1 = vadd.f32 %v3115_v44, %v6949_v38  ;;  %v3107_v39 = vadd.f32 %v7032_v51, %v6853_v30 }
 0x426   : > { %v3205_v42 = vadd.f32 %v3203_v56, %v3107_v39  ;;  %v3220_v39 = vmul.f32 %v6811_v12, %v3219_v32 }
 0x427   : > { %v3213_v5 = vstv %s7040_s27 }
 0x428   : > { %v3215_v59 = vmul.f32 %v6799_v54, %v3213_v5  ;;  %v3214_v30 = vmul.f32 %v6811_v12, %v3213_v5 }
 0x42a   : > { %v3251_v47 = vpop.permute.xlu2 %3250 }
 0x42b   : > { %v7042_v18 = vadd.f32 %v3251_v47, %v3199_v48  ;;  %v3131_v6 = vpop.permute.xlu1 %3130  ;;  %v7046_v38 = vpop.permute.xlu0 %3128 }
 0x42c   : > { %v3135_v43 = vadd.f32 %v3131_v6, %v6970_v24  ;;  %v3210_v24 = vadd.f32 %v3208_v34, %v3120_v1  ;;  %v3134_v48 = vadd.f32 %v7046_v38, %v6873_v3 }
 0x42e   : > { %v3217_v29 = vadd.f32 %v3215_v59, %v3135_v43  ;;  %v3216_v43 = vadd.f32 %v3214_v30, %v3134_v48 }
 0x432   : > { %v3277_v19 = vpop.permute.xlu2 %3276 }
 0x433   : > { %v7062_v4 = vadd.f32 %v3277_v19, %v3210_v24  ;;  %v3157_v11 = vpop.permute.xlu1 %3156  ;;  %v3145_v60 = vpop.permute.xlu0 %3144 }
 0x434   : > { %v3162_v17 = vadd.f32 %v3157_v11, %v6987_v40  ;;  %v3149_v19 = vadd.f32 %v3145_v60, %v6895_v16  ;;  %v3221_v11 = vmul.f32 %v6799_v54, %v3219_v32  ;;  %v3202_v60 = vmul.f32 %v6811_v12, %v3201_v52 }
 0x436   : > { %v3228_v25 = vadd.f32 %v3226_v58, %v3162_v17  ;;  %v3223_v38 = vadd.f32 %v3221_v11, %v3149_v19 }
 0x43a   : > { %v3293_v31 = vpop.permute.xlu2 %3292 }
 0x43b   : > { %v7086_v45 = vadd.f32 %v3293_v31, %v3217_v29  ;;  %v3173_v40 = vpop.permute.xlu1 %3172  ;;  %v3171_v7 = vpop.permute.xlu0 %3170 }
 0x43c   : > { %v3177_v37 = vadd.f32 %v3173_v40, %v7006_v20  ;;  %v3092_v20 = vadd.f32 %v7019_v8, %v6831_v9  ;;  %v3176_v31 = vadd.f32 %v3171_v7, %v6923_v10  ;;  %v3232_v40 = vmul.f32 %v6811_v12, %v3231_v2 }
 0x43e   : > { %v3235_v26 = vadd.f32 %v3233_v28, %v3177_v37  ;;  %v3198_v57 = vadd.f32 %v3196_v61, %v3092_v20  ;;  %v3237_v28 = vstv %s7132_s26  ;;  %v3209_v61 = vmul.f32 %v6799_v54, %v3207_v50 }
 0x43f   : > { %v3239_v2 = vmul.f32 %v6799_v54, %v3237_v28 }
 0x442   : > { %v3319_v53 = vpop.permute.xlu2 %3318 }
 0x443   : > { %v7102_v49 = vadd.f32 %v3319_v53, %v3228_v25  ;;  %v3249_v13 = vpop.permute.xlu1 %3248  ;;  %v3187_v62 = vpop.permute.xlu0 %3186  ;;  %v3234_v25 = vadd.f32 %v3232_v40, %v3176_v31  ;;  %v3204_v53 = vadd.f32 %v3202_v60, %v6965_v0 }
 0x444   : > { %v3254_v21 = vadd.f32 %v3249_v13, %v3198_v57  ;;  %v3191_v10 = vadd.f32 %v3187_v62, %v6944_v33  ;;  %v3211_v33 = vadd.f32 %v3209_v61, %v6982_v35  ;;  %v3222_v35 = vadd.f32 %v3220_v39, %v7001_v41 }
 0x44a   : > { %v3335_v14 = vpop.permute.xlu2 %3334 }
 0x44b   : > { %v7112_v27 = vadd.f32 %v3335_v14, %v3235_v26  ;;  %v3265_v36 = vpop.permute.xlu1 %3264  ;;  %v3263_v46 = vpop.permute.xlu0 %3262 }
 0x44c   : > { %v3269_v1 = vadd.f32 %v3265_v36, %v3205_v42  ;;  %v3268_v7 = vadd.f32 %v3263_v46, %v3204_v53  ;;  %v3227_v42 = vmul.f32 %v6799_v54, %v3225_v15 }
 0x452   : > { %v3361_v22 = vpop.permute.xlu2 %3360 }
 0x453   : > { %v3366_v44 = vadd.f32 %v3361_v22, %v3254_v21  ;;  %v3291_v9 = vpop.permute.xlu1 %3290  ;;  %v3279_v8 = vpop.permute.xlu0 %3278  ;;  %v3241_v21 = vadd.f32 %v3239_v2, %v3191_v10 }
 0x454   : > { %v3296_v34 = vadd.f32 %v3291_v9, %v3216_v43  ;;  %v3283_v52 = vadd.f32 %v3279_v8, %v3211_v33 }
 0x455   : > { %3467 = vst.msk [vmem:[%s7051_s0] sm:$0xff] %vm3466_vm1, %v3366_v44 }
 0x45a   : > { %v3377_v23 = vpop.permute.xlu2 %3376 }
 0x45b   : > { %v3381_v51 = vadd.f32 %v3377_v23, %v3269_v1  ;;  %v3307_v47 = vpop.permute.xlu1 %3306  ;;  %v3305_v6 = vpop.permute.xlu0 %3304 }
 0x45c   : > { %v3311_v5 = vadd.f32 %v3307_v47, %v3223_v38  ;;  %v3310_v9 = vadd.f32 %v3305_v6, %v3222_v35 }
 0x45d   : > { %3895 = vst.msk [vmem:[%s7051_s0 + $0x18] sm:$0x7f] %vm3468_vm2, %v3381_v51  ;;  %v3238_v51 = vmul.f32 %v6811_v12, %v3237_v28 }
 0x462   : > { %v3403_v24 = vpop.permute.xlu2 %3402 }
 0x463   : > { %v3408_v17 = vadd.f32 %v3403_v24, %v3296_v34  ;;  %v3333_v59 = vpop.permute.xlu1 %3332  ;;  %v3321_v3 = vpop.permute.xlu0 %3320 }
 0x464   : > { %v3338_v13 = vadd.f32 %v3333_v59, %v3234_v25 }
 0x465   : > { %3898 = vst.msk [vmem:[%s7051_s0 + $0x30] sm:$0xff] %vm3466_vm1, %v3408_v17 }
 0x46a   : > { %v3419_v29 = vpop.permute.xlu2 %3418 }
 0x46b   : > { %v3423_v37 = vadd.f32 %v3419_v29, %v3311_v5  ;;  %v3349_v16 = vpop.permute.xlu1 %3348  ;;  %v3347_v58 = vpop.permute.xlu0 %3346 }
 0x46c   : > { %v3353_v62 = vadd.f32 %v3349_v16, %v3241_v21 }
 0x46d   : > { %3901 = vst.msk [vmem:[%s7051_s0 + $0x48] sm:$0x7f] %vm3468_vm2, %v3423_v37 }
 0x472   : > { %v3445_v26 = vpop.permute.xlu2 %3444 }
 0x473   : > { %v3450_v14 = vadd.f32 %v3445_v26, %v3338_v13  ;;  %v3375_v20 = vpop.permute.xlu1 %3374  ;;  %v3363_v57 = vpop.permute.xlu0 %3362 }
 0x474   : > { %v3380_v36 = vadd.f32 %v3375_v20, %v3268_v7  ;;  %v3367_v0 = vadd.f32 %v3363_v57, %v7042_v18 }
 0x475   : > { %3904 = vst.msk [vmem:[%s7051_s0 + $0x60] sm:$0xff] %vm3466_vm1, %v3450_v14 }
 0x476   : > { %3894 = vst.msk [vmem:[%s7051_s0 + $0x10] sm:$0xff] %vm3466_vm1, %v3380_v36 }
 0x477   : > { %3469 = vst.msk [vmem:[%s7051_s0 + $0x8] sm:$0x7f] %vm3468_vm2, %v3367_v0 }
 0x47a   : > { %v3461_v46 = vpop.permute.xlu2 %3460 }
 0x47b   : > { %v3465_v50 = vadd.f32 %v3461_v46, %v3353_v62  ;;  %v3391_v22 = vpop.permute.xlu1 %3390  ;;  %v3389_v56 = vpop.permute.xlu0 %3388 }
 0x47c   : > { %v3395_v18 = vadd.f32 %v3391_v22, %v3283_v52  ;;  %v3394_v44 = vadd.f32 %v3389_v56, %v7062_v4  ;;  %v3229_v4 = vadd.f32 %v3227_v42, %v7015_v63  ;;  %v3240_v63 = vadd.f32 %v3238_v51, %v7027_v55 }
 0x47d   : > { %3907 = vst.msk [vmem:[%s7051_s0 + $0x78] sm:$0x7f] %vm3468_vm2, %v3465_v50 }
 0x47e   : > { %3897 = vst.msk [vmem:[%s7051_s0 + $0x28] sm:$0x7f] %vm3468_vm2, %v3395_v18  ;;  %v3325_v30 = vadd.f32 %v3321_v3, %v3229_v4  ;;  %v3352_v12 = vadd.f32 %v3347_v58, %v3240_v63 }
 0x47f   : > { %3896 = vst.msk [vmem:[%s7051_s0 + $0x20] sm:$0xff] %vm3466_vm1, %v3394_v44 }
 0x483   : > { %v3417_v8 = vpop.permute.xlu1 %3416  ;;  %v3405_v23 = vpop.permute.xlu0 %3404 }
 0x484   : > { %v3422_v1 = vadd.f32 %v3417_v8, %v3310_v9  ;;  %v3409_v48 = vadd.f32 %v3405_v23, %v7086_v45 }
 0x486   : > { %3900 = vst.msk [vmem:[%s7051_s0 + $0x40] sm:$0xff] %vm3466_vm1, %v3422_v1 }
 0x487   : > { %3899 = vst.msk [vmem:[%s7051_s0 + $0x38] sm:$0x7f] %vm3468_vm2, %v3409_v48 }
 0x48b   : > { %v3433_v41 = vpop.permute.xlu1 %3432  ;;  %v3431_v54 = vpop.permute.xlu0 %3430 }
 0x48c   : > { %v3437_v47 = vadd.f32 %v3433_v41, %v3325_v30  ;;  %v3436_v15 = vadd.f32 %v3431_v54, %v7102_v49 }
 0x48e   : > { %3903 = vst.msk [vmem:[%s7051_s0 + $0x58] sm:$0x7f] %vm3468_vm2, %v3437_v47 }
 0x48f   : > { %3902 = vst.msk [vmem:[%s7051_s0 + $0x50] sm:$0xff] %vm3466_vm1, %v3436_v15 }
 0x493   : > { %v3459_v45 = vpop.permute.xlu1 %3458  ;;  %v3447_v43 = vpop.permute.xlu0 %3446 }
 0x494   : > { %v3464_v6 = vadd.f32 %v3459_v45, %v3352_v12  ;;  %v3451_v49 = vadd.f32 %v3447_v43, %v7112_v27 }
 0x496   : > { %3906 = vst.msk [vmem:[%s7051_s0 + $0x70] sm:$0xff] %vm3466_vm1, %v3464_v6 }
 0x497   : > { %3905 = vst.msk [vmem:[%s7051_s0 + $0x68] sm:$0x7f] %vm3468_vm2, %v3451_v49 }
 0x498   : > { %4034 = shalt.err (!%p4031_p8)
}
 0x499   : > { %s4081_s22 = smov 128   ;;  %s4082_s27 = smov 8  }
 0x49a   : > { %3919 = dma.vmem_to_hbm [thread:$0]  (%p4136_p5), %s3505_s13, 2048, %s3507_s14, %s3492_s28, %s4081_s22, %s4081_s22, %s4082_s27  }
 0x49b PF: > { %p3931_p9 = scmp.ge.s32.totalorder %s4073_s12, 2  ;;  %s3521_s0 = sand.u32 1, %s4061_s9  }
 0x49c   : > { %s3522_s3 = scalar_lea.sflag [#allocation3], %s3521_s0 }
 0x49d   : > { %p3926_p10 = pnand %p3931_p9, %p4140_p6 }
 0x49f   : > { %p3927_p11 = pneg %p3926_p10 }
 0x4a1   : > { %4056 = dma.done.wait (%p3927_p11), %s3522_s3, 2048  }
 0x4a2   : > { %4058 = vsyncadd (%p3927_p11), %s3522_s3, 4294965248  ;;  %p13_p12 = scmp.ge.s32.totalorder %s4123_s15, 4   ;;  %s7666_s9 = smov %s4065_s10 }
 0x4a3   : > { %s7667_s10 = smov %s4069_s11  ;;  %s7668_s11 = smov %s4134_s18 }
 0x4a4   : > { %s7669_s12 = smov %s4123_s15  ;;  %15 = sbr.rel (!%p13_p12) target bundleno = 7 (0x7), region = 78 }
 0x4a9   :  { %3528 = vsyncpa [#allocation3], 1 }
 0x4aa   :  { %3530 = vsyncpa [#allocation3 + $0x1], 1 }
 0x4ab   :  { %3531 = vsyncpa [#allocation4], 1 }
 0x4ac   :  { %3533 = vsyncpa [#allocation4 + $0x1], 1 }

</bundles_post_ra>
